<compile_context>
chip_gen: v7x
topology: tpu7x:2x2x1
jax: 0.10.0
libtpu: 0.0.40
codegen_flags: <defaults>
</compile_context>

<pallas_src>
import math
from functools import partial

import numpy as np
import jax
import jax.numpy as jnp
from jax.experimental import pallas as pl
from jax.experimental.pallas import tpu as pltpu


# ----------------------------- pallas plumbing -----------------------------

def _zero_map(ndim):
    return lambda i: (0,) * ndim


def _pcall(kernel, out_sds, *args):
    """Run `kernel` once with every operand as a full-array VMEM block."""
    in_specs = [pl.BlockSpec(a.shape, _zero_map(a.ndim)) for a in args]
    out_specs = pl.BlockSpec(out_sds.shape, _zero_map(len(out_sds.shape)))
    return pl.pallas_call(
        kernel,
        grid=(1,),
        in_specs=in_specs,
        out_specs=out_specs,
        out_shape=out_sds,
        compiler_params=pltpu.CompilerParams(
            dimension_semantics=("arbitrary",),
            vmem_limit_bytes=32 * 1024 * 1024,
        ),
    )(*args)


# ----------------------------- math helpers --------------------------------

def _erf(x):
    # Abramowitz & Stegun 7.1.26 polynomial approximation (|err| < 1.5e-7),
    # reproduces PyTorch's exact (erf-based) GELU with supported ops.
    a1, a2, a3, a4, a5 = (0.254829592, -0.284496736, 1.421413741,
                          -1.453152027, 1.061405429)
    p = 0.3275911
    s = jnp.where(x < 0.0, -1.0, 1.0)
    ax = jnp.abs(x)
    t = 1.0 / (1.0 + p * ax)
    poly = ((((a5 * t + a4) * t + a3) * t + a2) * t + a1) * t
    return s * (1.0 - poly * jnp.exp(-ax * ax))


def _gelu_exact(x):
    return 0.5 * x * (1.0 + _erf(x * 0.7071067811865476))


def _layernorm(x, g, b, eps=1e-5):
    # PyTorch LayerNorm: biased variance, eps=1e-5.
    mean = jnp.mean(x, axis=-1, keepdims=True)
    xc = x - mean
    var = jnp.mean(xc * xc, axis=-1, keepdims=True)
    return xc * jax.lax.rsqrt(var + eps) * g + b


# ----------------------------- fused Pallas kernels -------------------------

def _patch_embed_kernel(x_ref, g1_ref, b1_ref, w_ref, bias_ref, g2_ref, b2_ref,
                        pos_ref, o_ref):
    # LN -> Linear -> LN -> + pos_embedding, all in one kernel.
    x = _layernorm(x_ref[...], g1_ref[...], b1_ref[...])
    y = jnp.dot(x.astype(jnp.bfloat16), w_ref[...],
                preferred_element_type=jnp.float32) + bias_ref[...]
    y = _layernorm(y, g2_ref[...], b2_ref[...])
    o_ref[...] = y + pos_ref[...]


def _encoder_layer_kernel(t_ref, bias_mask_ref, wqkv_ref, bqkv_ref, wo_ref, bo_ref,
                          g1_ref, beta1_ref, w1_ref, b1_ref, w2_ref, b2_ref,
                          g2_ref, beta2_ref, o_ref, *, num_heads):
    f32 = jnp.float32
    bf16 = jnp.bfloat16
    t = t_ref[...]                              # (M, D) f32, M = N*P tokens
    M, D = t.shape
    Hd = D // num_heads
    scale = 1.0 / math.sqrt(Hd)

    # ---- fused QKV projection (bf16 MXU, f32 accumulate) ----
    qkv = jnp.dot(t.astype(bf16), wqkv_ref[...],
                  preferred_element_type=f32) + bqkv_ref[...]
    q = qkv[:, :D] * scale                      # 128-aligned lane slices
    k = qkv[:, D:2 * D]
    v = qkv[:, 2 * D:]
    k_bf = k.astype(bf16)

    # ---- multi-head attention via lane-masked full-D matmuls ----
    # Head h owns lanes [h*Hd, (h+1)*Hd).  Masking q restricts the score contraction
    # to head h; masking v restricts the written lanes to head h, so the summed
    # context comes out directly as a lane-dense (M, D) slab (no reshape/transpose,
    # no sub-128 slicing or concatenation in-kernel).
    lane = jax.lax.broadcasted_iota(jnp.int32, (M, D), 1)
    bias = bias_mask_ref[...]                   # (M, M) additive same-patch mask
    ctx = jnp.zeros((M, D), f32)
    for h in range(num_heads):
        m_h = jnp.where((lane >= h * Hd) & (lane < (h + 1) * Hd), 1.0, 0.0)
        s = jax.lax.dot_general((q * m_h).astype(bf16), k_bf,
                                (((1,), (1,)), ((), ())),
                                preferred_element_type=f32) + bias
        s_max = jnp.max(s, axis=-1, keepdims=True)
        p = jnp.exp(s - s_max)
        p = p * pl.reciprocal(jnp.sum(p, axis=-1, keepdims=True), approx=True)
        ctx = ctx + jnp.dot(p.astype(bf16), (v * m_h).astype(bf16),
                            preferred_element_type=f32)

    attn = jnp.dot(ctx.astype(bf16), wo_ref[...],
                   preferred_element_type=f32) + bo_ref[...]

    # ---- post-norm residual blocks (norm_first=False) ----
    h1 = _layernorm(t + attn, g1_ref[...], beta1_ref[...])
    ff = jnp.dot(h1.astype(bf16), w1_ref[...],
                 preferred_element_type=f32) + b1_ref[...]
    ff = _gelu_exact(ff)                        # f32 GELU (v5e-safe)
    ff = jnp.dot(ff.astype(bf16), w2_ref[...],
                 preferred_element_type=f32) + b2_ref[...]
    o_ref[...] = _layernorm(h1 + ff, g2_ref[...], beta2_ref[...])


# ----------------------------- kernel wrappers -------------------------------

def patch_embed(tokens, params, pos):
    out = jax.ShapeDtypeStruct(tokens.shape, jnp.float32)
    return _pcall(_patch_embed_kernel, out, tokens,
                  params['pe_ln1_g'], params['pe_ln1_b'],
                  params['pe_w_t'], params['pe_b'],
                  params['pe_ln2_g'], params['pe_ln2_b'], pos)


def encoder_layer(t, lp, bias_mask, num_heads):
    out = jax.ShapeDtypeStruct(t.shape, jnp.float32)
    return _pcall(partial(_encoder_layer_kernel, num_heads=num_heads), out,
                  t, bias_mask,
                  lp['w_qkv_t'], lp['b_qkv'], lp['w_o_t'], lp['b_o'],
                  lp['ln1_g'], lp['ln1_b'],
                  lp['w1_t'], lp['b1'], lp['w2_t'], lp['b2'],
                  lp['ln2_g'], lp['ln2_b'])


# ----------------------------- parameters ------------------------------------

def init_params(key, channels, input_size, patch_size, num_heads, num_layers,
                dim_ff=2048):
    D = channels * patch_size * patch_size
    P = (input_size ** 2) // (patch_size ** 2)
    keys = list(jax.random.split(key, 4 + 8 * num_layers))
    it = iter(keys)

    def wmat(shape, scale=0.02):
        # Matmul weights stored in bf16: half HBM traffic, native MXU dtype.
        return (scale * jax.random.normal(next(it), shape)).astype(jnp.bfloat16)

    params = {
        # to_patch_embedding: LayerNorm -> Linear -> LayerNorm
        'pe_ln1_g': jnp.ones((1, D), jnp.float32),
        'pe_ln1_b': jnp.zeros((1, D), jnp.float32),
        'pe_w_t': wmat((D, D)),
        'pe_b': jnp.zeros((1, D), jnp.float32),
        'pe_ln2_g': jnp.ones((1, D), jnp.float32),
        'pe_ln2_b': jnp.zeros((1, D), jnp.float32),
        # pos_embedding ~ randn(1, P, D)
        'pos': jax.random.normal(next(it), (1, P, D), jnp.float32),
        'layers': [],
    }
    for _ in range(num_layers):
        params['layers'].append({
            'w_qkv_t': wmat((D, 3 * D)),            # in_proj (transposed)
            'b_qkv': jnp.zeros((1, 3 * D), jnp.float32),
            'w_o_t': wmat((D, D)),                  # out_proj (transposed)
            'b_o': jnp.zeros((1, D), jnp.float32),
            'ln1_g': jnp.ones((1, D), jnp.float32),
            'ln1_b': jnp.zeros((1, D), jnp.float32),
            'w1_t': wmat((D, dim_ff)),              # FFN linear1 (transposed)
            'b1': jnp.zeros((1, dim_ff), jnp.float32),
            'w2_t': wmat((dim_ff, D)),              # FFN linear2 (transposed)
            'b2': jnp.zeros((1, D), jnp.float32),
            'ln2_g': jnp.ones((1, D), jnp.float32),
            'ln2_b': jnp.zeros((1, D), jnp.float32),
        })
    return params


# ----------------------------- forward pass ----------------------------------

def vision_transformer_forward(x, params, *, patch_size, num_heads):
    N, C, H, W = x.shape
    p = patch_size
    h, w = H // p, W // p
    P = h * w
    D = C * p * p

    # Rearrange 'n c (h p1) (w p2) -> n (h w) (p1 p2 c)'   (glue)
    xp = x.reshape(N, C, h, p, w, p)
    xp = jnp.transpose(xp, (0, 2, 4, 3, 5, 1))              # n h w p1 p2 c
    tokens = xp.reshape(N * P, D).astype(jnp.float32)

    # pos broadcast is a tiny trace-time-shaped op; the add itself is fused into
    # the patch-embedding kernel (no standalone add kernel, no zeros buffer).
    pos = jnp.broadcast_to(params['pos'], (N, P, D)).reshape(N * P, D)
    t = patch_embed(tokens, params, pos)

    # seq-first nn.TransformerEncoder semantics (S = image batch N, B = patches P):
    # attention mixes rows sharing the same patch index (r % P) across images.
    # Additive score mask is a trace-time constant.
    r = np.arange(N * P)
    same = (r[:, None] % P) == (r[None, :] % P)
    bias_mask = jnp.asarray(np.where(same, 0.0, -1e30), dtype=jnp.float32)

    # TODO(synk): dropout (p=0.5) in attention/FFN/residual paths is omitted ->
    # eval-mode semantics (PyTorch training-mode dropout is stochastic).
    for lp in params['layers']:
        t = encoder_layer(t, lp, bias_mask, num_heads)

    # Rearrange 'n (h w) (p1 p2 c) -> n c (h p1) (w p2)'   (glue)
    y = t.reshape(N, h, w, p, p, C)
    y = jnp.transpose(y, (0, 5, 1, 3, 2, 4))                 # n c h p1 w p2
    return y.reshape(N, C, h * p, w * p)


# ----------------------------- main -------------------------------------------

if __name__ == "__main__":
    channels, input_size, patch_size = 4, 16, 8     # patch_dim = 256, num_patches = 4
    num_heads, num_layers, dim_ff = 8, 2, 2048      # nn.TransformerEncoderLayer defaults

    key = jax.random.PRNGKey(0)
    kx, kp = jax.random.split(key)
    x = jax.random.normal(kx, (2, channels, input_size, input_size), jnp.float32)
    params = init_params(kp, channels, input_size, patch_size,
                         num_heads, num_layers, dim_ff)

    fwd = jax.jit(partial(vision_transformer_forward,
                          patch_size=patch_size, num_heads=num_heads))
    out = fwd(x, params)
    jax.block_until_ready(out)
    assert out.shape == x.shape and out.dtype == jnp.float32
    print("KERNEL_OK")
</pallas_src>

<mosaic_0001>
module attributes {stable_mosaic.version = 11 : i64} {
  func.func @_encoder_layer_kernel(%arg0: i32, %arg1: memref<8x256xf32, #tpu.memory_space<vmem>>, %arg2: memref<8x8xf32, #tpu.memory_space<vmem>>, %arg3: memref<256x768xbf16, #tpu.memory_space<vmem>>, %arg4: memref<1x768xf32, #tpu.memory_space<vmem>>, %arg5: memref<256x256xbf16, #tpu.memory_space<vmem>>, %arg6: memref<1x256xf32, #tpu.memory_space<vmem>>, %arg7: memref<1x256xf32, #tpu.memory_space<vmem>>, %arg8: memref<1x256xf32, #tpu.memory_space<vmem>>, %arg9: memref<256x2048xbf16, #tpu.memory_space<vmem>>, %arg10: memref<1x2048xf32, #tpu.memory_space<vmem>>, %arg11: memref<2048x256xbf16, #tpu.memory_space<vmem>>, %arg12: memref<1x256xf32, #tpu.memory_space<vmem>>, %arg13: memref<1x256xf32, #tpu.memory_space<vmem>>, %arg14: memref<1x256xf32, #tpu.memory_space<vmem>>, %arg15: memref<8x256xf32, #tpu.memory_space<vmem>>) attributes {dimension_semantics = [#tpu.dimension_semantics<arbitrary>], iteration_bounds = array<i64: 1>, scalar_prefetch = 0 : i64, scratch_operands = 0 : i64, tpu.core_type = #tpu.core_type<tc>, window_params = [{pipeline_mode = #tpu.pipeline_mode<synchronous>, transform_indices = @transform_0, window_bounds = array<i64: 8, 256>}, {pipeline_mode = #tpu.pipeline_mode<synchronous>, transform_indices = @transform_1, window_bounds = array<i64: 8, 8>}, {pipeline_mode = #tpu.pipeline_mode<synchronous>, transform_indices = @transform_2, window_bounds = array<i64: 256, 768>}, {pipeline_mode = #tpu.pipeline_mode<synchronous>, transform_indices = @transform_3, window_bounds = array<i64: 1, 768>}, {pipeline_mode = #tpu.pipeline_mode<synchronous>, transform_indices = @transform_4, window_bounds = array<i64: 256, 256>}, {pipeline_mode = #tpu.pipeline_mode<synchronous>, transform_indices = @transform_5, window_bounds = array<i64: 1, 256>}, {pipeline_mode = #tpu.pipeline_mode<synchronous>, transform_indices = @transform_6, window_bounds = array<i64: 1, 256>}, {pipeline_mode = #tpu.pipeline_mode<synchronous>, transform_indices = @transform_7, window_bounds = array<i64: 1, 256>}, {pipeline_mode = #tpu.pipeline_mode<synchronous>, transform_indices = @transform_8, window_bounds = array<i64: 256, 2048>}, {pipeline_mode = #tpu.pipeline_mode<synchronous>, transform_indices = @transform_9, window_bounds = array<i64: 1, 2048>}, {pipeline_mode = #tpu.pipeline_mode<synchronous>, transform_indices = @transform_10, window_bounds = array<i64: 2048, 256>}, {pipeline_mode = #tpu.pipeline_mode<synchronous>, transform_indices = @transform_11, window_bounds = array<i64: 1, 256>}, {pipeline_mode = #tpu.pipeline_mode<synchronous>, transform_indices = @transform_12, window_bounds = array<i64: 1, 256>}, {pipeline_mode = #tpu.pipeline_mode<synchronous>, transform_indices = @transform_13, window_bounds = array<i64: 1, 256>}, {pipeline_mode = #tpu.pipeline_mode<synchronous>, transform_indices = @transform_14, window_bounds = array<i64: 8, 256>}]} {
    %c0 = arith.constant 0 : index
    %c0_0 = arith.constant 0 : index
    %0 = vector.load %arg1[%c0, %c0_0] : memref<8x256xf32, #tpu.memory_space<vmem>>, vector<8x256xf32>
    %1 = arith.truncf %0 : vector<8x256xf32> to vector<8x256xbf16>
    %c0_1 = arith.constant 0 : index
    %c0_2 = arith.constant 0 : index
    %2 = vector.load %arg3[%c0_1, %c0_2] : memref<256x768xbf16, #tpu.memory_space<vmem>>, vector<256x768xbf16>
    %cst = arith.constant dense<0.000000e+00> : vector<8x768xf32>
    %3 = tpu.matmul %1, %2, %cst {dimension_numbers = #tpu.dot_dimension_numbers<[1], [0], [0], [1], [0, 0, 1, 1], [], []>} : vector<8x256xbf16>, vector<256x768xbf16>, vector<8x768xf32> -> vector<8x768xf32>
    %c0_3 = arith.constant 0 : index
    %c0_4 = arith.constant 0 : index
    %4 = vector.load %arg4[%c0_3, %c0_4] : memref<1x768xf32, #tpu.memory_space<vmem>>, vector<1x768xf32>
    %5 = vector.broadcast %4 : vector<1x768xf32> to vector<8x768xf32>
    %6 = arith.addf %3, %5 : vector<8x768xf32>
    %7 = vector.extract_strided_slice %6 {offsets = [0, 0], sizes = [8, 256], strides = [1, 1]} : vector<8x768xf32> to vector<8x256xf32>
    %cst_5 = arith.constant 0.176776692 : f32
    %8 = vector.broadcast %cst_5 : f32 to vector<8x256xf32>
    %9 = arith.mulf %7, %8 : vector<8x256xf32>
    %10 = vector.extract_strided_slice %6 {offsets = [0, 256], sizes = [8, 256], strides = [1, 1]} : vector<8x768xf32> to vector<8x256xf32>
    %11 = vector.extract_strided_slice %6 {offsets = [0, 512], sizes = [8, 256], strides = [1, 1]} : vector<8x768xf32> to vector<8x256xf32>
    %12 = arith.truncf %10 : vector<8x256xf32> to vector<8x256xbf16>
    %13 = tpu.iota {dimensions = array<i32: 1>} : vector<8x256xi32>
    %c0_6 = arith.constant 0 : index
    %c0_7 = arith.constant 0 : index
    %14 = vector.load %arg2[%c0_6, %c0_7] : memref<8x8xf32, #tpu.memory_space<vmem>>, vector<8x8xf32>
    %cst_8 = arith.constant 0.000000e+00 : f32
    %15 = vector.broadcast %cst_8 : f32 to vector<8x256xf32>
    %c0_i32 = arith.constant 0 : i32
    %16 = vector.broadcast %c0_i32 : i32 to vector<8x256xi32>
    %17 = arith.cmpi sge, %13, %16 : vector<8x256xi32>
    %c32_i32 = arith.constant 32 : i32
    %18 = vector.broadcast %c32_i32 : i32 to vector<8x256xi32>
    %19 = arith.cmpi slt, %13, %18 : vector<8x256xi32>
    %20 = arith.andi %17, %19 : vector<8x256xi1>
    %cst_9 = arith.constant 1.000000e+00 : f32
    %cst_10 = arith.constant 0.000000e+00 : f32
    %21 = vector.broadcast %cst_9 : f32 to vector<8x256xf32>
    %22 = vector.broadcast %cst_10 : f32 to vector<8x256xf32>
    %23 = arith.select %20, %21, %22 : vector<8x256xi1>, vector<8x256xf32>
    %24 = arith.mulf %9, %23 : vector<8x256xf32>
    %25 = arith.truncf %24 : vector<8x256xf32> to vector<8x256xbf16>
    %cst_11 = arith.constant dense<0.000000e+00> : vector<8x8xf32>
    %26 = tpu.matmul %25, %12, %cst_11 {dimension_numbers = #tpu.dot_dimension_numbers<[1], [1], [0], [0], [0, 0, 1, 0], [], []>} : vector<8x256xbf16>, vector<8x256xbf16>, vector<8x8xf32> -> vector<8x8xf32>
    %27 = arith.addf %26, %14 : vector<8x8xf32>
    %cst_12 = arith.constant dense<0xFF800000> : vector<8xf32>
    %28 = vector.multi_reduction <maximumf>, %27, %cst_12 [1] : vector<8x8xf32> to vector<8xf32>
    %29 = vector.shape_cast %28 : vector<8xf32> to vector<8x1xf32>
    %30 = vector.broadcast %29 : vector<8x1xf32> to vector<8x8xf32>
    %31 = arith.subf %27, %30 : vector<8x8xf32>
    %32 = math.exp %31 : vector<8x8xf32>
    %cst_13 = arith.constant dense<0.000000e+00> : vector<8xf32>
    %33 = vector.multi_reduction <add>, %32, %cst_13 [1] : vector<8x8xf32> to vector<8xf32>
    %34 = vector.shape_cast %33 : vector<8xf32> to vector<8x1xf32>
    %35 = tpu.reciprocal %34 {approx = true} : vector<8x1xf32> -> vector<8x1xf32>
    %36 = vector.broadcast %35 : vector<8x1xf32> to vector<8x8xf32>
    %37 = arith.mulf %32, %36 : vector<8x8xf32>
    %38 = arith.truncf %37 : vector<8x8xf32> to vector<8x8xbf16>
    %39 = arith.mulf %11, %23 : vector<8x256xf32>
    %40 = arith.truncf %39 : vector<8x256xf32> to vector<8x256xbf16>
    %cst_14 = arith.constant dense<0.000000e+00> : vector<8x256xf32>
    %41 = tpu.matmul %38, %40, %cst_14 {dimension_numbers = #tpu.dot_dimension_numbers<[1], [0], [0], [1], [0, 0, 1, 1], [], []>} : vector<8x8xbf16>, vector<8x256xbf16>, vector<8x256xf32> -> vector<8x256xf32>
    %42 = arith.addf %15, %41 : vector<8x256xf32>
    %c32_i32_15 = arith.constant 32 : i32
    %43 = vector.broadcast %c32_i32_15 : i32 to vector<8x256xi32>
    %44 = arith.cmpi sge, %13, %43 : vector<8x256xi32>
    %c64_i32 = arith.constant 64 : i32
    %45 = vector.broadcast %c64_i32 : i32 to vector<8x256xi32>
    %46 = arith.cmpi slt, %13, %45 : vector<8x256xi32>
    %47 = arith.andi %44, %46 : vector<8x256xi1>
    %cst_16 = arith.constant 1.000000e+00 : f32
    %cst_17 = arith.constant 0.000000e+00 : f32
    %48 = vector.broadcast %cst_16 : f32 to vector<8x256xf32>
    %49 = vector.broadcast %cst_17 : f32 to vector<8x256xf32>
    %50 = arith.select %47, %48, %49 : vector<8x256xi1>, vector<8x256xf32>
    %51 = arith.mulf %9, %50 : vector<8x256xf32>
    %52 = arith.truncf %51 : vector<8x256xf32> to vector<8x256xbf16>
    %cst_18 = arith.constant dense<0.000000e+00> : vector<8x8xf32>
    %53 = tpu.matmul %52, %12, %cst_18 {dimension_numbers = #tpu.dot_dimension_numbers<[1], [1], [0], [0], [0, 0, 1, 0], [], []>} : vector<8x256xbf16>, vector<8x256xbf16>, vector<8x8xf32> -> vector<8x8xf32>
    %54 = arith.addf %53, %14 : vector<8x8xf32>
    %cst_19 = arith.constant dense<0xFF800000> : vector<8xf32>
    %55 = vector.multi_reduction <maximumf>, %54, %cst_19 [1] : vector<8x8xf32> to vector<8xf32>
    %56 = vector.shape_cast %55 : vector<8xf32> to vector<8x1xf32>
    %57 = vector.broadcast %56 : vector<8x1xf32> to vector<8x8xf32>
    %58 = arith.subf %54, %57 : vector<8x8xf32>
    %59 = math.exp %58 : vector<8x8xf32>
    %cst_20 = arith.constant dense<0.000000e+00> : vector<8xf32>
    %60 = vector.multi_reduction <add>, %59, %cst_20 [1] : vector<8x8xf32> to vector<8xf32>
    %61 = vector.shape_cast %60 : vector<8xf32> to vector<8x1xf32>
    %62 = tpu.reciprocal %61 {approx = true} : vector<8x1xf32> -> vector<8x1xf32>
    %63 = vector.broadcast %62 : vector<8x1xf32> to vector<8x8xf32>
    %64 = arith.mulf %59, %63 : vector<8x8xf32>
    %65 = arith.truncf %64 : vector<8x8xf32> to vector<8x8xbf16>
    %66 = arith.mulf %11, %50 : vector<8x256xf32>
    %67 = arith.truncf %66 : vector<8x256xf32> to vector<8x256xbf16>
    %cst_21 = arith.constant dense<0.000000e+00> : vector<8x256xf32>
    %68 = tpu.matmul %65, %67, %cst_21 {dimension_numbers = #tpu.dot_dimension_numbers<[1], [0], [0], [1], [0, 0, 1, 1], [], []>} : vector<8x8xbf16>, vector<8x256xbf16>, vector<8x256xf32> -> vector<8x256xf32>
    %69 = arith.addf %42, %68 : vector<8x256xf32>
    %c64_i32_22 = arith.constant 64 : i32
    %70 = vector.broadcast %c64_i32_22 : i32 to vector<8x256xi32>
    %71 = arith.cmpi sge, %13, %70 : vector<8x256xi32>
    %c96_i32 = arith.constant 96 : i32
    %72 = vector.broadcast %c96_i32 : i32 to vector<8x256xi32>
    %73 = arith.cmpi slt, %13, %72 : vector<8x256xi32>
    %74 = arith.andi %71, %73 : vector<8x256xi1>
    %cst_23 = arith.constant 1.000000e+00 : f32
    %cst_24 = arith.constant 0.000000e+00 : f32
    %75 = vector.broadcast %cst_23 : f32 to vector<8x256xf32>
    %76 = vector.broadcast %cst_24 : f32 to vector<8x256xf32>
    %77 = arith.select %74, %75, %76 : vector<8x256xi1>, vector<8x256xf32>
    %78 = arith.mulf %9, %77 : vector<8x256xf32>
    %79 = arith.truncf %78 : vector<8x256xf32> to vector<8x256xbf16>
    %cst_25 = arith.constant dense<0.000000e+00> : vector<8x8xf32>
    %80 = tpu.matmul %79, %12, %cst_25 {dimension_numbers = #tpu.dot_dimension_numbers<[1], [1], [0], [0], [0, 0, 1, 0], [], []>} : vector<8x256xbf16>, vector<8x256xbf16>, vector<8x8xf32> -> vector<8x8xf32>
    %81 = arith.addf %80, %14 : vector<8x8xf32>
    %cst_26 = arith.constant dense<0xFF800000> : vector<8xf32>
    %82 = vector.multi_reduction <maximumf>, %81, %cst_26 [1] : vector<8x8xf32> to vector<8xf32>
    %83 = vector.shape_cast %82 : vector<8xf32> to vector<8x1xf32>
    %84 = vector.broadcast %83 : vector<8x1xf32> to vector<8x8xf32>
    %85 = arith.subf %81, %84 : vector<8x8xf32>
    %86 = math.exp %85 : vector<8x8xf32>
    %cst_27 = arith.constant dense<0.000000e+00> : vector<8xf32>
    %87 = vector.multi_reduction <add>, %86, %cst_27 [1] : vector<8x8xf32> to vector<8xf32>
    %88 = vector.shape_cast %87 : vector<8xf32> to vector<8x1xf32>
    %89 = tpu.reciprocal %88 {approx = true} : vector<8x1xf32> -> vector<8x1xf32>
    %90 = vector.broadcast %89 : vector<8x1xf32> to vector<8x8xf32>
    %91 = arith.mulf %86, %90 : vector<8x8xf32>
    %92 = arith.truncf %91 : vector<8x8xf32> to vector<8x8xbf16>
    %93 = arith.mulf %11, %77 : vector<8x256xf32>
    %94 = arith.truncf %93 : vector<8x256xf32> to vector<8x256xbf16>
    %cst_28 = arith.constant dense<0.000000e+00> : vector<8x256xf32>
    %95 = tpu.matmul %92, %94, %cst_28 {dimension_numbers = #tpu.dot_dimension_numbers<[1], [0], [0], [1], [0, 0, 1, 1], [], []>} : vector<8x8xbf16>, vector<8x256xbf16>, vector<8x256xf32> -> vector<8x256xf32>
    %96 = arith.addf %69, %95 : vector<8x256xf32>
    %c96_i32_29 = arith.constant 96 : i32
    %97 = vector.broadcast %c96_i32_29 : i32 to vector<8x256xi32>
    %98 = arith.cmpi sge, %13, %97 : vector<8x256xi32>
    %c128_i32 = arith.constant 128 : i32
    %99 = vector.broadcast %c128_i32 : i32 to vector<8x256xi32>
    %100 = arith.cmpi slt, %13, %99 : vector<8x256xi32>
    %101 = arith.andi %98, %100 : vector<8x256xi1>
    %cst_30 = arith.constant 1.000000e+00 : f32
    %cst_31 = arith.constant 0.000000e+00 : f32
    %102 = vector.broadcast %cst_30 : f32 to vector<8x256xf32>
    %103 = vector.broadcast %cst_31 : f32 to vector<8x256xf32>
    %104 = arith.select %101, %102, %103 : vector<8x256xi1>, vector<8x256xf32>
    %105 = arith.mulf %9, %104 : vector<8x256xf32>
    %106 = arith.truncf %105 : vector<8x256xf32> to vector<8x256xbf16>
    %cst_32 = arith.constant dense<0.000000e+00> : vector<8x8xf32>
    %107 = tpu.matmul %106, %12, %cst_32 {dimension_numbers = #tpu.dot_dimension_numbers<[1], [1], [0], [0], [0, 0, 1, 0], [], []>} : vector<8x256xbf16>, vector<8x256xbf16>, vector<8x8xf32> -> vector<8x8xf32>
    %108 = arith.addf %107, %14 : vector<8x8xf32>
    %cst_33 = arith.constant dense<0xFF800000> : vector<8xf32>
    %109 = vector.multi_reduction <maximumf>, %108, %cst_33 [1] : vector<8x8xf32> to vector<8xf32>
    %110 = vector.shape_cast %109 : vector<8xf32> to vector<8x1xf32>
    %111 = vector.broadcast %110 : vector<8x1xf32> to vector<8x8xf32>
    %112 = arith.subf %108, %111 : vector<8x8xf32>
    %113 = math.exp %112 : vector<8x8xf32>
    %cst_34 = arith.constant dense<0.000000e+00> : vector<8xf32>
    %114 = vector.multi_reduction <add>, %113, %cst_34 [1] : vector<8x8xf32> to vector<8xf32>
    %115 = vector.shape_cast %114 : vector<8xf32> to vector<8x1xf32>
    %116 = tpu.reciprocal %115 {approx = true} : vector<8x1xf32> -> vector<8x1xf32>
    %117 = vector.broadcast %116 : vector<8x1xf32> to vector<8x8xf32>
    %118 = arith.mulf %113, %117 : vector<8x8xf32>
    %119 = arith.truncf %118 : vector<8x8xf32> to vector<8x8xbf16>
    %120 = arith.mulf %11, %104 : vector<8x256xf32>
    %121 = arith.truncf %120 : vector<8x256xf32> to vector<8x256xbf16>
    %cst_35 = arith.constant dense<0.000000e+00> : vector<8x256xf32>
    %122 = tpu.matmul %119, %121, %cst_35 {dimension_numbers = #tpu.dot_dimension_numbers<[1], [0], [0], [1], [0, 0, 1, 1], [], []>} : vector<8x8xbf16>, vector<8x256xbf16>, vector<8x256xf32> -> vector<8x256xf32>
    %123 = arith.addf %96, %122 : vector<8x256xf32>
    %c128_i32_36 = arith.constant 128 : i32
    %124 = vector.broadcast %c128_i32_36 : i32 to vector<8x256xi32>
    %125 = arith.cmpi sge, %13, %124 : vector<8x256xi32>
    %c160_i32 = arith.constant 160 : i32
    %126 = vector.broadcast %c160_i32 : i32 to vector<8x256xi32>
    %127 = arith.cmpi slt, %13, %126 : vector<8x256xi32>
    %128 = arith.andi %125, %127 : vector<8x256xi1>
    %cst_37 = arith.constant 1.000000e+00 : f32
    %cst_38 = arith.constant 0.000000e+00 : f32
    %129 = vector.broadcast %cst_37 : f32 to vector<8x256xf32>
    %130 = vector.broadcast %cst_38 : f32 to vector<8x256xf32>
    %131 = arith.select %128, %129, %130 : vector<8x256xi1>, vector<8x256xf32>
    %132 = arith.mulf %9, %131 : vector<8x256xf32>
    %133 = arith.truncf %132 : vector<8x256xf32> to vector<8x256xbf16>
    %cst_39 = arith.constant dense<0.000000e+00> : vector<8x8xf32>
    %134 = tpu.matmul %133, %12, %cst_39 {dimension_numbers = #tpu.dot_dimension_numbers<[1], [1], [0], [0], [0, 0, 1, 0], [], []>} : vector<8x256xbf16>, vector<8x256xbf16>, vector<8x8xf32> -> vector<8x8xf32>
    %135 = arith.addf %134, %14 : vector<8x8xf32>
    %cst_40 = arith.constant dense<0xFF800000> : vector<8xf32>
    %136 = vector.multi_reduction <maximumf>, %135, %cst_40 [1] : vector<8x8xf32> to vector<8xf32>
    %137 = vector.shape_cast %136 : vector<8xf32> to vector<8x1xf32>
    %138 = vector.broadcast %137 : vector<8x1xf32> to vector<8x8xf32>
    %139 = arith.subf %135, %138 : vector<8x8xf32>
    %140 = math.exp %139 : vector<8x8xf32>
    %cst_41 = arith.constant dense<0.000000e+00> : vector<8xf32>
    %141 = vector.multi_reduction <add>, %140, %cst_41 [1] : vector<8x8xf32> to vector<8xf32>
    %142 = vector.shape_cast %141 : vector<8xf32> to vector<8x1xf32>
    %143 = tpu.reciprocal %142 {approx = true} : vector<8x1xf32> -> vector<8x1xf32>
    %144 = vector.broadcast %143 : vector<8x1xf32> to vector<8x8xf32>
    %145 = arith.mulf %140, %144 : vector<8x8xf32>
    %146 = arith.truncf %145 : vector<8x8xf32> to vector<8x8xbf16>
    %147 = arith.mulf %11, %131 : vector<8x256xf32>
    %148 = arith.truncf %147 : vector<8x256xf32> to vector<8x256xbf16>
    %cst_42 = arith.constant dense<0.000000e+00> : vector<8x256xf32>
    %149 = tpu.matmul %146, %148, %cst_42 {dimension_numbers = #tpu.dot_dimension_numbers<[1], [0], [0], [1], [0, 0, 1, 1], [], []>} : vector<8x8xbf16>, vector<8x256xbf16>, vector<8x256xf32> -> vector<8x256xf32>
    %150 = arith.addf %123, %149 : vector<8x256xf32>
    %c160_i32_43 = arith.constant 160 : i32
    %151 = vector.broadcast %c160_i32_43 : i32 to vector<8x256xi32>
    %152 = arith.cmpi sge, %13, %151 : vector<8x256xi32>
    %c192_i32 = arith.constant 192 : i32
    %153 = vector.broadcast %c192_i32 : i32 to vector<8x256xi32>
    %154 = arith.cmpi slt, %13, %153 : vector<8x256xi32>
    %155 = arith.andi %152, %154 : vector<8x256xi1>
    %cst_44 = arith.constant 1.000000e+00 : f32
    %cst_45 = arith.constant 0.000000e+00 : f32
    %156 = vector.broadcast %cst_44 : f32 to vector<8x256xf32>
    %157 = vector.broadcast %cst_45 : f32 to vector<8x256xf32>
    %158 = arith.select %155, %156, %157 : vector<8x256xi1>, vector<8x256xf32>
    %159 = arith.mulf %9, %158 : vector<8x256xf32>
    %160 = arith.truncf %159 : vector<8x256xf32> to vector<8x256xbf16>
    %cst_46 = arith.constant dense<0.000000e+00> : vector<8x8xf32>
    %161 = tpu.matmul %160, %12, %cst_46 {dimension_numbers = #tpu.dot_dimension_numbers<[1], [1], [0], [0], [0, 0, 1, 0], [], []>} : vector<8x256xbf16>, vector<8x256xbf16>, vector<8x8xf32> -> vector<8x8xf32>
    %162 = arith.addf %161, %14 : vector<8x8xf32>
    %cst_47 = arith.constant dense<0xFF800000> : vector<8xf32>
    %163 = vector.multi_reduction <maximumf>, %162, %cst_47 [1] : vector<8x8xf32> to vector<8xf32>
    %164 = vector.shape_cast %163 : vector<8xf32> to vector<8x1xf32>
    %165 = vector.broadcast %164 : vector<8x1xf32> to vector<8x8xf32>
    %166 = arith.subf %162, %165 : vector<8x8xf32>
    %167 = math.exp %166 : vector<8x8xf32>
    %cst_48 = arith.constant dense<0.000000e+00> : vector<8xf32>
    %168 = vector.multi_reduction <add>, %167, %cst_48 [1] : vector<8x8xf32> to vector<8xf32>
    %169 = vector.shape_cast %168 : vector<8xf32> to vector<8x1xf32>
    %170 = tpu.reciprocal %169 {approx = true} : vector<8x1xf32> -> vector<8x1xf32>
    %171 = vector.broadcast %170 : vector<8x1xf32> to vector<8x8xf32>
    %172 = arith.mulf %167, %171 : vector<8x8xf32>
    %173 = arith.truncf %172 : vector<8x8xf32> to vector<8x8xbf16>
    %174 = arith.mulf %11, %158 : vector<8x256xf32>
    %175 = arith.truncf %174 : vector<8x256xf32> to vector<8x256xbf16>
    %cst_49 = arith.constant dense<0.000000e+00> : vector<8x256xf32>
    %176 = tpu.matmul %173, %175, %cst_49 {dimension_numbers = #tpu.dot_dimension_numbers<[1], [0], [0], [1], [0, 0, 1, 1], [], []>} : vector<8x8xbf16>, vector<8x256xbf16>, vector<8x256xf32> -> vector<8x256xf32>
    %177 = arith.addf %150, %176 : vector<8x256xf32>
    %c192_i32_50 = arith.constant 192 : i32
    %178 = vector.broadcast %c192_i32_50 : i32 to vector<8x256xi32>
    %179 = arith.cmpi sge, %13, %178 : vector<8x256xi32>
    %c224_i32 = arith.constant 224 : i32
    %180 = vector.broadcast %c224_i32 : i32 to vector<8x256xi32>
    %181 = arith.cmpi slt, %13, %180 : vector<8x256xi32>
    %182 = arith.andi %179, %181 : vector<8x256xi1>
    %cst_51 = arith.constant 1.000000e+00 : f32
    %cst_52 = arith.constant 0.000000e+00 : f32
    %183 = vector.broadcast %cst_51 : f32 to vector<8x256xf32>
    %184 = vector.broadcast %cst_52 : f32 to vector<8x256xf32>
    %185 = arith.select %182, %183, %184 : vector<8x256xi1>, vector<8x256xf32>
    %186 = arith.mulf %9, %185 : vector<8x256xf32>
    %187 = arith.truncf %186 : vector<8x256xf32> to vector<8x256xbf16>
    %cst_53 = arith.constant dense<0.000000e+00> : vector<8x8xf32>
    %188 = tpu.matmul %187, %12, %cst_53 {dimension_numbers = #tpu.dot_dimension_numbers<[1], [1], [0], [0], [0, 0, 1, 0], [], []>} : vector<8x256xbf16>, vector<8x256xbf16>, vector<8x8xf32> -> vector<8x8xf32>
    %189 = arith.addf %188, %14 : vector<8x8xf32>
    %cst_54 = arith.constant dense<0xFF800000> : vector<8xf32>
    %190 = vector.multi_reduction <maximumf>, %189, %cst_54 [1] : vector<8x8xf32> to vector<8xf32>
    %191 = vector.shape_cast %190 : vector<8xf32> to vector<8x1xf32>
    %192 = vector.broadcast %191 : vector<8x1xf32> to vector<8x8xf32>
    %193 = arith.subf %189, %192 : vector<8x8xf32>
    %194 = math.exp %193 : vector<8x8xf32>
    %cst_55 = arith.constant dense<0.000000e+00> : vector<8xf32>
    %195 = vector.multi_reduction <add>, %194, %cst_55 [1] : vector<8x8xf32> to vector<8xf32>
    %196 = vector.shape_cast %195 : vector<8xf32> to vector<8x1xf32>
    %197 = tpu.reciprocal %196 {approx = true} : vector<8x1xf32> -> vector<8x1xf32>
    %198 = vector.broadcast %197 : vector<8x1xf32> to vector<8x8xf32>
    %199 = arith.mulf %194, %198 : vector<8x8xf32>
    %200 = arith.truncf %199 : vector<8x8xf32> to vector<8x8xbf16>
    %201 = arith.mulf %11, %185 : vector<8x256xf32>
    %202 = arith.truncf %201 : vector<8x256xf32> to vector<8x256xbf16>
    %cst_56 = arith.constant dense<0.000000e+00> : vector<8x256xf32>
    %203 = tpu.matmul %200, %202, %cst_56 {dimension_numbers = #tpu.dot_dimension_numbers<[1], [0], [0], [1], [0, 0, 1, 1], [], []>} : vector<8x8xbf16>, vector<8x256xbf16>, vector<8x256xf32> -> vector<8x256xf32>
    %204 = arith.addf %177, %203 : vector<8x256xf32>
    %c224_i32_57 = arith.constant 224 : i32
    %205 = vector.broadcast %c224_i32_57 : i32 to vector<8x256xi32>
    %206 = arith.cmpi sge, %13, %205 : vector<8x256xi32>
    %c256_i32 = arith.constant 256 : i32
    %207 = vector.broadcast %c256_i32 : i32 to vector<8x256xi32>
    %208 = arith.cmpi slt, %13, %207 : vector<8x256xi32>
    %209 = arith.andi %206, %208 : vector<8x256xi1>
    %cst_58 = arith.constant 1.000000e+00 : f32
    %cst_59 = arith.constant 0.000000e+00 : f32
    %210 = vector.broadcast %cst_58 : f32 to vector<8x256xf32>
    %211 = vector.broadcast %cst_59 : f32 to vector<8x256xf32>
    %212 = arith.select %209, %210, %211 : vector<8x256xi1>, vector<8x256xf32>
    %213 = arith.mulf %9, %212 : vector<8x256xf32>
    %214 = arith.truncf %213 : vector<8x256xf32> to vector<8x256xbf16>
    %cst_60 = arith.constant dense<0.000000e+00> : vector<8x8xf32>
    %215 = tpu.matmul %214, %12, %cst_60 {dimension_numbers = #tpu.dot_dimension_numbers<[1], [1], [0], [0], [0, 0, 1, 0], [], []>} : vector<8x256xbf16>, vector<8x256xbf16>, vector<8x8xf32> -> vector<8x8xf32>
    %216 = arith.addf %215, %14 : vector<8x8xf32>
    %cst_61 = arith.constant dense<0xFF800000> : vector<8xf32>
    %217 = vector.multi_reduction <maximumf>, %216, %cst_61 [1] : vector<8x8xf32> to vector<8xf32>
    %218 = vector.shape_cast %217 : vector<8xf32> to vector<8x1xf32>
    %219 = vector.broadcast %218 : vector<8x1xf32> to vector<8x8xf32>
    %220 = arith.subf %216, %219 : vector<8x8xf32>
    %221 = math.exp %220 : vector<8x8xf32>
    %cst_62 = arith.constant dense<0.000000e+00> : vector<8xf32>
    %222 = vector.multi_reduction <add>, %221, %cst_62 [1] : vector<8x8xf32> to vector<8xf32>
    %223 = vector.shape_cast %222 : vector<8xf32> to vector<8x1xf32>
    %224 = tpu.reciprocal %223 {approx = true} : vector<8x1xf32> -> vector<8x1xf32>
    %225 = vector.broadcast %224 : vector<8x1xf32> to vector<8x8xf32>
    %226 = arith.mulf %221, %225 : vector<8x8xf32>
    %227 = arith.truncf %226 : vector<8x8xf32> to vector<8x8xbf16>
    %228 = arith.mulf %11, %212 : vector<8x256xf32>
    %229 = arith.truncf %228 : vector<8x256xf32> to vector<8x256xbf16>
    %cst_63 = arith.constant dense<0.000000e+00> : vector<8x256xf32>
    %230 = tpu.matmul %227, %229, %cst_63 {dimension_numbers = #tpu.dot_dimension_numbers<[1], [0], [0], [1], [0, 0, 1, 1], [], []>} : vector<8x8xbf16>, vector<8x256xbf16>, vector<8x256xf32> -> vector<8x256xf32>
    %231 = arith.addf %204, %230 : vector<8x256xf32>
    %232 = arith.truncf %231 : vector<8x256xf32> to vector<8x256xbf16>
    %c0_64 = arith.constant 0 : index
    %c0_65 = arith.constant 0 : index
    %233 = vector.load %arg5[%c0_64, %c0_65] : memref<256x256xbf16, #tpu.memory_space<vmem>>, vector<256x256xbf16>
    %cst_66 = arith.constant dense<0.000000e+00> : vector<8x256xf32>
    %234 = tpu.matmul %232, %233, %cst_66 {dimension_numbers = #tpu.dot_dimension_numbers<[1], [0], [0], [1], [0, 0, 1, 1], [], []>} : vector<8x256xbf16>, vector<256x256xbf16>, vector<8x256xf32> -> vector<8x256xf32>
    %c0_67 = arith.constant 0 : index
    %c0_68 = arith.constant 0 : index
    %235 = vector.load %arg6[%c0_67, %c0_68] : memref<1x256xf32, #tpu.memory_space<vmem>>, vector<1x256xf32>
    %236 = vector.broadcast %235 : vector<1x256xf32> to vector<8x256xf32>
    %237 = arith.addf %234, %236 : vector<8x256xf32>
    %238 = arith.addf %0, %237 : vector<8x256xf32>
    %c0_69 = arith.constant 0 : index
    %c0_70 = arith.constant 0 : index
    %239 = vector.load %arg7[%c0_69, %c0_70] : memref<1x256xf32, #tpu.memory_space<vmem>>, vector<1x256xf32>
    %c0_71 = arith.constant 0 : index
    %c0_72 = arith.constant 0 : index
    %240 = vector.load %arg8[%c0_71, %c0_72] : memref<1x256xf32, #tpu.memory_space<vmem>>, vector<1x256xf32>
    %cst_73 = arith.constant dense<0.000000e+00> : vector<8xf32>
    %241 = vector.multi_reduction <add>, %238, %cst_73 [1] : vector<8x256xf32> to vector<8xf32>
    %242 = vector.shape_cast %241 : vector<8xf32> to vector<8x1xf32>
    %cst_74 = arith.constant 2.560000e+02 : f32
    %243 = vector.broadcast %cst_74 : f32 to vector<8x1xf32>
    %244 = arith.divf %242, %243 : vector<8x1xf32>
    %245 = vector.broadcast %244 : vector<8x1xf32> to vector<8x256xf32>
    %246 = arith.subf %238, %245 : vector<8x256xf32>
    %247 = arith.mulf %246, %246 : vector<8x256xf32>
    %cst_75 = arith.constant dense<0.000000e+00> : vector<8xf32>
    %248 = vector.multi_reduction <add>, %247, %cst_75 [1] : vector<8x256xf32> to vector<8xf32>
    %249 = vector.shape_cast %248 : vector<8xf32> to vector<8x1xf32>
    %cst_76 = arith.constant 2.560000e+02 : f32
    %250 = vector.broadcast %cst_76 : f32 to vector<8x1xf32>
    %251 = arith.divf %249, %250 : vector<8x1xf32>
    %cst_77 = arith.constant 9.99999974E-6 : f32
    %252 = vector.broadcast %cst_77 : f32 to vector<8x1xf32>
    %253 = arith.addf %251, %252 : vector<8x1xf32>
    %254 = math.rsqrt %253 : vector<8x1xf32>
    %255 = vector.broadcast %254 : vector<8x1xf32> to vector<8x256xf32>
    %256 = arith.mulf %246, %255 : vector<8x256xf32>
    %257 = vector.broadcast %239 : vector<1x256xf32> to vector<8x256xf32>
    %258 = arith.mulf %256, %257 : vector<8x256xf32>
    %259 = vector.broadcast %240 : vector<1x256xf32> to vector<8x256xf32>
    %260 = arith.addf %258, %259 : vector<8x256xf32>
    %261 = arith.truncf %260 : vector<8x256xf32> to vector<8x256xbf16>
    %c0_78 = arith.constant 0 : index
    %c0_79 = arith.constant 0 : index
    %262 = vector.load %arg9[%c0_78, %c0_79] : memref<256x2048xbf16, #tpu.memory_space<vmem>>, vector<256x2048xbf16>
    %cst_80 = arith.constant dense<0.000000e+00> : vector<8x2048xf32>
    %263 = tpu.matmul %261, %262, %cst_80 {dimension_numbers = #tpu.dot_dimension_numbers<[1], [0], [0], [1], [0, 0, 1, 1], [], []>} : vector<8x256xbf16>, vector<256x2048xbf16>, vector<8x2048xf32> -> vector<8x2048xf32>
    %c0_81 = arith.constant 0 : index
    %c0_82 = arith.constant 0 : index
    %264 = vector.load %arg10[%c0_81, %c0_82] : memref<1x2048xf32, #tpu.memory_space<vmem>>, vector<1x2048xf32>
    %265 = vector.broadcast %264 : vector<1x2048xf32> to vector<8x2048xf32>
    %266 = arith.addf %263, %265 : vector<8x2048xf32>
    %cst_83 = arith.constant 5.000000e-01 : f32
    %267 = vector.broadcast %cst_83 : f32 to vector<8x2048xf32>
    %268 = arith.mulf %267, %266 : vector<8x2048xf32>
    %cst_84 = arith.constant 0.707106769 : f32
    %269 = vector.broadcast %cst_84 : f32 to vector<8x2048xf32>
    %270 = arith.mulf %266, %269 : vector<8x2048xf32>
    %cst_85 = arith.constant 0.000000e+00 : f32
    %271 = vector.broadcast %cst_85 : f32 to vector<8x2048xf32>
    %272 = arith.cmpf olt, %270, %271 : vector<8x2048xf32>
    %cst_86 = arith.constant -1.000000e+00 : f32
    %cst_87 = arith.constant 1.000000e+00 : f32
    %273 = vector.broadcast %cst_86 : f32 to vector<8x2048xf32>
    %274 = vector.broadcast %cst_87 : f32 to vector<8x2048xf32>
    %275 = arith.select %272, %273, %274 : vector<8x2048xi1>, vector<8x2048xf32>
    %276 = math.absf %270 : vector<8x2048xf32>
    %cst_88 = arith.constant 0.327591091 : f32
    %277 = vector.broadcast %cst_88 : f32 to vector<8x2048xf32>
    %278 = arith.mulf %277, %276 : vector<8x2048xf32>
    %cst_89 = arith.constant 1.000000e+00 : f32
    %279 = vector.broadcast %cst_89 : f32 to vector<8x2048xf32>
    %280 = arith.addf %279, %278 : vector<8x2048xf32>
    %cst_90 = arith.constant 1.000000e+00 : f32
    %281 = vector.broadcast %cst_90 : f32 to vector<8x2048xf32>
    %282 = arith.divf %281, %280 : vector<8x2048xf32>
    %cst_91 = arith.constant 1.06140542 : f32
    %283 = vector.broadcast %cst_91 : f32 to vector<8x2048xf32>
    %284 = arith.mulf %283, %282 : vector<8x2048xf32>
    %cst_92 = arith.constant -1.45315206 : f32
    %285 = vector.broadcast %cst_92 : f32 to vector<8x2048xf32>
    %286 = arith.addf %284, %285 : vector<8x2048xf32>
    %287 = arith.mulf %286, %282 : vector<8x2048xf32>
    %cst_93 = arith.constant 1.42141378 : f32
    %288 = vector.broadcast %cst_93 : f32 to vector<8x2048xf32>
    %289 = arith.addf %287, %288 : vector<8x2048xf32>
    %290 = arith.mulf %289, %282 : vector<8x2048xf32>
    %cst_94 = arith.constant -0.284496725 : f32
    %291 = vector.broadcast %cst_94 : f32 to vector<8x2048xf32>
    %292 = arith.addf %290, %291 : vector<8x2048xf32>
    %293 = arith.mulf %292, %282 : vector<8x2048xf32>
    %cst_95 = arith.constant 0.254829586 : f32
    %294 = vector.broadcast %cst_95 : f32 to vector<8x2048xf32>
    %295 = arith.addf %293, %294 : vector<8x2048xf32>
    %296 = arith.mulf %295, %282 : vector<8x2048xf32>
    %cst_96 = arith.constant 0.000000e+00 : f32
    %297 = vector.broadcast %cst_96 : f32 to vector<8x2048xf32>
    %298 = arith.subf %297, %276 : vector<8x2048xf32>
    %299 = arith.mulf %298, %276 : vector<8x2048xf32>
    %300 = math.exp %299 : vector<8x2048xf32>
    %301 = arith.mulf %296, %300 : vector<8x2048xf32>
    %cst_97 = arith.constant 1.000000e+00 : f32
    %302 = vector.broadcast %cst_97 : f32 to vector<8x2048xf32>
    %303 = arith.subf %302, %301 : vector<8x2048xf32>
    %304 = arith.mulf %275, %303 : vector<8x2048xf32>
    %cst_98 = arith.constant 1.000000e+00 : f32
    %305 = vector.broadcast %cst_98 : f32 to vector<8x2048xf32>
    %306 = arith.addf %305, %304 : vector<8x2048xf32>
    %307 = arith.mulf %268, %306 : vector<8x2048xf32>
    %308 = arith.truncf %307 : vector<8x2048xf32> to vector<8x2048xbf16>
    %c0_99 = arith.constant 0 : index
    %c0_100 = arith.constant 0 : index
    %309 = vector.load %arg11[%c0_99, %c0_100] : memref<2048x256xbf16, #tpu.memory_space<vmem>>, vector<2048x256xbf16>
    %cst_101 = arith.constant dense<0.000000e+00> : vector<8x256xf32>
    %310 = tpu.matmul %308, %309, %cst_101 {dimension_numbers = #tpu.dot_dimension_numbers<[1], [0], [0], [1], [0, 0, 1, 1], [], []>} : vector<8x2048xbf16>, vector<2048x256xbf16>, vector<8x256xf32> -> vector<8x256xf32>
    %c0_102 = arith.constant 0 : index
    %c0_103 = arith.constant 0 : index
    %311 = vector.load %arg12[%c0_102, %c0_103] : memref<1x256xf32, #tpu.memory_space<vmem>>, vector<1x256xf32>
    %312 = vector.broadcast %311 : vector<1x256xf32> to vector<8x256xf32>
    %313 = arith.addf %310, %312 : vector<8x256xf32>
    %314 = arith.addf %260, %313 : vector<8x256xf32>
    %c0_104 = arith.constant 0 : index
    %c0_105 = arith.constant 0 : index
    %315 = vector.load %arg13[%c0_104, %c0_105] : memref<1x256xf32, #tpu.memory_space<vmem>>, vector<1x256xf32>
    %c0_106 = arith.constant 0 : index
    %c0_107 = arith.constant 0 : index
    %316 = vector.load %arg14[%c0_106, %c0_107] : memref<1x256xf32, #tpu.memory_space<vmem>>, vector<1x256xf32>
    %cst_108 = arith.constant dense<0.000000e+00> : vector<8xf32>
    %317 = vector.multi_reduction <add>, %314, %cst_108 [1] : vector<8x256xf32> to vector<8xf32>
    %318 = vector.shape_cast %317 : vector<8xf32> to vector<8x1xf32>
    %cst_109 = arith.constant 2.560000e+02 : f32
    %319 = vector.broadcast %cst_109 : f32 to vector<8x1xf32>
    %320 = arith.divf %318, %319 : vector<8x1xf32>
    %321 = vector.broadcast %320 : vector<8x1xf32> to vector<8x256xf32>
    %322 = arith.subf %314, %321 : vector<8x256xf32>
    %323 = arith.mulf %322, %322 : vector<8x256xf32>
    %cst_110 = arith.constant dense<0.000000e+00> : vector<8xf32>
    %324 = vector.multi_reduction <add>, %323, %cst_110 [1] : vector<8x256xf32> to vector<8xf32>
    %325 = vector.shape_cast %324 : vector<8xf32> to vector<8x1xf32>
    %cst_111 = arith.constant 2.560000e+02 : f32
    %326 = vector.broadcast %cst_111 : f32 to vector<8x1xf32>
    %327 = arith.divf %325, %326 : vector<8x1xf32>
    %cst_112 = arith.constant 9.99999974E-6 : f32
    %328 = vector.broadcast %cst_112 : f32 to vector<8x1xf32>
    %329 = arith.addf %327, %328 : vector<8x1xf32>
    %330 = math.rsqrt %329 : vector<8x1xf32>
    %331 = vector.broadcast %330 : vector<8x1xf32> to vector<8x256xf32>
    %332 = arith.mulf %322, %331 : vector<8x256xf32>
    %333 = vector.broadcast %315 : vector<1x256xf32> to vector<8x256xf32>
    %334 = arith.mulf %332, %333 : vector<8x256xf32>
    %335 = vector.broadcast %316 : vector<1x256xf32> to vector<8x256xf32>
    %336 = arith.addf %334, %335 : vector<8x256xf32>
    %c0_113 = arith.constant 0 : index
    %c0_114 = arith.constant 0 : index
    %337 = vector.load %arg15[%c0_113, %c0_114] : memref<8x256xf32, #tpu.memory_space<vmem>>, vector<8x256xf32>
    tpu.vector_store %arg15[%c0_113, %c0_114], %336 {strides = array<i32>} : memref<8x256xf32, #tpu.memory_space<vmem>>, vector<8x256xf32>,
    return
  }
  func.func @transform_0(%arg0: i32) -> (i32, i32) {
    %c0_i32 = arith.constant 0 : i32
    %c0_i32_0 = arith.constant 0 : i32
    %c0_i32_1 = arith.constant 0 : i32
    return %c0_i32, %c0_i32_0 : i32, i32
  }
  func.func @transform_1(%arg0: i32) -> (i32, i32) {
    %c0_i32 = arith.constant 0 : i32
    %c0_i32_0 = arith.constant 0 : i32
    %c0_i32_1 = arith.constant 0 : i32
    return %c0_i32, %c0_i32_0 : i32, i32
  }
  func.func @transform_2(%arg0: i32) -> (i32, i32) {
    %c0_i32 = arith.constant 0 : i32
    %c0_i32_0 = arith.constant 0 : i32
    %c0_i32_1 = arith.constant 0 : i32
    return %c0_i32, %c0_i32_0 : i32, i32
  }
  func.func @transform_3(%arg0: i32) -> (i32, i32) {
    %c0_i32 = arith.constant 0 : i32
    %c0_i32_0 = arith.constant 0 : i32
    %c0_i32_1 = arith.constant 0 : i32
    return %c0_i32, %c0_i32_0 : i32, i32
  }
  func.func @transform_4(%arg0: i32) -> (i32, i32) {
    %c0_i32 = arith.constant 0 : i32
    %c0_i32_0 = arith.constant 0 : i32
    %c0_i32_1 = arith.constant 0 : i32
    return %c0_i32, %c0_i32_0 : i32, i32
  }
  func.func @transform_5(%arg0: i32) -> (i32, i32) {
    %c0_i32 = arith.constant 0 : i32
    %c0_i32_0 = arith.constant 0 : i32
    %c0_i32_1 = arith.constant 0 : i32
    return %c0_i32, %c0_i32_0 : i32, i32
  }
  func.func @transform_6(%arg0: i32) -> (i32, i32) {
    %c0_i32 = arith.constant 0 : i32
    %c0_i32_0 = arith.constant 0 : i32
    %c0_i32_1 = arith.constant 0 : i32
    return %c0_i32, %c0_i32_0 : i32, i32
  }
  func.func @transform_7(%arg0: i32) -> (i32, i32) {
    %c0_i32 = arith.constant 0 : i32
    %c0_i32_0 = arith.constant 0 : i32
    %c0_i32_1 = arith.constant 0 : i32
    return %c0_i32, %c0_i32_0 : i32, i32
  }
  func.func @transform_8(%arg0: i32) -> (i32, i32) {
    %c0_i32 = arith.constant 0 : i32
    %c0_i32_0 = arith.constant 0 : i32
    %c0_i32_1 = arith.constant 0 : i32
    return %c0_i32, %c0_i32_0 : i32, i32
  }
  func.func @transform_9(%arg0: i32) -> (i32, i32) {
    %c0_i32 = arith.constant 0 : i32
    %c0_i32_0 = arith.constant 0 : i32
    %c0_i32_1 = arith.constant 0 : i32
    return %c0_i32, %c0_i32_0 : i32, i32
  }
  func.func @transform_10(%arg0: i32) -> (i32, i32) {
    %c0_i32 = arith.constant 0 : i32
    %c0_i32_0 = arith.constant 0 : i32
    %c0_i32_1 = arith.constant 0 : i32
    return %c0_i32, %c0_i32_0 : i32, i32
  }
  func.func @transform_11(%arg0: i32) -> (i32, i32) {
    %c0_i32 = arith.constant 0 : i32
    %c0_i32_0 = arith.constant 0 : i32
    %c0_i32_1 = arith.constant 0 : i32
    return %c0_i32, %c0_i32_0 : i32, i32
  }
  func.func @transform_12(%arg0: i32) -> (i32, i32) {
    %c0_i32 = arith.constant 0 : i32
    %c0_i32_0 = arith.constant 0 : i32
    %c0_i32_1 = arith.constant 0 : i32
    return %c0_i32, %c0_i32_0 : i32, i32
  }
  func.func @transform_13(%arg0: i32) -> (i32, i32) {
    %c0_i32 = arith.constant 0 : i32
    %c0_i32_0 = arith.constant 0 : i32
    %c0_i32_1 = arith.constant 0 : i32
    return %c0_i32, %c0_i32_0 : i32, i32
  }
  func.func @transform_14(%arg0: i32) -> (i32, i32) {
    %c0_i32 = arith.constant 0 : i32
    %c0_i32_0 = arith.constant 0 : i32
    %c0_i32_1 = arith.constant 0 : i32
    return %c0_i32, %c0_i32_0 : i32, i32
  }
}

module attributes {stable_mosaic.version = 11 : i64} {
  func.func @_patch_embed_kernel(%arg0: i32, %arg1: memref<8x256xf32, #tpu.memory_space<vmem>>, %arg2: memref<1x256xf32, #tpu.memory_space<vmem>>, %arg3: memref<1x256xf32, #tpu.memory_space<vmem>>, %arg4: memref<256x256xbf16, #tpu.memory_space<vmem>>, %arg5: memref<1x256xf32, #tpu.memory_space<vmem>>, %arg6: memref<1x256xf32, #tpu.memory_space<vmem>>, %arg7: memref<1x256xf32, #tpu.memory_space<vmem>>, %arg8: memref<8x256xf32, #tpu.memory_space<vmem>>, %arg9: memref<8x256xf32, #tpu.memory_space<vmem>>) attributes {dimension_semantics = [#tpu.dimension_semantics<arbitrary>], iteration_bounds = array<i64: 1>, scalar_prefetch = 0 : i64, scratch_operands = 0 : i64, tpu.core_type = #tpu.core_type<tc>, window_params = [{pipeline_mode = #tpu.pipeline_mode<synchronous>, transform_indices = @transform_0, window_bounds = array<i64: 8, 256>}, {pipeline_mode = #tpu.pipeline_mode<synchronous>, transform_indices = @transform_1, window_bounds = array<i64: 1, 256>}, {pipeline_mode = #tpu.pipeline_mode<synchronous>, transform_indices = @transform_2, window_bounds = array<i64: 1, 256>}, {pipeline_mode = #tpu.pipeline_mode<synchronous>, transform_indices = @transform_3, window_bounds = array<i64: 256, 256>}, {pipeline_mode = #tpu.pipeline_mode<synchronous>, transform_indices = @transform_4, window_bounds = array<i64: 1, 256>}, {pipeline_mode = #tpu.pipeline_mode<synchronous>, transform_indices = @transform_5, window_bounds = array<i64: 1, 256>}, {pipeline_mode = #tpu.pipeline_mode<synchronous>, transform_indices = @transform_6, window_bounds = array<i64: 1, 256>}, {pipeline_mode = #tpu.pipeline_mode<synchronous>, transform_indices = @transform_7, window_bounds = array<i64: 8, 256>}, {pipeline_mode = #tpu.pipeline_mode<synchronous>, transform_indices = @transform_8, window_bounds = array<i64: 8, 256>}]} {
    %c0 = arith.constant 0 : index
    %c0_0 = arith.constant 0 : index
    %0 = vector.load %arg1[%c0, %c0_0] : memref<8x256xf32, #tpu.memory_space<vmem>>, vector<8x256xf32>
    %c0_1 = arith.constant 0 : index
    %c0_2 = arith.constant 0 : index
    %1 = vector.load %arg2[%c0_1, %c0_2] : memref<1x256xf32, #tpu.memory_space<vmem>>, vector<1x256xf32>
    %c0_3 = arith.constant 0 : index
    %c0_4 = arith.constant 0 : index
    %2 = vector.load %arg3[%c0_3, %c0_4] : memref<1x256xf32, #tpu.memory_space<vmem>>, vector<1x256xf32>
    %cst = arith.constant dense<0.000000e+00> : vector<8xf32>
    %3 = vector.multi_reduction <add>, %0, %cst [1] : vector<8x256xf32> to vector<8xf32>
    %4 = vector.shape_cast %3 : vector<8xf32> to vector<8x1xf32>
    %cst_5 = arith.constant 2.560000e+02 : f32
    %5 = vector.broadcast %cst_5 : f32 to vector<8x1xf32>
    %6 = arith.divf %4, %5 : vector<8x1xf32>
    %7 = vector.broadcast %6 : vector<8x1xf32> to vector<8x256xf32>
    %8 = arith.subf %0, %7 : vector<8x256xf32>
    %9 = arith.mulf %8, %8 : vector<8x256xf32>
    %cst_6 = arith.constant dense<0.000000e+00> : vector<8xf32>
    %10 = vector.multi_reduction <add>, %9, %cst_6 [1] : vector<8x256xf32> to vector<8xf32>
    %11 = vector.shape_cast %10 : vector<8xf32> to vector<8x1xf32>
    %cst_7 = arith.constant 2.560000e+02 : f32
    %12 = vector.broadcast %cst_7 : f32 to vector<8x1xf32>
    %13 = arith.divf %11, %12 : vector<8x1xf32>
    %cst_8 = arith.constant 9.99999974E-6 : f32
    %14 = vector.broadcast %cst_8 : f32 to vector<8x1xf32>
    %15 = arith.addf %13, %14 : vector<8x1xf32>
    %16 = math.rsqrt %15 : vector<8x1xf32>
    %17 = vector.broadcast %16 : vector<8x1xf32> to vector<8x256xf32>
    %18 = arith.mulf %8, %17 : vector<8x256xf32>
    %19 = vector.broadcast %1 : vector<1x256xf32> to vector<8x256xf32>
    %20 = arith.mulf %18, %19 : vector<8x256xf32>
    %21 = vector.broadcast %2 : vector<1x256xf32> to vector<8x256xf32>
    %22 = arith.addf %20, %21 : vector<8x256xf32>
    %23 = arith.truncf %22 : vector<8x256xf32> to vector<8x256xbf16>
    %c0_9 = arith.constant 0 : index
    %c0_10 = arith.constant 0 : index
    %24 = vector.load %arg4[%c0_9, %c0_10] : memref<256x256xbf16, #tpu.memory_space<vmem>>, vector<256x256xbf16>
    %cst_11 = arith.constant dense<0.000000e+00> : vector<8x256xf32>
    %25 = tpu.matmul %23, %24, %cst_11 {dimension_numbers = #tpu.dot_dimension_numbers<[1], [0], [0], [1], [0, 0, 1, 1], [], []>} : vector<8x256xbf16>, vector<256x256xbf16>, vector<8x256xf32> -> vector<8x256xf32>
    %c0_12 = arith.constant 0 : index
    %c0_13 = arith.constant 0 : index
    %26 = vector.load %arg5[%c0_12, %c0_13] : memref<1x256xf32, #tpu.memory_space<vmem>>, vector<1x256xf32>
    %27 = vector.broadcast %26 : vector<1x256xf32> to vector<8x256xf32>
    %28 = arith.addf %25, %27 : vector<8x256xf32>
    %c0_14 = arith.constant 0 : index
    %c0_15 = arith.constant 0 : index
    %29 = vector.load %arg6[%c0_14, %c0_15] : memref<1x256xf32, #tpu.memory_space<vmem>>, vector<1x256xf32>
    %c0_16 = arith.constant 0 : index
    %c0_17 = arith.constant 0 : index
    %30 = vector.load %arg7[%c0_16, %c0_17] : memref<1x256xf32, #tpu.memory_space<vmem>>, vector<1x256xf32>
    %cst_18 = arith.constant dense<0.000000e+00> : vector<8xf32>
    %31 = vector.multi_reduction <add>, %28, %cst_18 [1] : vector<8x256xf32> to vector<8xf32>
    %32 = vector.shape_cast %31 : vector<8xf32> to vector<8x1xf32>
    %cst_19 = arith.constant 2.560000e+02 : f32
    %33 = vector.broadcast %cst_19 : f32 to vector<8x1xf32>
    %34 = arith.divf %32, %33 : vector<8x1xf32>
    %35 = vector.broadcast %34 : vector<8x1xf32> to vector<8x256xf32>
    %36 = arith.subf %28, %35 : vector<8x256xf32>
    %37 = arith.mulf %36, %36 : vector<8x256xf32>
    %cst_20 = arith.constant dense<0.000000e+00> : vector<8xf32>
    %38 = vector.multi_reduction <add>, %37, %cst_20 [1] : vector<8x256xf32> to vector<8xf32>
    %39 = vector.shape_cast %38 : vector<8xf32> to vector<8x1xf32>
    %cst_21 = arith.constant 2.560000e+02 : f32
    %40 = vector.broadcast %cst_21 : f32 to vector<8x1xf32>
    %41 = arith.divf %39, %40 : vector<8x1xf32>
    %cst_22 = arith.constant 9.99999974E-6 : f32
    %42 = vector.broadcast %cst_22 : f32 to vector<8x1xf32>
    %43 = arith.addf %41, %42 : vector<8x1xf32>
    %44 = math.rsqrt %43 : vector<8x1xf32>
    %45 = vector.broadcast %44 : vector<8x1xf32> to vector<8x256xf32>
    %46 = arith.mulf %36, %45 : vector<8x256xf32>
    %47 = vector.broadcast %29 : vector<1x256xf32> to vector<8x256xf32>
    %48 = arith.mulf %46, %47 : vector<8x256xf32>
    %49 = vector.broadcast %30 : vector<1x256xf32> to vector<8x256xf32>
    %50 = arith.addf %48, %49 : vector<8x256xf32>
    %c0_23 = arith.constant 0 : index
    %c0_24 = arith.constant 0 : index
    %51 = vector.load %arg8[%c0_23, %c0_24] : memref<8x256xf32, #tpu.memory_space<vmem>>, vector<8x256xf32>
    %52 = arith.addf %50, %51 : vector<8x256xf32>
    %c0_25 = arith.constant 0 : index
    %c0_26 = arith.constant 0 : index
    %53 = vector.load %arg9[%c0_25, %c0_26] : memref<8x256xf32, #tpu.memory_space<vmem>>, vector<8x256xf32>
    tpu.vector_store %arg9[%c0_25, %c0_26], %52 {strides = array<i32>} : memref<8x256xf32, #tpu.memory_space<vmem>>, vector<8x256xf32>,
    return
  }
  func.func @transform_0(%arg0: i32) -> (i32, i32) {
    %c0_i32 = arith.constant 0 : i32
    %c0_i32_0 = arith.constant 0 : i32
    %c0_i32_1 = arith.constant 0 : i32
    return %c0_i32, %c0_i32_0 : i32, i32
  }
  func.func @transform_1(%arg0: i32) -> (i32, i32) {
    %c0_i32 = arith.constant 0 : i32
    %c0_i32_0 = arith.constant 0 : i32
    %c0_i32_1 = arith.constant 0 : i32
    return %c0_i32, %c0_i32_0 : i32, i32
  }
  func.func @transform_2(%arg0: i32) -> (i32, i32) {
    %c0_i32 = arith.constant 0 : i32
    %c0_i32_0 = arith.constant 0 : i32
    %c0_i32_1 = arith.constant 0 : i32
    return %c0_i32, %c0_i32_0 : i32, i32
  }
  func.func @transform_3(%arg0: i32) -> (i32, i32) {
    %c0_i32 = arith.constant 0 : i32
    %c0_i32_0 = arith.constant 0 : i32
    %c0_i32_1 = arith.constant 0 : i32
    return %c0_i32, %c0_i32_0 : i32, i32
  }
  func.func @transform_4(%arg0: i32) -> (i32, i32) {
    %c0_i32 = arith.constant 0 : i32
    %c0_i32_0 = arith.constant 0 : i32
    %c0_i32_1 = arith.constant 0 : i32
    return %c0_i32, %c0_i32_0 : i32, i32
  }
  func.func @transform_5(%arg0: i32) -> (i32, i32) {
    %c0_i32 = arith.constant 0 : i32
    %c0_i32_0 = arith.constant 0 : i32
    %c0_i32_1 = arith.constant 0 : i32
    return %c0_i32, %c0_i32_0 : i32, i32
  }
  func.func @transform_6(%arg0: i32) -> (i32, i32) {
    %c0_i32 = arith.constant 0 : i32
    %c0_i32_0 = arith.constant 0 : i32
    %c0_i32_1 = arith.constant 0 : i32
    return %c0_i32, %c0_i32_0 : i32, i32
  }
  func.func @transform_7(%arg0: i32) -> (i32, i32) {
    %c0_i32 = arith.constant 0 : i32
    %c0_i32_0 = arith.constant 0 : i32
    %c0_i32_1 = arith.constant 0 : i32
    return %c0_i32, %c0_i32_0 : i32, i32
  }
  func.func @transform_8(%arg0: i32) -> (i32, i32) {
    %c0_i32 = arith.constant 0 : i32
    %c0_i32_0 = arith.constant 0 : i32
    %c0_i32_1 = arith.constant 0 : i32
    return %c0_i32, %c0_i32_0 : i32, i32
  }
}

module attributes {stable_mosaic.version = 11 : i64} {
  func.func @_encoder_layer_kernel(%arg0: i32, %arg1: memref<8x256xf32, #tpu.memory_space<vmem>>, %arg2: memref<8x8xf32, #tpu.memory_space<vmem>>, %arg3: memref<256x768xbf16, #tpu.memory_space<vmem>>, %arg4: memref<1x768xf32, #tpu.memory_space<vmem>>, %arg5: memref<256x256xbf16, #tpu.memory_space<vmem>>, %arg6: memref<1x256xf32, #tpu.memory_space<vmem>>, %arg7: memref<1x256xf32, #tpu.memory_space<vmem>>, %arg8: memref<1x256xf32, #tpu.memory_space<vmem>>, %arg9: memref<256x2048xbf16, #tpu.memory_space<vmem>>, %arg10: memref<1x2048xf32, #tpu.memory_space<vmem>>, %arg11: memref<2048x256xbf16, #tpu.memory_space<vmem>>, %arg12: memref<1x256xf32, #tpu.memory_space<vmem>>, %arg13: memref<1x256xf32, #tpu.memory_space<vmem>>, %arg14: memref<1x256xf32, #tpu.memory_space<vmem>>, %arg15: memref<8x256xf32, #tpu.memory_space<vmem>>) attributes {dimension_semantics = [#tpu.dimension_semantics<arbitrary>], iteration_bounds = array<i64: 1>, scalar_prefetch = 0 : i64, scratch_operands = 0 : i64, tpu.core_type = #tpu.core_type<tc>, window_params = [{pipeline_mode = #tpu.pipeline_mode<synchronous>, transform_indices = @transform_0, window_bounds = array<i64: 8, 256>}, {pipeline_mode = #tpu.pipeline_mode<synchronous>, transform_indices = @transform_1, window_bounds = array<i64: 8, 8>}, {pipeline_mode = #tpu.pipeline_mode<synchronous>, transform_indices = @transform_2, window_bounds = array<i64: 256, 768>}, {pipeline_mode = #tpu.pipeline_mode<synchronous>, transform_indices = @transform_3, window_bounds = array<i64: 1, 768>}, {pipeline_mode = #tpu.pipeline_mode<synchronous>, transform_indices = @transform_4, window_bounds = array<i64: 256, 256>}, {pipeline_mode = #tpu.pipeline_mode<synchronous>, transform_indices = @transform_5, window_bounds = array<i64: 1, 256>}, {pipeline_mode = #tpu.pipeline_mode<synchronous>, transform_indices = @transform_6, window_bounds = array<i64: 1, 256>}, {pipeline_mode = #tpu.pipeline_mode<synchronous>, transform_indices = @transform_7, window_bounds = array<i64: 1, 256>}, {pipeline_mode = #tpu.pipeline_mode<synchronous>, transform_indices = @transform_8, window_bounds = array<i64: 256, 2048>}, {pipeline_mode = #tpu.pipeline_mode<synchronous>, transform_indices = @transform_9, window_bounds = array<i64: 1, 2048>}, {pipeline_mode = #tpu.pipeline_mode<synchronous>, transform_indices = @transform_10, window_bounds = array<i64: 2048, 256>}, {pipeline_mode = #tpu.pipeline_mode<synchronous>, transform_indices = @transform_11, window_bounds = array<i64: 1, 256>}, {pipeline_mode = #tpu.pipeline_mode<synchronous>, transform_indices = @transform_12, window_bounds = array<i64: 1, 256>}, {pipeline_mode = #tpu.pipeline_mode<synchronous>, transform_indices = @transform_13, window_bounds = array<i64: 1, 256>}, {pipeline_mode = #tpu.pipeline_mode<synchronous>, transform_indices = @transform_14, window_bounds = array<i64: 8, 256>}]} {
    %c0 = arith.constant 0 : index
    %c0_0 = arith.constant 0 : index
    %0 = vector.load %arg1[%c0, %c0_0] : memref<8x256xf32, #tpu.memory_space<vmem>>, vector<8x256xf32>
    %1 = arith.truncf %0 : vector<8x256xf32> to vector<8x256xbf16>
    %c0_1 = arith.constant 0 : index
    %c0_2 = arith.constant 0 : index
    %2 = vector.load %arg3[%c0_1, %c0_2] : memref<256x768xbf16, #tpu.memory_space<vmem>>, vector<256x768xbf16>
    %cst = arith.constant dense<0.000000e+00> : vector<8x768xf32>
    %3 = tpu.matmul %1, %2, %cst {dimension_numbers = #tpu.dot_dimension_numbers<[1], [0], [0], [1], [0, 0, 1, 1], [], []>} : vector<8x256xbf16>, vector<256x768xbf16>, vector<8x768xf32> -> vector<8x768xf32>
    %c0_3 = arith.constant 0 : index
    %c0_4 = arith.constant 0 : index
    %4 = vector.load %arg4[%c0_3, %c0_4] : memref<1x768xf32, #tpu.memory_space<vmem>>, vector<1x768xf32>
    %5 = vector.broadcast %4 : vector<1x768xf32> to vector<8x768xf32>
    %6 = arith.addf %3, %5 : vector<8x768xf32>
    %7 = vector.extract_strided_slice %6 {offsets = [0, 0], sizes = [8, 256], strides = [1, 1]} : vector<8x768xf32> to vector<8x256xf32>
    %cst_5 = arith.constant 0.176776692 : f32
    %8 = vector.broadcast %cst_5 : f32 to vector<8x256xf32>
    %9 = arith.mulf %7, %8 : vector<8x256xf32>
    %10 = vector.extract_strided_slice %6 {offsets = [0, 256], sizes = [8, 256], strides = [1, 1]} : vector<8x768xf32> to vector<8x256xf32>
    %11 = vector.extract_strided_slice %6 {offsets = [0, 512], sizes = [8, 256], strides = [1, 1]} : vector<8x768xf32> to vector<8x256xf32>
    %12 = arith.truncf %10 : vector<8x256xf32> to vector<8x256xbf16>
    %13 = tpu.iota {dimensions = array<i32: 1>} : vector<8x256xi32>
    %c0_6 = arith.constant 0 : index
    %c0_7 = arith.constant 0 : index
    %14 = vector.load %arg2[%c0_6, %c0_7] : memref<8x8xf32, #tpu.memory_space<vmem>>, vector<8x8xf32>
    %cst_8 = arith.constant 0.000000e+00 : f32
    %15 = vector.broadcast %cst_8 : f32 to vector<8x256xf32>
    %c0_i32 = arith.constant 0 : i32
    %16 = vector.broadcast %c0_i32 : i32 to vector<8x256xi32>
    %17 = arith.cmpi sge, %13, %16 : vector<8x256xi32>
    %c32_i32 = arith.constant 32 : i32
    %18 = vector.broadcast %c32_i32 : i32 to vector<8x256xi32>
    %19 = arith.cmpi slt, %13, %18 : vector<8x256xi32>
    %20 = arith.andi %17, %19 : vector<8x256xi1>
    %cst_9 = arith.constant 1.000000e+00 : f32
    %cst_10 = arith.constant 0.000000e+00 : f32
    %21 = vector.broadcast %cst_9 : f32 to vector<8x256xf32>
    %22 = vector.broadcast %cst_10 : f32 to vector<8x256xf32>
    %23 = arith.select %20, %21, %22 : vector<8x256xi1>, vector<8x256xf32>
    %24 = arith.mulf %9, %23 : vector<8x256xf32>
    %25 = arith.truncf %24 : vector<8x256xf32> to vector<8x256xbf16>
    %cst_11 = arith.constant dense<0.000000e+00> : vector<8x8xf32>
    %26 = tpu.matmul %25, %12, %cst_11 {dimension_numbers = #tpu.dot_dimension_numbers<[1], [1], [0], [0], [0, 0, 1, 0], [], []>} : vector<8x256xbf16>, vector<8x256xbf16>, vector<8x8xf32> -> vector<8x8xf32>
    %27 = arith.addf %26, %14 : vector<8x8xf32>
    %cst_12 = arith.constant dense<0xFF800000> : vector<8xf32>
    %28 = vector.multi_reduction <maximumf>, %27, %cst_12 [1] : vector<8x8xf32> to vector<8xf32>
    %29 = vector.shape_cast %28 : vector<8xf32> to vector<8x1xf32>
    %30 = vector.broadcast %29 : vector<8x1xf32> to vector<8x8xf32>
    %31 = arith.subf %27, %30 : vector<8x8xf32>
    %32 = math.exp %31 : vector<8x8xf32>
    %cst_13 = arith.constant dense<0.000000e+00> : vector<8xf32>
    %33 = vector.multi_reduction <add>, %32, %cst_13 [1] : vector<8x8xf32> to vector<8xf32>
    %34 = vector.shape_cast %33 : vector<8xf32> to vector<8x1xf32>
    %35 = tpu.reciprocal %34 {approx = true} : vector<8x1xf32> -> vector<8x1xf32>
    %36 = vector.broadcast %35 : vector<8x1xf32> to vector<8x8xf32>
    %37 = arith.mulf %32, %36 : vector<8x8xf32>
    %38 = arith.truncf %37 : vector<8x8xf32> to vector<8x8xbf16>
    %39 = arith.mulf %11, %23 : vector<8x256xf32>
    %40 = arith.truncf %39 : vector<8x256xf32> to vector<8x256xbf16>
    %cst_14 = arith.constant dense<0.000000e+00> : vector<8x256xf32>
    %41 = tpu.matmul %38, %40, %cst_14 {dimension_numbers = #tpu.dot_dimension_numbers<[1], [0], [0], [1], [0, 0, 1, 1], [], []>} : vector<8x8xbf16>, vector<8x256xbf16>, vector<8x256xf32> -> vector<8x256xf32>
    %42 = arith.addf %15, %41 : vector<8x256xf32>
    %c32_i32_15 = arith.constant 32 : i32
    %43 = vector.broadcast %c32_i32_15 : i32 to vector<8x256xi32>
    %44 = arith.cmpi sge, %13, %43 : vector<8x256xi32>
    %c64_i32 = arith.constant 64 : i32
    %45 = vector.broadcast %c64_i32 : i32 to vector<8x256xi32>
    %46 = arith.cmpi slt, %13, %45 : vector<8x256xi32>
    %47 = arith.andi %44, %46 : vector<8x256xi1>
    %cst_16 = arith.constant 1.000000e+00 : f32
    %cst_17 = arith.constant 0.000000e+00 : f32
    %48 = vector.broadcast %cst_16 : f32 to vector<8x256xf32>
    %49 = vector.broadcast %cst_17 : f32 to vector<8x256xf32>
    %50 = arith.select %47, %48, %49 : vector<8x256xi1>, vector<8x256xf32>
    %51 = arith.mulf %9, %50 : vector<8x256xf32>
    %52 = arith.truncf %51 : vector<8x256xf32> to vector<8x256xbf16>
    %cst_18 = arith.constant dense<0.000000e+00> : vector<8x8xf32>
    %53 = tpu.matmul %52, %12, %cst_18 {dimension_numbers = #tpu.dot_dimension_numbers<[1], [1], [0], [0], [0, 0, 1, 0], [], []>} : vector<8x256xbf16>, vector<8x256xbf16>, vector<8x8xf32> -> vector<8x8xf32>
    %54 = arith.addf %53, %14 : vector<8x8xf32>
    %cst_19 = arith.constant dense<0xFF800000> : vector<8xf32>
    %55 = vector.multi_reduction <maximumf>, %54, %cst_19 [1] : vector<8x8xf32> to vector<8xf32>
    %56 = vector.shape_cast %55 : vector<8xf32> to vector<8x1xf32>
    %57 = vector.broadcast %56 : vector<8x1xf32> to vector<8x8xf32>
    %58 = arith.subf %54, %57 : vector<8x8xf32>
    %59 = math.exp %58 : vector<8x8xf32>
    %cst_20 = arith.constant dense<0.000000e+00> : vector<8xf32>
    %60 = vector.multi_reduction <add>, %59, %cst_20 [1] : vector<8x8xf32> to vector<8xf32>
    %61 = vector.shape_cast %60 : vector<8xf32> to vector<8x1xf32>
    %62 = tpu.reciprocal %61 {approx = true} : vector<8x1xf32> -> vector<8x1xf32>
    %63 = vector.broadcast %62 : vector<8x1xf32> to vector<8x8xf32>
    %64 = arith.mulf %59, %63 : vector<8x8xf32>
    %65 = arith.truncf %64 : vector<8x8xf32> to vector<8x8xbf16>
    %66 = arith.mulf %11, %50 : vector<8x256xf32>
    %67 = arith.truncf %66 : vector<8x256xf32> to vector<8x256xbf16>
    %cst_21 = arith.constant dense<0.000000e+00> : vector<8x256xf32>
    %68 = tpu.matmul %65, %67, %cst_21 {dimension_numbers = #tpu.dot_dimension_numbers<[1], [0], [0], [1], [0, 0, 1, 1], [], []>} : vector<8x8xbf16>, vector<8x256xbf16>, vector<8x256xf32> -> vector<8x256xf32>
    %69 = arith.addf %42, %68 : vector<8x256xf32>
    %c64_i32_22 = arith.constant 64 : i32
    %70 = vector.broadcast %c64_i32_22 : i32 to vector<8x256xi32>
    %71 = arith.cmpi sge, %13, %70 : vector<8x256xi32>
    %c96_i32 = arith.constant 96 : i32
    %72 = vector.broadcast %c96_i32 : i32 to vector<8x256xi32>
    %73 = arith.cmpi slt, %13, %72 : vector<8x256xi32>
    %74 = arith.andi %71, %73 : vector<8x256xi1>
    %cst_23 = arith.constant 1.000000e+00 : f32
    %cst_24 = arith.constant 0.000000e+00 : f32
    %75 = vector.broadcast %cst_23 : f32 to vector<8x256xf32>
    %76 = vector.broadcast %cst_24 : f32 to vector<8x256xf32>
    %77 = arith.select %74, %75, %76 : vector<8x256xi1>, vector<8x256xf32>
    %78 = arith.mulf %9, %77 : vector<8x256xf32>
    %79 = arith.truncf %78 : vector<8x256xf32> to vector<8x256xbf16>
    %cst_25 = arith.constant dense<0.000000e+00> : vector<8x8xf32>
    %80 = tpu.matmul %79, %12, %cst_25 {dimension_numbers = #tpu.dot_dimension_numbers<[1], [1], [0], [0], [0, 0, 1, 0], [], []>} : vector<8x256xbf16>, vector<8x256xbf16>, vector<8x8xf32> -> vector<8x8xf32>
    %81 = arith.addf %80, %14 : vector<8x8xf32>
    %cst_26 = arith.constant dense<0xFF800000> : vector<8xf32>
    %82 = vector.multi_reduction <maximumf>, %81, %cst_26 [1] : vector<8x8xf32> to vector<8xf32>
    %83 = vector.shape_cast %82 : vector<8xf32> to vector<8x1xf32>
    %84 = vector.broadcast %83 : vector<8x1xf32> to vector<8x8xf32>
    %85 = arith.subf %81, %84 : vector<8x8xf32>
    %86 = math.exp %85 : vector<8x8xf32>
    %cst_27 = arith.constant dense<0.000000e+00> : vector<8xf32>
    %87 = vector.multi_reduction <add>, %86, %cst_27 [1] : vector<8x8xf32> to vector<8xf32>
    %88 = vector.shape_cast %87 : vector<8xf32> to vector<8x1xf32>
    %89 = tpu.reciprocal %88 {approx = true} : vector<8x1xf32> -> vector<8x1xf32>
    %90 = vector.broadcast %89 : vector<8x1xf32> to vector<8x8xf32>
    %91 = arith.mulf %86, %90 : vector<8x8xf32>
    %92 = arith.truncf %91 : vector<8x8xf32> to vector<8x8xbf16>
    %93 = arith.mulf %11, %77 : vector<8x256xf32>
    %94 = arith.truncf %93 : vector<8x256xf32> to vector<8x256xbf16>
    %cst_28 = arith.constant dense<0.000000e+00> : vector<8x256xf32>
    %95 = tpu.matmul %92, %94, %cst_28 {dimension_numbers = #tpu.dot_dimension_numbers<[1], [0], [0], [1], [0, 0, 1, 1], [], []>} : vector<8x8xbf16>, vector<8x256xbf16>, vector<8x256xf32> -> vector<8x256xf32>
    %96 = arith.addf %69, %95 : vector<8x256xf32>
    %c96_i32_29 = arith.constant 96 : i32
    %97 = vector.broadcast %c96_i32_29 : i32 to vector<8x256xi32>
    %98 = arith.cmpi sge, %13, %97 : vector<8x256xi32>
    %c128_i32 = arith.constant 128 : i32
    %99 = vector.broadcast %c128_i32 : i32 to vector<8x256xi32>
    %100 = arith.cmpi slt, %13, %99 : vector<8x256xi32>
    %101 = arith.andi %98, %100 : vector<8x256xi1>
    %cst_30 = arith.constant 1.000000e+00 : f32
    %cst_31 = arith.constant 0.000000e+00 : f32
    %102 = vector.broadcast %cst_30 : f32 to vector<8x256xf32>
    %103 = vector.broadcast %cst_31 : f32 to vector<8x256xf32>
    %104 = arith.select %101, %102, %103 : vector<8x256xi1>, vector<8x256xf32>
    %105 = arith.mulf %9, %104 : vector<8x256xf32>
    %106 = arith.truncf %105 : vector<8x256xf32> to vector<8x256xbf16>
    %cst_32 = arith.constant dense<0.000000e+00> : vector<8x8xf32>
    %107 = tpu.matmul %106, %12, %cst_32 {dimension_numbers = #tpu.dot_dimension_numbers<[1], [1], [0], [0], [0, 0, 1, 0], [], []>} : vector<8x256xbf16>, vector<8x256xbf16>, vector<8x8xf32> -> vector<8x8xf32>
    %108 = arith.addf %107, %14 : vector<8x8xf32>
    %cst_33 = arith.constant dense<0xFF800000> : vector<8xf32>
    %109 = vector.multi_reduction <maximumf>, %108, %cst_33 [1] : vector<8x8xf32> to vector<8xf32>
    %110 = vector.shape_cast %109 : vector<8xf32> to vector<8x1xf32>
    %111 = vector.broadcast %110 : vector<8x1xf32> to vector<8x8xf32>
    %112 = arith.subf %108, %111 : vector<8x8xf32>
    %113 = math.exp %112 : vector<8x8xf32>
    %cst_34 = arith.constant dense<0.000000e+00> : vector<8xf32>
    %114 = vector.multi_reduction <add>, %113, %cst_34 [1] : vector<8x8xf32> to vector<8xf32>
    %115 = vector.shape_cast %114 : vector<8xf32> to vector<8x1xf32>
    %116 = tpu.reciprocal %115 {approx = true} : vector<8x1xf32> -> vector<8x1xf32>
    %117 = vector.broadcast %116 : vector<8x1xf32> to vector<8x8xf32>
    %118 = arith.mulf %113, %117 : vector<8x8xf32>
    %119 = arith.truncf %118 : vector<8x8xf32> to vector<8x8xbf16>
    %120 = arith.mulf %11, %104 : vector<8x256xf32>
    %121 = arith.truncf %120 : vector<8x256xf32> to vector<8x256xbf16>
    %cst_35 = arith.constant dense<0.000000e+00> : vector<8x256xf32>
    %122 = tpu.matmul %119, %121, %cst_35 {dimension_numbers = #tpu.dot_dimension_numbers<[1], [0], [0], [1], [0, 0, 1, 1], [], []>} : vector<8x8xbf16>, vector<8x256xbf16>, vector<8x256xf32> -> vector<8x256xf32>
    %123 = arith.addf %96, %122 : vector<8x256xf32>
    %c128_i32_36 = arith.constant 128 : i32
    %124 = vector.broadcast %c128_i32_36 : i32 to vector<8x256xi32>
    %125 = arith.cmpi sge, %13, %124 : vector<8x256xi32>
    %c160_i32 = arith.constant 160 : i32
    %126 = vector.broadcast %c160_i32 : i32 to vector<8x256xi32>
    %127 = arith.cmpi slt, %13, %126 : vector<8x256xi32>
    %128 = arith.andi %125, %127 : vector<8x256xi1>
    %cst_37 = arith.constant 1.000000e+00 : f32
    %cst_38 = arith.constant 0.000000e+00 : f32
    %129 = vector.broadcast %cst_37 : f32 to vector<8x256xf32>
    %130 = vector.broadcast %cst_38 : f32 to vector<8x256xf32>
    %131 = arith.select %128, %129, %130 : vector<8x256xi1>, vector<8x256xf32>
    %132 = arith.mulf %9, %131 : vector<8x256xf32>
    %133 = arith.truncf %132 : vector<8x256xf32> to vector<8x256xbf16>
    %cst_39 = arith.constant dense<0.000000e+00> : vector<8x8xf32>
    %134 = tpu.matmul %133, %12, %cst_39 {dimension_numbers = #tpu.dot_dimension_numbers<[1], [1], [0], [0], [0, 0, 1, 0], [], []>} : vector<8x256xbf16>, vector<8x256xbf16>, vector<8x8xf32> -> vector<8x8xf32>
    %135 = arith.addf %134, %14 : vector<8x8xf32>
    %cst_40 = arith.constant dense<0xFF800000> : vector<8xf32>
    %136 = vector.multi_reduction <maximumf>, %135, %cst_40 [1] : vector<8x8xf32> to vector<8xf32>
    %137 = vector.shape_cast %136 : vector<8xf32> to vector<8x1xf32>
    %138 = vector.broadcast %137 : vector<8x1xf32> to vector<8x8xf32>
    %139 = arith.subf %135, %138 : vector<8x8xf32>
    %140 = math.exp %139 : vector<8x8xf32>
    %cst_41 = arith.constant dense<0.000000e+00> : vector<8xf32>
    %141 = vector.multi_reduction <add>, %140, %cst_41 [1] : vector<8x8xf32> to vector<8xf32>
    %142 = vector.shape_cast %141 : vector<8xf32> to vector<8x1xf32>
    %143 = tpu.reciprocal %142 {approx = true} : vector<8x1xf32> -> vector<8x1xf32>
    %144 = vector.broadcast %143 : vector<8x1xf32> to vector<8x8xf32>
    %145 = arith.mulf %140, %144 : vector<8x8xf32>
    %146 = arith.truncf %145 : vector<8x8xf32> to vector<8x8xbf16>
    %147 = arith.mulf %11, %131 : vector<8x256xf32>
    %148 = arith.truncf %147 : vector<8x256xf32> to vector<8x256xbf16>
    %cst_42 = arith.constant dense<0.000000e+00> : vector<8x256xf32>
    %149 = tpu.matmul %146, %148, %cst_42 {dimension_numbers = #tpu.dot_dimension_numbers<[1], [0], [0], [1], [0, 0, 1, 1], [], []>} : vector<8x8xbf16>, vector<8x256xbf16>, vector<8x256xf32> -> vector<8x256xf32>
    %150 = arith.addf %123, %149 : vector<8x256xf32>
    %c160_i32_43 = arith.constant 160 : i32
    %151 = vector.broadcast %c160_i32_43 : i32 to vector<8x256xi32>
    %152 = arith.cmpi sge, %13, %151 : vector<8x256xi32>
    %c192_i32 = arith.constant 192 : i32
    %153 = vector.broadcast %c192_i32 : i32 to vector<8x256xi32>
    %154 = arith.cmpi slt, %13, %153 : vector<8x256xi32>
    %155 = arith.andi %152, %154 : vector<8x256xi1>
    %cst_44 = arith.constant 1.000000e+00 : f32
    %cst_45 = arith.constant 0.000000e+00 : f32
    %156 = vector.broadcast %cst_44 : f32 to vector<8x256xf32>
    %157 = vector.broadcast %cst_45 : f32 to vector<8x256xf32>
    %158 = arith.select %155, %156, %157 : vector<8x256xi1>, vector<8x256xf32>
    %159 = arith.mulf %9, %158 : vector<8x256xf32>
    %160 = arith.truncf %159 : vector<8x256xf32> to vector<8x256xbf16>
    %cst_46 = arith.constant dense<0.000000e+00> : vector<8x8xf32>
    %161 = tpu.matmul %160, %12, %cst_46 {dimension_numbers = #tpu.dot_dimension_numbers<[1], [1], [0], [0], [0, 0, 1, 0], [], []>} : vector<8x256xbf16>, vector<8x256xbf16>, vector<8x8xf32> -> vector<8x8xf32>
    %162 = arith.addf %161, %14 : vector<8x8xf32>
    %cst_47 = arith.constant dense<0xFF800000> : vector<8xf32>
    %163 = vector.multi_reduction <maximumf>, %162, %cst_47 [1] : vector<8x8xf32> to vector<8xf32>
    %164 = vector.shape_cast %163 : vector<8xf32> to vector<8x1xf32>
    %165 = vector.broadcast %164 : vector<8x1xf32> to vector<8x8xf32>
    %166 = arith.subf %162, %165 : vector<8x8xf32>
    %167 = math.exp %166 : vector<8x8xf32>
    %cst_48 = arith.constant dense<0.000000e+00> : vector<8xf32>
    %168 = vector.multi_reduction <add>, %167, %cst_48 [1] : vector<8x8xf32> to vector<8xf32>
    %169 = vector.shape_cast %168 : vector<8xf32> to vector<8x1xf32>
    %170 = tpu.reciprocal %169 {approx = true} : vector<8x1xf32> -> vector<8x1xf32>
    %171 = vector.broadcast %170 : vector<8x1xf32> to vector<8x8xf32>
    %172 = arith.mulf %167, %171 : vector<8x8xf32>
    %173 = arith.truncf %172 : vector<8x8xf32> to vector<8x8xbf16>
    %174 = arith.mulf %11, %158 : vector<8x256xf32>
    %175 = arith.truncf %174 : vector<8x256xf32> to vector<8x256xbf16>
    %cst_49 = arith.constant dense<0.000000e+00> : vector<8x256xf32>
    %176 = tpu.matmul %173, %175, %cst_49 {dimension_numbers = #tpu.dot_dimension_numbers<[1], [0], [0], [1], [0, 0, 1, 1], [], []>} : vector<8x8xbf16>, vector<8x256xbf16>, vector<8x256xf32> -> vector<8x256xf32>
    %177 = arith.addf %150, %176 : vector<8x256xf32>
    %c192_i32_50 = arith.constant 192 : i32
    %178 = vector.broadcast %c192_i32_50 : i32 to vector<8x256xi32>
    %179 = arith.cmpi sge, %13, %178 : vector<8x256xi32>
    %c224_i32 = arith.constant 224 : i32
    %180 = vector.broadcast %c224_i32 : i32 to vector<8x256xi32>
    %181 = arith.cmpi slt, %13, %180 : vector<8x256xi32>
    %182 = arith.andi %179, %181 : vector<8x256xi1>
    %cst_51 = arith.constant 1.000000e+00 : f32
    %cst_52 = arith.constant 0.000000e+00 : f32
    %183 = vector.broadcast %cst_51 : f32 to vector<8x256xf32>
    %184 = vector.broadcast %cst_52 : f32 to vector<8x256xf32>
    %185 = arith.select %182, %183, %184 : vector<8x256xi1>, vector<8x256xf32>
    %186 = arith.mulf %9, %185 : vector<8x256xf32>
    %187 = arith.truncf %186 : vector<8x256xf32> to vector<8x256xbf16>
    %cst_53 = arith.constant dense<0.000000e+00> : vector<8x8xf32>
    %188 = tpu.matmul %187, %12, %cst_53 {dimension_numbers = #tpu.dot_dimension_numbers<[1], [1], [0], [0], [0, 0, 1, 0], [], []>} : vector<8x256xbf16>, vector<8x256xbf16>, vector<8x8xf32> -> vector<8x8xf32>
    %189 = arith.addf %188, %14 : vector<8x8xf32>
    %cst_54 = arith.constant dense<0xFF800000> : vector<8xf32>
    %190 = vector.multi_reduction <maximumf>, %189, %cst_54 [1] : vector<8x8xf32> to vector<8xf32>
    %191 = vector.shape_cast %190 : vector<8xf32> to vector<8x1xf32>
    %192 = vector.broadcast %191 : vector<8x1xf32> to vector<8x8xf32>
    %193 = arith.subf %189, %192 : vector<8x8xf32>
    %194 = math.exp %193 : vector<8x8xf32>
    %cst_55 = arith.constant dense<0.000000e+00> : vector<8xf32>
    %195 = vector.multi_reduction <add>, %194, %cst_55 [1] : vector<8x8xf32> to vector<8xf32>
    %196 = vector.shape_cast %195 : vector<8xf32> to vector<8x1xf32>
    %197 = tpu.reciprocal %196 {approx = true} : vector<8x1xf32> -> vector<8x1xf32>
    %198 = vector.broadcast %197 : vector<8x1xf32> to vector<8x8xf32>
    %199 = arith.mulf %194, %198 : vector<8x8xf32>
    %200 = arith.truncf %199 : vector<8x8xf32> to vector<8x8xbf16>
    %201 = arith.mulf %11, %185 : vector<8x256xf32>
    %202 = arith.truncf %201 : vector<8x256xf32> to vector<8x256xbf16>
    %cst_56 = arith.constant dense<0.000000e+00> : vector<8x256xf32>
    %203 = tpu.matmul %200, %202, %cst_56 {dimension_numbers = #tpu.dot_dimension_numbers<[1], [0], [0], [1], [0, 0, 1, 1], [], []>} : vector<8x8xbf16>, vector<8x256xbf16>, vector<8x256xf32> -> vector<8x256xf32>
    %204 = arith.addf %177, %203 : vector<8x256xf32>
    %c224_i32_57 = arith.constant 224 : i32
    %205 = vector.broadcast %c224_i32_57 : i32 to vector<8x256xi32>
    %206 = arith.cmpi sge, %13, %205 : vector<8x256xi32>
    %c256_i32 = arith.constant 256 : i32
    %207 = vector.broadcast %c256_i32 : i32 to vector<8x256xi32>
    %208 = arith.cmpi slt, %13, %207 : vector<8x256xi32>
    %209 = arith.andi %206, %208 : vector<8x256xi1>
    %cst_58 = arith.constant 1.000000e+00 : f32
    %cst_59 = arith.constant 0.000000e+00 : f32
    %210 = vector.broadcast %cst_58 : f32 to vector<8x256xf32>
    %211 = vector.broadcast %cst_59 : f32 to vector<8x256xf32>
    %212 = arith.select %209, %210, %211 : vector<8x256xi1>, vector<8x256xf32>
    %213 = arith.mulf %9, %212 : vector<8x256xf32>
    %214 = arith.truncf %213 : vector<8x256xf32> to vector<8x256xbf16>
    %cst_60 = arith.constant dense<0.000000e+00> : vector<8x8xf32>
    %215 = tpu.matmul %214, %12, %cst_60 {dimension_numbers = #tpu.dot_dimension_numbers<[1], [1], [0], [0], [0, 0, 1, 0], [], []>} : vector<8x256xbf16>, vector<8x256xbf16>, vector<8x8xf32> -> vector<8x8xf32>
    %216 = arith.addf %215, %14 : vector<8x8xf32>
    %cst_61 = arith.constant dense<0xFF800000> : vector<8xf32>
    %217 = vector.multi_reduction <maximumf>, %216, %cst_61 [1] : vector<8x8xf32> to vector<8xf32>
    %218 = vector.shape_cast %217 : vector<8xf32> to vector<8x1xf32>
    %219 = vector.broadcast %218 : vector<8x1xf32> to vector<8x8xf32>
    %220 = arith.subf %216, %219 : vector<8x8xf32>
    %221 = math.exp %220 : vector<8x8xf32>
    %cst_62 = arith.constant dense<0.000000e+00> : vector<8xf32>
    %222 = vector.multi_reduction <add>, %221, %cst_62 [1] : vector<8x8xf32> to vector<8xf32>
    %223 = vector.shape_cast %222 : vector<8xf32> to vector<8x1xf32>
    %224 = tpu.reciprocal %223 {approx = true} : vector<8x1xf32> -> vector<8x1xf32>
    %225 = vector.broadcast %224 : vector<8x1xf32> to vector<8x8xf32>
    %226 = arith.mulf %221, %225 : vector<8x8xf32>
    %227 = arith.truncf %226 : vector<8x8xf32> to vector<8x8xbf16>
    %228 = arith.mulf %11, %212 : vector<8x256xf32>
    %229 = arith.truncf %228 : vector<8x256xf32> to vector<8x256xbf16>
    %cst_63 = arith.constant dense<0.000000e+00> : vector<8x256xf32>
    %230 = tpu.matmul %227, %229, %cst_63 {dimension_numbers = #tpu.dot_dimension_numbers<[1], [0], [0], [1], [0, 0, 1, 1], [], []>} : vector<8x8xbf16>, vector<8x256xbf16>, vector<8x256xf32> -> vector<8x256xf32>
    %231 = arith.addf %204, %230 : vector<8x256xf32>
    %232 = arith.truncf %231 : vector<8x256xf32> to vector<8x256xbf16>
    %c0_64 = arith.constant 0 : index
    %c0_65 = arith.constant 0 : index
    %233 = vector.load %arg5[%c0_64, %c0_65] : memref<256x256xbf16, #tpu.memory_space<vmem>>, vector<256x256xbf16>
    %cst_66 = arith.constant dense<0.000000e+00> : vector<8x256xf32>
    %234 = tpu.matmul %232, %233, %cst_66 {dimension_numbers = #tpu.dot_dimension_numbers<[1], [0], [0], [1], [0, 0, 1, 1], [], []>} : vector<8x256xbf16>, vector<256x256xbf16>, vector<8x256xf32> -> vector<8x256xf32>
    %c0_67 = arith.constant 0 : index
    %c0_68 = arith.constant 0 : index
    %235 = vector.load %arg6[%c0_67, %c0_68] : memref<1x256xf32, #tpu.memory_space<vmem>>, vector<1x256xf32>
    %236 = vector.broadcast %235 : vector<1x256xf32> to vector<8x256xf32>
    %237 = arith.addf %234, %236 : vector<8x256xf32>
    %238 = arith.addf %0, %237 : vector<8x256xf32>
    %c0_69 = arith.constant 0 : index
    %c0_70 = arith.constant 0 : index
    %239 = vector.load %arg7[%c0_69, %c0_70] : memref<1x256xf32, #tpu.memory_space<vmem>>, vector<1x256xf32>
    %c0_71 = arith.constant 0 : index
    %c0_72 = arith.constant 0 : index
    %240 = vector.load %arg8[%c0_71, %c0_72] : memref<1x256xf32, #tpu.memory_space<vmem>>, vector<1x256xf32>
    %cst_73 = arith.constant dense<0.000000e+00> : vector<8xf32>
    %241 = vector.multi_reduction <add>, %238, %cst_73 [1] : vector<8x256xf32> to vector<8xf32>
    %242 = vector.shape_cast %241 : vector<8xf32> to vector<8x1xf32>
    %cst_74 = arith.constant 2.560000e+02 : f32
    %243 = vector.broadcast %cst_74 : f32 to vector<8x1xf32>
    %244 = arith.divf %242, %243 : vector<8x1xf32>
    %245 = vector.broadcast %244 : vector<8x1xf32> to vector<8x256xf32>
    %246 = arith.subf %238, %245 : vector<8x256xf32>
    %247 = arith.mulf %246, %246 : vector<8x256xf32>
    %cst_75 = arith.constant dense<0.000000e+00> : vector<8xf32>
    %248 = vector.multi_reduction <add>, %247, %cst_75 [1] : vector<8x256xf32> to vector<8xf32>
    %249 = vector.shape_cast %248 : vector<8xf32> to vector<8x1xf32>
    %cst_76 = arith.constant 2.560000e+02 : f32
    %250 = vector.broadcast %cst_76 : f32 to vector<8x1xf32>
    %251 = arith.divf %249, %250 : vector<8x1xf32>
    %cst_77 = arith.constant 9.99999974E-6 : f32
    %252 = vector.broadcast %cst_77 : f32 to vector<8x1xf32>
    %253 = arith.addf %251, %252 : vector<8x1xf32>
    %254 = math.rsqrt %253 : vector<8x1xf32>
    %255 = vector.broadcast %254 : vector<8x1xf32> to vector<8x256xf32>
    %256 = arith.mulf %246, %255 : vector<8x256xf32>
    %257 = vector.broadcast %239 : vector<1x256xf32> to vector<8x256xf32>
    %258 = arith.mulf %256, %257 : vector<8x256xf32>
    %259 = vector.broadcast %240 : vector<1x256xf32> to vector<8x256xf32>
    %260 = arith.addf %258, %259 : vector<8x256xf32>
    %261 = arith.truncf %260 : vector<8x256xf32> to vector<8x256xbf16>
    %c0_78 = arith.constant 0 : index
    %c0_79 = arith.constant 0 : index
    %262 = vector.load %arg9[%c0_78, %c0_79] : memref<256x2048xbf16, #tpu.memory_space<vmem>>, vector<256x2048xbf16>
    %cst_80 = arith.constant dense<0.000000e+00> : vector<8x2048xf32>
    %263 = tpu.matmul %261, %262, %cst_80 {dimension_numbers = #tpu.dot_dimension_numbers<[1], [0], [0], [1], [0, 0, 1, 1], [], []>} : vector<8x256xbf16>, vector<256x2048xbf16>, vector<8x2048xf32> -> vector<8x2048xf32>
    %c0_81 = arith.constant 0 : index
    %c0_82 = arith.constant 0 : index
    %264 = vector.load %arg10[%c0_81, %c0_82] : memref<1x2048xf32, #tpu.memory_space<vmem>>, vector<1x2048xf32>
    %265 = vector.broadcast %264 : vector<1x2048xf32> to vector<8x2048xf32>
    %266 = arith.addf %263, %265 : vector<8x2048xf32>
    %cst_83 = arith.constant 5.000000e-01 : f32
    %267 = vector.broadcast %cst_83 : f32 to vector<8x2048xf32>
    %268 = arith.mulf %267, %266 : vector<8x2048xf32>
    %cst_84 = arith.constant 0.707106769 : f32
    %269 = vector.broadcast %cst_84 : f32 to vector<8x2048xf32>
    %270 = arith.mulf %266, %269 : vector<8x2048xf32>
    %cst_85 = arith.constant 0.000000e+00 : f32
    %271 = vector.broadcast %cst_85 : f32 to vector<8x2048xf32>
    %272 = arith.cmpf olt, %270, %271 : vector<8x2048xf32>
    %cst_86 = arith.constant -1.000000e+00 : f32
    %cst_87 = arith.constant 1.000000e+00 : f32
    %273 = vector.broadcast %cst_86 : f32 to vector<8x2048xf32>
    %274 = vector.broadcast %cst_87 : f32 to vector<8x2048xf32>
    %275 = arith.select %272, %273, %274 : vector<8x2048xi1>, vector<8x2048xf32>
    %276 = math.absf %270 : vector<8x2048xf32>
    %cst_88 = arith.constant 0.327591091 : f32
    %277 = vector.broadcast %cst_88 : f32 to vector<8x2048xf32>
    %278 = arith.mulf %277, %276 : vector<8x2048xf32>
    %cst_89 = arith.constant 1.000000e+00 : f32
    %279 = vector.broadcast %cst_89 : f32 to vector<8x2048xf32>
    %280 = arith.addf %279, %278 : vector<8x2048xf32>
    %cst_90 = arith.constant 1.000000e+00 : f32
    %281 = vector.broadcast %cst_90 : f32 to vector<8x2048xf32>
    %282 = arith.divf %281, %280 : vector<8x2048xf32>
    %cst_91 = arith.constant 1.06140542 : f32
    %283 = vector.broadcast %cst_91 : f32 to vector<8x2048xf32>
    %284 = arith.mulf %283, %282 : vector<8x2048xf32>
    %cst_92 = arith.constant -1.45315206 : f32
    %285 = vector.broadcast %cst_92 : f32 to vector<8x2048xf32>
    %286 = arith.addf %284, %285 : vector<8x2048xf32>
    %287 = arith.mulf %286, %282 : vector<8x2048xf32>
    %cst_93 = arith.constant 1.42141378 : f32
    %288 = vector.broadcast %cst_93 : f32 to vector<8x2048xf32>
    %289 = arith.addf %287, %288 : vector<8x2048xf32>
    %290 = arith.mulf %289, %282 : vector<8x2048xf32>
    %cst_94 = arith.constant -0.284496725 : f32
    %291 = vector.broadcast %cst_94 : f32 to vector<8x2048xf32>
    %292 = arith.addf %290, %291 : vector<8x2048xf32>
    %293 = arith.mulf %292, %282 : vector<8x2048xf32>
    %cst_95 = arith.constant 0.254829586 : f32
    %294 = vector.broadcast %cst_95 : f32 to vector<8x2048xf32>
    %295 = arith.addf %293, %294 : vector<8x2048xf32>
    %296 = arith.mulf %295, %282 : vector<8x2048xf32>
    %cst_96 = arith.constant 0.000000e+00 : f32
    %297 = vector.broadcast %cst_96 : f32 to vector<8x2048xf32>
    %298 = arith.subf %297, %276 : vector<8x2048xf32>
    %299 = arith.mulf %298, %276 : vector<8x2048xf32>
    %300 = math.exp %299 : vector<8x2048xf32>
    %301 = arith.mulf %296, %300 : vector<8x2048xf32>
    %cst_97 = arith.constant 1.000000e+00 : f32
    %302 = vector.broadcast %cst_97 : f32 to vector<8x2048xf32>
    %303 = arith.subf %302, %301 : vector<8x2048xf32>
    %304 = arith.mulf %275, %303 : vector<8x2048xf32>
    %cst_98 = arith.constant 1.000000e+00 : f32
    %305 = vector.broadcast %cst_98 : f32 to vector<8x2048xf32>
    %306 = arith.addf %305, %304 : vector<8x2048xf32>
    %307 = arith.mulf %268, %306 : vector<8x2048xf32>
    %308 = arith.truncf %307 : vector<8x2048xf32> to vector<8x2048xbf16>
    %c0_99 = arith.constant 0 : index
    %c0_100 = arith.constant 0 : index
    %309 = vector.load %arg11[%c0_99, %c0_100] : memref<2048x256xbf16, #tpu.memory_space<vmem>>, vector<2048x256xbf16>
    %cst_101 = arith.constant dense<0.000000e+00> : vector<8x256xf32>
    %310 = tpu.matmul %308, %309, %cst_101 {dimension_numbers = #tpu.dot_dimension_numbers<[1], [0], [0], [1], [0, 0, 1, 1], [], []>} : vector<8x2048xbf16>, vector<2048x256xbf16>, vector<8x256xf32> -> vector<8x256xf32>
    %c0_102 = arith.constant 0 : index
    %c0_103 = arith.constant 0 : index
    %311 = vector.load %arg12[%c0_102, %c0_103] : memref<1x256xf32, #tpu.memory_space<vmem>>, vector<1x256xf32>
    %312 = vector.broadcast %311 : vector<1x256xf32> to vector<8x256xf32>
    %313 = arith.addf %310, %312 : vector<8x256xf32>
    %314 = arith.addf %260, %313 : vector<8x256xf32>
    %c0_104 = arith.constant 0 : index
    %c0_105 = arith.constant 0 : index
    %315 = vector.load %arg13[%c0_104, %c0_105] : memref<1x256xf32, #tpu.memory_space<vmem>>, vector<1x256xf32>
    %c0_106 = arith.constant 0 : index
    %c0_107 = arith.constant 0 : index
    %316 = vector.load %arg14[%c0_106, %c0_107] : memref<1x256xf32, #tpu.memory_space<vmem>>, vector<1x256xf32>
    %cst_108 = arith.constant dense<0.000000e+00> : vector<8xf32>
    %317 = vector.multi_reduction <add>, %314, %cst_108 [1] : vector<8x256xf32> to vector<8xf32>
    %318 = vector.shape_cast %317 : vector<8xf32> to vector<8x1xf32>
    %cst_109 = arith.constant 2.560000e+02 : f32
    %319 = vector.broadcast %cst_109 : f32 to vector<8x1xf32>
    %320 = arith.divf %318, %319 : vector<8x1xf32>
    %321 = vector.broadcast %320 : vector<8x1xf32> to vector<8x256xf32>
    %322 = arith.subf %314, %321 : vector<8x256xf32>
    %323 = arith.mulf %322, %322 : vector<8x256xf32>
    %cst_110 = arith.constant dense<0.000000e+00> : vector<8xf32>
    %324 = vector.multi_reduction <add>, %323, %cst_110 [1] : vector<8x256xf32> to vector<8xf32>
    %325 = vector.shape_cast %324 : vector<8xf32> to vector<8x1xf32>
    %cst_111 = arith.constant 2.560000e+02 : f32
    %326 = vector.broadcast %cst_111 : f32 to vector<8x1xf32>
    %327 = arith.divf %325, %326 : vector<8x1xf32>
    %cst_112 = arith.constant 9.99999974E-6 : f32
    %328 = vector.broadcast %cst_112 : f32 to vector<8x1xf32>
    %329 = arith.addf %327, %328 : vector<8x1xf32>
    %330 = math.rsqrt %329 : vector<8x1xf32>
    %331 = vector.broadcast %330 : vector<8x1xf32> to vector<8x256xf32>
    %332 = arith.mulf %322, %331 : vector<8x256xf32>
    %333 = vector.broadcast %315 : vector<1x256xf32> to vector<8x256xf32>
    %334 = arith.mulf %332, %333 : vector<8x256xf32>
    %335 = vector.broadcast %316 : vector<1x256xf32> to vector<8x256xf32>
    %336 = arith.addf %334, %335 : vector<8x256xf32>
    %c0_113 = arith.constant 0 : index
    %c0_114 = arith.constant 0 : index
    %337 = vector.load %arg15[%c0_113, %c0_114] : memref<8x256xf32, #tpu.memory_space<vmem>>, vector<8x256xf32>
    tpu.vector_store %arg15[%c0_113, %c0_114], %336 {strides = array<i32>} : memref<8x256xf32, #tpu.memory_space<vmem>>, vector<8x256xf32>,
    return
  }
  func.func @transform_0(%arg0: i32) -> (i32, i32) {
    %c0_i32 = arith.constant 0 : i32
    %c0_i32_0 = arith.constant 0 : i32
    %c0_i32_1 = arith.constant 0 : i32
    return %c0_i32, %c0_i32_0 : i32, i32
  }
  func.func @transform_1(%arg0: i32) -> (i32, i32) {
    %c0_i32 = arith.constant 0 : i32
    %c0_i32_0 = arith.constant 0 : i32
    %c0_i32_1 = arith.constant 0 : i32
    return %c0_i32, %c0_i32_0 : i32, i32
  }
  func.func @transform_2(%arg0: i32) -> (i32, i32) {
    %c0_i32 = arith.constant 0 : i32
    %c0_i32_0 = arith.constant 0 : i32
    %c0_i32_1 = arith.constant 0 : i32
    return %c0_i32, %c0_i32_0 : i32, i32
  }
  func.func @transform_3(%arg0: i32) -> (i32, i32) {
    %c0_i32 = arith.constant 0 : i32
    %c0_i32_0 = arith.constant 0 : i32
    %c0_i32_1 = arith.constant 0 : i32
    return %c0_i32, %c0_i32_0 : i32, i32
  }
  func.func @transform_4(%arg0: i32) -> (i32, i32) {
    %c0_i32 = arith.constant 0 : i32
    %c0_i32_0 = arith.constant 0 : i32
    %c0_i32_1 = arith.constant 0 : i32
    return %c0_i32, %c0_i32_0 : i32, i32
  }
  func.func @transform_5(%arg0: i32) -> (i32, i32) {
    %c0_i32 = arith.constant 0 : i32
    %c0_i32_0 = arith.constant 0 : i32
    %c0_i32_1 = arith.constant 0 : i32
    return %c0_i32, %c0_i32_0 : i32, i32
  }
  func.func @transform_6(%arg0: i32) -> (i32, i32) {
    %c0_i32 = arith.constant 0 : i32
    %c0_i32_0 = arith.constant 0 : i32
    %c0_i32_1 = arith.constant 0 : i32
    return %c0_i32, %c0_i32_0 : i32, i32
  }
  func.func @transform_7(%arg0: i32) -> (i32, i32) {
    %c0_i32 = arith.constant 0 : i32
    %c0_i32_0 = arith.constant 0 : i32
    %c0_i32_1 = arith.constant 0 : i32
    return %c0_i32, %c0_i32_0 : i32, i32
  }
  func.func @transform_8(%arg0: i32) -> (i32, i32) {
    %c0_i32 = arith.constant 0 : i32
    %c0_i32_0 = arith.constant 0 : i32
    %c0_i32_1 = arith.constant 0 : i32
    return %c0_i32, %c0_i32_0 : i32, i32
  }
  func.func @transform_9(%arg0: i32) -> (i32, i32) {
    %c0_i32 = arith.constant 0 : i32
    %c0_i32_0 = arith.constant 0 : i32
    %c0_i32_1 = arith.constant 0 : i32
    return %c0_i32, %c0_i32_0 : i32, i32
  }
  func.func @transform_10(%arg0: i32) -> (i32, i32) {
    %c0_i32 = arith.constant 0 : i32
    %c0_i32_0 = arith.constant 0 : i32
    %c0_i32_1 = arith.constant 0 : i32
    return %c0_i32, %c0_i32_0 : i32, i32
  }
  func.func @transform_11(%arg0: i32) -> (i32, i32) {
    %c0_i32 = arith.constant 0 : i32
    %c0_i32_0 = arith.constant 0 : i32
    %c0_i32_1 = arith.constant 0 : i32
    return %c0_i32, %c0_i32_0 : i32, i32
  }
  func.func @transform_12(%arg0: i32) -> (i32, i32) {
    %c0_i32 = arith.constant 0 : i32
    %c0_i32_0 = arith.constant 0 : i32
    %c0_i32_1 = arith.constant 0 : i32
    return %c0_i32, %c0_i32_0 : i32, i32
  }
  func.func @transform_13(%arg0: i32) -> (i32, i32) {
    %c0_i32 = arith.constant 0 : i32
    %c0_i32_0 = arith.constant 0 : i32
    %c0_i32_1 = arith.constant 0 : i32
    return %c0_i32, %c0_i32_0 : i32, i32
  }
  func.func @transform_14(%arg0: i32) -> (i32, i32) {
    %c0_i32 = arith.constant 0 : i32
    %c0_i32_0 = arith.constant 0 : i32
    %c0_i32_1 = arith.constant 0 : i32
    return %c0_i32, %c0_i32_0 : i32, i32
  }
}

</mosaic_0001>

<bundles_post_ra>
// kernel: vision_transformer_forward.3
= control target key start
LH: loop header
LB: loop body
LE: loop exit
PB: predicated region body
PF: predicated region fallthrough
CT: control target
= control target key end

     0   :  { %13 = vsyncpa [#allocation3], 0  ;;  %s503_s27 = smov [#allocation2]   ;;  %s596_s0 = inlined_call_operand.vmem [shape: f32[8,256], index: 0, kind: input, shape index: {}]   ;;  %s597_s1 = inlined_call_operand.vmem [shape: f32[1,256], index: 1, kind: input, shape index: {}]   ;;  %s598_s2 = inlined_call_operand.vmem [shape: f32[1,256], index: 2, kind: input, shape index: {}]   ;;  %s599_s3 = inlined_call_operand.hbm [shape: bf16[256,256], index: 3, kind: input, shape index: {}]   ;;  %s600_s4 = inlined_call_operand.vmem [shape: f32[1,256], index: 4, kind: input, shape index: {}]   ;;  %s601_s5 = inlined_call_operand.vmem [shape: f32[1,256], index: 5, kind: input, shape index: {}]   ;;  %s602_s6 = inlined_call_operand.vmem [shape: f32[1,256], index: 6, kind: input, shape index: {}]   ;;  %s603_s7 = inlined_call_operand.vmem [shape: f32[8,256], index: 7, kind: input, shape index: {}]   ;;  %s604_s8 = inlined_call_operand.vmem [shape: f32[8,256], index: 8, kind: output, shape index: {}]  }
   0x1   :  { %s25_s28 = sshll.u32 %s503_s27, 4  ;;  %s479_s9 = scalar_lea.hbm %s599_s3, 4096  ;;  %s26_s28 = int_to_ptr.vmem [resolvable:$true] %s25_s28 }
   0x2   :  { %p480_p0 = scmp.ne.s32.totalorder %s599_s3, %s479_s9  ;;  %p483_p1 = scmp.lt.u32.totalorder %s479_s9, %s599_s3 }
   0x4   :  { %p485_p2 = pnand %p483_p1, %p480_p0 }
   0x6   :  { %488 = shalt.err (!%p485_p2)
}
   0x7   :  { %s489_s14 = scalar_lea.vmem %s26_s28, 4096  ;;  %p494_p4 = scmp.lt.s32.totalorder %s26_s28, %s26_s28 }
   0x8   :  { %p490_p3 = scmp.ne.s32.totalorder %s26_s28, %s489_s14  ;;  %p495_p5 = scmp.lt.s32.totalorder %s489_s14, %s489_s14 }
   0xa   :  { %p496_p6 = por %p495_p5, %p494_p4 }
   0xc   :  { %p497_p7 = pnand %p496_p6, %p490_p3 }
   0xe   :  { %500 = shalt.err (!%p497_p7)
}
   0xf   :  { %s504_s15 = smov 128   ;;  %s505_s16 = smov 8  }
  0x10   :  { %31 = dma.hbm_to_vmem [thread:$0]  %s599_s3, 4096, %s26_s28, [#allocation3], %s504_s15, %s504_s15, %s505_s16  }
  0x11   :  { %501 = dma.done.wait [#allocation3], 4096  }
  0x12   :  { %502 = vsyncadd [#allocation3], 4294963200  ;;  %v43_v0 = vld [vmem:[%s596_s0] sm:$0xff]  ;;  %v44_v1 = vld [vmem:[%s596_s0 + $0x8] sm:$0xff]  ;;  %v65_v44 = vlaneseq }
  0x13   :  { %v47_v2 = vadd.f32 %v44_v1, %v43_v0  ;;  %v427_v3 = vld [vmem:[#allocation2 + $0x4] ss:$8 sps:$4 sm:$0xff]   ;;  %v429_v4 = vld [vmem:[#allocation2] ss:$8 sps:$4 sm:$0xff]   ;;  %v430_v5 = vld [vmem:[#allocation2 + $0x14] ss:$8 sps:$4 sm:$0xff]  }
  0x14   :  { %296 = vmatprep.subr.bf16.mxu0 %v427_v3  ;;  %v432_v6 = vld [vmem:[#allocation2 + $0x10] ss:$8 sps:$4 sm:$0xff]   ;;  %v433_v7 = vld [vmem:[#allocation2 + $0x24] ss:$8 sps:$4 sm:$0xff]   ;;  %v435_v8 = vld [vmem:[#allocation2 + $0x20] ss:$8 sps:$4 sm:$0xff]  }
  0x15   :  { %48 = vadd.xlane.f32.xlu0 %v47_v2  ;;  %297 = vmatpush1.bf16.msra.mxu0 %v429_v4  ;;  %v436_v9 = vld [vmem:[#allocation2 + $0x34] ss:$8 sps:$4 sm:$0xff]   ;;  %v438_v10 = vld [vmem:[#allocation2 + $0x30] ss:$8 sps:$4 sm:$0xff]   ;;  %v439_v11 = vld [vmem:[#allocation2 + $0x44] ss:$8 sps:$4 sm:$0xff]  }
  0x16   :  { %298 = vmatprep.subr.bf16.mxu0 %v430_v5  ;;  %v441_v12 = vld [vmem:[#allocation2 + $0x40] ss:$8 sps:$4 sm:$0xff]   ;;  %v442_v13 = vld [vmem:[#allocation2 + $0x54] ss:$8 sps:$4 sm:$0xff]   ;;  %v444_v14 = vld [vmem:[#allocation2 + $0x50] ss:$8 sps:$4 sm:$0xff]  }
  0x17   :  { %v445_v15 = vld [vmem:[#allocation2 + $0x64] ss:$8 sps:$4 sm:$0xff]   ;;  %v447_v16 = vld [vmem:[#allocation2 + $0x60] ss:$8 sps:$4 sm:$0xff]   ;;  %v448_v17 = vld [vmem:[#allocation2 + $0x74] ss:$8 sps:$4 sm:$0xff]  }
  0x18   :  { %v450_v18 = vld [vmem:[#allocation2 + $0x70] ss:$8 sps:$4 sm:$0xff]   ;;  %v451_v19 = vld [vmem:[#allocation2 + $0x84] ss:$8 sps:$4 sm:$0xff]   ;;  %v453_v20 = vld [vmem:[#allocation2 + $0x80] ss:$8 sps:$4 sm:$0xff]  }
  0x19   :  { %299 = vmatpush1.bf16.msra.mxu0 %v432_v6  ;;  %v454_v21 = vld [vmem:[#allocation2 + $0x94] ss:$8 sps:$4 sm:$0xff]   ;;  %v456_v22 = vld [vmem:[#allocation2 + $0x90] ss:$8 sps:$4 sm:$0xff]   ;;  %v457_v30 = vld [vmem:[#allocation2 + $0xa4] ss:$8 sps:$4 sm:$0xff]  }
  0x1a   :  { %300 = vmatprep.subr.bf16.mxu0 %v433_v7  ;;  %v459_v31 = vld [vmem:[#allocation2 + $0xa0] ss:$8 sps:$4 sm:$0xff]   ;;  %v460_v32 = vld [vmem:[#allocation2 + $0xb4] ss:$8 sps:$4 sm:$0xff]   ;;  %v462_v33 = vld [vmem:[#allocation2 + $0xb0] ss:$8 sps:$4 sm:$0xff]  }
  0x1b   :  { %v463_v34 = vld [vmem:[#allocation2 + $0xc4] ss:$8 sps:$4 sm:$0xff]   ;;  %v465_v35 = vld [vmem:[#allocation2 + $0xc0] ss:$8 sps:$4 sm:$0xff]   ;;  %v466_v36 = vld [vmem:[#allocation2 + $0xd4] ss:$8 sps:$4 sm:$0xff]  }
  0x1c   :  { %v468_v37 = vld [vmem:[#allocation2 + $0xd0] ss:$8 sps:$4 sm:$0xff]   ;;  %v469_v38 = vld [vmem:[#allocation2 + $0xe4] ss:$8 sps:$4 sm:$0xff]   ;;  %v471_v39 = vld [vmem:[#allocation2 + $0xe0] ss:$8 sps:$4 sm:$0xff]  }
  0x1d   :  { %301 = vmatpush1.bf16.msra.mxu0 %v435_v8  ;;  %v472_v40 = vld [vmem:[#allocation2 + $0xf4] ss:$8 sps:$4 sm:$0xff]   ;;  %v474_v41 = vld [vmem:[#allocation2 + $0xf0] ss:$8 sps:$4 sm:$0xff]   ;;  %v66_v46 = vshrl.u32 %v65_v44, 7 }
  0x1e   :  { %302 = vmatprep.subr.bf16.mxu0 %v436_v9  ;;  %v45_v49 = vld [vmem:[%s597_s1] sm:$0x3] }
  0x1f   :  { %v67_v47 = vsub.s32 0, %v66_v46  ;;  %v71_v48 = vsub.s32 1, %v66_v46  ;;  %v46_v50 = vld [vmem:[%s598_s2] sm:$0x3] }
  0x21   :  { %303 = vmatpush1.bf16.msra.mxu0 %v438_v10  ;;  %v68_v51 = vrot.slane %v45_v49, %v67_v47  ;;  %v72_v52 = vrot.slane %v45_v49, %v71_v48  ;;  %v81_v55 = vrot.slane %v46_v50, %v67_v47  ;;  %v85_v56 = vrot.slane %v46_v50, %v71_v48 }
  0x22   :  { %304 = vmatprep.subr.bf16.mxu0 %v439_v11 }
  0x25   :  { %305 = vmatpush1.bf16.msra.mxu0 %v441_v12 }
  0x26   :  { %306 = vmatprep.subr.bf16.mxu0 %v442_v13 }
  0x29   :  { %307 = vmatpush1.bf16.msra.mxu0 %v444_v14 }
  0x2a   :  { %308 = vmatprep.subr.bf16.mxu0 %v445_v15 }
  0x2d   :  { %309 = vmatpush1.bf16.msra.mxu0 %v447_v16 }
  0x2e   :  { %310 = vmatprep.subr.bf16.mxu0 %v448_v17 }
  0x31   :  { %311 = vmatpush1.bf16.msra.mxu0 %v450_v18 }
  0x32   :  { %312 = vmatprep.subr.bf16.mxu0 %v451_v19 }
  0x35   :  { %313 = vmatpush1.bf16.msra.mxu0 %v453_v20  ;;  %v337_v20 = vld [vmem:[%s601_s5] sm:$0x3] }
  0x36   :  { %314 = vmatprep.subr.bf16.mxu0 %v454_v21  ;;  %v338_v21 = vld [vmem:[%s602_s6] sm:$0x3] }
  0x39   :  { %315 = vmatpush1.bf16.msra.mxu0 %v456_v22  ;;  %v359_v22 = vrot.slane %v337_v20, %v67_v47 }
  0x3a   :  { %316 = vmatprep.subr.bf16.mxu0 %v457_v30 }
  0x3d   :  { %317 = vmatpush1.bf16.msra.mxu0 %v459_v31  ;;  %v381_v31 = vld [vmem:[%s603_s7] sm:$0xff] }
  0x3e   :  { %318 = vmatprep.subr.bf16.mxu0 %v460_v32  ;;  %v382_v32 = vld [vmem:[%s603_s7 + $0x8] sm:$0xff] }
  0x41   :  { %319 = vmatpush1.bf16.msra.mxu0 %v462_v33 }
  0x42   :  { %320 = vmatprep.subr.bf16.mxu0 %v463_v34 }
  0x45   :  { %321 = vmatpush1.bf16.msra.mxu0 %v465_v35 }
  0x46   :  { %322 = vmatprep.subr.bf16.mxu0 %v466_v36 }
  0x49   :  { %323 = vmatpush1.bf16.msra.mxu0 %v468_v37 }
  0x4a   :  { %324 = vmatprep.subr.bf16.mxu0 %v469_v38 }
  0x4d   :  { %325 = vmatpush1.bf16.msra.mxu0 %v471_v39 }
  0x4e   :  { %326 = vmatprep.subr.bf16.mxu0 %v472_v40 }
  0x51   :  { %327 = vmatpush1.bf16.msra.mxu0 %v474_v41 }
  0xa2   :  { %v49_v23 = vpop.xlane.xlu0 %48 }
  0xa3   :  { %v51_v24 = vmul.f32 0.00390625, %v49_v23  ;;  %v363_v23 = vrot.slane %v337_v20, %v71_v48 }
  0xa5   :  { %v52_v25 = vsub.f32 %v43_v0, %v51_v24  ;;  %v53_v26 = vsub.f32 %v44_v1, %v51_v24  ;;  %v124_v0 = vld [vmem:[%s600_s4] sm:$0x3] }
  0xa6   :  { %v129_v1 = vrot.slane %v124_v0, %v67_v47  ;;  %v133_v2 = vrot.slane %v124_v0, %v71_v48 }
  0xa7   :  { %v54_v27 = vmul.f32 %v52_v25, %v52_v25  ;;  %v55_v28 = vmul.f32 %v53_v26, %v53_v26 }
  0xa9   :  { %v56_v29 = vadd.f32 %v55_v28, %v54_v27 }
  0xab   :  { %57 = vadd.xlane.f32.xlu0 %v56_v29 }
 0x138   :  { %v58_v42 = vpop.xlane.xlu0 %57 }
 0x139   :  { %v59_v43 = vmul.f32 0.00390625, %v58_v42 }
 0x13b   :  { %v60_v45 = vadd.f32 1e-05, %v59_v43 }
 0x13d   :  { %475 = vrsqrt.f32 %v60_v45 }
 0x147   :  { %v476_v53 = vpop.eup %475 }
 0x148   :  { %v63_v54 = vmul.f32 %v476_v53, %v53_v26  ;;  %v62_v57 = vmul.f32 %v476_v53, %v52_v25  ;;  %v372_v25 = vrot.slane %v338_v21, %v67_v47  ;;  %v376_v26 = vrot.slane %v338_v21, %v71_v48 }
 0x14a   :  { %v76_v58 = vmul.f32 %v72_v52, %v63_v54  ;;  %v75_v59 = vmul.f32 %v68_v51, %v62_v57 }
 0x14c   :  { %v89_v60 = vadd.f32 %v85_v56, %v76_v58  ;;  %v88_v61 = vadd.f32 %v81_v55, %v75_v59 }
 0x14e   :  { %v91_v62 = vpack.c.bf16 %v89_v60, %v89_v60  ;;  %v90_v63 = vpack.c.bf16 %v88_v61, %v88_v61 }
 0x150   :  { %328 = vmatprep.mubr.bf16.mxu0 %v91_v62 }
 0x151   :  { %329 = vmatmul.mubr.bf16.vlgmr.msra.gmra.mrb[0].mxu0 %v90_v63 }
 0x224   :  { %v330_v3 = vpop.f32.mrb[0].mxu0 }
 0x225   :  { %v331_v4 = vadd.f32 %v330_v3, %v129_v1  ;;  %v332_v5 = vpop.f32.mrb[1].mxu0 }
 0x226   :  { %v333_v6 = vadd.f32 %v332_v5, %v133_v2  ;;  %v334_v7 = vpop.f32.mrb[2].mxu0 }
 0x227   :  { %v335_v8 = vpop.f32.mrb[3].mxu0 }
 0x228   :  { %v339_v9 = vadd.f32 %v333_v6, %v331_v4 }
 0x22a   :  { %340 = vadd.xlane.f32.xlu1 %v339_v9 }
 0x2b7   :  { %v341_v10 = vpop.xlane.xlu1 %340 }
 0x2b8   :  { %v342_v11 = vmul.f32 0.00390625, %v341_v10 }
 0x2ba   :  { %v343_v12 = vsub.f32 %v331_v4, %v342_v11  ;;  %v344_v13 = vsub.f32 %v333_v6, %v342_v11 }
 0x2bc   :  { %v345_v14 = vmul.f32 %v343_v12, %v343_v12  ;;  %v346_v15 = vmul.f32 %v344_v13, %v344_v13 }
 0x2be   :  { %v347_v16 = vadd.f32 %v346_v15, %v345_v14 }
 0x2c0   :  { %348 = vadd.xlane.f32.xlu1 %v347_v16 }
 0x34d   :  { %v349_v17 = vpop.xlane.xlu1 %348 }
 0x34e   :  { %v350_v18 = vmul.f32 0.00390625, %v349_v17 }
 0x350   :  { %v351_v19 = vadd.f32 1e-05, %v350_v18 }
 0x352   :  { %477 = vrsqrt.f32 %v351_v19 }
 0x35c   :  { %v478_v24 = vpop.eup %477 }
 0x35d   :  { %v353_v27 = vmul.f32 %v478_v24, %v343_v12  ;;  %v354_v28 = vmul.f32 %v478_v24, %v344_v13 }
 0x35f   :  { %v366_v29 = vmul.f32 %v359_v22, %v353_v27  ;;  %v367_v30 = vmul.f32 %v363_v23, %v354_v28 }
 0x361   :  { %v379_v33 = vadd.f32 %v372_v25, %v366_v29  ;;  %v380_v34 = vadd.f32 %v376_v26, %v367_v30 }
 0x363   :  { %v383_v35 = vadd.f32 %v381_v31, %v379_v33  ;;  %v384_v36 = vadd.f32 %v382_v32, %v380_v34 }
 0x365   :  { %385 = vst [vmem:[%s604_s8] sm:$0xff] %v383_v35  ;;  %386 = vst [vmem:[%s604_s8 + $0x8] sm:$0xff] %v384_v36 }
 0x366   :  { %391 = vsyncpa [#allocation3], 1 }

// kernel: vision_transformer_forward.4
= control target key start
LH: loop header
LB: loop body
LE: loop exit
PB: predicated region body
PF: predicated region fallthrough
CT: control target
= control target key end

     0   :  { %19 = vsyncpa [#allocation3], 0  ;;  %s9432_s0 = inlined_call_operand.vmem [shape: f32[8,256], index: 0, kind: input, shape index: {}]   ;;  %s9433_s1 = inlined_call_operand.vmem [shape: f32[8,8], index: 1, kind: input, shape index: {}]   ;;  %s9434_s2 = inlined_call_operand.hbm [shape: bf16[256,768], index: 2, kind: input, shape index: {}]   ;;  %s9435_s3 = inlined_call_operand.vmem [shape: f32[1,768], index: 3, kind: input, shape index: {}]   ;;  %s9436_s4 = inlined_call_operand.hbm [shape: bf16[256,256], index: 4, kind: input, shape index: {}]   ;;  %s9437_s5 = inlined_call_operand.vmem [shape: f32[1,256], index: 5, kind: input, shape index: {}]   ;;  %s9438_s6 = inlined_call_operand.vmem [shape: f32[1,256], index: 6, kind: input, shape index: {}]   ;;  %s9439_s7 = inlined_call_operand.vmem [shape: f32[1,256], index: 7, kind: input, shape index: {}]   ;;  %s9440_s8 = inlined_call_operand.vmem [shape: bf16[256,2048], index: 8, kind: input, shape index: {}]   ;;  %s9441_s9 = inlined_call_operand.vmem [shape: f32[1,2048], index: 9, kind: input, shape index: {}]   ;;  %s9442_s10 = inlined_call_operand.hbm [shape: bf16[2048,256], index: 10, kind: input, shape index: {}]   ;;  %s9443_s11 = inlined_call_operand.vmem [shape: f32[1,256], index: 11, kind: input, shape index: {}]   ;;  %s9444_s12 = inlined_call_operand.vmem [shape: f32[1,256], index: 12, kind: input, shape index: {}]   ;;  %s9445_s13 = inlined_call_operand.vmem [shape: f32[1,256], index: 13, kind: input, shape index: {}]   ;;  %s9446_s14 = inlined_call_operand.vmem [shape: f32[8,256], index: 14, kind: output, shape index: {}]  }
   0x1   :  { %20 = vsyncpa [#allocation5], 0  ;;  %s7854_s29 = smov [#allocation4]   ;;  %s7784_s17 = scalar_lea.hbm %s9436_s4, 4096 }
   0x2   :  { %s44_s30 = sshll.u32 %s7854_s29, 4  ;;  %p7785_p0 = scmp.ne.s32.totalorder %s9436_s4, %s7784_s17  ;;  %s45_s30 = int_to_ptr.vmem [resolvable:$true] %s44_s30 }
   0x3   :  { %p7788_p1 = scmp.lt.u32.totalorder %s7784_s17, %s9436_s4 }
   0x5   :  { %p7790_p2 = pnand %p7788_p1, %p7785_p0 }
   0x7   :  { %7793 = shalt.err (!%p7790_p2)
}
   0x8   :  { %s7794_s22 = scalar_lea.vmem %s45_s30, 4096  ;;  %p7799_p4 = scmp.lt.s32.totalorder %s45_s30, %s45_s30 }
   0x9   :  { %p7795_p3 = scmp.ne.s32.totalorder %s45_s30, %s7794_s22  ;;  %p7800_p5 = scmp.lt.s32.totalorder %s7794_s22, %s7794_s22 }
   0xb   :  { %p7801_p6 = por %p7800_p5, %p7799_p4 }
   0xd   :  { %p7802_p7 = pnand %p7801_p6, %p7795_p3 }
   0xf   :  { %7805 = shalt.err (!%p7802_p7)
}
  0x10   :  { %s7855_s23 = smov 128   ;;  %s7856_s24 = smov 8  }
  0x11   :  { %50 = dma.hbm_to_vmem [thread:$0]  %s9436_s4, 4096, %s45_s30, [#allocation5], %s7855_s23, %s7855_s23, %s7856_s24  }
  0x12   :  { %s7857_s27 = smov [#allocation2]   ;;  %s7806_s16 = scalar_lea.hbm %s9434_s2, 12288 }
  0x13   :  { %s30_s28 = sshll.u32 %s7857_s27, 4  ;;  %p7807_p8 = scmp.ne.s32.totalorder %s9434_s2, %s7806_s16  ;;  %s31_s28 = int_to_ptr.vmem [resolvable:$true] %s30_s28 }
  0x14   :  { %p7810_p9 = scmp.lt.u32.totalorder %s7806_s16, %s9434_s2 }
  0x16   :  { %p7812_p10 = pnand %p7810_p9, %p7807_p8 }
  0x18   :  { %7815 = shalt.err (!%p7812_p10)
}
  0x19   :  { %s7816_s21 = scalar_lea.vmem %s31_s28, 12288  ;;  %p7821_p12 = scmp.lt.s32.totalorder %s31_s28, %s31_s28 }
  0x1a   :  { %p7817_p11 = scmp.ne.s32.totalorder %s31_s28, %s7816_s21  ;;  %p7822_p13 = scmp.lt.s32.totalorder %s7816_s21, %s7816_s21 }
  0x1c   :  { %p7823_p0 = por %p7822_p13, %p7821_p12 }
  0x1e   :  { %p7824_p1 = pnand %p7823_p0, %p7817_p11 }
  0x20   :  { %7827 = shalt.err (!%p7824_p1)
}
  0x21   :  { %s7858_s4 = smov 384   ;;  %s7859_s30 = smov 24  }
  0x22   :  { %36 = dma.hbm_to_vmem [thread:$0]  %s9434_s2, 12288, %s31_s28, [#allocation3], %s7858_s4, %s7858_s4, %s7859_s30  }
  0x23   :  { %s7860_s26 = smov [#allocation6]   ;;  %s7828_s16 = scalar_lea.hbm %s9442_s10, 32768 }
  0x24   :  { %s66_s27 = sshll.u32 %s7860_s26, 4  ;;  %p7829_p2 = scmp.ne.s32.totalorder %s9442_s10, %s7828_s16  ;;  %s67_s27 = int_to_ptr.vmem [resolvable:$true] %s66_s27 }
  0x25   :  { %p7832_p3 = scmp.lt.u32.totalorder %s7828_s16, %s9442_s10 }
  0x27   :  { %p7834_p4 = pnand %p7832_p3, %p7829_p2 }
  0x29   :  { %7837 = shalt.err (!%p7834_p4)
}
  0x2a   :  { %s7838_s21 = scalar_lea.vmem %s67_s27, 32768  ;;  %p7843_p6 = scmp.lt.s32.totalorder %s67_s27, %s67_s27 }
  0x2b   :  { %p7839_p5 = scmp.ne.s32.totalorder %s67_s27, %s7838_s21  ;;  %p7844_p7 = scmp.lt.s32.totalorder %s7838_s21, %s7838_s21 }
  0x2d   :  { %p7845_p8 = por %p7844_p7, %p7843_p6 }
  0x2f   :  { %p7846_p9 = pnand %p7845_p8, %p7839_p5 }
  0x31   :  { %7849 = shalt.err (!%p7846_p9)
}
  0x32   :  { %72 = dma.hbm_to_vmem [thread:$0]  %s9442_s10, 32768, %s67_s27, [#allocation5], %s7855_s23, %s7855_s23, %s7856_s24  }
  0x33   :  { %7850 = dma.done.wait [#allocation3], 12288  }
  0x34   :  { %7851 = vsyncadd [#allocation3], 4294955008 }
  0x35   :  { %7852 = dma.done.wait [#allocation5], 36864  }
  0x36   :  { %7853 = vsyncadd [#allocation5], 4294930432  ;;  %v7106_v0 = vld [vmem:[#allocation2 + $0xc] ss:$24 sps:$4 sm:$0xff]   ;;  %v7110_v2 = vld [vmem:[#allocation2 + $0x8] ss:$24 sps:$4 sm:$0xff]  }
  0x37   :  { %v7108_v1 = vld [vmem:[#allocation2 + $0x4] ss:$24 sps:$4 sm:$0xff]   ;;  %742 = vmatprep.subr.bf16.mxu1 %v7106_v0  ;;  %v7111_v3 = vld [vmem:[#allocation2] ss:$24 sps:$4 sm:$0xff]   ;;  %v7114_v5 = vld [vmem:[#allocation2 + $0x34] ss:$24 sps:$4 sm:$0xff]  }
  0x38   :  { %701 = vmatprep.subr.bf16.mxu0 %v7108_v1  ;;  %v7112_v4 = vld [vmem:[#allocation2 + $0x3c] ss:$24 sps:$4 sm:$0xff]   ;;  %743 = vmatpush1.bf16.msra.mxu1 %v7110_v2  ;;  %v7116_v6 = vld [vmem:[#allocation2 + $0x38] ss:$24 sps:$4 sm:$0xff]   ;;  %v7118_v8 = vld [vmem:[#allocation2 + $0x6c] ss:$24 sps:$4 sm:$0xff]  }
  0x39   :  { %702 = vmatpush1.bf16.msra.mxu0 %v7111_v3  ;;  %744 = vmatprep.subr.bf16.mxu1 %v7112_v4  ;;  %v7117_v7 = vld [vmem:[#allocation2 + $0x30] ss:$24 sps:$4 sm:$0xff]   ;;  %v7120_v9 = vld [vmem:[#allocation2 + $0x64] ss:$24 sps:$4 sm:$0xff]   ;;  %v7123_v11 = vld [vmem:[#allocation2 + $0x60] ss:$24 sps:$4 sm:$0xff]   ;;  %v191_v4 = vlaneseq }
  0x3a   :  { %703 = vmatprep.subr.bf16.mxu0 %v7114_v5  ;;  %v7122_v10 = vld [vmem:[#allocation2 + $0x68] ss:$24 sps:$4 sm:$0xff]   ;;  %v7124_v12 = vld [vmem:[#allocation2 + $0x9c] ss:$24 sps:$4 sm:$0xff]   ;;  %v7128_v14 = vld [vmem:[#allocation2 + $0x98] ss:$24 sps:$4 sm:$0xff]  }
  0x3b   :  { %v7126_v13 = vld [vmem:[#allocation2 + $0x94] ss:$24 sps:$4 sm:$0xff]   ;;  %v7129_v15 = vld [vmem:[#allocation2 + $0x90] ss:$24 sps:$4 sm:$0xff]   ;;  %v7132_v17 = vld [vmem:[#allocation2 + $0xc4] ss:$24 sps:$4 sm:$0xff]  }
  0x3c   :  { %745 = vmatpush1.bf16.msra.mxu1 %v7116_v6  ;;  %v7130_v16 = vld [vmem:[#allocation2 + $0xcc] ss:$24 sps:$4 sm:$0xff]   ;;  %v7134_v18 = vld [vmem:[#allocation2 + $0xc8] ss:$24 sps:$4 sm:$0xff]   ;;  %v7136_v20 = vld [vmem:[#allocation2 + $0xfc] ss:$24 sps:$4 sm:$0xff]  }
  0x3d   :  { %704 = vmatpush1.bf16.msra.mxu0 %v7117_v7  ;;  %746 = vmatprep.subr.bf16.mxu1 %v7118_v8  ;;  %v7135_v19 = vld [vmem:[#allocation2 + $0xc0] ss:$24 sps:$4 sm:$0xff]   ;;  %v7138_v21 = vld [vmem:[#allocation2 + $0xf4] ss:$24 sps:$4 sm:$0xff]   ;;  %v7141_v23 = vld [vmem:[#allocation2 + $0xf0] ss:$24 sps:$4 sm:$0xff]  }
  0x3e   :  { %705 = vmatprep.subr.bf16.mxu0 %v7120_v9  ;;  %v7140_v22 = vld [vmem:[#allocation2 + $0xf8] ss:$24 sps:$4 sm:$0xff]   ;;  %v7142_v24 = vld [vmem:[#allocation2 + $0x12c] ss:$24 sps:$4 sm:$0xff]   ;;  %v7146_v26 = vld [vmem:[#allocation2 + $0x128] ss:$24 sps:$4 sm:$0xff]  }
  0x3f   :  { %v7144_v25 = vld [vmem:[#allocation2 + $0x124] ss:$24 sps:$4 sm:$0xff]   ;;  %v7147_v27 = vld [vmem:[#allocation2 + $0x120] ss:$24 sps:$4 sm:$0xff]   ;;  %v7150_v29 = vld [vmem:[#allocation2 + $0x154] ss:$24 sps:$4 sm:$0xff]  }
  0x40   :  { %747 = vmatpush1.bf16.msra.mxu1 %v7122_v10  ;;  %v7148_v28 = vld [vmem:[#allocation2 + $0x15c] ss:$24 sps:$4 sm:$0xff]   ;;  %v7152_v30 = vld [vmem:[#allocation2 + $0x158] ss:$24 sps:$4 sm:$0xff]   ;;  %v7154_v32 = vld [vmem:[#allocation2 + $0x18c] ss:$24 sps:$4 sm:$0xff]  }
  0x41   :  { %706 = vmatpush1.bf16.msra.mxu0 %v7123_v11  ;;  %748 = vmatprep.subr.bf16.mxu1 %v7124_v12  ;;  %v7153_v31 = vld [vmem:[#allocation2 + $0x150] ss:$24 sps:$4 sm:$0xff]   ;;  %v7156_v33 = vld [vmem:[#allocation2 + $0x184] ss:$24 sps:$4 sm:$0xff]   ;;  %v7159_v35 = vld [vmem:[#allocation2 + $0x180] ss:$24 sps:$4 sm:$0xff]  }
  0x42   :  { %707 = vmatprep.subr.bf16.mxu0 %v7126_v13  ;;  %v7158_v34 = vld [vmem:[#allocation2 + $0x188] ss:$24 sps:$4 sm:$0xff]   ;;  %v7160_v36 = vld [vmem:[#allocation2 + $0x1bc] ss:$24 sps:$4 sm:$0xff]   ;;  %v7164_v38 = vld [vmem:[#allocation2 + $0x1b8] ss:$24 sps:$4 sm:$0xff]  }
  0x43   :  { %v7162_v37 = vld [vmem:[#allocation2 + $0x1b4] ss:$24 sps:$4 sm:$0xff]   ;;  %v7165_v39 = vld [vmem:[#allocation2 + $0x1b0] ss:$24 sps:$4 sm:$0xff]   ;;  %v7168_v41 = vld [vmem:[#allocation2 + $0x1e4] ss:$24 sps:$4 sm:$0xff]  }
  0x44   :  { %749 = vmatpush1.bf16.msra.mxu1 %v7128_v14  ;;  %v7166_v40 = vld [vmem:[#allocation2 + $0x1ec] ss:$24 sps:$4 sm:$0xff]   ;;  %v7170_v42 = vld [vmem:[#allocation2 + $0x1e8] ss:$24 sps:$4 sm:$0xff]   ;;  %v7172_v44 = vld [vmem:[#allocation2 + $0x21c] ss:$24 sps:$4 sm:$0xff]  }
  0x45   :  { %708 = vmatpush1.bf16.msra.mxu0 %v7129_v15  ;;  %750 = vmatprep.subr.bf16.mxu1 %v7130_v16  ;;  %v7171_v43 = vld [vmem:[#allocation2 + $0x1e0] ss:$24 sps:$4 sm:$0xff]   ;;  %v7174_v45 = vld [vmem:[#allocation2 + $0x214] ss:$24 sps:$4 sm:$0xff]   ;;  %v7177_v47 = vld [vmem:[#allocation2 + $0x210] ss:$24 sps:$4 sm:$0xff]  }
  0x46   :  { %709 = vmatprep.subr.bf16.mxu0 %v7132_v17  ;;  %v7176_v46 = vld [vmem:[#allocation2 + $0x218] ss:$24 sps:$4 sm:$0xff]   ;;  %v90_v48 = vld [vmem:[%s9432_s0 + $0x8] sm:$0xff]  ;;  %v7180_v50 = vld [vmem:[#allocation2 + $0x244] ss:$24 sps:$4 sm:$0xff]   ;;  %v7991_v5 = vand.u32 127, %v191_v4 }
  0x47   :  { %v7178_v49 = vld [vmem:[#allocation2 + $0x24c] ss:$24 sps:$4 sm:$0xff]   ;;  %v92_v51 = vpack.c.bf16 %v90_v48, %v90_v48  ;;  %v7182_v52 = vld [vmem:[#allocation2 + $0x248] ss:$24 sps:$4 sm:$0xff]   ;;  %v7184_v54 = vld [vmem:[#allocation2 + $0x27c] ss:$24 sps:$4 sm:$0xff]  }
  0x48   :  { %751 = vmatpush1.bf16.msra.mxu1 %v7134_v18  ;;  %v7183_v53 = vld [vmem:[#allocation2 + $0x240] ss:$24 sps:$4 sm:$0xff]   ;;  %v7186_v55 = vld [vmem:[#allocation2 + $0x274] ss:$24 sps:$4 sm:$0xff]   ;;  %v7189_v57 = vld [vmem:[#allocation2 + $0x270] ss:$24 sps:$4 sm:$0xff]  }
  0x49   :  { %710 = vmatpush1.bf16.msra.mxu0 %v7135_v19  ;;  %752 = vmatprep.subr.bf16.mxu1 %v7136_v20  ;;  %v7188_v56 = vld [vmem:[#allocation2 + $0x278] ss:$24 sps:$4 sm:$0xff]   ;;  %v7190_v58 = vld [vmem:[#allocation2 + $0x2ac] ss:$24 sps:$4 sm:$0xff]   ;;  %v7194_v60 = vld [vmem:[#allocation2 + $0x2a8] ss:$24 sps:$4 sm:$0xff]  }
  0x4a   :  { %711 = vmatprep.subr.bf16.mxu0 %v7138_v21  ;;  %774 = vmatprep.mubr.bf16.mxu1 %v92_v51  ;;  %v7192_v59 = vld [vmem:[#allocation2 + $0x2a4] ss:$24 sps:$4 sm:$0xff]   ;;  %v7195_v61 = vld [vmem:[#allocation2 + $0x2a0] ss:$24 sps:$4 sm:$0xff]   ;;  %v7198_v63 = vld [vmem:[#allocation2 + $0x2d4] ss:$24 sps:$4 sm:$0xff]  }
  0x4b   :  { %733 = vmatprep.mubr.bf16.mxu0 %v92_v51  ;;  %v7196_v62 = vld [vmem:[#allocation2 + $0x2dc] ss:$24 sps:$4 sm:$0xff]   ;;  %v7200_v0 = vld [vmem:[#allocation2 + $0x2d8] ss:$24 sps:$4 sm:$0xff]   ;;  %v89_v2 = vld [vmem:[%s9432_s0] sm:$0xff]  ;;  %v830_v6 = vadd.s32 128, %v7991_v5 }
  0x4c   :  { %753 = vmatpush1.bf16.msra.mxu1 %v7140_v22  ;;  %v7201_v1 = vld [vmem:[#allocation2 + $0x2d0] ss:$24 sps:$4 sm:$0xff]   ;;  %v7987_v3 = vpack.c.bf16 %v89_v2, %v89_v2  ;;  %vm1070_vm0 = vcmp.ge.s32.totalorder %v7991_v5, 64  ;;  %vm1072_vm1 = vcmp.lt.s32.totalorder %v7991_v5, 96  ;;  %vm1190_vm3 = vcmp.ge.s32.totalorder %v7991_v5, 96 }
  0x4d   :  { %712 = vmatpush1.bf16.msra.mxu0 %v7141_v23  ;;  %754 = vmatprep.subr.bf16.mxu1 %v7142_v24  ;;  %vm1074_vm2 = vmand %vm1070_vm0, %vm1072_vm1  ;;  %vm1313_vm4 = vcmp.lt.s32.totalorder %v830_v6, 160  ;;  %v7861_v7 = vmov 0.0   ;;  %vm1431_vm5 = vcmp.ge.s32.totalorder %v830_v6, 160  ;;  %vm1433_vm6 = vcmp.lt.s32.totalorder %v830_v6, 192  ;;  %v8020_v17 = vld [vmem:[%s9435_s3] sm:$0x3f] }
  0x4e   :  { %713 = vmatprep.subr.bf16.mxu0 %v7144_v25  ;;  %v7997_v8 = vsel %vm1074_vm2, 1.0, %v7861_v7  ;;  %v7999_v9 = vsel %vm1190_vm3, 1.0, %v7861_v7  ;;  %v8001_v10 = vsel %vm1313_vm4, 1.0, %v7861_v7  ;;  %vm1551_vm7 = vcmp.ge.s32.totalorder %v830_v6, 192  ;;  %vm1435_vm10 = vmand %vm1431_vm5, %vm1433_vm6  ;;  %v7222_v2 = vld [vmem:[#allocation2 + $0x134] ss:$24 sps:$4 sm:$0xff]  }
  0x4f   :  { %vm1553_vm8 = vcmp.lt.s32.totalorder %v830_v6, 224  ;;  %vm1671_vm9 = vcmp.ge.s32.totalorder %v830_v6, 224  ;;  %v8005_v12 = vsel %vm1435_vm10, 1.0, %v7861_v7  ;;  %v8009_v14 = vshrl.u32 %v191_v4, 7  ;;  %v7220_v4 = vld [vmem:[#allocation2 + $0x130] ss:$24 sps:$4 sm:$0xff]  }
  0x50   :  { %755 = vmatpush1.bf16.msra.mxu1 %v7146_v26  ;;  %v8003_v11 = vsel %vm1671_vm9, 1.0, %v7861_v7  ;;  %vm1555_vm11 = vmand %vm1551_vm7, %vm1553_vm8  ;;  %vm834_vm12 = vcmp.lt.s32.totalorder %v7991_v5, 32  ;;  %vm901_vm13 = vcmp.ge.s32.totalorder %v7991_v5, 32  ;;  %vm903_vm14 = vcmp.lt.s32.totalorder %v7991_v5, 64  ;;  %v7225_v5 = vld [vmem:[#allocation2 + $0x164] ss:$24 sps:$4 sm:$0xff]  }
  0x51   :  { %714 = vmatpush1.bf16.msra.mxu0 %v7147_v27  ;;  %756 = vmatprep.subr.bf16.mxu1 %v7148_v28  ;;  %v8007_v13 = vsel %vm1555_vm11, 1.0, %v7861_v7  ;;  %v8012_v15 = vsub.s32 2, %v8009_v14  ;;  %v8015_v16 = vsub.s32 0, %v8009_v14  ;;  %v8023_v18 = vsub.s32 3, %v8009_v14  ;;  %vm905_vm15 = vmand %vm901_vm13, %vm903_vm14  ;;  %v7223_v6 = vld [vmem:[#allocation2 + $0x160] ss:$24 sps:$4 sm:$0xff]  }
  0x52   :  { %715 = vmatprep.subr.bf16.mxu0 %v7150_v29  ;;  %v8026_v19 = vsub.s32 1, %v8009_v14  ;;  %vm884_vm0 = vcmask 64512   ;;  %vm972_vm1 = vcmask 1043456  }
  0x53   :  { %v202_v20 = vrot.slane %v8020_v17, %v8012_v15  ;;  %v194_v21 = vrot.slane %v8020_v17, %v8015_v16  ;;  %v206_v22 = vrot.slane %v8020_v17, %v8023_v18 }
  0x54   :  { %757 = vmatpush1.bf16.msra.mxu1 %v7152_v30  ;;  %v198_v23 = vrot.slane %v8020_v17, %v8026_v19 }
  0x55   :  { %716 = vmatpush1.bf16.msra.mxu0 %v7153_v31  ;;  %758 = vmatprep.subr.bf16.mxu1 %v7154_v32 }
  0x56   :  { %717 = vmatprep.subr.bf16.mxu0 %v7156_v33 }
  0x58   :  { %759 = vmatpush1.bf16.msra.mxu1 %v7158_v34 }
  0x59   :  { %718 = vmatpush1.bf16.msra.mxu0 %v7159_v35  ;;  %760 = vmatprep.subr.bf16.mxu1 %v7160_v36 }
  0x5a   :  { %719 = vmatprep.subr.bf16.mxu0 %v7162_v37 }
  0x5c   :  { %761 = vmatpush1.bf16.msra.mxu1 %v7164_v38 }
  0x5d   :  { %720 = vmatpush1.bf16.msra.mxu0 %v7165_v39  ;;  %762 = vmatprep.subr.bf16.mxu1 %v7166_v40  ;;  %v8043_v40 = vsel %vm834_vm12, 1.0, %v7861_v7 }
  0x5e   :  { %721 = vmatprep.subr.bf16.mxu0 %v7168_v41 }
  0x60   :  { %763 = vmatpush1.bf16.msra.mxu1 %v7170_v42 }
  0x61   :  { %722 = vmatpush1.bf16.msra.mxu0 %v7171_v43  ;;  %764 = vmatprep.subr.bf16.mxu1 %v7172_v44 }
  0x62   :  { %723 = vmatprep.subr.bf16.mxu0 %v7174_v45 }
  0x64   :  { %765 = vmatpush1.bf16.msra.mxu1 %v7176_v46 }
  0x65   :  { %724 = vmatpush1.bf16.msra.mxu0 %v7177_v47  ;;  %766 = vmatprep.subr.bf16.mxu1 %v7178_v49 }
  0x66   :  { %725 = vmatprep.subr.bf16.mxu0 %v7180_v50 }
  0x68   :  { %767 = vmatpush1.bf16.msra.mxu1 %v7182_v52 }
  0x69   :  { %726 = vmatpush1.bf16.msra.mxu0 %v7183_v53  ;;  %768 = vmatprep.subr.bf16.mxu1 %v7184_v54  ;;  %v7202_v54 = vld [vmem:[#allocation2 + $0x10] ss:$24 sps:$4 sm:$0xff]  }
  0x6a   :  { %727 = vmatprep.subr.bf16.mxu0 %v7186_v55  ;;  %v7204_v55 = vld [vmem:[#allocation2 + $0x14] ss:$24 sps:$4 sm:$0xff]  }
  0x6c   :  { %769 = vmatpush1.bf16.msra.mxu1 %v7188_v56  ;;  %v7207_v56 = vld [vmem:[#allocation2 + $0x44] ss:$24 sps:$4 sm:$0xff]  }
  0x6d   :  { %728 = vmatpush1.bf16.msra.mxu0 %v7189_v57  ;;  %770 = vmatprep.subr.bf16.mxu1 %v7190_v58  ;;  %v7205_v57 = vld [vmem:[#allocation2 + $0x40] ss:$24 sps:$4 sm:$0xff]   ;;  %v7210_v58 = vld [vmem:[#allocation2 + $0x74] ss:$24 sps:$4 sm:$0xff]  }
  0x6e   :  { %729 = vmatprep.subr.bf16.mxu0 %v7192_v59  ;;  %v7208_v59 = vld [vmem:[#allocation2 + $0x70] ss:$24 sps:$4 sm:$0xff]  }
  0x70   :  { %771 = vmatpush1.bf16.msra.mxu1 %v7194_v60  ;;  %v7213_v60 = vld [vmem:[#allocation2 + $0xa4] ss:$24 sps:$4 sm:$0xff]  }
  0x71   :  { %730 = vmatpush1.bf16.msra.mxu0 %v7195_v61  ;;  %772 = vmatprep.subr.bf16.mxu1 %v7196_v62  ;;  %v7211_v61 = vld [vmem:[#allocation2 + $0xa0] ss:$24 sps:$4 sm:$0xff]   ;;  %v7216_v62 = vld [vmem:[#allocation2 + $0xd4] ss:$24 sps:$4 sm:$0xff]  }
  0x72   :  { %731 = vmatprep.subr.bf16.mxu0 %v7198_v63  ;;  %v7214_v63 = vld [vmem:[#allocation2 + $0xd0] ss:$24 sps:$4 sm:$0xff]  }
  0x74   :  { %773 = vmatpush1.bf16.msra.mxu1 %v7200_v0  ;;  %v7219_v0 = vld [vmem:[#allocation2 + $0x104] ss:$24 sps:$4 sm:$0xff]  }
  0x75   :  { %732 = vmatpush1.bf16.msra.mxu0 %v7201_v1  ;;  %v7217_v1 = vld [vmem:[#allocation2 + $0x100] ss:$24 sps:$4 sm:$0xff]  }
  0x76   :  { %783 = vmatprep.subr.bf16.mxu0 %v7204_v55 }
  0x77   :  { %775 = vmatmul.mubr.bf16.vlgmr.msra.gmra.mrb[0].mxu1 %v7987_v3 }
  0x78   :  { %734 = vmatmul.mubr.bf16.vlgmr.msra.gmra.mrb[0].mxu0 %v7987_v3 }
  0x79   :  { %815 = vmatprep.mubr.bf16.mxu0 %v92_v51  ;;  %v8075_v51 = vsel %vm905_vm15, 1.0, %v7861_v7  ;;  %784 = vmatpush1.bf16.msra.mxu0 %v7202_v54  ;;  %v7228_v7 = vld [vmem:[#allocation2 + $0x194] ss:$24 sps:$4 sm:$0xff]  }
  0x7a   :  { %785 = vmatprep.subr.bf16.mxu0 %v7207_v56 }
  0x7d   :  { %786 = vmatpush1.bf16.msra.mxu0 %v7205_v57 }
  0x7e   :  { %787 = vmatprep.subr.bf16.mxu0 %v7210_v58 }
  0x81   :  { %788 = vmatpush1.bf16.msra.mxu0 %v7208_v59 }
  0x82   :  { %789 = vmatprep.subr.bf16.mxu0 %v7213_v60 }
  0x85   :  { %790 = vmatpush1.bf16.msra.mxu0 %v7211_v61 }
  0x86   :  { %791 = vmatprep.subr.bf16.mxu0 %v7216_v62 }
  0x89   :  { %792 = vmatpush1.bf16.msra.mxu0 %v7214_v63 }
  0x8a   :  { %793 = vmatprep.subr.bf16.mxu0 %v7219_v0 }
  0x8d   :  { %794 = vmatpush1.bf16.msra.mxu0 %v7217_v1 }
  0x8e   :  { %795 = vmatprep.subr.bf16.mxu0 %v7222_v2 }
  0x91   :  { %796 = vmatpush1.bf16.msra.mxu0 %v7220_v4 }
  0x92   :  { %797 = vmatprep.subr.bf16.mxu0 %v7225_v5 }
  0x95   :  { %798 = vmatpush1.bf16.msra.mxu0 %v7223_v6 }
  0x96   :  { %799 = vmatprep.subr.bf16.mxu0 %v7228_v7 }
 0x14a   :  { %v776_v24 = vpop.f32.mrb[0].mxu1 }
 0x14b   :  { %v735_v25 = vpop.f32.mrb[0].mxu0  ;;  %v777_v26 = vadd.f32 %v776_v24, %v202_v20  ;;  %v778_v28 = vpop.f32.mrb[1].mxu1  ;;  %v7226_v20 = vld [vmem:[#allocation2 + $0x190] ss:$24 sps:$4 sm:$0xff]  }
 0x14c   :  { %v736_v27 = vadd.f32 %v735_v25, %v194_v21  ;;  %v737_v29 = vpop.f32.mrb[1].mxu0  ;;  %v779_v30 = vadd.f32 %v778_v28, %v206_v22  ;;  %v780_v32 = vpop.f32.mrb[2].mxu1  ;;  %v7231_v21 = vld [vmem:[#allocation2 + $0x1c4] ss:$24 sps:$4 sm:$0xff]   ;;  %800 = vmatpush1.bf16.msra.mxu0 %v7226_v20  ;;  %v7229_v22 = vld [vmem:[#allocation2 + $0x1c0] ss:$24 sps:$4 sm:$0xff]  }
 0x14d   :  { %v738_v31 = vadd.f32 %v737_v29, %v198_v23  ;;  %v739_v33 = vpop.f32.mrb[2].mxu0  ;;  %v781_v35 = vpop.f32.mrb[3].mxu1  ;;  %v8041_v39 = vpack.c.bf16 %v777_v26, %v777_v26  ;;  %801 = vmatprep.subr.bf16.mxu0 %v7231_v21  ;;  %v7234_v23 = vld [vmem:[#allocation2 + $0x1f4] ss:$24 sps:$4 sm:$0xff]   ;;  %v7232_v24 = vld [vmem:[#allocation2 + $0x1f0] ss:$24 sps:$4 sm:$0xff]  }
 0x14e   :  { %v8037_v34 = vmul.f32 0.17677669, %v736_v27  ;;  %v740_v36 = vpop.f32.mrb[3].mxu0  ;;  %v8039_v37 = vpack.c.bf16 %v779_v30, %v779_v30  ;;  %v7237_v25 = vld [vmem:[#allocation2 + $0x224] ss:$24 sps:$4 sm:$0xff]  }
 0x14f   :  { %v825_v38 = vmul.f32 0.17677669, %v738_v31  ;;  %v7235_v26 = vld [vmem:[#allocation2 + $0x220] ss:$24 sps:$4 sm:$0xff]   ;;  %v7240_v27 = vld [vmem:[#allocation2 + $0x254] ss:$24 sps:$4 sm:$0xff]  }
 0x150   :  { %v8047_v41 = vmul.f32 %v7997_v8, %v8037_v34  ;;  %v8051_v42 = vmul.f32 %v7999_v9, %v8037_v34  ;;  %844 = vmatprep.subr.bf16.mxu1 %v8039_v37  ;;  %v840_v47 = vmul.f32 %v8043_v40, %v8037_v34  ;;  %v909_v52 = vmul.f32 %v8075_v51, %v8037_v34  ;;  %v7238_v28 = vld [vmem:[#allocation2 + $0x250] ss:$24 sps:$4 sm:$0xff]   ;;  %v7243_v29 = vld [vmem:[#allocation2 + $0x284] ss:$24 sps:$4 sm:$0xff]   ;;  %v7241_v30 = vld [vmem:[#allocation2 + $0x280] ss:$24 sps:$4 sm:$0xff]  }
 0x151   :  { %v841_v43 = vmul.f32 0.0, %v825_v38  ;;  %v8055_v44 = vmul.f32 %v8001_v10, %v825_v38  ;;  %v8058_v45 = vmul.f32 %v8005_v12, %v825_v38  ;;  %845 = vmatpush1.bf16.xpose.msra.mxu1 %v8041_v39  ;;  %v8069_v48 = vmul.f32 %v8007_v13, %v825_v38  ;;  %802 = vmatpush1.bf16.msra.mxu0 %v7229_v22  ;;  %v7246_v31 = vld [vmem:[#allocation2 + $0x2b4] ss:$24 sps:$4 sm:$0xff]   ;;  %v7244_v32 = vld [vmem:[#allocation2 + $0x2b0] ss:$24 sps:$4 sm:$0xff]  }
 0x152   :  { %913 = vmatprep.subr.bf16.mxu1 %v8039_v37  ;;  %v8072_v49 = vmul.f32 %v8003_v11, %v825_v38  ;;  %v842_v50 = vpack.c.bf16 %v840_v47, %v840_v47  ;;  %v911_v53 = vpack.c.bf16 %v909_v52, %v909_v52  ;;  %803 = vmatprep.subr.bf16.mxu0 %v7234_v23  ;;  %v7249_v33 = vld [vmem:[#allocation2 + $0x2e4] ss:$24 sps:$4 sm:$0xff]   ;;  %v7247_v35 = vld [vmem:[#allocation2 + $0x2e0] ss:$24 sps:$4 sm:$0xff]   ;;  %v8094_v22 = vsub.s32 4, %v8009_v14 }
 0x153   :  { %v8064_v46 = vpack.c.bf16 %v841_v43, %v841_v43  ;;  %v8097_v23 = vsub.s32 5, %v8009_v14 }
 0x155   :  { %876 = vmatprep.mubr.bf16.mxu1 %v8064_v46  ;;  %804 = vmatpush1.bf16.msra.mxu0 %v7232_v24  ;;  %v210_v24 = vrot.slane %v8020_v17, %v8094_v22 }
 0x156   :  { %805 = vmatprep.subr.bf16.mxu0 %v7237_v25  ;;  %v214_v25 = vrot.slane %v8020_v17, %v8097_v23 }
 0x158   :  { %877 = vmatmul.mubr.bf16.vlgmr.msra.gmra.mrb[4].mxu1 %v842_v50  ;;  %v8085_v50 = vld [vmem:[%s9433_s1] sm:$0xff] }
 0x159   :  { %914 = vmatpush1.bf16.xpose.msra.mxu1 %v8041_v39  ;;  %945 = vmatprep.mubr.bf16.mxu1 %v8064_v46 }
 0x15a   :  { %806 = vmatpush1.bf16.msra.mxu0 %v7235_v26 }
 0x15b   :  { %807 = vmatprep.subr.bf16.mxu0 %v7240_v27 }
 0x15e   :  { %808 = vmatpush1.bf16.msra.mxu0 %v7238_v28 }
 0x15f   :  { %809 = vmatprep.subr.bf16.mxu0 %v7243_v29 }
 0x160   :  { %946 = vmatmul.mubr.bf16.vlgmr.msra.gmra.mrb[8].mxu1 %v911_v53 }
 0x162   :  { %810 = vmatpush1.bf16.msra.mxu0 %v7241_v30 }
 0x163   :  { %811 = vmatprep.subr.bf16.mxu0 %v7246_v31 }
 0x166   :  { %812 = vmatpush1.bf16.msra.mxu0 %v7244_v32 }
 0x167   :  { %813 = vmatprep.subr.bf16.mxu0 %v7249_v33 }
 0x16a   :  { %814 = vmatpush1.bf16.msra.mxu0 %v7247_v35 }
 0x16d   :  { %816 = vmatmul.mubr.bf16.vlgmr.msra.gmra.mrb[4].mxu0 %v7987_v3 }
 0x22b   :  { %v878_v36 = vpop.f32.mrb[4].mxu1 }
 0x22c   :  { %v880_v38 = vpop.f32.mrb[5].mxu1  ;;  %v879_v56 = vadd.f32 %v878_v36, %v8085_v50 }
 0x22d   :  { %v881_v43 = vpop.f32.mrb[6].mxu1 }
 0x22e   :  { %v882_v47 = vpop.f32.mrb[7].mxu1  ;;  %v885_v58 = vsel %vm884_vm0, %v879_v56, -inf }
 0x233   :  { %v947_v52 = vpop.f32.mrb[8].mxu1 }
 0x234   :  { %v948_v53 = vadd.f32 %v947_v52, %v8085_v50  ;;  %v949_v54 = vpop.f32.mrb[9].mxu1 }
 0x235   :  { %v950_v55 = vpop.f32.mrb[10].mxu1 }
 0x236   :  { %v951_v57 = vpop.f32.mrb[11].mxu1  ;;  %v953_v3 = vsel %vm884_vm0, %v948_v53, -inf }
 0x237   :  { %954 = vmax.xlane.f32.xlu0 %v953_v3 }
 0x23b   :  { %886 = vmax.xlane.f32.xlu0 %v885_v58 }
 0x240   :  { %v817_v1 = vpop.f32.mrb[4].mxu0 }
 0x241   :  { %v819_v2 = vpop.f32.mrb[5].mxu0  ;;  %v8103_v26 = vadd.f32 %v817_v1, %v210_v24 }
 0x242   :  { %v821_v4 = vpop.f32.mrb[6].mxu0  ;;  %v820_v27 = vadd.f32 %v819_v2, %v214_v25 }
 0x243   :  { %v822_v6 = vpop.f32.mrb[7].mxu0  ;;  %v965_v29 = vmul.f32 %v8075_v51, %v8103_v26  ;;  %v1134_v32 = vmul.f32 %v7997_v8, %v8103_v26  ;;  %v8113_v33 = vmul.f32 %v7999_v9, %v8103_v26  ;;  %v7862_v9 = vmov 0  }
 0x244   :  { %v898_v28 = vmul.f32 0.0, %v820_v27  ;;  %v8116_v17 = vmul.f32 %v8001_v10, %v820_v27  ;;  %v8122_v51 = vmul.f32 %v8005_v12, %v820_v27  ;;  %v8125_v36 = vmul.f32 %v8007_v13, %v820_v27  ;;  %1011 = vmatprep.mubr.bf16.mxu1 %v7862_v9 }
 0x245   :  { %v967_v31 = vpack.c.bf16 %v965_v29, %v965_v29  ;;  %v8130_v8 = vmul.f32 %v8003_v11, %v820_v27  ;;  %v897_v12 = vmul.f32 %v8043_v40, %v8103_v26  ;;  %v1136_v40 = vpack.c.bf16 %v1134_v32, %v1134_v32 }
 0x246   :  { %v8107_v30 = vpack.c.bf16 %v898_v28, %v898_v28 }
 0x247   :  { %v974_v35 = vsel %vm972_vm1, %v967_v31, 0  ;;  %v899_v13 = vpack.c.bf16 %v897_v12, %v897_v12  ;;  %v1142_v57 = vsel %vm972_vm1, %v1136_v40, 0 }
 0x248   :  { %6508 = vmatprep.subr.msk.bf16.mxu1 %vm972_vm1, %v8107_v30 }
 0x249   :  { %980 = vmatpush1.bf16.msra.mxu1 %v974_v35 }
 0x24a   :  { %6510 = vmatprep.subr.msk.bf16.mxu1 %vm972_vm1, %v8107_v30 }
 0x2c4   :  { %v955_v59 = vpop.xlane.xlu0 %954 }
 0x2c5   :  { %v956_v60 = vsub.f32 %v948_v53, %v955_v59  ;;  %v1024_v53 = vsel %vm972_vm1, %v899_v13, 0  ;;  %v1377_v13 = vpack.c.bf16 %v8116_v17, %v8116_v17 }
 0x2c7   :  { %v957_v61 = vmul.f32 1.442695, %v956_v60 }
 0x2c8   :  { %v887_v62 = vpop.xlane.xlu0 %886 }
 0x2c9   :  { %7682 = vpow2.f32 %v957_v61  ;;  %v888_v63 = vsub.f32 %v879_v56, %v887_v62  ;;  %v1080_v56 = vpack.c.bf16 %v8047_v41, %v8047_v41 }
 0x2cb   :  { %v889_v0 = vmul.f32 1.442695, %v888_v63 }
 0x2cd   :  { %7684 = vpow2.f32 %v889_v0 }
 0x2d3   :  { %v7683_v5 = vpop.eup %7682 }
 0x2d4   :  { %v959_v7 = vsel %vm884_vm0, %v7683_v5, 0.0 }
 0x2d5   :  { %960 = vadd.xlane.f32.xlu1 %v959_v7 }
 0x2d7   :  { %v7685_v20 = vpop.eup %7684 }
 0x2d8   :  { %v891_v21 = vsel %vm884_vm0, %v7685_v20, 0.0 }
 0x2d9   :  { %892 = vadd.xlane.f32.xlu1 %v891_v21  ;;  %v1200_v21 = vpack.c.bf16 %v8051_v42, %v8051_v42 }
 0x362   :  { %v961_v10 = vpop.xlane.xlu1 %960 }
 0x363   :  { %7686 = vrcp.f32 %v961_v10 }
 0x366   :  { %v893_v38 = vpop.xlane.xlu1 %892 }
 0x367   :  { %7688 = vrcp.f32 %v893_v38 }
 0x36d   :  { %v7687_v43 = vpop.eup %7686 }
 0x36e   :  { %v963_v47 = vmul.f32 %v7687_v43, %v7683_v5 }
 0x370   :  { %v964_v52 = vpack.c.bf16 %v963_v47, %v963_v47  ;;  %v1321_v47 = vpack.c.bf16 %v8055_v44, %v8055_v44 }
 0x371   :  { %v7689_v11 = vpop.eup %7688 }
 0x372   :  { %6509 = vmatmul.mubr.msk.bf16.vlgmr.msra.gmra.mrb[12].mxu1 %vm884_vm0, %v964_v52  ;;  %v895_v54 = vmul.f32 %v7689_v11, %v7685_v20  ;;  %v1256_v20 = vpack.c.bf16 %v8113_v33, %v8113_v33  ;;  %v1374_v52 = vmul.f32 0.0, %v8103_v26 }
 0x373   :  { %1030 = vmatpush1.bf16.msra.mxu1 %v1024_v53  ;;  %1061 = vmatprep.mubr.bf16.mxu1 %v7862_v9  ;;  %v1318_v53 = vmul.f32 0.0, %v8037_v34 }
 0x374   :  { %1082 = vmatprep.subr.bf16.mxu1 %v8039_v37  ;;  %v896_v55 = vpack.c.bf16 %v895_v54, %v895_v54  ;;  %v1262_v24 = vsel %vm972_vm1, %v1256_v20, 0  ;;  %v1376_v11 = vpack.c.bf16 %v1374_v52, %v1374_v52 }
 0x375   :  { %v8176_v54 = vpack.c.bf16 %v1318_v53, %v1318_v53 }
 0x376   :  { %v8180_v44 = vsel %vm972_vm1, %v1376_v11, 0  ;;  %v1681_v11 = vpack.c.bf16 %v8072_v49, %v8072_v49 }
 0x37e   :  { %6511 = vmatmul.mubr.msk.bf16.vlgmr.msra.gmra.mrb[12].mxu1 %vm884_vm0, %v896_v55 }
 0x37f   :  { %1083 = vmatpush1.bf16.xpose.msra.mxu1 %v8041_v39  ;;  %1114 = vmatprep.mubr.bf16.mxu1 %v8064_v46 }
 0x380   :  { %6512 = vmatprep.subr.msk.bf16.mxu1 %vm972_vm1, %v8107_v30 }
 0x386   :  { %1115 = vmatmul.mubr.bf16.vlgmr.msra.gmra.mrb[16].mxu1 %v1080_v56 }
 0x387   :  { %1148 = vmatpush1.bf16.msra.mxu1 %v1142_v57  ;;  %1179 = vmatprep.mubr.bf16.mxu1 %v7862_v9 }
 0x388   :  { %1202 = vmatprep.subr.bf16.mxu1 %v8039_v37 }
 0x459   :  { %v1116_v3 = vpop.f32.mrb[16].mxu1 }
 0x45a   :  { %v1117_v58 = vadd.f32 %v1116_v3, %v8085_v50  ;;  %v1118_v59 = vpop.f32.mrb[17].mxu1 }
 0x45b   :  { %v1119_v60 = vpop.f32.mrb[18].mxu1 }
 0x45c   :  { %v1120_v61 = vpop.f32.mrb[19].mxu1  ;;  %v1122_v62 = vsel %vm884_vm0, %v1117_v58, -inf }
 0x45d   :  { %1123 = vmax.xlane.f32.xlu0 %v1122_v62 }
 0x4ea   :  { %v1124_v63 = vpop.xlane.xlu0 %1123 }
 0x4eb   :  { %v1125_v0 = vsub.f32 %v1117_v58, %v1124_v63 }
 0x4ed   :  { %v1126_v41 = vmul.f32 1.442695, %v1125_v0 }
 0x4ef   :  { %7690 = vpow2.f32 %v1126_v41  ;;  %v1441_v41 = vpack.c.bf16 %v8058_v45, %v8058_v45 }
 0x4f9   :  { %v7691_v1 = vpop.eup %7690 }
 0x4fa   :  { %v1128_v2 = vsel %vm884_vm0, %v7691_v1, 0.0 }
 0x4fb   :  { %1129 = vadd.xlane.f32.xlu1 %v1128_v2 }
 0x588   :  { %v1130_v4 = vpop.xlane.xlu1 %1129 }
 0x589   :  { %7692 = vrcp.f32 %v1130_v4 }
 0x593   :  { %v7693_v5 = vpop.eup %7692 }
 0x594   :  { %v1132_v6 = vmul.f32 %v7693_v5, %v7691_v1  ;;  %v1497_v1 = vpack.c.bf16 %v8122_v51, %v8122_v51 }
 0x596   :  { %v1133_v7 = vpack.c.bf16 %v1132_v6, %v1132_v6 }
 0x598   :  { %6513 = vmatmul.mubr.msk.bf16.vlgmr.msra.gmra.mrb[12].mxu1 %vm884_vm0, %v1133_v7 }
 0x599   :  { %1203 = vmatpush1.bf16.xpose.msra.mxu1 %v8041_v39  ;;  %1234 = vmatprep.mubr.bf16.mxu1 %v8064_v46 }
 0x59a   :  { %6514 = vmatprep.subr.msk.bf16.mxu1 %vm972_vm1, %v8107_v30 }
 0x5a0   :  { %1235 = vmatmul.mubr.bf16.vlgmr.msra.gmra.mrb[20].mxu1 %v1200_v21 }
 0x5a1   :  { %1268 = vmatpush1.bf16.msra.mxu1 %v1262_v24  ;;  %1299 = vmatprep.mubr.bf16.mxu1 %v7862_v9 }
 0x5a2   :  { %1322 = vmatprep.subr.bf16.mxu1 %v8039_v37 }
 0x673   :  { %v1236_v25 = vpop.f32.mrb[20].mxu1 }
 0x674   :  { %v1237_v46 = vadd.f32 %v1236_v25, %v8085_v50  ;;  %v1238_v27 = vpop.f32.mrb[21].mxu1 }
 0x675   :  { %v1239_v28 = vpop.f32.mrb[22].mxu1 }
 0x676   :  { %v1240_v29 = vpop.f32.mrb[23].mxu1  ;;  %v1242_v30 = vsel %vm884_vm0, %v1237_v46, -inf }
 0x677   :  { %1243 = vmax.xlane.f32.xlu0 %v1242_v30  ;;  %v1561_v30 = vpack.c.bf16 %v8069_v48, %v8069_v48 }
 0x704   :  { %v1244_v31 = vpop.xlane.xlu0 %1243 }
 0x705   :  { %v1245_v32 = vsub.f32 %v1237_v46, %v1244_v31  ;;  %v1617_v31 = vpack.c.bf16 %v8125_v36, %v8125_v36 }
 0x707   :  { %v1246_v42 = vmul.f32 1.442695, %v1245_v32 }
 0x709   :  { %7694 = vpow2.f32 %v1246_v42 }
 0x713   :  { %v7695_v33 = vpop.eup %7694 }
 0x714   :  { %v1248_v35 = vsel %vm884_vm0, %v7695_v33, 0.0 }
 0x715   :  { %1249 = vadd.xlane.f32.xlu1 %v1248_v35 }
 0x7a2   :  { %v1250_v10 = vpop.xlane.xlu1 %1249 }
 0x7a3   :  { %7696 = vrcp.f32 %v1250_v10 }
 0x7ad   :  { %v7697_v38 = vpop.eup %7696 }
 0x7ae   :  { %v1252_v12 = vmul.f32 %v7697_v38, %v7695_v33 }
 0x7b0   :  { %v1253_v43 = vpack.c.bf16 %v1252_v12, %v1252_v12 }
 0x7b2   :  { %6515 = vmatmul.mubr.msk.bf16.vlgmr.msra.gmra.mrb[12].mxu1 %vm884_vm0, %v1253_v43 }
 0x7b3   :  { %1323 = vmatpush1.bf16.xpose.msra.mxu1 %v8041_v39  ;;  %1354 = vmatprep.mubr.bf16.mxu1 %v1321_v47 }
 0x7b4   :  { %6516 = vmatprep.subr.msk.bf16.mxu1 %vm972_vm1, %v1377_v13 }
 0x7ba   :  { %1355 = vmatmul.mubr.bf16.vlgmr.msra.gmra.mrb[24].mxu1 %v8176_v54 }
 0x7bb   :  { %1388 = vmatpush1.bf16.msra.mxu1 %v8180_v44  ;;  %1419 = vmatprep.mubr.bf16.mxu1 %v7862_v9 }
 0x7bc   :  { %1442 = vmatprep.subr.bf16.mxu1 %v8039_v37 }
 0x88d   :  { %v1356_v26 = vpop.f32.mrb[24].mxu1 }
 0x88e   :  { %v1357_v17 = vadd.f32 %v1356_v26, %v8085_v50  ;;  %v1358_v55 = vpop.f32.mrb[25].mxu1  ;;  %v1737_v26 = vpack.c.bf16 %v8130_v8, %v8130_v8 }
 0x88f   :  { %v1359_v40 = vpop.f32.mrb[26].mxu1 }
 0x890   :  { %v1360_v34 = vpop.f32.mrb[27].mxu1  ;;  %v1362_v56 = vsel %vm884_vm0, %v1357_v17, -inf }
 0x891   :  { %1363 = vmax.xlane.f32.xlu0 %v1362_v56 }
 0x91e   :  { %v1364_v57 = vpop.xlane.xlu0 %1363 }
 0x91f   :  { %v1365_v3 = vsub.f32 %v1357_v17, %v1364_v57 }
 0x921   :  { %v1366_v58 = vmul.f32 1.442695, %v1365_v3 }
 0x923   :  { %7698 = vpow2.f32 %v1366_v58  ;;  %v7255_v58 = vld [vmem:[#allocation4 + $0x14] ss:$8 sps:$4 sm:$0xff]  }
 0x92d   :  { %v7699_v59 = vpop.eup %7698 }
 0x92e   :  { %v1368_v60 = vsel %vm884_vm0, %v7699_v59, 0.0 }
 0x92f   :  { %1369 = vadd.xlane.f32.xlu1 %v1368_v60  ;;  %v7256_v60 = vld [vmem:[#allocation4 + $0x20] ss:$8 sps:$4 sm:$0xff]  }
 0x9bc   :  { %v1370_v61 = vpop.xlane.xlu1 %1369 }
 0x9bd   :  { %7700 = vrcp.f32 %v1370_v61  ;;  %v7261_v61 = vld [vmem:[#allocation4 + $0x34] ss:$8 sps:$4 sm:$0xff]  }
 0x9c7   :  { %v7701_v62 = vpop.eup %7700 }
 0x9c8   :  { %v1372_v63 = vmul.f32 %v7701_v62, %v7699_v59  ;;  %v7258_v59 = vld [vmem:[#allocation4 + $0x24] ss:$8 sps:$4 sm:$0xff]   ;;  %v7259_v62 = vld [vmem:[#allocation4 + $0x30] ss:$8 sps:$4 sm:$0xff]  }
 0x9ca   :  { %v1373_v0 = vpack.c.bf16 %v1372_v63, %v1372_v63  ;;  %v7264_v63 = vld [vmem:[#allocation4 + $0x44] ss:$8 sps:$4 sm:$0xff]  }
 0x9cc   :  { %6517 = vmatmul.mubr.msk.bf16.vlgmr.msra.gmra.mrb[12].mxu1 %vm884_vm0, %v1373_v0  ;;  %v7262_v0 = vld [vmem:[#allocation4 + $0x40] ss:$8 sps:$4 sm:$0xff]  }
 0x9cd   :  { %1443 = vmatpush1.bf16.xpose.msra.mxu1 %v8041_v39  ;;  %1474 = vmatprep.mubr.bf16.mxu1 %v1441_v41  ;;  %v7267_v41 = vld [vmem:[#allocation4 + $0x54] ss:$8 sps:$4 sm:$0xff]  }
 0x9ce   :  { %6518 = vmatprep.subr.msk.bf16.mxu1 %vm972_vm1, %v1497_v1  ;;  %v7265_v1 = vld [vmem:[#allocation4 + $0x50] ss:$8 sps:$4 sm:$0xff]  }
 0x9d4   :  { %1475 = vmatmul.mubr.bf16.vlgmr.msra.gmra.mrb[28].mxu1 %v8176_v54 }
 0x9d5   :  { %1508 = vmatpush1.bf16.msra.mxu1 %v8180_v44  ;;  %1539 = vmatprep.mubr.bf16.mxu1 %v7862_v9 }
 0x9d6   :  { %1562 = vmatprep.subr.bf16.mxu1 %v8039_v37 }
 0xaa7   :  { %v1476_v2 = vpop.f32.mrb[28].mxu1 }
 0xaa8   :  { %v1477_v45 = vadd.f32 %v1476_v2, %v8085_v50  ;;  %v1478_v4 = vpop.f32.mrb[29].mxu1  ;;  %v7270_v2 = vld [vmem:[#allocation4 + $0x64] ss:$8 sps:$4 sm:$0xff]  }
 0xaa9   :  { %v1479_v5 = vpop.f32.mrb[30].mxu1  ;;  %v7273_v4 = vld [vmem:[#allocation4 + $0x74] ss:$8 sps:$4 sm:$0xff]  }
 0xaaa   :  { %v1480_v6 = vpop.f32.mrb[31].mxu1  ;;  %v1482_v51 = vsel %vm884_vm0, %v1477_v45, -inf  ;;  %v7271_v5 = vld [vmem:[#allocation4 + $0x70] ss:$8 sps:$4 sm:$0xff]  }
 0xaab   :  { %1483 = vmax.xlane.f32.xlu0 %v1482_v51  ;;  %v7276_v6 = vld [vmem:[#allocation4 + $0x84] ss:$8 sps:$4 sm:$0xff]   ;;  %v7274_v51 = vld [vmem:[#allocation4 + $0x80] ss:$8 sps:$4 sm:$0xff]  }
 0xb38   :  { %v1484_v7 = vpop.xlane.xlu0 %1483 }
 0xb39   :  { %v1485_v20 = vsub.f32 %v1477_v45, %v1484_v7  ;;  %v7268_v45 = vld [vmem:[#allocation4 + $0x60] ss:$8 sps:$4 sm:$0xff]   ;;  %v7279_v7 = vld [vmem:[#allocation4 + $0x94] ss:$8 sps:$4 sm:$0xff]  }
 0xb3b   :  { %v1486_v21 = vmul.f32 1.442695, %v1485_v20  ;;  %v7277_v20 = vld [vmem:[#allocation4 + $0x90] ss:$8 sps:$4 sm:$0xff]  }
 0xb3d   :  { %7702 = vpow2.f32 %v1486_v21  ;;  %v7282_v21 = vld [vmem:[#allocation4 + $0xa4] ss:$8 sps:$4 sm:$0xff]  }
 0xb47   :  { %v7703_v24 = vpop.eup %7702 }
 0xb48   :  { %v1488_v25 = vsel %vm884_vm0, %v7703_v24, 0.0 }
 0xb49   :  { %1489 = vadd.xlane.f32.xlu1 %v1488_v25  ;;  %v7285_v25 = vld [vmem:[#allocation4 + $0xb4] ss:$8 sps:$4 sm:$0xff]  }
 0xbd6   :  { %v1490_v46 = vpop.xlane.xlu1 %1489 }
 0xbd7   :  { %7704 = vrcp.f32 %v1490_v46  ;;  %v7283_v46 = vld [vmem:[#allocation4 + $0xb0] ss:$8 sps:$4 sm:$0xff]  }
 0xbe1   :  { %v7705_v27 = vpop.eup %7704 }
 0xbe2   :  { %v1492_v28 = vmul.f32 %v7705_v27, %v7703_v24  ;;  %v7280_v24 = vld [vmem:[#allocation4 + $0xa0] ss:$8 sps:$4 sm:$0xff]   ;;  %v7288_v27 = vld [vmem:[#allocation4 + $0xc4] ss:$8 sps:$4 sm:$0xff]  }
 0xbe4   :  { %v1493_v29 = vpack.c.bf16 %v1492_v28, %v1492_v28  ;;  %v7286_v28 = vld [vmem:[#allocation4 + $0xc0] ss:$8 sps:$4 sm:$0xff]  }
 0xbe6   :  { %6519 = vmatmul.mubr.msk.bf16.vlgmr.msra.gmra.mrb[12].mxu1 %vm884_vm0, %v1493_v29  ;;  %v7291_v29 = vld [vmem:[#allocation4 + $0xd4] ss:$8 sps:$4 sm:$0xff]  }
 0xbe7   :  { %1563 = vmatpush1.bf16.xpose.msra.mxu1 %v8041_v39  ;;  %1594 = vmatprep.mubr.bf16.mxu1 %v1561_v30  ;;  %v7289_v30 = vld [vmem:[#allocation4 + $0xd0] ss:$8 sps:$4 sm:$0xff]  }
 0xbe8   :  { %6520 = vmatprep.subr.msk.bf16.mxu1 %vm972_vm1, %v1617_v31  ;;  %v7294_v31 = vld [vmem:[#allocation4 + $0xe4] ss:$8 sps:$4 sm:$0xff]  }
 0xbee   :  { %1595 = vmatmul.mubr.bf16.vlgmr.msra.gmra.mrb[32].mxu1 %v8176_v54 }
 0xbef   :  { %1628 = vmatpush1.bf16.msra.mxu1 %v8180_v44  ;;  %1659 = vmatprep.mubr.bf16.mxu1 %v7862_v9 }
 0xbf0   :  { %1682 = vmatprep.subr.bf16.mxu1 %v8039_v37 }
 0xcc1   :  { %v1596_v32 = vpop.f32.mrb[32].mxu1 }
 0xcc2   :  { %v1597_v48 = vadd.f32 %v1596_v32, %v8085_v50  ;;  %v1598_v42 = vpop.f32.mrb[33].mxu1  ;;  %v7292_v32 = vld [vmem:[#allocation4 + $0xe0] ss:$8 sps:$4 sm:$0xff]  }
 0xcc3   :  { %v1599_v33 = vpop.f32.mrb[34].mxu1 }
 0xcc4   :  { %v1600_v35 = vpop.f32.mrb[35].mxu1  ;;  %v1602_v36 = vsel %vm884_vm0, %v1597_v48, -inf }
 0xcc5   :  { %1603 = vmax.xlane.f32.xlu0 %v1602_v36  ;;  %v7297_v36 = vld [vmem:[#allocation4 + $0xf4] ss:$8 sps:$4 sm:$0xff]  }
 0xd52   :  { %v1604_v10 = vpop.xlane.xlu0 %1603 }
 0xd53   :  { %v1605_v38 = vsub.f32 %v1597_v48, %v1604_v10  ;;  %v7295_v10 = vld [vmem:[#allocation4 + $0xf0] ss:$8 sps:$4 sm:$0xff]  }
 0xd55   :  { %v1606_v12 = vmul.f32 1.442695, %v1605_v38 }
 0xd57   :  { %7706 = vpow2.f32 %v1606_v12 }
 0xd61   :  { %v7707_v43 = vpop.eup %7706 }
 0xd62   :  { %v1608_v47 = vsel %vm884_vm0, %v7707_v43, 0.0 }
 0xd63   :  { %1609 = vadd.xlane.f32.xlu1 %v1608_v47 }
 0xdf0   :  { %v1610_v13 = vpop.xlane.xlu1 %1609 }
 0xdf1   :  { %7708 = vrcp.f32 %v1610_v13 }
 0xdfb   :  { %v7709_v37 = vpop.eup %7708 }
 0xdfc   :  { %v1612_v52 = vmul.f32 %v7709_v37, %v7707_v43 }
 0xdfe   :  { %v1613_v53 = vpack.c.bf16 %v1612_v52, %v1612_v52  ;;  %v1824_v52 = vld [vmem:[%s9437_s5] sm:$0x3] }
 0xe00   :  { %6521 = vmatmul.mubr.msk.bf16.vlgmr.msra.gmra.mrb[12].mxu1 %vm884_vm0, %v1613_v53  ;;  %v1829_v53 = vrot.slane %v1824_v52, %v8015_v16 }
 0xe01   :  { %1683 = vmatpush1.bf16.xpose.msra.mxu1 %v8041_v39  ;;  %1714 = vmatprep.mubr.bf16.mxu1 %v1681_v11  ;;  %v1833_v11 = vrot.slane %v1824_v52, %v8026_v19 }
 0xe02   :  { %6522 = vmatprep.subr.msk.bf16.mxu1 %vm972_vm1, %v1737_v26 }
 0xe08   :  { %1715 = vmatmul.mubr.bf16.vlgmr.msra.gmra.mrb[36].mxu1 %v8176_v54 }
 0xe09   :  { %1748 = vmatpush1.bf16.msra.mxu1 %v8180_v44  ;;  %1779 = vmatprep.mubr.bf16.mxu1 %v7862_v9  ;;  %v7250_v9 = vld [vmem:[#allocation4] ss:$8 sps:$4 sm:$0xff]   ;;  %v7252_v44 = vld [vmem:[#allocation4 + $0x4] ss:$8 sps:$4 sm:$0xff]  }
 0xe0a   :  { %1996 = vmatprep.subr.bf16.mxu0 %v7252_v44  ;;  %v2087_v44 = vld [vmem:[%s9440_s8 + $0x8] sm:$0xff] }
 0xe0b   :  { %1997 = vmatpush1.bf16.msra.mxu0 %v7250_v9  ;;  %v2094_v9 = vld [vmem:[%s9440_s8 + $0x40] sm:$0xff] }
 0xe0c   :  { %1998 = vmatprep.subr.bf16.mxu0 %v7255_v58 }
 0xedb   :  { %v1716_v17 = vpop.f32.mrb[36].mxu1 }
 0xedc   :  { %v1717_v55 = vadd.f32 %v1716_v17, %v8085_v50  ;;  %v1718_v49 = vpop.f32.mrb[37].mxu1  ;;  %v7253_v50 = vld [vmem:[#allocation4 + $0x10] ss:$8 sps:$4 sm:$0xff]  }
 0xedd   :  { %v1719_v40 = vpop.f32.mrb[38].mxu1  ;;  %1999 = vmatpush1.bf16.msra.mxu0 %v7253_v50 }
 0xede   :  { %v1720_v34 = vpop.f32.mrb[39].mxu1  ;;  %v1722_v56 = vsel %vm884_vm0, %v1717_v55, -inf  ;;  %2000 = vmatprep.subr.bf16.mxu0 %v7258_v59  ;;  %v2095_v59 = vld [vmem:[%s9440_s8 + $0x48] sm:$0xff] }
 0xedf   :  { %1723 = vmax.xlane.f32.xlu0 %v1722_v56  ;;  %v7782_v34 = vld [vmem:[%s9432_s0] sm:$0xff] }
 0xee1   :  { %2001 = vmatpush1.bf16.msra.mxu0 %v7256_v60  ;;  %v2102_v60 = vld [vmem:[%s9440_s8 + $0x80] sm:$0xff] }
 0xee2   :  { %2002 = vmatprep.subr.bf16.mxu0 %v7261_v61  ;;  %v2110_v61 = vld [vmem:[%s9440_s8 + $0xc0] sm:$0xff] }
 0xee5   :  { %2003 = vmatpush1.bf16.msra.mxu0 %v7259_v62  ;;  %v6558_v62 = vcombine.low %v2087_v44, %v2095_v59 }
 0xee6   :  { %2004 = vmatprep.subr.bf16.mxu0 %v7264_v63  ;;  %v6559_v63 = vcombine.high %v2087_v44, %v2095_v59  ;;  %v2207_v44 = vld [vmem:[%s9440_s8 + $0x3c8] sm:$0xff] }
 0xee9   :  { %2005 = vmatpush1.bf16.msra.mxu0 %v7262_v0  ;;  %v6573_v0 = vcombine.high %v2102_v60, %v2110_v61 }
 0xeea   :  { %2006 = vmatprep.subr.bf16.mxu0 %v7267_v41  ;;  %v2103_v41 = vld [vmem:[%s9440_s8 + $0x88] sm:$0xff] }
 0xeed   :  { %2007 = vmatpush1.bf16.msra.mxu0 %v7265_v1  ;;  %v2111_v1 = vld [vmem:[%s9440_s8 + $0xc8] sm:$0xff] }
 0xeee   :  { %2008 = vmatprep.subr.bf16.mxu0 %v7270_v2  ;;  %v2118_v2 = vld [vmem:[%s9440_s8 + $0x100] sm:$0xff] }
 0xef1   :  { %2009 = vmatpush1.bf16.msra.mxu0 %v7268_v45  ;;  %v6575_v45 = vcombine.high %v2103_v41, %v2111_v1 }
 0xef2   :  { %2010 = vmatprep.subr.bf16.mxu0 %v7273_v4  ;;  %v2126_v4 = vld [vmem:[%s9440_s8 + $0x140] sm:$0xff] }
 0xef5   :  { %2011 = vmatpush1.bf16.msra.mxu0 %v7271_v5  ;;  %v2119_v5 = vld [vmem:[%s9440_s8 + $0x108] sm:$0xff] }
 0xef6   :  { %2012 = vmatprep.subr.bf16.mxu0 %v7276_v6  ;;  %v2127_v6 = vld [vmem:[%s9440_s8 + $0x148] sm:$0xff] }
 0xef9   :  { %2013 = vmatpush1.bf16.msra.mxu0 %v7274_v51  ;;  %v6572_v51 = vcombine.low %v2102_v60, %v2110_v61  ;;  %v2214_v61 = vld [vmem:[%s9440_s8 + $0x400] sm:$0xff] }
 0xefa   :  { %2014 = vmatprep.subr.bf16.mxu0 %v7279_v7  ;;  %v6574_v7 = vcombine.low %v2103_v41, %v2111_v1 }
 0xefd   :  { %2015 = vmatpush1.bf16.msra.mxu0 %v7277_v20  ;;  %v6589_v20 = vcombine.high %v2118_v2, %v2126_v4 }
 0xefe   :  { %2016 = vmatprep.subr.bf16.mxu0 %v7282_v21  ;;  %v6591_v21 = vcombine.high %v2119_v5, %v2127_v6 }
 0xf01   :  { %2017 = vmatpush1.bf16.msra.mxu0 %v7280_v24  ;;  %v2134_v24 = vld [vmem:[%s9440_s8 + $0x180] sm:$0xff] }
 0xf02   :  { %2018 = vmatprep.subr.bf16.mxu0 %v7285_v25  ;;  %v2142_v25 = vld [vmem:[%s9440_s8 + $0x1c0] sm:$0xff] }
 0xf05   :  { %2019 = vmatpush1.bf16.msra.mxu0 %v7283_v46  ;;  %v2135_v46 = vld [vmem:[%s9440_s8 + $0x188] sm:$0xff] }
 0xf06   :  { %2020 = vmatprep.subr.bf16.mxu0 %v7288_v27  ;;  %v2143_v27 = vld [vmem:[%s9440_s8 + $0x1c8] sm:$0xff] }
 0xf09   :  { %2021 = vmatpush1.bf16.msra.mxu0 %v7286_v28  ;;  %v6588_v28 = vcombine.low %v2118_v2, %v2126_v4  ;;  %v2230_v4 = vld [vmem:[%s9440_s8 + $0x480] sm:$0xff] }
 0xf0a   :  { %2022 = vmatprep.subr.bf16.mxu0 %v7291_v29  ;;  %v6590_v29 = vcombine.low %v2119_v5, %v2127_v6  ;;  %v2238_v5 = vld [vmem:[%s9440_s8 + $0x4c0] sm:$0xff]  ;;  %v2231_v6 = vld [vmem:[%s9440_s8 + $0x488] sm:$0xff] }
 0xf0d   :  { %2023 = vmatpush1.bf16.msra.mxu0 %v7289_v30  ;;  %v6605_v30 = vcombine.high %v2134_v24, %v2142_v25 }
 0xf0e   :  { %2024 = vmatprep.subr.bf16.mxu0 %v7294_v31  ;;  %v6607_v31 = vcombine.high %v2135_v46, %v2143_v27 }
 0xf11   :  { %2025 = vmatpush1.bf16.msra.mxu0 %v7292_v32  ;;  %v2150_v32 = vld [vmem:[%s9440_s8 + $0x200] sm:$0xff] }
 0xf12   :  { %2026 = vmatprep.subr.bf16.mxu0 %v7297_v36  ;;  %v6606_v36 = vcombine.low %v2135_v46, %v2143_v27  ;;  %v2254_v46 = vld [vmem:[%s9440_s8 + $0x540] sm:$0xff]  ;;  %v2247_v27 = vld [vmem:[%s9440_s8 + $0x508] sm:$0xff] }
 0xf15   :  { %2027 = vmatpush1.bf16.msra.mxu0 %v7295_v10 }
 0xf16   :  { %3747 = vmatprep.subr.bf16.mxu0 %v6559_v63  ;;  %v2215_v63 = vld [vmem:[%s9440_s8 + $0x408] sm:$0xff] }
 0xf6c   :  { %v1724_v8 = vpop.xlane.xlu0 %1723 }
 0xf6d   :  { %v1725_v39 = vsub.f32 %v1717_v55, %v1724_v8 }
 0xf6f   :  { %v1726_v57 = vmul.f32 1.442695, %v1725_v39  ;;  %v7783_v39 = vld [vmem:[%s9432_s0 + $0x8] sm:$0xff] }
 0xf71   :  { %7710 = vpow2.f32 %v1726_v57 }
 0xf7b   :  { %v8228_v3 = vpop.eup %7710 }
 0xf7c   :  { %v1728_v54 = vsel %vm884_vm0, %v8228_v3, 0.0 }
 0xf7d   :  { %1729 = vadd.xlane.f32.xlu1 %v1728_v54  ;;  %v2086_v54 = vld [vmem:[%s9440_s8] sm:$0xff] }
 0xf7e   :  { %v6556_v58 = vcombine.low %v2086_v54, %v2094_v9  ;;  %v6557_v50 = vcombine.high %v2086_v54, %v2094_v9  ;;  %v2206_v54 = vld [vmem:[%s9440_s8 + $0x3c0] sm:$0xff]  ;;  %v2199_v9 = vld [vmem:[%s9440_s8 + $0x388] sm:$0xff] }
 0xf7f   :  { %v6671_v60 = vcombine.high %v2199_v9, %v2207_v44  ;;  %v6670_v1 = vcombine.low %v2199_v9, %v2207_v44  ;;  %v2295_v9 = vld [vmem:[%s9440_s8 + $0x688] sm:$0xff] }
 0xf80   :  { %3706 = vmatprep.subr.bf16.mxu1 %v6557_v50 }
0x100a   :  { %v1730_v48 = vpop.xlane.xlu1 %1729 }
0x100b   :  { %7712 = vrcp.f32 %v1730_v48  ;;  %v2158_v48 = vld [vmem:[%s9440_s8 + $0x240] sm:$0xff] }
0x100c   :  { %v6621_v10 = vcombine.high %v2150_v32, %v2158_v48 }
0x1015   :  { %v7713_v42 = vpop.eup %7712 }
0x1016   :  { %v1732_v33 = vmul.f32 %v7713_v42, %v8228_v3  ;;  %v2151_v42 = vld [vmem:[%s9440_s8 + $0x208] sm:$0xff] }
0x1018   :  { %v1733_v35 = vpack.c.bf16 %v1732_v33, %v1732_v33  ;;  %v2159_v33 = vld [vmem:[%s9440_s8 + $0x248] sm:$0xff] }
0x1019   :  { %v6622_v52 = vcombine.low %v2151_v42, %v2159_v33 }
0x101a   :  { %6523 = vmatmul.mubr.msk.bf16.vlgmr.msra.gmra.mrb[12].mxu1 %vm884_vm0, %v1733_v35  ;;  %v6604_v35 = vcombine.low %v2134_v24, %v2142_v25  ;;  %v2246_v25 = vld [vmem:[%s9440_s8 + $0x500] sm:$0xff] }
0x101b   :  { %3707 = vmatpush1.bf16.msra.mxu1 %v6556_v58 }
0x101c   :  { %3708 = vmatprep.subr.bf16.mxu1 %v6573_v0  ;;  %v2223_v0 = vld [vmem:[%s9440_s8 + $0x448] sm:$0xff] }
0x101f   :  { %3709 = vmatpush1.bf16.msra.mxu1 %v6572_v51  ;;  %v2239_v51 = vld [vmem:[%s9440_s8 + $0x4c8] sm:$0xff] }
0x1020   :  { %3710 = vmatprep.subr.bf16.mxu1 %v6589_v20  ;;  %v6686_v20 = vcombine.low %v2215_v63, %v2223_v0  ;;  %v6703_v24 = vcombine.high %v2231_v6, %v2239_v51 }
0x1023   :  { %3711 = vmatpush1.bf16.msra.mxu1 %v6588_v28  ;;  %v2255_v28 = vld [vmem:[%s9440_s8 + $0x548] sm:$0xff] }
0x1024   :  { %3712 = vmatprep.subr.bf16.mxu1 %v6605_v30  ;;  %v6702_v30 = vcombine.low %v2231_v6, %v2239_v51  ;;  %v2327_v6 = vld [vmem:[%s9440_s8 + $0x788] sm:$0xff] }
0x1027   :  { %3713 = vmatpush1.bf16.msra.mxu1 %v6604_v35 }
0x1028   :  { %3714 = vmatprep.subr.bf16.mxu1 %v6621_v10 }
0x10ed   :  { %v1781_v38 = vpop.f32.mrb[12].mxu1 }
0x10ee   :  { %v1783_v12 = vpop.f32.mrb[13].mxu1  ;;  %v1790_v13 = vpack.c.bf16 %v1781_v38, %v1781_v38  ;;  %v6623_v38 = vcombine.high %v2151_v42, %v2159_v33  ;;  %v6718_v42 = vcombine.low %v2247_v27, %v2255_v28 }
0x10ef   :  { %v1791_v43 = vpack.c.bf16 %v1783_v12, %v1783_v12  ;;  %v1785_v47 = vpop.f32.mrb[14].mxu1  ;;  %v2166_v12 = vld [vmem:[%s9440_s8 + $0x280] sm:$0xff] }
0x10f0   :  { %v1786_v37 = vpop.f32.mrb[15].mxu1  ;;  %v2167_v47 = vld [vmem:[%s9440_s8 + $0x288] sm:$0xff] }
0x10f1   :  { %2028 = vmatprep.mubr.bf16.mxu0 %v1791_v43  ;;  %v2174_v43 = vld [vmem:[%s9440_s8 + $0x2c0] sm:$0xff]  ;;  %v6620_v37 = vcombine.low %v2150_v32, %v2158_v48  ;;  %v6719_v32 = vcombine.high %v2247_v27, %v2255_v28  ;;  %v6716_v48 = vcombine.low %v2246_v25, %v2254_v46  ;;  %v2089_v27 = vld [vmem:[%s9440_s8 + $0x18] sm:$0xff] }
0x10f2   :  { %2029 = vmatmul.mubr.bf16.vlgmr.msra.gmra.mrb[8].mxu0 %v1790_v13  ;;  %v2175_v13 = vld [vmem:[%s9440_s8 + $0x2c8] sm:$0xff] }
0x10f3   :  { %3748 = vmatpush1.bf16.msra.mxu0 %v6558_v62  ;;  %3715 = vmatpush1.bf16.msra.mxu1 %v6620_v37  ;;  %v2222_v62 = vld [vmem:[%s9440_s8 + $0x440] sm:$0xff]  ;;  %v2271_v37 = vld [vmem:[%s9440_s8 + $0x5c8] sm:$0xff] }
0x10f4   :  { %3749 = vmatprep.subr.bf16.mxu0 %v6575_v45  ;;  %v6685_v2 = vcombine.high %v2214_v61, %v2222_v62  ;;  %v6687_v45 = vcombine.high %v2215_v63, %v2223_v0  ;;  %v2311_v63 = vld [vmem:[%s9440_s8 + $0x708] sm:$0xff] }
0x10f7   :  { %3750 = vmatpush1.bf16.msra.mxu0 %v6574_v7  ;;  %v6684_v7 = vcombine.low %v2214_v61, %v2222_v62  ;;  %v2310_v61 = vld [vmem:[%s9440_s8 + $0x700] sm:$0xff] }
0x10f8   :  { %3751 = vmatprep.subr.bf16.mxu0 %v6591_v21  ;;  %v6701_v21 = vcombine.high %v2230_v4, %v2238_v5  ;;  %v2318_v62 = vld [vmem:[%s9440_s8 + $0x740] sm:$0xff] }
0x10f9   :  { %v6781_v0 = vcombine.high %v2310_v61, %v2318_v62 }
0x10fb   :  { %3752 = vmatpush1.bf16.msra.mxu0 %v6590_v29  ;;  %v6700_v29 = vcombine.low %v2230_v4, %v2238_v5  ;;  %v2326_v4 = vld [vmem:[%s9440_s8 + $0x780] sm:$0xff] }
0x10fc   :  { %3753 = vmatprep.subr.bf16.mxu0 %v6607_v31  ;;  %v6717_v31 = vcombine.high %v2246_v25, %v2254_v46  ;;  %v2334_v5 = vld [vmem:[%s9440_s8 + $0x7c0] sm:$0xff]  ;;  %v2088_v25 = vld [vmem:[%s9440_s8 + $0x10] sm:$0xff] }
0x10fd   :  { %v6797_v51 = vcombine.high %v2326_v4, %v2334_v5  ;;  %v2096_v46 = vld [vmem:[%s9440_s8 + $0x50] sm:$0xff] }
0x10fe   :  { %v6561_v28 = vcombine.high %v2088_v25, %v2096_v46 }
0x10ff   :  { %3754 = vmatpush1.bf16.msra.mxu0 %v6606_v36 }
0x1100   :  { %3755 = vmatprep.subr.bf16.mxu0 %v6623_v38 }
0x1103   :  { %3756 = vmatpush1.bf16.msra.mxu0 %v6622_v52 }
0x11c5   :  { %v2030_v26 = vpop.f32.mrb[8].mxu0 }
0x11c6   :  { %v2031_v17 = vadd.f32 %v2030_v26, %v1829_v53  ;;  %v2032_v55 = vpop.f32.mrb[9].mxu0  ;;  %v6637_v53 = vcombine.high %v2166_v12, %v2174_v43  ;;  %v2182_v26 = vld [vmem:[%s9440_s8 + $0x300] sm:$0xff] }
0x11c7   :  { %v2033_v49 = vadd.f32 %v2032_v55, %v1833_v11  ;;  %v2034_v40 = vpop.f32.mrb[10].mxu0  ;;  %v6639_v11 = vcombine.high %v2167_v47, %v2175_v13  ;;  %v2183_v55 = vld [vmem:[%s9440_s8 + $0x308] sm:$0xff] }
0x11c8   :  { %v8242_v56 = vadd.f32 %v7782_v34, %v2031_v17  ;;  %v2035_v8 = vpop.f32.mrb[11].mxu0  ;;  %v2190_v17 = vld [vmem:[%s9440_s8 + $0x340] sm:$0xff]  ;;  %v6636_v40 = vcombine.low %v2166_v12, %v2174_v43  ;;  %3716 = vmatprep.subr.bf16.mxu1 %v6637_v53  ;;  %v6638_v34 = vcombine.low %v2167_v47, %v2175_v13 }
0x11c9   :  { %v8247_v57 = vadd.f32 %v7783_v39, %v2033_v49  ;;  %v2191_v49 = vld [vmem:[%s9440_s8 + $0x348] sm:$0xff]  ;;  %v6653_v8 = vcombine.high %v2182_v26, %v2190_v17  ;;  %3757 = vmatprep.subr.bf16.mxu0 %v6639_v11  ;;  %v6652_v58 = vcombine.low %v2182_v26, %v2190_v17  ;;  %v2262_v47 = vld [vmem:[%s9440_s8 + $0x580] sm:$0xff] }
0x11ca   :  { %v6655_v39 = vcombine.high %v2183_v55, %v2191_v49  ;;  %3717 = vmatpush1.bf16.msra.mxu1 %v6636_v40  ;;  %3758 = vmatpush1.bf16.msra.mxu0 %v6638_v34  ;;  %v6654_v50 = vcombine.low %v2183_v55, %v2191_v49  ;;  %v2278_v26 = vld [vmem:[%s9440_s8 + $0x600] sm:$0xff]  ;;  %v2279_v55 = vld [vmem:[%s9440_s8 + $0x608] sm:$0xff] }
0x11cb   :  { %v2041_v3 = vadd.f32 %v8247_v57, %v8242_v56  ;;  %3718 = vmatprep.subr.bf16.mxu1 %v6653_v8  ;;  %v2286_v17 = vld [vmem:[%s9440_s8 + $0x640] sm:$0xff]  ;;  %v2287_v40 = vld [vmem:[%s9440_s8 + $0x648] sm:$0xff] }
0x11cc   :  { %3759 = vmatprep.subr.bf16.mxu0 %v6655_v39  ;;  %v6749_v49 = vcombine.high %v2278_v26, %v2286_v17  ;;  %v6748_v34 = vcombine.low %v2278_v26, %v2286_v17  ;;  %v6750_v8 = vcombine.low %v2279_v55, %v2287_v40  ;;  %v6751_v39 = vcombine.high %v2279_v55, %v2287_v40  ;;  %v2104_v17 = vld [vmem:[%s9440_s8 + $0x90] sm:$0xff] }
0x11cd   :  { %2042 = vadd.xlane.f32.xlu0 %v2041_v3  ;;  %v2198_v3 = vld [vmem:[%s9440_s8 + $0x380] sm:$0xff]  ;;  %v2112_v55 = vld [vmem:[%s9440_s8 + $0xd0] sm:$0xff] }
0x11ce   :  { %v6669_v59 = vcombine.high %v2198_v3, %v2206_v54  ;;  %3719 = vmatpush1.bf16.msra.mxu1 %v6652_v58  ;;  %v6668_v41 = vcombine.low %v2198_v3, %v2206_v54  ;;  %3760 = vmatpush1.bf16.msra.mxu0 %v6654_v50  ;;  %v2294_v3 = vld [vmem:[%s9440_s8 + $0x680] sm:$0xff]  ;;  %v2303_v58 = vld [vmem:[%s9440_s8 + $0x6c8] sm:$0xff] }
0x11cf   :  { %3761 = vmatprep.subr.bf16.mxu0 %v6671_v60  ;;  %v2302_v54 = vld [vmem:[%s9440_s8 + $0x6c0] sm:$0xff]  ;;  %v6767_v60 = vcombine.high %v2295_v9, %v2303_v58 }
0x11d0   :  { %3720 = vmatprep.subr.bf16.mxu1 %v6669_v59  ;;  %v6765_v44 = vcombine.high %v2294_v3, %v2302_v54  ;;  %v6764_v50 = vcombine.low %v2294_v3, %v2302_v54  ;;  %v6766_v59 = vcombine.low %v2295_v9, %v2303_v58  ;;  %v2128_v3 = vld [vmem:[%s9440_s8 + $0x150] sm:$0xff]  ;;  %v2121_v54 = vld [vmem:[%s9440_s8 + $0x118] sm:$0xff] }
0x11d1   :  { %v2129_v9 = vld [vmem:[%s9440_s8 + $0x158] sm:$0xff] }
0x11d2   :  { %3721 = vmatpush1.bf16.msra.mxu1 %v6668_v41  ;;  %3762 = vmatpush1.bf16.msra.mxu0 %v6670_v1  ;;  %v2319_v41 = vld [vmem:[%s9440_s8 + $0x748] sm:$0xff]  ;;  %v6780_v1 = vcombine.low %v2310_v61, %v2318_v62  ;;  %v2144_v61 = vld [vmem:[%s9440_s8 + $0x1d0] sm:$0xff]  ;;  %v2137_v62 = vld [vmem:[%s9440_s8 + $0x198] sm:$0xff] }
0x11d3   :  { %3722 = vmatprep.subr.bf16.mxu1 %v6685_v2  ;;  %3763 = vmatprep.subr.bf16.mxu0 %v6687_v45  ;;  %v6782_v2 = vcombine.low %v2311_v63, %v2319_v41  ;;  %v6783_v45 = vcombine.high %v2311_v63, %v2319_v41  ;;  %v2145_v63 = vld [vmem:[%s9440_s8 + $0x1d8] sm:$0xff]  ;;  %v6594_v41 = vcombine.low %v2121_v54, %v2129_v9 }
0x11d6   :  { %3723 = vmatpush1.bf16.msra.mxu1 %v6684_v7  ;;  %3764 = vmatpush1.bf16.msra.mxu0 %v6686_v20  ;;  %v2335_v7 = vld [vmem:[%s9440_s8 + $0x7c8] sm:$0xff]  ;;  %v6796_v20 = vcombine.low %v2326_v4, %v2334_v5  ;;  %v2160_v4 = vld [vmem:[%s9440_s8 + $0x250] sm:$0xff]  ;;  %v2153_v5 = vld [vmem:[%s9440_s8 + $0x218] sm:$0xff] }
0x11d7   :  { %3724 = vmatprep.subr.bf16.mxu1 %v6701_v21  ;;  %3765 = vmatprep.subr.bf16.mxu0 %v6703_v24  ;;  %v6798_v21 = vcombine.low %v2327_v6, %v2335_v7  ;;  %v6799_v24 = vcombine.high %v2327_v6, %v2335_v7  ;;  %v2161_v6 = vld [vmem:[%s9440_s8 + $0x258] sm:$0xff]  ;;  %v6610_v7 = vcombine.low %v2137_v62, %v2145_v63 }
0x11da   :  { %3725 = vmatpush1.bf16.msra.mxu1 %v6700_v29  ;;  %3766 = vmatpush1.bf16.msra.mxu0 %v6702_v30  ;;  %v2097_v29 = vld [vmem:[%s9440_s8 + $0x58] sm:$0xff]  ;;  %v6560_v30 = vcombine.low %v2088_v25, %v2096_v46  ;;  %v2176_v25 = vld [vmem:[%s9440_s8 + $0x2d0] sm:$0xff] }
0x11db   :  { %3726 = vmatprep.subr.bf16.mxu1 %v6717_v31  ;;  %3767 = vmatprep.subr.bf16.mxu0 %v6719_v32  ;;  %v6562_v31 = vcombine.low %v2089_v27, %v2097_v29  ;;  %v6563_v32 = vcombine.high %v2089_v27, %v2097_v29  ;;  %v2169_v46 = vld [vmem:[%s9440_s8 + $0x298] sm:$0xff]  ;;  %v6626_v29 = vcombine.low %v2153_v5, %v2161_v6 }
0x11dc   :  { %v2177_v27 = vld [vmem:[%s9440_s8 + $0x2d8] sm:$0xff] }
0x11de   :  { %3727 = vmatpush1.bf16.msra.mxu1 %v6716_v48  ;;  %3768 = vmatpush1.bf16.msra.mxu0 %v6718_v42 }
0x125a   :  { %v2043_v33 = vpop.xlane.xlu0 %2042 }
0x125b   :  { %v2045_v35 = vmul.f32 0.00390625, %v2043_v33 }
0x125d   :  { %v8384_v36 = vsub.f32 %v8242_v56, %v2045_v35  ;;  %v8387_v10 = vsub.f32 %v8247_v57, %v2045_v35  ;;  %v2270_v56 = vld [vmem:[%s9440_s8 + $0x5c0] sm:$0xff]  ;;  %v2263_v57 = vld [vmem:[%s9440_s8 + $0x588] sm:$0xff] }
0x125e   :  { %v6733_v13 = vcombine.high %v2262_v47, %v2270_v56  ;;  %v6732_v52 = vcombine.low %v2262_v47, %v2270_v56  ;;  %v6734_v53 = vcombine.low %v2263_v57, %v2271_v37  ;;  %v6735_v11 = vcombine.high %v2263_v57, %v2271_v37  ;;  %v2039_v35 = vld [vmem:[%s9438_s6] sm:$0x3] }
0x125f   :  { %v2048_v38 = vmul.f32 %v8384_v36, %v8384_v36  ;;  %v2049_v12 = vmul.f32 %v8387_v10, %v8387_v10 }
0x1260   :  { %3728 = vmatprep.subr.bf16.mxu1 %v6733_v13  ;;  %3769 = vmatprep.subr.bf16.mxu0 %v6735_v11 }
0x1261   :  { %v2050_v43 = vadd.f32 %v2049_v12, %v2048_v38  ;;  %3729 = vmatpush1.bf16.msra.mxu1 %v6732_v52  ;;  %3770 = vmatpush1.bf16.msra.mxu0 %v6734_v53  ;;  %v2040_v38 = vld [vmem:[%s9439_s7] sm:$0x3]  ;;  %v2062_v12 = vrot.slane %v2039_v35, %v8015_v16 }
0x1262   :  { %3730 = vmatprep.subr.bf16.mxu1 %v6749_v49  ;;  %3771 = vmatprep.subr.bf16.mxu0 %v6751_v39  ;;  %v2075_v56 = vrot.slane %v2040_v38, %v8015_v16  ;;  %v2079_v57 = vrot.slane %v2040_v38, %v8026_v19  ;;  %v6642_v38 = vcombine.low %v2169_v46, %v2177_v27 }
0x1263   :  { %2051 = vadd.xlane.f32.xlu1 %v2050_v43  ;;  %v2066_v43 = vrot.slane %v2039_v35, %v8026_v19 }
0x1265   :  { %3731 = vmatpush1.bf16.msra.mxu1 %v6748_v34  ;;  %3772 = vmatpush1.bf16.msra.mxu0 %v6750_v8  ;;  %v2120_v34 = vld [vmem:[%s9440_s8 + $0x110] sm:$0xff]  ;;  %v6577_v8 = vcombine.high %v2104_v17, %v2112_v55 }
0x1266   :  { %3732 = vmatprep.subr.bf16.mxu1 %v6765_v44  ;;  %3773 = vmatprep.subr.bf16.mxu0 %v6767_v60  ;;  %v6576_v44 = vcombine.low %v2104_v17, %v2112_v55  ;;  %v2136_v60 = vld [vmem:[%s9440_s8 + $0x190] sm:$0xff] }
0x1267   :  { %v2216_v55 = vld [vmem:[%s9440_s8 + $0x410] sm:$0xff] }
0x1269   :  { %3733 = vmatpush1.bf16.msra.mxu1 %v6764_v50  ;;  %3774 = vmatpush1.bf16.msra.mxu0 %v6766_v59  ;;  %v6593_v50 = vcombine.high %v2120_v34, %v2128_v3  ;;  %v6595_v59 = vcombine.high %v2121_v54, %v2129_v9  ;;  %v2232_v9 = vld [vmem:[%s9440_s8 + $0x490] sm:$0xff] }
0x126a   :  { %3734 = vmatprep.subr.bf16.mxu1 %v6781_v0  ;;  %3775 = vmatprep.subr.bf16.mxu0 %v6783_v45  ;;  %v6592_v0 = vcombine.low %v2120_v34, %v2128_v3  ;;  %v2152_v45 = vld [vmem:[%s9440_s8 + $0x210] sm:$0xff]  ;;  %v2225_v34 = vld [vmem:[%s9440_s8 + $0x458] sm:$0xff] }
0x126d   :  { %3735 = vmatpush1.bf16.msra.mxu1 %v6780_v1  ;;  %3776 = vmatpush1.bf16.msra.mxu0 %v6782_v2  ;;  %v6609_v1 = vcombine.high %v2136_v60, %v2144_v61  ;;  %v6611_v2 = vcombine.high %v2137_v62, %v2145_v63  ;;  %v2248_v63 = vld [vmem:[%s9440_s8 + $0x510] sm:$0xff] }
0x126e   :  { %3736 = vmatprep.subr.bf16.mxu1 %v6797_v51  ;;  %3777 = vmatprep.subr.bf16.mxu0 %v6799_v24  ;;  %v6608_v51 = vcombine.low %v2136_v60, %v2144_v61  ;;  %v2168_v24 = vld [vmem:[%s9440_s8 + $0x290] sm:$0xff] }
0x126f   :  { %v6640_v35 = vcombine.low %v2168_v24, %v2176_v25 }
0x1271   :  { %3737 = vmatpush1.bf16.msra.mxu1 %v6796_v20  ;;  %3778 = vmatpush1.bf16.msra.mxu0 %v6798_v21  ;;  %v6625_v20 = vcombine.high %v2152_v45, %v2160_v4  ;;  %v6627_v21 = vcombine.high %v2153_v5, %v2161_v6  ;;  %v2264_v6 = vld [vmem:[%s9440_s8 + $0x590] sm:$0xff] }
0x1272   :  { %3788 = vmatprep.subr.bf16.mxu1 %v6561_v28  ;;  %3829 = vmatprep.subr.bf16.mxu0 %v6563_v32  ;;  %v6624_v28 = vcombine.low %v2152_v45, %v2160_v4  ;;  %v2184_v32 = vld [vmem:[%s9440_s8 + $0x310] sm:$0xff] }
0x12f0   :  { %v2052_v48 = vpop.xlane.xlu1 %2051 }
0x12f1   :  { %v2053_v42 = vmul.f32 0.00390625, %v2052_v48  ;;  %v2192_v48 = vld [vmem:[%s9440_s8 + $0x350] sm:$0xff] }
0x12f3   :  { %v2054_v33 = vadd.f32 1e-05, %v2053_v42  ;;  %v2185_v42 = vld [vmem:[%s9440_s8 + $0x318] sm:$0xff] }
0x12f5   :  { %7714 = vrsqrt.f32 %v2054_v33  ;;  %v2193_v33 = vld [vmem:[%s9440_s8 + $0x358] sm:$0xff] }
0x12ff   :  { %v7715_v47 = vpop.eup %7714 }
0x1300   :  { %v2056_v13 = vmul.f32 %v7715_v47, %v8384_v36  ;;  %v2057_v37 = vmul.f32 %v7715_v47, %v8387_v10  ;;  %v2105_v36 = vld [vmem:[%s9440_s8 + $0x98] sm:$0xff]  ;;  %v2200_v47 = vld [vmem:[%s9440_s8 + $0x390] sm:$0xff] }
0x1301   :  { %v2113_v10 = vld [vmem:[%s9440_s8 + $0xd8] sm:$0xff] }
0x1302   :  { %v2069_v52 = vmul.f32 %v2062_v12, %v2056_v13  ;;  %v2070_v53 = vmul.f32 %v2066_v43, %v2057_v37  ;;  %v6579_v39 = vcombine.high %v2105_v36, %v2113_v10  ;;  %v6578_v58 = vcombine.low %v2105_v36, %v2113_v10  ;;  %v2209_v13 = vld [vmem:[%s9440_s8 + $0x3d8] sm:$0xff]  ;;  %v2224_v36 = vld [vmem:[%s9440_s8 + $0x450] sm:$0xff] }
0x1303   :  { %v6657_v12 = vcombine.high %v2184_v32, %v2192_v48  ;;  %v6659_v43 = vcombine.high %v2185_v42, %v2193_v33  ;;  %v6656_v37 = vcombine.low %v2184_v32, %v2192_v48  ;;  %v2217_v10 = vld [vmem:[%s9440_s8 + $0x418] sm:$0xff]  ;;  %v6689_v3 = vcombine.high %v2216_v55, %v2224_v36 }
0x1304   :  { %v8477_v11 = vadd.f32 %v2075_v56, %v2069_v52  ;;  %v8479_v26 = vadd.f32 %v2079_v57, %v2070_v53  ;;  %v2208_v56 = vld [vmem:[%s9440_s8 + $0x3d0] sm:$0xff]  ;;  %v2201_v57 = vld [vmem:[%s9440_s8 + $0x398] sm:$0xff]  ;;  %v6658_v52 = vcombine.low %v2185_v42, %v2193_v33  ;;  %v6691_v54 = vcombine.high %v2217_v10, %v2225_v34 }
0x1305   :  { %v6673_v53 = vcombine.high %v2200_v47, %v2208_v56  ;;  %v6675_v17 = vcombine.high %v2201_v57, %v2209_v13  ;;  %v6690_v60 = vcombine.low %v2217_v10, %v2225_v34  ;;  %v2296_v33 = vld [vmem:[%s9440_s8 + $0x690] sm:$0xff] }
0x1306   :  { %v8495_v49 = vpack.c.bf16 %v8477_v11, %v8477_v11  ;;  %v8499_v40 = vpack.c.bf16 %v8479_v26, %v8479_v26  ;;  %v2328_v34 = vld [vmem:[%s9440_s8 + $0x790] sm:$0xff] }
0x1308   :  { %3738 = vmatprep.mubr.bf16.mxu1 %v8499_v40  ;;  %3779 = vmatprep.mubr.bf16.mxu0 %v8499_v40 }
0x1309   :  { %3739 = vmatmul.mubr.bf16.vlgmr.msra.gmra.mrb[40].mxu1 %v8495_v49  ;;  %3780 = vmatmul.mubr.bf16.vlgmr.msra.gmra.mrb[12].mxu0 %v8495_v49 }
0x130a   :  { %3789 = vmatpush1.bf16.msra.mxu1 %v6560_v30  ;;  %3830 = vmatpush1.bf16.msra.mxu0 %v6562_v31  ;;  %v6641_v30 = vcombine.high %v2168_v24, %v2176_v25  ;;  %v6643_v31 = vcombine.high %v2169_v46, %v2177_v27  ;;  %v2280_v27 = vld [vmem:[%s9440_s8 + $0x610] sm:$0xff] }
0x130b   :  { %3820 = vmatprep.mubr.bf16.mxu1 %v8499_v40  ;;  %3861 = vmatprep.mubr.bf16.mxu0 %v8499_v40 }
0x130c   :  { %3790 = vmatprep.subr.bf16.mxu1 %v6577_v8  ;;  %3831 = vmatprep.subr.bf16.mxu0 %v6579_v39  ;;  %v6672_v8 = vcombine.low %v2200_v47, %v2208_v56  ;;  %v6674_v39 = vcombine.low %v2201_v57, %v2209_v13  ;;  %v2312_v13 = vld [vmem:[%s9440_s8 + $0x710] sm:$0xff] }
0x130e   :  { %3791 = vmatpush1.bf16.msra.mxu1 %v6576_v44  ;;  %3832 = vmatpush1.bf16.msra.mxu0 %v6578_v58  ;;  %v2240_v44 = vld [vmem:[%s9440_s8 + $0x4d0] sm:$0xff]  ;;  %v2233_v58 = vld [vmem:[%s9440_s8 + $0x498] sm:$0xff] }
0x130f   :  { %3792 = vmatprep.subr.bf16.mxu1 %v6593_v50  ;;  %3833 = vmatprep.subr.bf16.mxu0 %v6595_v59  ;;  %v2241_v50 = vld [vmem:[%s9440_s8 + $0x4d8] sm:$0xff]  ;;  %v6688_v59 = vcombine.low %v2216_v55, %v2224_v36  ;;  %v6705_v61 = vcombine.high %v2232_v9, %v2240_v44 }
0x1310   :  { %v6707_v62 = vcombine.high %v2233_v58, %v2241_v50  ;;  %v6706_v45 = vcombine.low %v2233_v58, %v2241_v50  ;;  %v2090_v50 = vld [vmem:[%s9440_s8 + $0x20] sm:$0xff] }
0x1312   :  { %3793 = vmatpush1.bf16.msra.mxu1 %v6592_v0  ;;  %3834 = vmatpush1.bf16.msra.mxu0 %v6594_v41  ;;  %v2256_v0 = vld [vmem:[%s9440_s8 + $0x550] sm:$0xff]  ;;  %v2249_v41 = vld [vmem:[%s9440_s8 + $0x518] sm:$0xff] }
0x1313   :  { %3794 = vmatprep.subr.bf16.mxu1 %v6609_v1  ;;  %3835 = vmatprep.subr.bf16.mxu0 %v6611_v2  ;;  %v2257_v1 = vld [vmem:[%s9440_s8 + $0x558] sm:$0xff]  ;;  %v6704_v2 = vcombine.low %v2232_v9, %v2240_v44  ;;  %v6721_v4 = vcombine.high %v2248_v63, %v2256_v0 }
0x1314   :  { %v6723_v5 = vcombine.high %v2249_v41, %v2257_v1  ;;  %v6722_v24 = vcombine.low %v2249_v41, %v2257_v1  ;;  %v2106_v1 = vld [vmem:[%s9440_s8 + $0xa0] sm:$0xff] }
0x1316   :  { %3795 = vmatpush1.bf16.msra.mxu1 %v6608_v51  ;;  %3836 = vmatpush1.bf16.msra.mxu0 %v6610_v7  ;;  %v2272_v51 = vld [vmem:[%s9440_s8 + $0x5d0] sm:$0xff]  ;;  %v2265_v7 = vld [vmem:[%s9440_s8 + $0x598] sm:$0xff] }
0x1317   :  { %3796 = vmatprep.subr.bf16.mxu1 %v6625_v20  ;;  %3837 = vmatprep.subr.bf16.mxu0 %v6627_v21  ;;  %v2273_v20 = vld [vmem:[%s9440_s8 + $0x5d8] sm:$0xff]  ;;  %v6720_v21 = vcombine.low %v2248_v63, %v2256_v0  ;;  %v6737_v25 = vcombine.high %v2264_v6, %v2272_v51 }
0x1318   :  { %v6739_v46 = vcombine.high %v2265_v7, %v2273_v20  ;;  %v6738_v32 = vcombine.low %v2265_v7, %v2273_v20  ;;  %v2122_v20 = vld [vmem:[%s9440_s8 + $0x120] sm:$0xff] }
0x131a   :  { %3797 = vmatpush1.bf16.msra.mxu1 %v6624_v28  ;;  %3838 = vmatpush1.bf16.msra.mxu0 %v6626_v29  ;;  %v2288_v28 = vld [vmem:[%s9440_s8 + $0x650] sm:$0xff]  ;;  %v2281_v29 = vld [vmem:[%s9440_s8 + $0x618] sm:$0xff] }
0x131b   :  { %3798 = vmatprep.subr.bf16.mxu1 %v6641_v30  ;;  %3839 = vmatprep.subr.bf16.mxu0 %v6643_v31  ;;  %v2289_v30 = vld [vmem:[%s9440_s8 + $0x658] sm:$0xff]  ;;  %v6736_v31 = vcombine.low %v2264_v6, %v2272_v51  ;;  %v6753_v48 = vcombine.high %v2280_v27, %v2288_v28 }
0x131c   :  { %v6755_v42 = vcombine.high %v2281_v29, %v2289_v30  ;;  %v6754_v47 = vcombine.low %v2281_v29, %v2289_v30  ;;  %v2138_v30 = vld [vmem:[%s9440_s8 + $0x1a0] sm:$0xff] }
0x131e   :  { %3799 = vmatpush1.bf16.msra.mxu1 %v6640_v35  ;;  %3840 = vmatpush1.bf16.msra.mxu0 %v6642_v38  ;;  %v2304_v35 = vld [vmem:[%s9440_s8 + $0x6d0] sm:$0xff]  ;;  %v2297_v38 = vld [vmem:[%s9440_s8 + $0x698] sm:$0xff] }
0x131f   :  { %3800 = vmatprep.subr.bf16.mxu1 %v6657_v12  ;;  %3841 = vmatprep.subr.bf16.mxu0 %v6659_v43  ;;  %v2305_v12 = vld [vmem:[%s9440_s8 + $0x6d8] sm:$0xff]  ;;  %v6752_v43 = vcombine.low %v2280_v27, %v2288_v28  ;;  %v6769_v56 = vcombine.high %v2296_v33, %v2304_v35 }
0x1320   :  { %v6771_v57 = vcombine.high %v2297_v38, %v2305_v12  ;;  %v6770_v55 = vcombine.low %v2297_v38, %v2305_v12  ;;  %v2154_v12 = vld [vmem:[%s9440_s8 + $0x220] sm:$0xff] }
0x1322   :  { %3801 = vmatpush1.bf16.msra.mxu1 %v6656_v37  ;;  %3842 = vmatpush1.bf16.msra.mxu0 %v6658_v52  ;;  %v2320_v37 = vld [vmem:[%s9440_s8 + $0x750] sm:$0xff]  ;;  %v2313_v52 = vld [vmem:[%s9440_s8 + $0x718] sm:$0xff] }
0x1323   :  { %3802 = vmatprep.subr.bf16.mxu1 %v6673_v53  ;;  %3843 = vmatprep.subr.bf16.mxu0 %v6675_v17  ;;  %v2321_v53 = vld [vmem:[%s9440_s8 + $0x758] sm:$0xff]  ;;  %v6768_v17 = vcombine.low %v2296_v33, %v2304_v35  ;;  %v6785_v36 = vcombine.high %v2312_v13, %v2320_v37 }
0x1324   :  { %v6787_v10 = vcombine.high %v2313_v52, %v2321_v53  ;;  %v6786_v9 = vcombine.low %v2313_v52, %v2321_v53  ;;  %v2170_v53 = vld [vmem:[%s9440_s8 + $0x2a0] sm:$0xff] }
0x1326   :  { %3803 = vmatpush1.bf16.msra.mxu1 %v6672_v8  ;;  %3844 = vmatpush1.bf16.msra.mxu0 %v6674_v39  ;;  %v2336_v8 = vld [vmem:[%s9440_s8 + $0x7d0] sm:$0xff]  ;;  %v2329_v39 = vld [vmem:[%s9440_s8 + $0x798] sm:$0xff] }
0x1327   :  { %3804 = vmatprep.subr.bf16.mxu1 %v6689_v3  ;;  %3845 = vmatprep.subr.bf16.mxu0 %v6691_v54  ;;  %v2337_v3 = vld [vmem:[%s9440_s8 + $0x7d8] sm:$0xff]  ;;  %v6784_v54 = vcombine.low %v2312_v13, %v2320_v37  ;;  %v6801_v44 = vcombine.high %v2328_v34, %v2336_v8 }
0x1328   :  { %v6803_v58 = vcombine.high %v2329_v39, %v2337_v3  ;;  %v6802_v63 = vcombine.low %v2329_v39, %v2337_v3  ;;  %v2186_v3 = vld [vmem:[%s9440_s8 + $0x320] sm:$0xff] }
0x132a   :  { %3805 = vmatpush1.bf16.msra.mxu1 %v6688_v59  ;;  %3846 = vmatpush1.bf16.msra.mxu0 %v6690_v60  ;;  %v2098_v59 = vld [vmem:[%s9440_s8 + $0x60] sm:$0xff]  ;;  %v2091_v60 = vld [vmem:[%s9440_s8 + $0x28] sm:$0xff] }
0x132b   :  { %3806 = vmatprep.subr.bf16.mxu1 %v6705_v61  ;;  %3847 = vmatprep.subr.bf16.mxu0 %v6707_v62  ;;  %v2099_v61 = vld [vmem:[%s9440_s8 + $0x68] sm:$0xff]  ;;  %v6800_v62 = vcombine.low %v2328_v34, %v2336_v8  ;;  %v6565_v0 = vcombine.high %v2090_v50, %v2098_v59 }
0x132c   :  { %v6567_v41 = vcombine.high %v2091_v60, %v2099_v61  ;;  %v6566_v6 = vcombine.low %v2091_v60, %v2099_v61  ;;  %v2202_v61 = vld [vmem:[%s9440_s8 + $0x3a0] sm:$0xff] }
0x132e   :  { %3807 = vmatpush1.bf16.msra.mxu1 %v6704_v2  ;;  %3848 = vmatpush1.bf16.msra.mxu0 %v6706_v45  ;;  %v2114_v2 = vld [vmem:[%s9440_s8 + $0xe0] sm:$0xff]  ;;  %v2107_v45 = vld [vmem:[%s9440_s8 + $0xa8] sm:$0xff] }
0x132f   :  { %3808 = vmatprep.subr.bf16.mxu1 %v6721_v4  ;;  %3849 = vmatprep.subr.bf16.mxu0 %v6723_v5  ;;  %v2115_v4 = vld [vmem:[%s9440_s8 + $0xe8] sm:$0xff]  ;;  %v6564_v5 = vcombine.low %v2090_v50, %v2098_v59  ;;  %v6581_v51 = vcombine.high %v2106_v1, %v2114_v2 }
0x1330   :  { %v6583_v7 = vcombine.high %v2107_v45, %v2115_v4  ;;  %v6582_v27 = vcombine.low %v2107_v45, %v2115_v4  ;;  %v2218_v4 = vld [vmem:[%s9440_s8 + $0x420] sm:$0xff] }
0x1332   :  { %3809 = vmatpush1.bf16.msra.mxu1 %v6720_v21  ;;  %3850 = vmatpush1.bf16.msra.mxu0 %v6722_v24  ;;  %v2130_v21 = vld [vmem:[%s9440_s8 + $0x160] sm:$0xff]  ;;  %v2123_v24 = vld [vmem:[%s9440_s8 + $0x128] sm:$0xff] }
0x1333   :  { %3810 = vmatprep.subr.bf16.mxu1 %v6737_v25  ;;  %3851 = vmatprep.subr.bf16.mxu0 %v6739_v46  ;;  %v2131_v25 = vld [vmem:[%s9440_s8 + $0x168] sm:$0xff]  ;;  %v6580_v46 = vcombine.low %v2106_v1, %v2114_v2  ;;  %v6597_v28 = vcombine.high %v2122_v20, %v2130_v21 }
0x1334   :  { %v6599_v29 = vcombine.high %v2123_v24, %v2131_v25  ;;  %v6598_v33 = vcombine.low %v2123_v24, %v2131_v25  ;;  %v2234_v25 = vld [vmem:[%s9440_s8 + $0x4a0] sm:$0xff] }
0x1336   :  { %3811 = vmatpush1.bf16.msra.mxu1 %v6736_v31  ;;  %3852 = vmatpush1.bf16.msra.mxu0 %v6738_v32  ;;  %v2146_v31 = vld [vmem:[%s9440_s8 + $0x1e0] sm:$0xff]  ;;  %v2139_v32 = vld [vmem:[%s9440_s8 + $0x1a8] sm:$0xff] }
0x1337   :  { %3812 = vmatprep.subr.bf16.mxu1 %v6753_v48  ;;  %3853 = vmatprep.subr.bf16.mxu0 %v6755_v42  ;;  %v2147_v48 = vld [vmem:[%s9440_s8 + $0x1e8] sm:$0xff]  ;;  %v6596_v42 = vcombine.low %v2122_v20, %v2130_v21  ;;  %v6613_v35 = vcombine.high %v2138_v30, %v2146_v31 }
0x1338   :  { %v6615_v38 = vcombine.high %v2139_v32, %v2147_v48  ;;  %v6614_v13 = vcombine.low %v2139_v32, %v2147_v48  ;;  %v2250_v48 = vld [vmem:[%s9440_s8 + $0x520] sm:$0xff] }
0x133a   :  { %3813 = vmatpush1.bf16.msra.mxu1 %v6752_v43  ;;  %3854 = vmatpush1.bf16.msra.mxu0 %v6754_v47  ;;  %v2162_v43 = vld [vmem:[%s9440_s8 + $0x260] sm:$0xff]  ;;  %v2155_v47 = vld [vmem:[%s9440_s8 + $0x228] sm:$0xff] }
0x133b   :  { %3814 = vmatprep.subr.bf16.mxu1 %v6769_v56  ;;  %3855 = vmatprep.subr.bf16.mxu0 %v6771_v57  ;;  %v2163_v56 = vld [vmem:[%s9440_s8 + $0x268] sm:$0xff]  ;;  %v6612_v57 = vcombine.low %v2138_v30, %v2146_v31  ;;  %v6629_v37 = vcombine.high %v2154_v12, %v2162_v43 }
0x133c   :  { %v6631_v52 = vcombine.high %v2155_v47, %v2163_v56  ;;  %v6630_v34 = vcombine.low %v2155_v47, %v2163_v56  ;;  %v2266_v56 = vld [vmem:[%s9440_s8 + $0x5a0] sm:$0xff] }
0x133e   :  { %3815 = vmatpush1.bf16.msra.mxu1 %v6768_v17  ;;  %3856 = vmatpush1.bf16.msra.mxu0 %v6770_v55  ;;  %v2178_v17 = vld [vmem:[%s9440_s8 + $0x2e0] sm:$0xff]  ;;  %v2171_v55 = vld [vmem:[%s9440_s8 + $0x2a8] sm:$0xff] }
0x133f   :  { %3816 = vmatprep.subr.bf16.mxu1 %v6785_v36  ;;  %3857 = vmatprep.subr.bf16.mxu0 %v6787_v10  ;;  %v2179_v36 = vld [vmem:[%s9440_s8 + $0x2e8] sm:$0xff]  ;;  %v6628_v10 = vcombine.low %v2154_v12, %v2162_v43  ;;  %v6645_v8 = vcombine.high %v2170_v53, %v2178_v17 }
0x1340   :  { %v6647_v39 = vcombine.high %v2171_v55, %v2179_v36  ;;  %v6646_v50 = vcombine.low %v2171_v55, %v2179_v36  ;;  %v2282_v36 = vld [vmem:[%s9440_s8 + $0x620] sm:$0xff] }
0x1342   :  { %3817 = vmatpush1.bf16.msra.mxu1 %v6784_v54  ;;  %3858 = vmatpush1.bf16.msra.mxu0 %v6786_v9  ;;  %v2194_v54 = vld [vmem:[%s9440_s8 + $0x360] sm:$0xff]  ;;  %v2187_v9 = vld [vmem:[%s9440_s8 + $0x328] sm:$0xff] }
0x1343   :  { %3818 = vmatprep.subr.bf16.mxu1 %v6801_v44  ;;  %3859 = vmatprep.subr.bf16.mxu0 %v6803_v58  ;;  %v2195_v44 = vld [vmem:[%s9440_s8 + $0x368] sm:$0xff]  ;;  %v6644_v58 = vcombine.low %v2170_v53, %v2178_v17  ;;  %v6661_v59 = vcombine.high %v2186_v3, %v2194_v54 }
0x1344   :  { %v6663_v60 = vcombine.high %v2187_v9, %v2195_v44  ;;  %v6662_v1 = vcombine.low %v2187_v9, %v2195_v44  ;;  %v2298_v44 = vld [vmem:[%s9440_s8 + $0x6a0] sm:$0xff] }
0x1346   :  { %3819 = vmatpush1.bf16.msra.mxu1 %v6800_v62  ;;  %3860 = vmatpush1.bf16.msra.mxu0 %v6802_v63  ;;  %v2210_v62 = vld [vmem:[%s9440_s8 + $0x3e0] sm:$0xff]  ;;  %v2203_v63 = vld [vmem:[%s9440_s8 + $0x3a8] sm:$0xff] }
0x1347   :  { %3870 = vmatprep.subr.bf16.mxu1 %v6565_v0  ;;  %3911 = vmatprep.subr.bf16.mxu0 %v6567_v41  ;;  %v2211_v0 = vld [vmem:[%s9440_s8 + $0x3e8] sm:$0xff]  ;;  %v6660_v41 = vcombine.low %v2186_v3, %v2194_v54  ;;  %v6677_v2 = vcombine.high %v2202_v61, %v2210_v62 }
0x1348   :  { %v6679_v45 = vcombine.high %v2203_v63, %v2211_v0  ;;  %v6678_v20 = vcombine.low %v2203_v63, %v2211_v0  ;;  %v2314_v0 = vld [vmem:[%s9440_s8 + $0x720] sm:$0xff] }
0x1349   :  { %3821 = vmatmul.mubr.bf16.vlgmr.msra.gmra.mrb[44].mxu1 %v8495_v49  ;;  %3862 = vmatmul.mubr.bf16.vlgmr.msra.gmra.mrb[16].mxu0 %v8495_v49 }
0x134a   :  { %3871 = vmatpush1.bf16.msra.mxu1 %v6564_v5  ;;  %3902 = vmatprep.mubr.bf16.mxu1 %v8499_v40  ;;  %v2226_v5 = vld [vmem:[%s9440_s8 + $0x460] sm:$0xff] }
0x134b   :  { %3912 = vmatpush1.bf16.msra.mxu0 %v6566_v6  ;;  %3943 = vmatprep.mubr.bf16.mxu0 %v8499_v40  ;;  %v2219_v6 = vld [vmem:[%s9440_s8 + $0x428] sm:$0xff]  ;;  %v6693_v21 = vcombine.high %v2218_v4, %v2226_v5 }
0x134c   :  { %3872 = vmatprep.subr.bf16.mxu1 %v6581_v51  ;;  %3913 = vmatprep.subr.bf16.mxu0 %v6583_v7  ;;  %v2227_v51 = vld [vmem:[%s9440_s8 + $0x468] sm:$0xff]  ;;  %v6676_v7 = vcombine.low %v2202_v61, %v2210_v62 }
0x134d   :  { %v6695_v24 = vcombine.high %v2219_v6, %v2227_v51  ;;  %v6694_v30 = vcombine.low %v2219_v6, %v2227_v51  ;;  %v2330_v51 = vld [vmem:[%s9440_s8 + $0x7a0] sm:$0xff] }
0x134e   :  { %3873 = vmatpush1.bf16.msra.mxu1 %v6580_v46  ;;  %v2242_v46 = vld [vmem:[%s9440_s8 + $0x4e0] sm:$0xff] }
0x134f   :  { %3914 = vmatpush1.bf16.msra.mxu0 %v6582_v27  ;;  %3874 = vmatprep.subr.bf16.mxu1 %v6597_v28  ;;  %v2235_v27 = vld [vmem:[%s9440_s8 + $0x4a8] sm:$0xff]  ;;  %v6709_v31 = vcombine.high %v2234_v25, %v2242_v46 }
0x1350   :  { %3915 = vmatprep.subr.bf16.mxu0 %v6599_v29  ;;  %v2243_v28 = vld [vmem:[%s9440_s8 + $0x4e8] sm:$0xff]  ;;  %v6692_v29 = vcombine.low %v2218_v4, %v2226_v5 }
0x1351   :  { %v6711_v32 = vcombine.high %v2235_v27, %v2243_v28  ;;  %v6710_v12 = vcombine.low %v2235_v27, %v2243_v28  ;;  %v2092_v28 = vld [vmem:[%s9440_s8 + $0x30] sm:$0xff] }
0x1352   :  { %3875 = vmatpush1.bf16.msra.mxu1 %v6596_v42  ;;  %v2258_v42 = vld [vmem:[%s9440_s8 + $0x560] sm:$0xff] }
0x1353   :  { %3916 = vmatpush1.bf16.msra.mxu0 %v6598_v33  ;;  %3876 = vmatprep.subr.bf16.mxu1 %v6613_v35  ;;  %v2251_v33 = vld [vmem:[%s9440_s8 + $0x528] sm:$0xff]  ;;  %v6725_v43 = vcombine.high %v2250_v48, %v2258_v42 }
0x1354   :  { %3917 = vmatprep.subr.bf16.mxu0 %v6615_v38  ;;  %v2259_v35 = vld [vmem:[%s9440_s8 + $0x568] sm:$0xff]  ;;  %v6708_v38 = vcombine.low %v2234_v25, %v2242_v46 }
0x1355   :  { %v6727_v47 = vcombine.high %v2251_v33, %v2259_v35  ;;  %v6726_v53 = vcombine.low %v2251_v33, %v2259_v35  ;;  %v2108_v35 = vld [vmem:[%s9440_s8 + $0xb0] sm:$0xff] }
0x1356   :  { %3877 = vmatpush1.bf16.msra.mxu1 %v6612_v57  ;;  %v2274_v57 = vld [vmem:[%s9440_s8 + $0x5e0] sm:$0xff] }
0x1357   :  { %3918 = vmatpush1.bf16.msra.mxu0 %v6614_v13  ;;  %3878 = vmatprep.subr.bf16.mxu1 %v6629_v37  ;;  %v2267_v13 = vld [vmem:[%s9440_s8 + $0x5a8] sm:$0xff]  ;;  %v6741_v17 = vcombine.high %v2266_v56, %v2274_v57 }
0x1358   :  { %3919 = vmatprep.subr.bf16.mxu0 %v6631_v52  ;;  %v2275_v37 = vld [vmem:[%s9440_s8 + $0x5e8] sm:$0xff]  ;;  %v6724_v52 = vcombine.low %v2250_v48, %v2258_v42 }
0x1359   :  { %v6743_v55 = vcombine.high %v2267_v13, %v2275_v37  ;;  %v6742_v3 = vcombine.low %v2267_v13, %v2275_v37  ;;  %v2124_v13 = vld [vmem:[%s9440_s8 + $0x130] sm:$0xff] }
0x135a   :  { %3879 = vmatpush1.bf16.msra.mxu1 %v6628_v10  ;;  %v2290_v10 = vld [vmem:[%s9440_s8 + $0x660] sm:$0xff]  ;;  %v2132_v37 = vld [vmem:[%s9440_s8 + $0x170] sm:$0xff] }
0x135b   :  { %3920 = vmatpush1.bf16.msra.mxu0 %v6630_v34  ;;  %3880 = vmatprep.subr.bf16.mxu1 %v6645_v8  ;;  %v2283_v34 = vld [vmem:[%s9440_s8 + $0x628] sm:$0xff]  ;;  %v6757_v54 = vcombine.high %v2282_v36, %v2290_v10 }
0x135c   :  { %3921 = vmatprep.subr.bf16.mxu0 %v6647_v39  ;;  %v2291_v8 = vld [vmem:[%s9440_s8 + $0x668] sm:$0xff]  ;;  %v6740_v39 = vcombine.low %v2266_v56, %v2274_v57 }
0x135d   :  { %v6759_v9 = vcombine.high %v2283_v34, %v2291_v8  ;;  %v6758_v61 = vcombine.low %v2283_v34, %v2291_v8  ;;  %v2140_v8 = vld [vmem:[%s9440_s8 + $0x1b0] sm:$0xff] }
0x135e   :  { %3881 = vmatpush1.bf16.msra.mxu1 %v6644_v58  ;;  %v2306_v58 = vld [vmem:[%s9440_s8 + $0x6e0] sm:$0xff] }
0x135f   :  { %3922 = vmatpush1.bf16.msra.mxu0 %v6646_v50  ;;  %3882 = vmatprep.subr.bf16.mxu1 %v6661_v59  ;;  %v2299_v50 = vld [vmem:[%s9440_s8 + $0x6a8] sm:$0xff]  ;;  %v6773_v62 = vcombine.high %v2298_v44, %v2306_v58 }
0x1360   :  { %3923 = vmatprep.subr.bf16.mxu0 %v6663_v60  ;;  %v2307_v59 = vld [vmem:[%s9440_s8 + $0x6e8] sm:$0xff]  ;;  %v6756_v60 = vcombine.low %v2282_v36, %v2290_v10  ;;  %v6601_v10 = vcombine.high %v2124_v13, %v2132_v37 }
0x1361   :  { %v6775_v63 = vcombine.high %v2299_v50, %v2307_v59  ;;  %v6774_v4 = vcombine.low %v2299_v50, %v2307_v59  ;;  %v2156_v50 = vld [vmem:[%s9440_s8 + $0x230] sm:$0xff] }
0x1362   :  { %3883 = vmatpush1.bf16.msra.mxu1 %v6660_v41  ;;  %v2322_v41 = vld [vmem:[%s9440_s8 + $0x760] sm:$0xff]  ;;  %v2164_v59 = vld [vmem:[%s9440_s8 + $0x270] sm:$0xff] }
0x1363   :  { %3924 = vmatpush1.bf16.msra.mxu0 %v6662_v1  ;;  %3884 = vmatprep.subr.bf16.mxu1 %v6677_v2  ;;  %v2315_v1 = vld [vmem:[%s9440_s8 + $0x728] sm:$0xff]  ;;  %v6789_v5 = vcombine.high %v2314_v0, %v2322_v41 }
0x1364   :  { %3925 = vmatprep.subr.bf16.mxu0 %v6679_v45  ;;  %v2323_v2 = vld [vmem:[%s9440_s8 + $0x768] sm:$0xff]  ;;  %v6772_v45 = vcombine.low %v2298_v44, %v2306_v58 }
0x1365   :  { %v6791_v6 = vcombine.high %v2315_v1, %v2323_v2  ;;  %v6790_v25 = vcombine.low %v2315_v1, %v2323_v2  ;;  %v2172_v1 = vld [vmem:[%s9440_s8 + $0x2b0] sm:$0xff] }
0x1366   :  { %3885 = vmatpush1.bf16.msra.mxu1 %v6676_v7  ;;  %v2338_v7 = vld [vmem:[%s9440_s8 + $0x7e0] sm:$0xff]  ;;  %v2180_v2 = vld [vmem:[%s9440_s8 + $0x2f0] sm:$0xff] }
0x1367   :  { %3926 = vmatpush1.bf16.msra.mxu0 %v6678_v20  ;;  %3886 = vmatprep.subr.bf16.mxu1 %v6693_v21  ;;  %v2331_v20 = vld [vmem:[%s9440_s8 + $0x7a8] sm:$0xff]  ;;  %v6805_v46 = vcombine.high %v2330_v51, %v2338_v7 }
0x1368   :  { %3927 = vmatprep.subr.bf16.mxu0 %v6695_v24  ;;  %v2339_v21 = vld [vmem:[%s9440_s8 + $0x7e8] sm:$0xff]  ;;  %v6788_v24 = vcombine.low %v2314_v0, %v2322_v41  ;;  %v6633_v0 = vcombine.high %v2156_v50, %v2164_v59 }
0x1369   :  { %v6807_v27 = vcombine.high %v2331_v20, %v2339_v21  ;;  %v6806_v48 = vcombine.low %v2331_v20, %v2339_v21  ;;  %v2188_v20 = vld [vmem:[%s9440_s8 + $0x330] sm:$0xff] }
0x136a   :  { %3887 = vmatpush1.bf16.msra.mxu1 %v6692_v29  ;;  %v2100_v29 = vld [vmem:[%s9440_s8 + $0x70] sm:$0xff] }
0x136b   :  { %3928 = vmatpush1.bf16.msra.mxu0 %v6694_v30  ;;  %3888 = vmatprep.subr.bf16.mxu1 %v6709_v31  ;;  %v2093_v30 = vld [vmem:[%s9440_s8 + $0x38] sm:$0xff]  ;;  %v6569_v42 = vcombine.high %v2092_v28, %v2100_v29  ;;  %v2196_v21 = vld [vmem:[%s9440_s8 + $0x370] sm:$0xff] }
0x136c   :  { %3929 = vmatprep.subr.bf16.mxu0 %v6711_v32  ;;  %v2101_v31 = vld [vmem:[%s9440_s8 + $0x78] sm:$0xff]  ;;  %v6804_v32 = vcombine.low %v2330_v51, %v2338_v7  ;;  %v6649_v51 = vcombine.high %v2172_v1, %v2180_v2 }
0x136d   :  { %v6571_v33 = vcombine.high %v2093_v30, %v2101_v31  ;;  %v6570_v56 = vcombine.low %v2093_v30, %v2101_v31  ;;  %v2204_v30 = vld [vmem:[%s9440_s8 + $0x3b0] sm:$0xff] }
0x136e   :  { %3889 = vmatpush1.bf16.msra.mxu1 %v6708_v38  ;;  %v2116_v38 = vld [vmem:[%s9440_s8 + $0xf0] sm:$0xff] }
0x136f   :  { %3930 = vmatpush1.bf16.msra.mxu0 %v6710_v12  ;;  %3890 = vmatprep.subr.bf16.mxu1 %v6725_v43  ;;  %v6568_v12 = vcombine.low %v2092_v28, %v2100_v29  ;;  %v2109_v43 = vld [vmem:[%s9440_s8 + $0xb8] sm:$0xff]  ;;  %v6585_v57 = vcombine.high %v2108_v35, %v2116_v38  ;;  %v6665_v28 = vcombine.high %v2188_v20, %v2196_v21  ;;  %v2212_v31 = vld [vmem:[%s9440_s8 + $0x3f0] sm:$0xff] }
0x1370   :  { %3931 = vmatprep.subr.bf16.mxu0 %v6727_v47  ;;  %v2117_v47 = vld [vmem:[%s9440_s8 + $0xf8] sm:$0xff] }
0x1371   :  { %v6586_v36 = vcombine.low %v2109_v43, %v2117_v47 }
0x1372   :  { %3891 = vmatpush1.bf16.msra.mxu1 %v6724_v52  ;;  %v6587_v52 = vcombine.high %v2109_v43, %v2117_v47  ;;  %v2228_v43 = vld [vmem:[%s9440_s8 + $0x470] sm:$0xff]  ;;  %v2221_v47 = vld [vmem:[%s9440_s8 + $0x438] sm:$0xff] }
0x1373   :  { %3932 = vmatpush1.bf16.msra.mxu0 %v6726_v53  ;;  %3892 = vmatprep.subr.bf16.mxu1 %v6741_v17  ;;  %v2125_v53 = vld [vmem:[%s9440_s8 + $0x138] sm:$0xff] }
0x1374   :  { %3933 = vmatprep.subr.bf16.mxu0 %v6743_v55  ;;  %v2133_v17 = vld [vmem:[%s9440_s8 + $0x178] sm:$0xff]  ;;  %v6584_v55 = vcombine.low %v2108_v35, %v2116_v38  ;;  %v6681_v35 = vcombine.high %v2204_v30, %v2212_v31 }
0x1375   :  { %v6603_v34 = vcombine.high %v2125_v53, %v2133_v17 }
0x1376   :  { %3893 = vmatpush1.bf16.msra.mxu1 %v6740_v39  ;;  %v2148_v39 = vld [vmem:[%s9440_s8 + $0x1f0] sm:$0xff] }
0x1377   :  { %3934 = vmatpush1.bf16.msra.mxu0 %v6742_v3  ;;  %3894 = vmatprep.subr.bf16.mxu1 %v6757_v54  ;;  %v2141_v3 = vld [vmem:[%s9440_s8 + $0x1b8] sm:$0xff]  ;;  %v6617_v44 = vcombine.high %v2140_v8, %v2148_v39 }
0x1378   :  { %3935 = vmatprep.subr.bf16.mxu0 %v6759_v9  ;;  %v2149_v54 = vld [vmem:[%s9440_s8 + $0x1f8] sm:$0xff]  ;;  %v6602_v9 = vcombine.low %v2125_v53, %v2133_v17  ;;  %v2236_v53 = vld [vmem:[%s9440_s8 + $0x4b0] sm:$0xff] }
0x1379   :  { %v6619_v58 = vcombine.high %v2141_v3, %v2149_v54  ;;  %v2244_v17 = vld [vmem:[%s9440_s8 + $0x4f0] sm:$0xff] }
0x137a   :  { %3895 = vmatpush1.bf16.msra.mxu1 %v6756_v60  ;;  %v2157_v60 = vld [vmem:[%s9440_s8 + $0x238] sm:$0xff] }
0x137b   :  { %3936 = vmatpush1.bf16.msra.mxu0 %v6758_v61  ;;  %3896 = vmatprep.subr.bf16.mxu1 %v6773_v62  ;;  %v2165_v61 = vld [vmem:[%s9440_s8 + $0x278] sm:$0xff]  ;;  %v6616_v62 = vcombine.low %v2140_v8, %v2148_v39  ;;  %v6713_v8 = vcombine.high %v2236_v53, %v2244_v17 }
0x137c   :  { %3937 = vmatprep.subr.bf16.mxu0 %v6775_v63  ;;  %v6618_v63 = vcombine.low %v2141_v3, %v2149_v54  ;;  %v6635_v41 = vcombine.high %v2157_v60, %v2165_v61  ;;  %v2252_v3 = vld [vmem:[%s9440_s8 + $0x530] sm:$0xff] }
0x137d   :  { %v2260_v54 = vld [vmem:[%s9440_s8 + $0x570] sm:$0xff] }
0x137e   :  { %3897 = vmatpush1.bf16.msra.mxu1 %v6772_v45  ;;  %v2173_v45 = vld [vmem:[%s9440_s8 + $0x2b8] sm:$0xff] }
0x137f   :  { %3938 = vmatpush1.bf16.msra.mxu0 %v6774_v4  ;;  %3898 = vmatprep.subr.bf16.mxu1 %v6789_v5  ;;  %v2181_v4 = vld [vmem:[%s9440_s8 + $0x2f8] sm:$0xff]  ;;  %v6632_v5 = vcombine.low %v2156_v50, %v2164_v59  ;;  %v6729_v50 = vcombine.high %v2252_v3, %v2260_v54 }
0x1380   :  { %3939 = vmatprep.subr.bf16.mxu0 %v6791_v6  ;;  %v6634_v6 = vcombine.low %v2157_v60, %v2165_v61  ;;  %v6651_v7 = vcombine.high %v2173_v45, %v2181_v4  ;;  %v2268_v60 = vld [vmem:[%s9440_s8 + $0x5b0] sm:$0xff] }
0x1381   :  { %v2276_v61 = vld [vmem:[%s9440_s8 + $0x5f0] sm:$0xff] }
0x1382   :  { %3899 = vmatpush1.bf16.msra.mxu1 %v6788_v24  ;;  %v2189_v24 = vld [vmem:[%s9440_s8 + $0x338] sm:$0xff] }
0x1383   :  { %3940 = vmatpush1.bf16.msra.mxu0 %v6790_v25  ;;  %3900 = vmatprep.subr.bf16.mxu1 %v6805_v46  ;;  %v2197_v25 = vld [vmem:[%s9440_s8 + $0x378] sm:$0xff]  ;;  %v6648_v46 = vcombine.low %v2172_v1, %v2180_v2  ;;  %v6745_v1 = vcombine.high %v2268_v60, %v2276_v61 }
0x1384   :  { %3941 = vmatprep.subr.bf16.mxu0 %v6807_v27  ;;  %v6650_v27 = vcombine.low %v2173_v45, %v2181_v4  ;;  %v6667_v29 = vcombine.high %v2189_v24, %v2197_v25  ;;  %v2284_v45 = vld [vmem:[%s9440_s8 + $0x630] sm:$0xff] }
0x1385   :  { %v2292_v4 = vld [vmem:[%s9440_s8 + $0x670] sm:$0xff] }
0x1386   :  { %3901 = vmatpush1.bf16.msra.mxu1 %v6804_v32  ;;  %v2205_v32 = vld [vmem:[%s9440_s8 + $0x3b8] sm:$0xff] }
0x1387   :  { %3942 = vmatpush1.bf16.msra.mxu0 %v6806_v48  ;;  %3952 = vmatprep.subr.bf16.mxu1 %v6569_v42  ;;  %v2213_v48 = vld [vmem:[%s9440_s8 + $0x3f8] sm:$0xff]  ;;  %v6664_v42 = vcombine.low %v2188_v20, %v2196_v21  ;;  %v6761_v20 = vcombine.high %v2284_v45, %v2292_v4 }
0x1388   :  { %3993 = vmatprep.subr.bf16.mxu0 %v6571_v33  ;;  %v6666_v33 = vcombine.low %v2189_v24, %v2197_v25  ;;  %v6683_v38 = vcombine.high %v2205_v32, %v2213_v48  ;;  %v2300_v24 = vld [vmem:[%s9440_s8 + $0x6b0] sm:$0xff] }
0x1389   :  { %3903 = vmatmul.mubr.bf16.vlgmr.msra.gmra.mrb[48].mxu1 %v8495_v49  ;;  %v2308_v25 = vld [vmem:[%s9440_s8 + $0x6f0] sm:$0xff] }
0x138a   :  { %3944 = vmatmul.mubr.bf16.vlgmr.msra.gmra.mrb[20].mxu0 %v8495_v49  ;;  %3953 = vmatpush1.bf16.msra.mxu1 %v6568_v12  ;;  %v2220_v12 = vld [vmem:[%s9440_s8 + $0x430] sm:$0xff] }
0x138b   :  { %3984 = vmatprep.mubr.bf16.mxu1 %v8499_v40  ;;  %3994 = vmatpush1.bf16.msra.mxu0 %v6570_v56  ;;  %v2229_v56 = vld [vmem:[%s9440_s8 + $0x478] sm:$0xff] }
0x138c   :  { %4025 = vmatprep.mubr.bf16.mxu0 %v8499_v40  ;;  %3954 = vmatprep.subr.bf16.mxu1 %v6585_v57  ;;  %v6600_v40 = vcombine.low %v2124_v13, %v2132_v37  ;;  %v6680_v57 = vcombine.low %v2204_v30, %v2212_v31  ;;  %v6682_v13 = vcombine.low %v2205_v32, %v2213_v48  ;;  %v2316_v32 = vld [vmem:[%s9440_s8 + $0x730] sm:$0xff] }
0x138d   :  { %3995 = vmatprep.subr.bf16.mxu0 %v6587_v52  ;;  %v6697_v37 = vcombine.high %v2220_v12, %v2228_v43  ;;  %v6699_v52 = vcombine.high %v2221_v47, %v2229_v56  ;;  %v6777_v30 = vcombine.high %v2300_v24, %v2308_v25  ;;  %v2324_v48 = vld [vmem:[%s9440_s8 + $0x770] sm:$0xff] }
0x138e   :  { %3955 = vmatpush1.bf16.msra.mxu1 %v6584_v55  ;;  %v2237_v55 = vld [vmem:[%s9440_s8 + $0x4b8] sm:$0xff] }
0x138f   :  { %3996 = vmatpush1.bf16.msra.mxu0 %v6586_v36  ;;  %3956 = vmatprep.subr.bf16.mxu1 %v6601_v10  ;;  %v2245_v36 = vld [vmem:[%s9440_s8 + $0x4f8] sm:$0xff]  ;;  %v6696_v10 = vcombine.low %v2220_v12, %v2228_v43  ;;  %v6793_v12 = vcombine.high %v2316_v32, %v2324_v48 }
0x1390   :  { %3997 = vmatprep.subr.bf16.mxu0 %v6603_v34  ;;  %v6698_v34 = vcombine.low %v2221_v47, %v2229_v56  ;;  %v6715_v39 = vcombine.high %v2237_v55, %v2245_v36  ;;  %v2332_v47 = vld [vmem:[%s9440_s8 + $0x7b0] sm:$0xff] }
0x1391   :  { %v2340_v56 = vld [vmem:[%s9440_s8 + $0x7f0] sm:$0xff] }
0x1392   :  { %3957 = vmatpush1.bf16.msra.mxu1 %v6600_v40  ;;  %v2253_v40 = vld [vmem:[%s9440_s8 + $0x538] sm:$0xff] }
0x1393   :  { %3998 = vmatpush1.bf16.msra.mxu0 %v6602_v9  ;;  %3958 = vmatprep.subr.bf16.mxu1 %v6617_v44  ;;  %v2261_v9 = vld [vmem:[%s9440_s8 + $0x578] sm:$0xff]  ;;  %v6712_v44 = vcombine.low %v2236_v53, %v2244_v17  ;;  %v6809_v53 = vcombine.high %v2332_v47, %v2340_v56 }
0x1394   :  { %3999 = vmatprep.subr.bf16.mxu0 %v6619_v58  ;;  %v6714_v58 = vcombine.low %v2237_v55, %v2245_v36  ;;  %v6731_v59 = vcombine.high %v2253_v40, %v2261_v9  ;;  %v6808_v55 = vcombine.low %v2332_v47, %v2340_v56  ;;  %v7342_v47 = vld [vmem:[#allocation6 + $0x74] ss:$8 sps:$4 sm:$0xff]  }
0x1396   :  { %3959 = vmatpush1.bf16.msra.mxu1 %v6616_v62  ;;  %v2269_v62 = vld [vmem:[%s9440_s8 + $0x5b8] sm:$0xff] }
0x1397   :  { %4000 = vmatpush1.bf16.msra.mxu0 %v6618_v63  ;;  %3960 = vmatprep.subr.bf16.mxu1 %v6633_v0  ;;  %v2277_v63 = vld [vmem:[%s9440_s8 + $0x5f8] sm:$0xff]  ;;  %v6728_v0 = vcombine.low %v2252_v3, %v2260_v54 }
0x1398   :  { %4001 = vmatprep.subr.bf16.mxu0 %v6635_v41  ;;  %v6730_v41 = vcombine.low %v2253_v40, %v2261_v9  ;;  %v6747_v2 = vcombine.high %v2269_v62, %v2277_v63  ;;  %v7306_v3 = vld [vmem:[#allocation6 + $0x14] ss:$8 sps:$4 sm:$0xff]   ;;  %v7304_v40 = vld [vmem:[#allocation6 + $0x10] ss:$8 sps:$4 sm:$0xff]  }
0x1399   :  { %v7309_v54 = vld [vmem:[#allocation6 + $0x114] ss:$8 sps:$4 sm:$0xff]   ;;  %v7307_v9 = vld [vmem:[#allocation6 + $0x110] ss:$8 sps:$4 sm:$0xff]  }
0x139a   :  { %3961 = vmatpush1.bf16.msra.mxu1 %v6632_v5  ;;  %v2285_v5 = vld [vmem:[%s9440_s8 + $0x638] sm:$0xff] }
0x139b   :  { %4002 = vmatpush1.bf16.msra.mxu0 %v6634_v6  ;;  %3962 = vmatprep.subr.bf16.mxu1 %v6649_v51  ;;  %v2293_v6 = vld [vmem:[%s9440_s8 + $0x678] sm:$0xff]  ;;  %v6744_v51 = vcombine.low %v2268_v60, %v2276_v61 }
0x139c   :  { %4003 = vmatprep.subr.bf16.mxu0 %v6651_v7  ;;  %v6746_v7 = vcombine.low %v2269_v62, %v2277_v63  ;;  %v6763_v21 = vcombine.high %v2285_v5, %v2293_v6  ;;  %v7318_v60 = vld [vmem:[#allocation6 + $0x34] ss:$8 sps:$4 sm:$0xff]   ;;  %v7316_v62 = vld [vmem:[#allocation6 + $0x30] ss:$8 sps:$4 sm:$0xff]   ;;  %v7324_v63 = vld [vmem:[#allocation6 + $0x44] ss:$8 sps:$4 sm:$0xff]  }
0x139d   :  { %v7321_v61 = vld [vmem:[#allocation6 + $0x134] ss:$8 sps:$4 sm:$0xff]  }
0x139e   :  { %3963 = vmatpush1.bf16.msra.mxu1 %v6648_v46  ;;  %v2301_v46 = vld [vmem:[%s9440_s8 + $0x6b8] sm:$0xff] }
0x139f   :  { %4004 = vmatpush1.bf16.msra.mxu0 %v6650_v27  ;;  %3964 = vmatprep.subr.bf16.mxu1 %v6665_v28  ;;  %v2309_v27 = vld [vmem:[%s9440_s8 + $0x6f8] sm:$0xff]  ;;  %v6760_v28 = vcombine.low %v2284_v45, %v2292_v4 }
0x13a0   :  { %4005 = vmatprep.subr.bf16.mxu0 %v6667_v29  ;;  %v6762_v29 = vcombine.low %v2285_v5, %v2293_v6  ;;  %v6779_v31 = vcombine.high %v2301_v46, %v2309_v27  ;;  %v7330_v45 = vld [vmem:[#allocation6 + $0x54] ss:$8 sps:$4 sm:$0xff]  }
0x13a1   :  { %v7333_v4 = vld [vmem:[#allocation6 + $0x154] ss:$8 sps:$4 sm:$0xff]  }
0x13a2   :  { %3965 = vmatpush1.bf16.msra.mxu1 %v6664_v42  ;;  %v2317_v42 = vld [vmem:[%s9440_s8 + $0x738] sm:$0xff] }
0x13a3   :  { %4006 = vmatpush1.bf16.msra.mxu0 %v6666_v33  ;;  %3966 = vmatprep.subr.bf16.mxu1 %v6681_v35  ;;  %v2325_v33 = vld [vmem:[%s9440_s8 + $0x778] sm:$0xff]  ;;  %v6776_v35 = vcombine.low %v2300_v24, %v2308_v25  ;;  %v7336_v24 = vld [vmem:[#allocation6 + $0x64] ss:$8 sps:$4 sm:$0xff]  }
0x13a4   :  { %4007 = vmatprep.subr.bf16.mxu0 %v6683_v38  ;;  %v6778_v38 = vcombine.low %v2301_v46, %v2309_v27  ;;  %v6795_v43 = vcombine.high %v2317_v42, %v2325_v33  ;;  %v7339_v27 = vld [vmem:[#allocation6 + $0x164] ss:$8 sps:$4 sm:$0xff]  }
0x13a6   :  { %3967 = vmatpush1.bf16.msra.mxu1 %v6680_v57  ;;  %v2333_v57 = vld [vmem:[%s9440_s8 + $0x7b8] sm:$0xff] }
0x13a7   :  { %4008 = vmatpush1.bf16.msra.mxu0 %v6682_v13  ;;  %3968 = vmatprep.subr.bf16.mxu1 %v6697_v37  ;;  %v2341_v13 = vld [vmem:[%s9440_s8 + $0x7f8] sm:$0xff]  ;;  %v6792_v37 = vcombine.low %v2316_v32, %v2324_v48 }
0x13a8   :  { %4009 = vmatprep.subr.bf16.mxu0 %v6699_v52  ;;  %v6794_v52 = vcombine.low %v2317_v42, %v2325_v33  ;;  %v6811_v17 = vcombine.high %v2333_v57, %v2341_v13  ;;  %v6810_v36 = vcombine.low %v2333_v57, %v2341_v13  ;;  %v7340_v57 = vld [vmem:[#allocation6 + $0x70] ss:$8 sps:$4 sm:$0xff]   ;;  %v7345_v13 = vld [vmem:[#allocation6 + $0x174] ss:$8 sps:$4 sm:$0xff]  }
0x13aa   :  { %3969 = vmatpush1.bf16.msra.mxu1 %v6696_v10  ;;  %v7300_v10 = vld [vmem:[#allocation6 + $0x4] ss:$8 sps:$4 sm:$0xff]  }
0x13ab   :  { %4010 = vmatpush1.bf16.msra.mxu0 %v6698_v34  ;;  %3970 = vmatprep.subr.bf16.mxu1 %v6713_v8  ;;  %v7303_v34 = vld [vmem:[#allocation6 + $0x104] ss:$8 sps:$4 sm:$0xff]   ;;  %v7298_v8 = vld [vmem:[#allocation6] ss:$8 sps:$4 sm:$0xff]  }
0x13ac   :  { %4011 = vmatprep.subr.bf16.mxu0 %v6715_v39  ;;  %v7301_v39 = vld [vmem:[#allocation6 + $0x100] ss:$8 sps:$4 sm:$0xff]  }
0x13ae   :  { %3971 = vmatpush1.bf16.msra.mxu1 %v6712_v44  ;;  %v7312_v44 = vld [vmem:[#allocation6 + $0x24] ss:$8 sps:$4 sm:$0xff]  }
0x13af   :  { %4012 = vmatpush1.bf16.msra.mxu0 %v6714_v58  ;;  %3972 = vmatprep.subr.bf16.mxu1 %v6729_v50  ;;  %v7315_v58 = vld [vmem:[#allocation6 + $0x124] ss:$8 sps:$4 sm:$0xff]   ;;  %v7310_v50 = vld [vmem:[#allocation6 + $0x20] ss:$8 sps:$4 sm:$0xff]  }
0x13b0   :  { %4013 = vmatprep.subr.bf16.mxu0 %v6731_v59  ;;  %v7313_v59 = vld [vmem:[#allocation6 + $0x120] ss:$8 sps:$4 sm:$0xff]  }
0x13b2   :  { %3973 = vmatpush1.bf16.msra.mxu1 %v6728_v0  ;;  %v7327_v0 = vld [vmem:[#allocation6 + $0x144] ss:$8 sps:$4 sm:$0xff]  }
0x13b3   :  { %4014 = vmatpush1.bf16.msra.mxu0 %v6730_v41  ;;  %3974 = vmatprep.subr.bf16.mxu1 %v6745_v1  ;;  %v9072_v41 = vld [vmem:[%s9441_s9] sm:$0xff] }
0x13b4   :  { %4015 = vmatprep.subr.bf16.mxu0 %v6747_v2  ;;  %v7322_v1 = vld [vmem:[#allocation6 + $0x40] ss:$8 sps:$4 sm:$0xff]   ;;  %v2349_v5 = vrot.slane %v9072_v41, %v8015_v16  ;;  %v2357_v6 = vrot.slane %v9072_v41, %v8012_v15 }
0x13b5   :  { %v7325_v2 = vld [vmem:[#allocation6 + $0x140] ss:$8 sps:$4 sm:$0xff]  }
0x13b6   :  { %3975 = vmatpush1.bf16.msra.mxu1 %v6744_v51  ;;  %v2353_v51 = vrot.slane %v9072_v41, %v8026_v19 }
0x13b7   :  { %4016 = vmatpush1.bf16.msra.mxu0 %v6746_v7  ;;  %3976 = vmatprep.subr.bf16.mxu1 %v6761_v20  ;;  %v2361_v7 = vrot.slane %v9072_v41, %v8023_v18  ;;  %v7328_v20 = vld [vmem:[#allocation6 + $0x50] ss:$8 sps:$4 sm:$0xff]  }
0x13b8   :  { %4017 = vmatprep.subr.bf16.mxu0 %v6763_v21  ;;  %v7331_v21 = vld [vmem:[#allocation6 + $0x150] ss:$8 sps:$4 sm:$0xff]  }
0x13ba   :  { %3977 = vmatpush1.bf16.msra.mxu1 %v6760_v28 }
0x13bb   :  { %4018 = vmatpush1.bf16.msra.mxu0 %v6762_v29  ;;  %3978 = vmatprep.subr.bf16.mxu1 %v6777_v30 }
0x13bc   :  { %4019 = vmatprep.subr.bf16.mxu0 %v6779_v31 }
0x13be   :  { %3979 = vmatpush1.bf16.msra.mxu1 %v6776_v35  ;;  %v7334_v35 = vld [vmem:[#allocation6 + $0x60] ss:$8 sps:$4 sm:$0xff]  }
0x13bf   :  { %4020 = vmatpush1.bf16.msra.mxu0 %v6778_v38  ;;  %3980 = vmatprep.subr.bf16.mxu1 %v6793_v12  ;;  %v7337_v38 = vld [vmem:[#allocation6 + $0x160] ss:$8 sps:$4 sm:$0xff]  }
0x13c0   :  { %4021 = vmatprep.subr.bf16.mxu0 %v6795_v43 }
0x13c2   :  { %3981 = vmatpush1.bf16.msra.mxu1 %v6792_v37 }
0x13c3   :  { %4022 = vmatpush1.bf16.msra.mxu0 %v6794_v52  ;;  %3982 = vmatprep.subr.bf16.mxu1 %v6809_v53  ;;  %v7343_v53 = vld [vmem:[#allocation6 + $0x170] ss:$8 sps:$4 sm:$0xff]  }
0x13c4   :  { %4023 = vmatprep.subr.bf16.mxu0 %v6811_v17 }
0x13c6   :  { %3983 = vmatpush1.bf16.msra.mxu1 %v6808_v55 }
0x13c7   :  { %4024 = vmatpush1.bf16.msra.mxu0 %v6810_v36  ;;  %6030 = vmatprep.subr.bf16.mxu1 %v7300_v10 }
0x13c8   :  { %6071 = vmatprep.subr.bf16.mxu0 %v7303_v34 }
0x13c9   :  { %3985 = vmatmul.mubr.bf16.vlgmr.msra.gmra.mrb[52].mxu1 %v8495_v49 }
0x13ca   :  { %4026 = vmatmul.mubr.bf16.vlgmr.msra.gmra.mrb[24].mxu0 %v8495_v49  ;;  %6031 = vmatpush1.bf16.msra.mxu1 %v7298_v8  ;;  %v7319_v49 = vld [vmem:[#allocation6 + $0x130] ss:$8 sps:$4 sm:$0xff]   ;;  %v7348_v8 = vld [vmem:[#allocation6 + $0x84] ss:$8 sps:$4 sm:$0xff]  }
0x13cb   :  { %6072 = vmatpush1.bf16.msra.mxu0 %v7301_v39  ;;  %6032 = vmatprep.subr.bf16.mxu1 %v7306_v3 }
0x13cc   :  { %6073 = vmatprep.subr.bf16.mxu0 %v7309_v54  ;;  %v7351_v54 = vld [vmem:[#allocation6 + $0x184] ss:$8 sps:$4 sm:$0xff]  }
0x13ce   :  { %6033 = vmatpush1.bf16.msra.mxu1 %v7304_v40 }
0x13cf   :  { %6074 = vmatpush1.bf16.msra.mxu0 %v7307_v9  ;;  %6034 = vmatprep.subr.bf16.mxu1 %v7312_v44 }
0x13d0   :  { %6075 = vmatprep.subr.bf16.mxu0 %v7315_v58  ;;  %v7346_v58 = vld [vmem:[#allocation6 + $0x80] ss:$8 sps:$4 sm:$0xff]  }
0x13d2   :  { %6035 = vmatpush1.bf16.msra.mxu1 %v7310_v50 }
0x13d3   :  { %6076 = vmatpush1.bf16.msra.mxu0 %v7313_v59  ;;  %6036 = vmatprep.subr.bf16.mxu1 %v7318_v60  ;;  %v7349_v59 = vld [vmem:[#allocation6 + $0x180] ss:$8 sps:$4 sm:$0xff]   ;;  %v7354_v60 = vld [vmem:[#allocation6 + $0x94] ss:$8 sps:$4 sm:$0xff]  }
0x13d4   :  { %6077 = vmatprep.subr.bf16.mxu0 %v7321_v61 }
0x13d6   :  { %6037 = vmatpush1.bf16.msra.mxu1 %v7316_v62  ;;  %v7357_v62 = vld [vmem:[#allocation6 + $0x194] ss:$8 sps:$4 sm:$0xff]  }
0x13d7   :  { %6078 = vmatpush1.bf16.msra.mxu0 %v7319_v49  ;;  %6038 = vmatprep.subr.bf16.mxu1 %v7324_v63  ;;  %v7352_v63 = vld [vmem:[#allocation6 + $0x90] ss:$8 sps:$4 sm:$0xff]  }
0x13d8   :  { %6079 = vmatprep.subr.bf16.mxu0 %v7327_v0  ;;  %v7355_v0 = vld [vmem:[#allocation6 + $0x190] ss:$8 sps:$4 sm:$0xff]  }
0x13da   :  { %6039 = vmatpush1.bf16.msra.mxu1 %v7322_v1  ;;  %v7360_v1 = vld [vmem:[#allocation6 + $0xa4] ss:$8 sps:$4 sm:$0xff]  }
0x13db   :  { %6080 = vmatpush1.bf16.msra.mxu0 %v7325_v2  ;;  %6040 = vmatprep.subr.bf16.mxu1 %v7330_v45  ;;  %v7363_v2 = vld [vmem:[#allocation6 + $0x1a4] ss:$8 sps:$4 sm:$0xff]  }
0x13dc   :  { %v3740_v25 = vpop.f32.mrb[40].mxu1  ;;  %v3781_v46 = vpop.f32.mrb[12].mxu0  ;;  %6081 = vmatprep.subr.bf16.mxu0 %v7333_v4 }
0x13dd   :  { %v9082_v28 = vadd.f32 %v3740_v25, %v2349_v5  ;;  %v9084_v29 = vadd.f32 %v3781_v46, %v2357_v6  ;;  %v3742_v30 = vpop.f32.mrb[41].mxu1  ;;  %v3783_v31 = vpop.f32.mrb[13].mxu0  ;;  %v7358_v5 = vld [vmem:[#allocation6 + $0xa0] ss:$8 sps:$4 sm:$0xff]  }
0x13de   :  { %v9086_v32 = vadd.f32 %v3742_v30, %v2353_v51  ;;  %v9088_v48 = vadd.f32 %v3783_v31, %v2361_v7  ;;  %v3744_v42 = vpop.f32.mrb[42].mxu1  ;;  %v3785_v33 = vpop.f32.mrb[14].mxu0  ;;  %6041 = vmatpush1.bf16.msra.mxu1 %v7328_v20  ;;  %v7361_v6 = vld [vmem:[#allocation6 + $0x1a0] ss:$8 sps:$4 sm:$0xff]   ;;  %v7366_v51 = vld [vmem:[#allocation6 + $0xb4] ss:$8 sps:$4 sm:$0xff]  }
0x13df   :  { %v9091_v12 = vmul.f32 0.70710677, %v9082_v28  ;;  %v9094_v43 = vmul.f32 0.70710677, %v9084_v29  ;;  %6082 = vmatpush1.bf16.msra.mxu0 %v7331_v21  ;;  %6042 = vmatprep.subr.bf16.mxu1 %v7336_v24  ;;  %v3745_v36 = vpop.f32.mrb[43].mxu1  ;;  %v3786_v3 = vpop.f32.mrb[15].mxu0 }
0x13e0   :  { %v9097_v56 = vmul.f32 0.70710677, %v9086_v32  ;;  %6083 = vmatprep.subr.bf16.mxu0 %v7339_v27  ;;  %v9105_v55 = vmul.f32 0.70710677, %v9088_v48  ;;  %v7369_v7 = vld [vmem:[#allocation6 + $0x1b4] ss:$8 sps:$4 sm:$0xff]  }
0x13e1   :  { %v4098_v37 = vand.u32 2147483647, %v9091_v12  ;;  %v4100_v52 = vand.u32 2147483647, %v9094_v43  ;;  %v7364_v30 = vld [vmem:[#allocation6 + $0xb0] ss:$8 sps:$4 sm:$0xff]  }
0x13e2   :  { %v9102_v17 = vand.u32 2147483647, %v9097_v56  ;;  %6043 = vmatpush1.bf16.msra.mxu1 %v7334_v35  ;;  %v4101_v44 = vand.u32 2147483647, %v9105_v55  ;;  %v7367_v31 = vld [vmem:[#allocation6 + $0x1b0] ss:$8 sps:$4 sm:$0xff]  }
0x13e3   :  { %v4114_v10 = vmul.f32 0.3275911, %v4098_v37  ;;  %v4116_v34 = vmul.f32 0.3275911, %v4100_v52  ;;  %6084 = vmatpush1.bf16.msra.mxu0 %v7337_v38  ;;  %6044 = vmatprep.subr.bf16.mxu1 %v7342_v47  ;;  %v4322_v45 = vsub.f32 0.0, %v4098_v37  ;;  %v4324_v4 = vsub.f32 0.0, %v4100_v52 }
0x13e4   :  { %v4115_v39 = vmul.f32 0.3275911, %v9102_v17  ;;  %6085 = vmatprep.subr.bf16.mxu0 %v7345_v13  ;;  %v4117_v61 = vmul.f32 0.3275911, %v4101_v44  ;;  %v4323_v24 = vsub.f32 0.0, %v9102_v17  ;;  %v4325_v33 = vsub.f32 0.0, %v4101_v44 }
0x13e5   :  { %v4130_v40 = vadd.f32 1.0, %v4114_v10  ;;  %v4132_v9 = vadd.f32 1.0, %v4116_v34  ;;  %v4338_v21 = vmul.f32 %v4322_v45, %v4098_v37  ;;  %v4340_v27 = vmul.f32 %v4324_v4, %v4100_v52  ;;  %v7372_v35 = vld [vmem:[#allocation6 + $0xc4] ss:$8 sps:$4 sm:$0xff]   ;;  %v7370_v34 = vld [vmem:[#allocation6 + $0xc0] ss:$8 sps:$4 sm:$0xff]  }
0x13e6   :  { %6045 = vmatpush1.bf16.msra.mxu1 %v7340_v57  ;;  %v4131_v50 = vadd.f32 1.0, %v4115_v39  ;;  %v4133_v49 = vadd.f32 1.0, %v4117_v61  ;;  %v7375_v47 = vld [vmem:[#allocation6 + $0x1c4] ss:$8 sps:$4 sm:$0xff]   ;;  %v4341_v3 = vmul.f32 %v4325_v33, %v4101_v44  ;;  %v7376_v44 = vld [vmem:[#allocation6 + $0xd0] ss:$8 sps:$4 sm:$0xff]  }
0x13e7   :  { %7716 = vrcp.f32 %v4130_v40  ;;  %6086 = vmatpush1.bf16.msra.mxu0 %v7343_v53  ;;  %6046 = vmatprep.subr.bf16.mxu1 %v7348_v8  ;;  %v4354_v13 = vmul.f32 1.442695, %v4338_v21  ;;  %v4339_v53 = vmul.f32 %v4323_v24, %v9102_v17  ;;  %v4358_v36 = vmul.f32 1.442695, %v4340_v27  ;;  %v7378_v40 = vld [vmem:[#allocation6 + $0xd4] ss:$8 sps:$4 sm:$0xff]  }
0x13e8   :  { %7718 = vrcp.f32 %v4132_v9  ;;  %6087 = vmatprep.subr.bf16.mxu0 %v7351_v54  ;;  %v7373_v54 = vld [vmem:[#allocation6 + $0x1c0] ss:$8 sps:$4 sm:$0xff]   ;;  %v7381_v9 = vld [vmem:[#allocation6 + $0x1d4] ss:$8 sps:$4 sm:$0xff]   ;;  %vm4066_vm2 = vcmp.lt.f32.partialorder %v9091_v12, 0.0  ;;  %vm4068_vm3 = vcmp.lt.f32.partialorder %v9094_v43, 0.0 }
0x13e9   :  { %7720 = vrcp.f32 %v4131_v50  ;;  %vm4067_vm4 = vcmp.lt.f32.partialorder %v9097_v56, 0.0  ;;  %vm4069_vm5 = vcmp.lt.f32.partialorder %v9105_v55, 0.0  ;;  %v4037_v55 = vmul.f32 0.5, %v9088_v48 }
0x13ea   :  { %6047 = vmatpush1.bf16.msra.mxu1 %v7346_v58  ;;  %7722 = vrcp.f32 %v4133_v49  ;;  %v2376_v48 = vsub.s32 7, %v8009_v14 }
0x13eb   :  { %6088 = vmatpush1.bf16.msra.mxu0 %v7349_v59  ;;  %6048 = vmatprep.subr.bf16.mxu1 %v7354_v60  ;;  %7724 = vpow2.f32 %v4354_v13  ;;  %v4356_v60 = vmul.f32 1.442695, %v4339_v53 }
0x13ec   :  { %6089 = vmatprep.subr.bf16.mxu0 %v7357_v62  ;;  %7726 = vpow2.f32 %v4358_v36 }
0x13ed   :  { %7728 = vpow2.f32 %v4356_v60  ;;  %v7863_v60 = vmov 1.0  }
0x13ee   :  { %6049 = vmatpush1.bf16.msra.mxu1 %v7352_v63  ;;  %v4085_v56 = vsel %vm4069_vm5, -1.0, %v7863_v60 }
0x13ef   :  { %6090 = vmatpush1.bf16.msra.mxu0 %v7355_v0  ;;  %6050 = vmatprep.subr.bf16.mxu1 %v7360_v1  ;;  %v4360_v0 = vmul.f32 1.442695, %v4341_v3  ;;  %v7379_v1 = vld [vmem:[#allocation6 + $0x1d0] ss:$8 sps:$4 sm:$0xff]  }
0x13f0   :  { %6091 = vmatprep.subr.bf16.mxu0 %v7363_v2  ;;  %v7384_v2 = vld [vmem:[#allocation6 + $0xe4] ss:$8 sps:$4 sm:$0xff]  }
0x13f1   :  { %v9109_v20 = vpop.eup %7716  ;;  %7730 = vpow2.f32 %v4360_v0 }
0x13f2   :  { %v9112_v25 = vpop.eup %7718  ;;  %v4178_v46 = vmul.f32 1.0614054, %v9109_v20  ;;  %6051 = vmatpush1.bf16.msra.mxu1 %v7358_v5 }
0x13f3   :  { %v4180_v42 = vmul.f32 1.0614054, %v9112_v25  ;;  %6092 = vmatpush1.bf16.msra.mxu0 %v7361_v6  ;;  %6052 = vmatprep.subr.bf16.mxu1 %v7366_v51  ;;  %v9116_v57 = vpop.eup %7720  ;;  %v7387_v6 = vld [vmem:[#allocation6 + $0x1e4] ss:$8 sps:$4 sm:$0xff]  }
0x13f4   :  { %v4194_v38 = vadd.f32 -1.4531521, %v4178_v46  ;;  %6093 = vmatprep.subr.bf16.mxu0 %v7369_v7  ;;  %v4179_v10 = vmul.f32 1.0614054, %v9116_v57  ;;  %v9121_v8 = vpop.eup %7722  ;;  %v7382_v46 = vld [vmem:[#allocation6 + $0xe0] ss:$8 sps:$4 sm:$0xff]  }
0x13f5   :  { %v4196_v37 = vadd.f32 -1.4531521, %v4180_v42  ;;  %v4181_v17 = vmul.f32 1.0614054, %v9121_v8  ;;  %v7725_v36 = vpop.eup %7724 }
0x13f6   :  { %v4210_v52 = vmul.f32 %v9109_v20, %v4194_v38  ;;  %6053 = vmatpush1.bf16.msra.mxu1 %v7364_v30  ;;  %v4195_v50 = vadd.f32 -1.4531521, %v4179_v10  ;;  %v7385_v30 = vld [vmem:[#allocation6 + $0x1e0] ss:$8 sps:$4 sm:$0xff]   ;;  %v7393_v38 = vld [vmem:[#allocation6 + $0x1f4] ss:$8 sps:$4 sm:$0xff]   ;;  %v7727_v3 = vpop.eup %7726 }
0x13f7   :  { %v4212_v39 = vmul.f32 %v9112_v25, %v4196_v37  ;;  %6094 = vmatpush1.bf16.msra.mxu0 %v7367_v31  ;;  %6054 = vmatprep.subr.bf16.mxu1 %v7372_v35  ;;  %v4197_v49 = vadd.f32 -1.4531521, %v4181_v17  ;;  %v7390_v31 = vld [vmem:[#allocation6 + $0xf4] ss:$8 sps:$4 sm:$0xff]  }
0x13f8   :  { %v4226_v58 = vadd.f32 1.4214138, %v4210_v52  ;;  %6095 = vmatprep.subr.bf16.mxu0 %v7375_v47  ;;  %v4211_v62 = vmul.f32 %v9116_v57, %v4195_v50  ;;  %v7388_v52 = vld [vmem:[#allocation6 + $0xf0] ss:$8 sps:$4 sm:$0xff]  }
0x13f9   :  { %v4228_v59 = vadd.f32 1.4214138, %v4212_v39  ;;  %v4213_v5 = vmul.f32 %v9121_v8, %v4197_v49  ;;  %v7396_v39 = vld [vmem:[#allocation6 + $0x204] ss:$8 sps:$4 sm:$0xff]  }
0x13fa   :  { %v4242_v61 = vmul.f32 %v9109_v20, %v4226_v58  ;;  %6055 = vmatpush1.bf16.msra.mxu1 %v7370_v34  ;;  %v4227_v4 = vadd.f32 1.4214138, %v4211_v62  ;;  %v7391_v34 = vld [vmem:[#allocation6 + $0x1f0] ss:$8 sps:$4 sm:$0xff]   ;;  %v4084_v62 = vsel %vm4068_vm3, -1.0, %v7863_v60 }
0x13fb   :  { %v4244_v63 = vmul.f32 %v9112_v25, %v4228_v59  ;;  %6096 = vmatpush1.bf16.msra.mxu0 %v7373_v54  ;;  %6056 = vmatprep.subr.bf16.mxu1 %v7378_v40  ;;  %v4229_v24 = vadd.f32 1.4214138, %v4213_v5 }
0x13fc   :  { %v4258_v45 = vadd.f32 -0.28449672, %v4242_v61  ;;  %6097 = vmatprep.subr.bf16.mxu0 %v7381_v9  ;;  %v4243_v21 = vmul.f32 %v9116_v57, %v4227_v4  ;;  %v7399_v9 = vld [vmem:[#allocation6 + $0x304] ss:$8 sps:$4 sm:$0xff]   ;;  %v4082_v61 = vsel %vm4066_vm2, -1.0, %v7863_v60 }
0x13fd   :  { %v4260_v51 = vadd.f32 -0.28449672, %v4244_v63  ;;  %v4245_v35 = vmul.f32 %v9121_v8, %v4229_v24 }
0x13fe   :  { %v4274_v7 = vmul.f32 %v9109_v20, %v4258_v45  ;;  %6057 = vmatpush1.bf16.msra.mxu1 %v7376_v44  ;;  %v4259_v33 = vadd.f32 -0.28449672, %v4243_v21  ;;  %v4083_v45 = vsel %vm4067_vm4, -1.0, %v7863_v60 }
0x13ff   :  { %v4276_v27 = vmul.f32 %v9112_v25, %v4260_v51  ;;  %6098 = vmatpush1.bf16.msra.mxu0 %v7379_v1  ;;  %6058 = vmatprep.subr.bf16.mxu1 %v7384_v2  ;;  %v4261_v53 = vadd.f32 -0.28449672, %v4245_v35  ;;  %v7394_v35 = vld [vmem:[#allocation6 + $0x200] ss:$8 sps:$4 sm:$0xff]  }
0x1400   :  { %v4290_v42 = vadd.f32 0.2548296, %v4274_v7  ;;  %6099 = vmatprep.subr.bf16.mxu0 %v7387_v6  ;;  %v4275_v37 = vmul.f32 %v9116_v57, %v4259_v33  ;;  %v4034_v6 = vmul.f32 0.5, %v9082_v28  ;;  %v4035_v7 = vmul.f32 0.5, %v9086_v32  ;;  %v7402_v28 = vld [vmem:[#allocation6 + $0x214] ss:$8 sps:$4 sm:$0xff]  }
0x1401   :  { %v4292_v47 = vadd.f32 0.2548296, %v4276_v27  ;;  %v7405_v32 = vld [vmem:[#allocation6 + $0x314] ss:$8 sps:$4 sm:$0xff]  }
0x1402   :  { %v4306_v13 = vmul.f32 %v9109_v20, %v4290_v42  ;;  %6059 = vmatpush1.bf16.msra.mxu1 %v7382_v46  ;;  %v4291_v40 = vadd.f32 0.2548296, %v4275_v37  ;;  %v4277_v20 = vmul.f32 %v9121_v8, %v4261_v53  ;;  %v4036_v46 = vmul.f32 0.5, %v9084_v29  ;;  %v7400_v29 = vld [vmem:[#allocation6 + $0x210] ss:$8 sps:$4 sm:$0xff]  }
0x1403   :  { %v4308_v10 = vmul.f32 %v9112_v25, %v4292_v47  ;;  %6100 = vmatpush1.bf16.msra.mxu0 %v7385_v30  ;;  %6060 = vmatprep.subr.bf16.mxu1 %v7390_v31  ;;  %v7729_v25 = vpop.eup %7728  ;;  %v2372_v53 = vsub.s32 6, %v8009_v14  ;;  %v7604_v14 = vld [vmem:[#allocation6 + $0x630] ss:$8 sps:$4 sm:$0xff]  }
0x1404   :  { %v4386_v54 = vmul.f32 %v7725_v36, %v4306_v13  ;;  %6101 = vmatprep.subr.bf16.mxu0 %v7393_v38  ;;  %v4307_v17 = vmul.f32 %v9116_v57, %v4291_v40  ;;  %v4293_v59 = vadd.f32 0.2548296, %v4277_v20  ;;  %v7731_v57 = vpop.eup %7730  ;;  %v7397_v13 = vld [vmem:[#allocation6 + $0x300] ss:$8 sps:$4 sm:$0xff]   ;;  %v7403_v36 = vld [vmem:[#allocation6 + $0x310] ss:$8 sps:$4 sm:$0xff]   ;;  %v2377_v40 = vrot.slane %v9072_v41, %v2376_v48 }
0x1405   :  { %v4388_v58 = vmul.f32 %v7727_v3, %v4308_v10  ;;  %v7411_v10 = vld [vmem:[#allocation6 + $0x324] ss:$8 sps:$4 sm:$0xff]   ;;  %v7406_v3 = vld [vmem:[#allocation6 + $0x220] ss:$8 sps:$4 sm:$0xff]   ;;  %v7414_v20 = vld [vmem:[#allocation6 + $0x234] ss:$8 sps:$4 sm:$0xff]  }
0x1406   :  { %v4402_v50 = vsub.f32 1.0, %v4386_v54  ;;  %6061 = vmatpush1.bf16.msra.mxu1 %v7388_v52  ;;  %v4387_v44 = vmul.f32 %v7729_v25, %v4307_v17  ;;  %v4309_v63 = vmul.f32 %v9121_v8, %v4293_v59  ;;  %v7408_v52 = vld [vmem:[#allocation6 + $0x224] ss:$8 sps:$4 sm:$0xff]   ;;  %v2369_v54 = vrot.slane %v9072_v41, %v8097_v23 }
0x1407   :  { %v4404_v43 = vsub.f32 1.0, %v4388_v58  ;;  %6102 = vmatpush1.bf16.msra.mxu0 %v7391_v34  ;;  %6112 = vmatprep.subr.bf16.mxu1 %v7396_v39  ;;  %v2365_v34 = vrot.slane %v9072_v41, %v8094_v22  ;;  %v2373_v39 = vrot.slane %v9072_v41, %v2372_v53 }
0x1408   :  { %v4418_v49 = vmul.f32 %v4402_v50, %v4082_v61  ;;  %6153 = vmatprep.subr.bf16.mxu0 %v7399_v9  ;;  %v4403_v1 = vsub.f32 1.0, %v4387_v44  ;;  %v4389_v2 = vmul.f32 %v7731_v57, %v4309_v63  ;;  %v7409_v9 = vld [vmem:[#allocation6 + $0x320] ss:$8 sps:$4 sm:$0xff]   ;;  %v7412_v63 = vld [vmem:[#allocation6 + $0x230] ss:$8 sps:$4 sm:$0xff]  }
0x1409   :  { %v4420_v0 = vmul.f32 %v4404_v43, %v4084_v62  ;;  %v7417_v62 = vld [vmem:[#allocation6 + $0x334] ss:$8 sps:$4 sm:$0xff]  }
0x140a   :  { %v4434_v12 = vadd.f32 1.0, %v4418_v49  ;;  %v4419_v4 = vmul.f32 %v4403_v1, %v4083_v45  ;;  %v4405_v5 = vsub.f32 1.0, %v4389_v2  ;;  %v7420_v1 = vld [vmem:[#allocation6 + $0x244] ss:$8 sps:$4 sm:$0xff]  }
0x140b   :  { %v4436_v51 = vadd.f32 1.0, %v4420_v0  ;;  %v7423_v45 = vld [vmem:[#allocation6 + $0x344] ss:$8 sps:$4 sm:$0xff]  }
0x140c   :  { %v4421_v8 = vmul.f32 %v4405_v5, %v4085_v56  ;;  %v4435_v21 = vadd.f32 1.0, %v4419_v4  ;;  %v4450_v24 = vmul.f32 %v4434_v12, %v4034_v6  ;;  %v7415_v12 = vld [vmem:[#allocation6 + $0x330] ss:$8 sps:$4 sm:$0xff]   ;;  %v7418_v6 = vld [vmem:[#allocation6 + $0x240] ss:$8 sps:$4 sm:$0xff]  }
0x140d   :  { %v4452_v31 = vmul.f32 %v4436_v51, %v4036_v46 }
0x140e   :  { %v4451_v27 = vmul.f32 %v4435_v21, %v4035_v7  ;;  %v4437_v30 = vadd.f32 1.0, %v4421_v8  ;;  %v4466_v38 = vpack.c.bf16 %v4450_v24, %v4450_v24  ;;  %v7426_v24 = vld [vmem:[#allocation6 + $0x254] ss:$8 sps:$4 sm:$0xff]  }
0x140f   :  { %v4468_v37 = vpack.c.bf16 %v4452_v31, %v4452_v31 }
0x1410   :  { %v4467_v42 = vpack.c.bf16 %v4451_v27, %v4451_v27  ;;  %v4453_v33 = vmul.f32 %v4437_v30, %v4037_v55  ;;  %v7421_v27 = vld [vmem:[#allocation6 + $0x340] ss:$8 sps:$4 sm:$0xff]  }
0x1412   :  { %6062 = vmatprep.mubr.bf16.mxu1 %v4467_v42  ;;  %v4469_v47 = vpack.c.bf16 %v4453_v33, %v4453_v33  ;;  %v7429_v42 = vld [vmem:[#allocation6 + $0x354] ss:$8 sps:$4 sm:$0xff]  }
0x1413   :  { %6063 = vmatmul.mubr.bf16.vlgmr.msra.gmra.mrb[56].mxu1 %v4466_v38 }
0x1414   :  { %6103 = vmatprep.mubr.bf16.mxu0 %v4469_v47  ;;  %6113 = vmatpush1.bf16.msra.mxu1 %v7394_v35  ;;  %v7424_v35 = vld [vmem:[#allocation6 + $0x250] ss:$8 sps:$4 sm:$0xff]  }
0x1415   :  { %6104 = vmatmul.mubr.bf16.vlgmr.msra.gmra.mrb[28].mxu0 %v4468_v37  ;;  %6114 = vmatprep.subr.bf16.mxu1 %v7402_v28  ;;  %v7432_v28 = vld [vmem:[#allocation6 + $0x264] ss:$8 sps:$4 sm:$0xff]  }
0x1416   :  { %6154 = vmatpush1.bf16.msra.mxu0 %v7397_v13  ;;  %v7427_v13 = vld [vmem:[#allocation6 + $0x350] ss:$8 sps:$4 sm:$0xff]   ;;  %v7435_v37 = vld [vmem:[#allocation6 + $0x364] ss:$8 sps:$4 sm:$0xff]  }
0x1417   :  { %6155 = vmatprep.subr.bf16.mxu0 %v7405_v32 }
0x1418   :  { %6115 = vmatpush1.bf16.msra.mxu1 %v7400_v29  ;;  %v7430_v29 = vld [vmem:[#allocation6 + $0x260] ss:$8 sps:$4 sm:$0xff]  }
0x1419   :  { %6116 = vmatprep.subr.bf16.mxu1 %v7408_v52  ;;  %v7438_v52 = vld [vmem:[#allocation6 + $0x274] ss:$8 sps:$4 sm:$0xff]  }
0x141a   :  { %6156 = vmatpush1.bf16.msra.mxu0 %v7403_v36  ;;  %v7433_v36 = vld [vmem:[#allocation6 + $0x360] ss:$8 sps:$4 sm:$0xff]  }
0x141b   :  { %6157 = vmatprep.subr.bf16.mxu0 %v7411_v10 }
0x141c   :  { %v3822_v58 = vpop.f32.mrb[44].mxu1  ;;  %v3863_v50 = vpop.f32.mrb[16].mxu0  ;;  %6117 = vmatpush1.bf16.msra.mxu1 %v7406_v3  ;;  %v7436_v3 = vld [vmem:[#allocation6 + $0x270] ss:$8 sps:$4 sm:$0xff]  }
0x141d   :  { %v9165_v17 = vadd.f32 %v3822_v58, %v2365_v34  ;;  %v9167_v59 = vadd.f32 %v3863_v50, %v2373_v39  ;;  %v3824_v25 = vpop.f32.mrb[45].mxu1  ;;  %v3865_v61 = vpop.f32.mrb[17].mxu0  ;;  %6118 = vmatprep.subr.bf16.mxu1 %v7414_v20  ;;  %v7441_v34 = vld [vmem:[#allocation6 + $0x374] ss:$8 sps:$4 sm:$0xff]   ;;  %v7447_v50 = vld [vmem:[#allocation6 + $0x384] ss:$8 sps:$4 sm:$0xff]  }
0x141e   :  { %v9169_v43 = vadd.f32 %v3824_v25, %v2369_v54  ;;  %v9171_v49 = vadd.f32 %v3865_v61, %v2377_v40  ;;  %v3826_v41 = vpop.f32.mrb[46].mxu1  ;;  %v3867_v44 = vpop.f32.mrb[18].mxu0  ;;  %6158 = vmatpush1.bf16.msra.mxu0 %v7409_v9  ;;  %v7444_v54 = vld [vmem:[#allocation6 + $0x284] ss:$8 sps:$4 sm:$0xff]   ;;  %v7439_v40 = vld [vmem:[#allocation6 + $0x370] ss:$8 sps:$4 sm:$0xff]  }
0x141f   :  { %v9174_v57 = vmul.f32 0.70710677, %v9165_v17  ;;  %v9177_v0 = vmul.f32 0.70710677, %v9167_v59  ;;  %6159 = vmatprep.subr.bf16.mxu0 %v7417_v62  ;;  %v3827_v7 = vpop.f32.mrb[47].mxu1  ;;  %v3868_v55 = vpop.f32.mrb[19].mxu0 }
0x1420   :  { %v9180_v2 = vmul.f32 0.70710677, %v9169_v43  ;;  %v9188_v56 = vmul.f32 0.70710677, %v9171_v49  ;;  %6119 = vmatpush1.bf16.msra.mxu1 %v7412_v63  ;;  %v7442_v41 = vld [vmem:[#allocation6 + $0x280] ss:$8 sps:$4 sm:$0xff]  }
0x1421   :  { %v4102_v4 = vand.u32 2147483647, %v9174_v57  ;;  %v4104_v5 = vand.u32 2147483647, %v9177_v0  ;;  %6120 = vmatprep.subr.bf16.mxu1 %v7420_v1  ;;  %v7450_v1 = vld [vmem:[#allocation6 + $0x294] ss:$8 sps:$4 sm:$0xff]  }
0x1422   :  { %v9185_v51 = vand.u32 2147483647, %v9180_v2  ;;  %6160 = vmatpush1.bf16.msra.mxu0 %v7415_v12  ;;  %v4105_v33 = vand.u32 2147483647, %v9188_v56  ;;  %v7448_v55 = vld [vmem:[#allocation6 + $0x290] ss:$8 sps:$4 sm:$0xff]  }
0x1423   :  { %v4118_v8 = vmul.f32 0.3275911, %v4102_v4  ;;  %v4120_v21 = vmul.f32 0.3275911, %v4104_v5  ;;  %6161 = vmatprep.subr.bf16.mxu0 %v7423_v45  ;;  %v4326_v10 = vsub.f32 0.0, %v4102_v4  ;;  %v4328_v39 = vsub.f32 0.0, %v4104_v5 }
0x1424   :  { %v4119_v46 = vmul.f32 0.3275911, %v9185_v51  ;;  %6121 = vmatpush1.bf16.msra.mxu1 %v7418_v6  ;;  %v4121_v47 = vmul.f32 0.3275911, %v4105_v33  ;;  %v4327_v58 = vsub.f32 0.0, %v9185_v51  ;;  %v4329_v63 = vsub.f32 0.0, %v4105_v33 }
0x1425   :  { %v4134_v30 = vadd.f32 1.0, %v4118_v8  ;;  %v4136_v31 = vadd.f32 1.0, %v4120_v21  ;;  %6122 = vmatprep.subr.bf16.mxu1 %v7426_v24  ;;  %v4342_v9 = vmul.f32 %v4326_v10, %v4102_v4  ;;  %v4344_v62 = vmul.f32 %v4328_v39, %v4104_v5  ;;  %v7445_v45 = vld [vmem:[#allocation6 + $0x380] ss:$8 sps:$4 sm:$0xff]   ;;  %v7453_v21 = vld [vmem:[#allocation6 + $0x394] ss:$8 sps:$4 sm:$0xff]  }
0x1426   :  { %v4135_v38 = vadd.f32 1.0, %v4119_v46  ;;  %6162 = vmatpush1.bf16.msra.mxu0 %v7421_v27  ;;  %v4137_v32 = vadd.f32 1.0, %v4121_v47  ;;  %v4343_v8 = vmul.f32 %v4327_v58, %v9185_v51  ;;  %v7465_v58 = vld [vmem:[#allocation6 + $0x3b4] ss:$8 sps:$4 sm:$0xff]   ;;  %vm4070_vm6 = vcmp.lt.f32.partialorder %v9174_v57, 0.0 }
0x1427   :  { %7732 = vrcp.f32 %v4134_v30  ;;  %6163 = vmatprep.subr.bf16.mxu0 %v7429_v42  ;;  %v4362_v6 = vmul.f32 1.442695, %v4342_v9  ;;  %v4366_v24 = vmul.f32 1.442695, %v4344_v62  ;;  %v7451_v42 = vld [vmem:[#allocation6 + $0x390] ss:$8 sps:$4 sm:$0xff]  }
0x1428   :  { %7734 = vrcp.f32 %v4136_v31  ;;  %6123 = vmatpush1.bf16.msra.mxu1 %v7424_v35  ;;  %v4345_v31 = vmul.f32 %v4329_v63, %v4105_v33  ;;  %v7456_v35 = vld [vmem:[#allocation6 + $0x2a4] ss:$8 sps:$4 sm:$0xff]   ;;  %v7454_v33 = vld [vmem:[#allocation6 + $0x2a0] ss:$8 sps:$4 sm:$0xff]   ;;  %vm4072_vm7 = vcmp.lt.f32.partialorder %v9177_v0, 0.0  ;;  %vm4071_vm8 = vcmp.lt.f32.partialorder %v9180_v2, 0.0 }
0x1429   :  { %7736 = vrcp.f32 %v4135_v38  ;;  %6124 = vmatprep.subr.bf16.mxu1 %v7432_v28  ;;  %v7468_v63 = vld [vmem:[#allocation6 + $0x2c4] ss:$8 sps:$4 sm:$0xff]   ;;  %v4088_v0 = vsel %vm4072_vm7, -1.0, %v7863_v60  ;;  %vm4073_vm9 = vcmp.lt.f32.partialorder %v9188_v56, 0.0  ;;  %v7486_v2 = vld [vmem:[#allocation6 + $0x2f4] ss:$8 sps:$4 sm:$0xff]  }
0x142a   :  { %6164 = vmatpush1.bf16.msra.mxu0 %v7427_v13  ;;  %7738 = vrcp.f32 %v4137_v32  ;;  %v4364_v13 = vmul.f32 1.442695, %v4343_v8  ;;  %v4368_v10 = vmul.f32 1.442695, %v4345_v31  ;;  %v7471_v8 = vld [vmem:[#allocation6 + $0x3c4] ss:$8 sps:$4 sm:$0xff]  }
0x142b   :  { %6165 = vmatprep.subr.bf16.mxu0 %v7435_v37  ;;  %7740 = vpow2.f32 %v4362_v6  ;;  %v7459_v37 = vld [vmem:[#allocation6 + $0x3a4] ss:$8 sps:$4 sm:$0xff]   ;;  %v7463_v6 = vld [vmem:[#allocation6 + $0x3b0] ss:$8 sps:$4 sm:$0xff]   ;;  %v7474_v31 = vld [vmem:[#allocation6 + $0x2d4] ss:$8 sps:$4 sm:$0xff]  }
0x142c   :  { %6125 = vmatpush1.bf16.msra.mxu1 %v7430_v29  ;;  %7742 = vpow2.f32 %v4366_v24  ;;  %v4039_v56 = vmul.f32 0.5, %v9169_v43 }
0x142d   :  { %6126 = vmatprep.subr.bf16.mxu1 %v7438_v52  ;;  %7744 = vpow2.f32 %v4364_v13 }
0x142e   :  { %6166 = vmatpush1.bf16.msra.mxu0 %v7433_v36  ;;  %7746 = vpow2.f32 %v4368_v10 }
0x142f   :  { %6167 = vmatprep.subr.bf16.mxu0 %v7441_v34  ;;  %v7462_v34 = vld [vmem:[#allocation6 + $0x2b4] ss:$8 sps:$4 sm:$0xff]  }
0x1430   :  { %6127 = vmatpush1.bf16.msra.mxu1 %v7436_v3 }
0x1431   :  { %v9192_v20 = vpop.eup %7732  ;;  %6128 = vmatprep.subr.bf16.mxu1 %v7444_v54 }
0x1432   :  { %v9195_v25 = vpop.eup %7734  ;;  %v4182_v61 = vmul.f32 1.0614054, %v9192_v20  ;;  %6168 = vmatpush1.bf16.msra.mxu0 %v7439_v40  ;;  %v7457_v40 = vld [vmem:[#allocation6 + $0x3a0] ss:$8 sps:$4 sm:$0xff]  }
0x1433   :  { %v4184_v44 = vmul.f32 1.0614054, %v9195_v25  ;;  %v9199_v4 = vpop.eup %7736  ;;  %6169 = vmatprep.subr.bf16.mxu0 %v7447_v50 }
0x1434   :  { %v4198_v12 = vadd.f32 -1.4531521, %v4182_v61  ;;  %v4183_v46 = vmul.f32 1.0614054, %v9199_v4  ;;  %6129 = vmatpush1.bf16.msra.mxu1 %v7442_v41  ;;  %v9204_v27 = vpop.eup %7738  ;;  %v7460_v41 = vld [vmem:[#allocation6 + $0x2b0] ss:$8 sps:$4 sm:$0xff]  }
0x1435   :  { %v4200_v7 = vadd.f32 -1.4531521, %v4184_v44  ;;  %6130 = vmatprep.subr.bf16.mxu1 %v7450_v1  ;;  %v4185_v51 = vmul.f32 1.0614054, %v9204_v27 }
0x1436   :  { %v4214_v5 = vmul.f32 %v9192_v20, %v4198_v12  ;;  %v4199_v28 = vadd.f32 -1.4531521, %v4183_v46  ;;  %6170 = vmatpush1.bf16.msra.mxu0 %v7445_v45  ;;  %v7466_v46 = vld [vmem:[#allocation6 + $0x2c0] ss:$8 sps:$4 sm:$0xff]  }
0x1437   :  { %v4216_v30 = vmul.f32 %v9195_v25, %v4200_v7  ;;  %6171 = vmatprep.subr.bf16.mxu0 %v7453_v21  ;;  %v4201_v52 = vadd.f32 -1.4531521, %v4185_v51 }
0x1438   :  { %v4230_v38 = vadd.f32 1.4214138, %v4214_v5  ;;  %v4215_v29 = vmul.f32 %v9199_v4, %v4199_v28  ;;  %6131 = vmatpush1.bf16.msra.mxu1 %v7448_v55  ;;  %v7741_v55 = vpop.eup %7740 }
0x1439   :  { %v4232_v47 = vadd.f32 1.4214138, %v4216_v30  ;;  %6132 = vmatprep.subr.bf16.mxu1 %v7456_v35  ;;  %v4217_v54 = vmul.f32 %v9204_v27, %v4201_v52  ;;  %v4086_v52 = vsel %vm4070_vm6, -1.0, %v7863_v60 }
0x143a   :  { %v4246_v32 = vmul.f32 %v9192_v20, %v4230_v38  ;;  %v4231_v3 = vadd.f32 1.4214138, %v4215_v29  ;;  %6172 = vmatpush1.bf16.msra.mxu0 %v7451_v42  ;;  %v7743_v42 = vpop.eup %7742 }
0x143b   :  { %v4248_v36 = vmul.f32 %v9195_v25, %v4232_v47  ;;  %6173 = vmatprep.subr.bf16.mxu0 %v7459_v37  ;;  %v4233_v62 = vadd.f32 1.4214138, %v4217_v54  ;;  %v7477_v47 = vld [vmem:[#allocation6 + $0x3d4] ss:$8 sps:$4 sm:$0xff]   ;;  %v7745_v29 = vpop.eup %7744 }
0x143c   :  { %v4262_v39 = vadd.f32 -0.28449672, %v4246_v32  ;;  %v4247_v61 = vmul.f32 %v9199_v4, %v4231_v3  ;;  %6133 = vmatpush1.bf16.msra.mxu1 %v7454_v33  ;;  %v7747_v3 = vpop.eup %7746 }
0x143d   :  { %v4264_v9 = vadd.f32 -0.28449672, %v4248_v36  ;;  %6134 = vmatprep.subr.bf16.mxu1 %v7462_v34  ;;  %v4249_v45 = vmul.f32 %v9204_v27, %v4233_v62  ;;  %v7480_v36 = vld [vmem:[#allocation6 + $0x2e4] ss:$8 sps:$4 sm:$0xff]  }
0x143e   :  { %v4278_v50 = vmul.f32 %v9192_v20, %v4262_v39  ;;  %v4263_v12 = vadd.f32 -0.28449672, %v4247_v61  ;;  %6174 = vmatpush1.bf16.msra.mxu0 %v7457_v40  ;;  %v7483_v40 = vld [vmem:[#allocation6 + $0x3e4] ss:$8 sps:$4 sm:$0xff]   ;;  %v4087_v61 = vsel %vm4071_vm8, -1.0, %v7863_v60 }
0x143f   :  { %v4280_v44 = vmul.f32 %v9195_v25, %v4264_v9  ;;  %6175 = vmatprep.subr.bf16.mxu0 %v7465_v58  ;;  %v4265_v24 = vadd.f32 -0.28449672, %v4249_v45  ;;  %v7478_v58 = vld [vmem:[#allocation6 + $0x2e0] ss:$8 sps:$4 sm:$0xff]  }
0x1440   :  { %v4294_v1 = vadd.f32 0.2548296, %v4278_v50  ;;  %v4279_v5 = vmul.f32 %v9199_v4, %v4263_v12  ;;  %6135 = vmatpush1.bf16.msra.mxu1 %v7460_v41  ;;  %v7489_v12 = vld [vmem:[#allocation6 + $0x3f4] ss:$8 sps:$4 sm:$0xff]  }
0x1441   :  { %v4296_v7 = vadd.f32 0.2548296, %v4280_v44  ;;  %6136 = vmatprep.subr.bf16.mxu1 %v7468_v63  ;;  %v4281_v28 = vmul.f32 %v9204_v27, %v4265_v24  ;;  %v4038_v44 = vmul.f32 0.5, %v9165_v17  ;;  %v4041_v24 = vmul.f32 0.5, %v9171_v49  ;;  %v7487_v17 = vld [vmem:[#allocation6 + $0x3f0] ss:$8 sps:$4 sm:$0xff]  }
0x1442   :  { %v4310_v21 = vmul.f32 %v9192_v20, %v4294_v1  ;;  %v4295_v38 = vadd.f32 0.2548296, %v4279_v5  ;;  %6176 = vmatpush1.bf16.msra.mxu0 %v7463_v6  ;;  %v7469_v20 = vld [vmem:[#allocation6 + $0x3c0] ss:$8 sps:$4 sm:$0xff]   ;;  %v4089_v1 = vsel %vm4073_vm9, -1.0, %v7863_v60 }
0x1443   :  { %v4312_v30 = vmul.f32 %v9195_v25, %v4296_v7  ;;  %6177 = vmatprep.subr.bf16.mxu0 %v7471_v8  ;;  %v4297_v32 = vadd.f32 0.2548296, %v4281_v28  ;;  %v7472_v25 = vld [vmem:[#allocation6 + $0x2d0] ss:$8 sps:$4 sm:$0xff]   ;;  %v7492_v5 = vld [vmem:[#allocation6 + $0x404] ss:$8 sps:$4 sm:$0xff]  }
0x1444   :  { %v4390_v35 = vmul.f32 %v7741_v55, %v4310_v21  ;;  %v4311_v37 = vmul.f32 %v9199_v4, %v4295_v38  ;;  %6137 = vmatpush1.bf16.msra.mxu1 %v7466_v46  ;;  %v7475_v4 = vld [vmem:[#allocation6 + $0x3d0] ss:$8 sps:$4 sm:$0xff]   ;;  %v4040_v21 = vmul.f32 0.5, %v9167_v59  ;;  %v7498_v28 = vld [vmem:[#allocation6 + $0x414] ss:$8 sps:$4 sm:$0xff]  }
0x1445   :  { %v4392_v51 = vmul.f32 %v7743_v42, %v4312_v30  ;;  %6138 = vmatprep.subr.bf16.mxu1 %v7474_v31  ;;  %v4313_v39 = vmul.f32 %v9204_v27, %v4297_v32  ;;  %v7481_v27 = vld [vmem:[#allocation6 + $0x3e0] ss:$8 sps:$4 sm:$0xff]   ;;  %v7484_v6 = vld [vmem:[#allocation6 + $0x2f0] ss:$8 sps:$4 sm:$0xff]   ;;  %v7495_v31 = vld [vmem:[#allocation6 + $0x504] ss:$8 sps:$4 sm:$0xff]  }
0x1446   :  { %v4406_v13 = vsub.f32 1.0, %v4390_v35  ;;  %v4391_v34 = vmul.f32 %v7745_v29, %v4311_v37  ;;  %6178 = vmatpush1.bf16.msra.mxu0 %v7469_v20  ;;  %v7490_v35 = vld [vmem:[#allocation6 + $0x400] ss:$8 sps:$4 sm:$0xff]   ;;  %v7501_v49 = vld [vmem:[#allocation6 + $0x514] ss:$8 sps:$4 sm:$0xff]  }
0x1447   :  { %v4408_v33 = vsub.f32 1.0, %v4392_v51  ;;  %6179 = vmatprep.subr.bf16.mxu0 %v7477_v47  ;;  %v4393_v57 = vmul.f32 %v7747_v3, %v4313_v39  ;;  %v7493_v20 = vld [vmem:[#allocation6 + $0x500] ss:$8 sps:$4 sm:$0xff]   ;;  %v7496_v47 = vld [vmem:[#allocation6 + $0x410] ss:$8 sps:$4 sm:$0xff]  }
0x1448   :  { %v4422_v10 = vmul.f32 %v4406_v13, %v4086_v52  ;;  %v4407_v9 = vsub.f32 1.0, %v4391_v34  ;;  %6139 = vmatpush1.bf16.msra.mxu1 %v7472_v25  ;;  %v9239_v13 = vld [vmem:[%s9441_s9 + $0x8] sm:$0xff]  ;;  %v7499_v32 = vld [vmem:[#allocation6 + $0x510] ss:$8 sps:$4 sm:$0xff]  }
0x1449   :  { %v4424_v54 = vmul.f32 %v4408_v33, %v4088_v0  ;;  %6140 = vmatprep.subr.bf16.mxu1 %v7480_v36  ;;  %v4409_v41 = vsub.f32 1.0, %v4393_v57  ;;  %v7504_v37 = vld [vmem:[#allocation6 + $0x424] ss:$8 sps:$4 sm:$0xff]   ;;  %v2381_v29 = vrot.slane %v9239_v13, %v8015_v16  ;;  %v7502_v52 = vld [vmem:[#allocation6 + $0x420] ss:$8 sps:$4 sm:$0xff]   ;;  %v2389_v0 = vrot.slane %v9239_v13, %v8012_v15 }
0x144a   :  { %v4438_v50 = vadd.f32 1.0, %v4422_v10  ;;  %v4423_v62 = vmul.f32 %v4407_v9, %v4087_v61  ;;  %6180 = vmatpush1.bf16.msra.mxu0 %v7475_v4  ;;  %v7507_v25 = vld [vmem:[#allocation6 + $0x524] ss:$8 sps:$4 sm:$0xff]   ;;  %v2385_v33 = vrot.slane %v9239_v13, %v8026_v19  ;;  %v2393_v36 = vrot.slane %v9239_v13, %v8023_v18  ;;  %v7510_v10 = vld [vmem:[#allocation6 + $0x434] ss:$8 sps:$4 sm:$0xff]  }
0x144b   :  { %v4440_v63 = vadd.f32 1.0, %v4424_v54  ;;  %6181 = vmatprep.subr.bf16.mxu0 %v7483_v40  ;;  %v4425_v45 = vmul.f32 %v4409_v41, %v4089_v1  ;;  %v7505_v34 = vld [vmem:[#allocation6 + $0x520] ss:$8 sps:$4 sm:$0xff]   ;;  %v7513_v40 = vld [vmem:[#allocation6 + $0x534] ss:$8 sps:$4 sm:$0xff]  }
0x144c   :  { %6141 = vmatpush1.bf16.msra.mxu1 %v7478_v58  ;;  %v4439_v7 = vadd.f32 1.0, %v4423_v62  ;;  %v4454_v8 = vmul.f32 %v4438_v50, %v4038_v44  ;;  %v7508_v50 = vld [vmem:[#allocation6 + $0x430] ss:$8 sps:$4 sm:$0xff]   ;;  %v7516_v41 = vld [vmem:[#allocation6 + $0x444] ss:$8 sps:$4 sm:$0xff]  }
0x144d   :  { %6142 = vmatprep.subr.bf16.mxu1 %v7486_v2  ;;  %v4441_v55 = vadd.f32 1.0, %v4425_v45  ;;  %v4456_v30 = vmul.f32 %v4440_v63, %v4040_v21  ;;  %v7511_v63 = vld [vmem:[#allocation6 + $0x530] ss:$8 sps:$4 sm:$0xff]   ;;  %v7522_v21 = vld [vmem:[#allocation6 + $0x454] ss:$8 sps:$4 sm:$0xff]  }
0x144e   :  { %6182 = vmatpush1.bf16.msra.mxu0 %v7481_v27  ;;  %v4455_v46 = vmul.f32 %v4439_v7, %v4039_v56  ;;  %v4470_v38 = vpack.c.bf16 %v4454_v8, %v4454_v8  ;;  %v7519_v56 = vld [vmem:[#allocation6 + $0x544] ss:$8 sps:$4 sm:$0xff]   ;;  %v7514_v7 = vld [vmem:[#allocation6 + $0x440] ss:$8 sps:$4 sm:$0xff]  }
0x144f   :  { %6183 = vmatprep.subr.bf16.mxu0 %v7489_v12  ;;  %v4457_v42 = vmul.f32 %v4441_v55, %v4041_v24  ;;  %v4472_v51 = vpack.c.bf16 %v4456_v30, %v4456_v30  ;;  %v7525_v30 = vld [vmem:[#allocation6 + $0x554] ss:$8 sps:$4 sm:$0xff]  }
0x1450   :  { %6143 = vmatpush1.bf16.msra.mxu1 %v7484_v6  ;;  %v4471_v43 = vpack.c.bf16 %v4455_v46, %v4455_v46 }
0x1451   :  { %6194 = vmatprep.subr.bf16.mxu1 %v7492_v5  ;;  %v4473_v59 = vpack.c.bf16 %v4457_v42, %v4457_v42  ;;  %v7520_v42 = vld [vmem:[#allocation6 + $0x450] ss:$8 sps:$4 sm:$0xff]  }
0x1452   :  { %6184 = vmatpush1.bf16.msra.mxu0 %v7487_v17  ;;  %6144 = vmatprep.mubr.bf16.mxu1 %v4471_v43  ;;  %v7517_v17 = vld [vmem:[#allocation6 + $0x540] ss:$8 sps:$4 sm:$0xff]  }
0x1453   :  { %6145 = vmatmul.mubr.bf16.vlgmr.msra.gmra.mrb[60].mxu1 %v4470_v38  ;;  %6235 = vmatprep.subr.bf16.mxu0 %v7495_v31  ;;  %v7528_v38 = vld [vmem:[#allocation6 + $0x464] ss:$8 sps:$4 sm:$0xff]  }
0x1454   :  { %6185 = vmatprep.mubr.bf16.mxu0 %v4473_v59  ;;  %6195 = vmatpush1.bf16.msra.mxu1 %v7490_v35  ;;  %v7523_v59 = vld [vmem:[#allocation6 + $0x550] ss:$8 sps:$4 sm:$0xff]  }
0x1455   :  { %6186 = vmatmul.mubr.bf16.vlgmr.msra.gmra.mrb[32].mxu0 %v4472_v51  ;;  %6196 = vmatprep.subr.bf16.mxu1 %v7498_v28  ;;  %v7531_v51 = vld [vmem:[#allocation6 + $0x564] ss:$8 sps:$4 sm:$0xff]  }
0x1456   :  { %6236 = vmatpush1.bf16.msra.mxu0 %v7493_v20 }
0x1457   :  { %6237 = vmatprep.subr.bf16.mxu0 %v7501_v49  ;;  %v7526_v49 = vld [vmem:[#allocation6 + $0x460] ss:$8 sps:$4 sm:$0xff]  }
0x1458   :  { %6197 = vmatpush1.bf16.msra.mxu1 %v7496_v47  ;;  %v7534_v47 = vld [vmem:[#allocation6 + $0x474] ss:$8 sps:$4 sm:$0xff]  }
0x1459   :  { %6198 = vmatprep.subr.bf16.mxu1 %v7504_v37  ;;  %v7529_v37 = vld [vmem:[#allocation6 + $0x560] ss:$8 sps:$4 sm:$0xff]  }
0x145a   :  { %6238 = vmatpush1.bf16.msra.mxu0 %v7499_v32 }
0x145b   :  { %6239 = vmatprep.subr.bf16.mxu0 %v7507_v25  ;;  %v7537_v25 = vld [vmem:[#allocation6 + $0x574] ss:$8 sps:$4 sm:$0xff]  }
0x145c   :  { %v3904_v39 = vpop.f32.mrb[48].mxu1  ;;  %6199 = vmatpush1.bf16.msra.mxu1 %v7502_v52  ;;  %v7532_v52 = vld [vmem:[#allocation6 + $0x470] ss:$8 sps:$4 sm:$0xff]  }
0x145d   :  { %v9249_v4 = vadd.f32 %v3904_v39, %v2381_v29  ;;  %v3945_v3 = vpop.f32.mrb[20].mxu0  ;;  %v3906_v54 = vpop.f32.mrb[49].mxu1  ;;  %6200 = vmatprep.subr.bf16.mxu1 %v7510_v10  ;;  %v7543_v39 = vld [vmem:[#allocation6 + $0x584] ss:$8 sps:$4 sm:$0xff]  }
0x145e   :  { %v9251_v9 = vadd.f32 %v3945_v3, %v2389_v0  ;;  %v9253_v15 = vadd.f32 %v3906_v54, %v2385_v33  ;;  %v3947_v57 = vpop.f32.mrb[21].mxu0  ;;  %v3908_v58 = vpop.f32.mrb[50].mxu1  ;;  %6240 = vmatpush1.bf16.msra.mxu0 %v7505_v34  ;;  %v7540_v0 = vld [vmem:[#allocation6 + $0x484] ss:$8 sps:$4 sm:$0xff]   ;;  %v7535_v33 = vld [vmem:[#allocation6 + $0x570] ss:$8 sps:$4 sm:$0xff]  }
0x145f   :  { %v9256_v18 = vmul.f32 0.70710677, %v9249_v4  ;;  %v9258_v61 = vadd.f32 %v3947_v57, %v2393_v36  ;;  %v3949_v2 = vpop.f32.mrb[22].mxu0  ;;  %v3909_v62 = vpop.f32.mrb[51].mxu1  ;;  %6241 = vmatprep.subr.bf16.mxu0 %v7513_v40  ;;  %v7538_v57 = vld [vmem:[#allocation6 + $0x480] ss:$8 sps:$4 sm:$0xff]  }
0x1460   :  { %v9261_v27 = vmul.f32 0.70710677, %v9251_v9  ;;  %v9264_v44 = vmul.f32 0.70710677, %v9253_v15  ;;  %v3950_v6 = vpop.f32.mrb[23].mxu0  ;;  %6201 = vmatpush1.bf16.msra.mxu1 %v7508_v50 }
0x1461   :  { %v4106_v1 = vand.u32 2147483647, %v9256_v18  ;;  %v9268_v12 = vmul.f32 0.70710677, %v9258_v61  ;;  %6202 = vmatprep.subr.bf16.mxu1 %v7516_v41  ;;  %v7546_v2 = vld [vmem:[#allocation6 + $0x494] ss:$8 sps:$4 sm:$0xff]  }
0x1462   :  { %v4108_v45 = vand.u32 2147483647, %v9261_v27  ;;  %v4107_v24 = vand.u32 2147483647, %v9264_v44  ;;  %6242 = vmatpush1.bf16.msra.mxu0 %v7511_v63  ;;  %v7541_v41 = vld [vmem:[#allocation6 + $0x580] ss:$8 sps:$4 sm:$0xff]  }
0x1463   :  { %v4122_v8 = vmul.f32 0.3275911, %v4106_v1  ;;  %v9273_v55 = vand.u32 2147483647, %v9268_v12  ;;  %6243 = vmatprep.subr.bf16.mxu0 %v7519_v56  ;;  %v4330_v32 = vsub.f32 0.0, %v4106_v1  ;;  %vm4074_vm10 = vcmp.lt.f32.partialorder %v9256_v18, 0.0 }
0x1464   :  { %v4124_v5 = vmul.f32 0.3275911, %v4108_v45  ;;  %v4123_v43 = vmul.f32 0.3275911, %v4107_v24  ;;  %6203 = vmatpush1.bf16.msra.mxu1 %v7514_v7  ;;  %v4332_v29 = vsub.f32 0.0, %v4108_v45  ;;  %v4331_v34 = vsub.f32 0.0, %v4107_v24 }
0x1465   :  { %v4138_v46 = vadd.f32 1.0, %v4122_v8  ;;  %v4125_v35 = vmul.f32 0.3275911, %v9273_v55  ;;  %6204 = vmatprep.subr.bf16.mxu1 %v7522_v21  ;;  %v4346_v10 = vmul.f32 %v4330_v32, %v4106_v1  ;;  %v4333_v50 = vsub.f32 0.0, %v9273_v55  ;;  %v7549_v7 = vld [vmem:[#allocation6 + $0x594] ss:$8 sps:$4 sm:$0xff]  }
0x1466   :  { %v4140_v31 = vadd.f32 1.0, %v4124_v5  ;;  %v4139_v28 = vadd.f32 1.0, %v4123_v43  ;;  %6244 = vmatpush1.bf16.msra.mxu0 %v7517_v17  ;;  %v4348_v40 = vmul.f32 %v4332_v29, %v4108_v45  ;;  %v4347_v6 = vmul.f32 %v4331_v34, %v4107_v24  ;;  %v7544_v5 = vld [vmem:[#allocation6 + $0x490] ss:$8 sps:$4 sm:$0xff]   ;;  %v7552_v43 = vld [vmem:[#allocation6 + $0x4a4] ss:$8 sps:$4 sm:$0xff]  }
0x1467   :  { %7748 = vrcp.f32 %v4138_v46  ;;  %v4141_v20 = vadd.f32 1.0, %v4125_v35  ;;  %6245 = vmatprep.subr.bf16.mxu0 %v7525_v30  ;;  %v4370_v1 = vmul.f32 1.442695, %v4346_v10  ;;  %v4349_v30 = vmul.f32 %v4333_v50, %v9273_v55  ;;  %v7550_v55 = vld [vmem:[#allocation6 + $0x4a0] ss:$8 sps:$4 sm:$0xff]  }
0x1468   :  { %7750 = vrcp.f32 %v4140_v31  ;;  %6205 = vmatpush1.bf16.msra.mxu1 %v7520_v42  ;;  %v4374_v8 = vmul.f32 1.442695, %v4348_v40  ;;  %v7547_v31 = vld [vmem:[#allocation6 + $0x590] ss:$8 sps:$4 sm:$0xff]   ;;  %v7558_v32 = vld [vmem:[#allocation6 + $0x4b4] ss:$8 sps:$4 sm:$0xff]  }
0x1469   :  { %7752 = vrcp.f32 %v4139_v28  ;;  %6206 = vmatprep.subr.bf16.mxu1 %v7528_v38  ;;  %v4372_v28 = vmul.f32 1.442695, %v4347_v6  ;;  %v7561_v10 = vld [vmem:[#allocation6 + $0x5b4] ss:$8 sps:$4 sm:$0xff]   ;;  %v7556_v40 = vld [vmem:[#allocation6 + $0x4b0] ss:$8 sps:$4 sm:$0xff]  }
0x146a   :  { %6246 = vmatpush1.bf16.msra.mxu0 %v7523_v59  ;;  %7754 = vrcp.f32 %v4141_v20  ;;  %v7555_v59 = vld [vmem:[#allocation6 + $0x5a4] ss:$8 sps:$4 sm:$0xff]   ;;  %vm4076_vm11 = vcmp.lt.f32.partialorder %v9261_v27, 0.0  ;;  %vm4075_vm12 = vcmp.lt.f32.partialorder %v9264_v44, 0.0  ;;  %vm4077_vm13 = vcmp.lt.f32.partialorder %v9268_v12, 0.0 }
0x146b   :  { %6247 = vmatprep.subr.bf16.mxu0 %v7531_v51  ;;  %7756 = vpow2.f32 %v4370_v1  ;;  %v7579_v18 = vld [vmem:[#allocation6 + $0x5e4] ss:$8 sps:$4 sm:$0xff]   ;;  %v4091_v27 = vsel %vm4075_vm12, -1.0, %v7863_v60  ;;  %v7585_v12 = vld [vmem:[#allocation6 + $0x5f4] ss:$8 sps:$4 sm:$0xff]  }
0x146c   :  { %6207 = vmatpush1.bf16.msra.mxu1 %v7526_v49  ;;  %7758 = vpow2.f32 %v4374_v8  ;;  %v7562_v8 = vld [vmem:[#allocation6 + $0x4c0] ss:$8 sps:$4 sm:$0xff]  }
0x146d   :  { %6208 = vmatprep.subr.bf16.mxu1 %v7534_v47  ;;  %7760 = vpow2.f32 %v4372_v28 }
0x146e   :  { %6248 = vmatpush1.bf16.msra.mxu0 %v7529_v37  ;;  %v4376_v37 = vmul.f32 1.442695, %v4349_v30 }
0x146f   :  { %6249 = vmatprep.subr.bf16.mxu0 %v7537_v25 }
0x1470   :  { %6209 = vmatpush1.bf16.msra.mxu1 %v7532_v52  ;;  %7762 = vpow2.f32 %v4376_v37  ;;  %v4092_v37 = vsel %vm4076_vm11, -1.0, %v7863_v60 }
0x1471   :  { %v9276_v36 = vpop.eup %7748  ;;  %6210 = vmatprep.subr.bf16.mxu1 %v7540_v0  ;;  %v7553_v0 = vld [vmem:[#allocation6 + $0x5a0] ss:$8 sps:$4 sm:$0xff]  }
0x1472   :  { %v9278_v3 = vpop.eup %7750  ;;  %v4186_v54 = vmul.f32 1.0614054, %v9276_v36  ;;  %6250 = vmatpush1.bf16.msra.mxu0 %v7535_v33 }
0x1473   :  { %v4188_v58 = vmul.f32 1.0614054, %v9278_v3  ;;  %v9283_v63 = vpop.eup %7752  ;;  %6251 = vmatprep.subr.bf16.mxu0 %v7543_v39 }
0x1474   :  { %v4202_v62 = vadd.f32 -1.4531521, %v4186_v54  ;;  %v4187_v21 = vmul.f32 1.0614054, %v9283_v63  ;;  %6211 = vmatpush1.bf16.msra.mxu1 %v7538_v57  ;;  %v9287_v17 = vpop.eup %7754 }
0x1475   :  { %v4204_v56 = vadd.f32 -1.4531521, %v4188_v58  ;;  %6212 = vmatprep.subr.bf16.mxu1 %v7546_v2  ;;  %v4189_v35 = vmul.f32 1.0614054, %v9287_v17  ;;  %v7564_v58 = vld [vmem:[#allocation6 + $0x4c4] ss:$8 sps:$4 sm:$0xff]  }
0x1476   :  { %v4218_v45 = vmul.f32 %v9276_v36, %v4202_v62  ;;  %v4203_v24 = vadd.f32 -1.4531521, %v4187_v21  ;;  %6252 = vmatpush1.bf16.msra.mxu0 %v7541_v41  ;;  %v7559_v41 = vld [vmem:[#allocation6 + $0x5b0] ss:$8 sps:$4 sm:$0xff]   ;;  %v7757_v21 = vpop.eup %7756 }
0x1477   :  { %v4220_v46 = vmul.f32 %v9278_v3, %v4204_v56  ;;  %6253 = vmatprep.subr.bf16.mxu0 %v7549_v7  ;;  %v4205_v49 = vadd.f32 -1.4531521, %v4189_v35  ;;  %v7567_v56 = vld [vmem:[#allocation6 + $0x5c4] ss:$8 sps:$4 sm:$0xff]   ;;  %v7759_v30 = vpop.eup %7758  ;;  %v7573_v35 = vld [vmem:[#allocation6 + $0x5d4] ss:$8 sps:$4 sm:$0xff]  }
0x1478   :  { %v4234_v42 = vadd.f32 1.4214138, %v4218_v45  ;;  %v4219_v51 = vmul.f32 %v9283_v63, %v4203_v24  ;;  %6213 = vmatpush1.bf16.msra.mxu1 %v7544_v5  ;;  %v7565_v24 = vld [vmem:[#allocation6 + $0x5c0] ss:$8 sps:$4 sm:$0xff]  }
0x1479   :  { %v4236_v38 = vadd.f32 1.4214138, %v4220_v46  ;;  %6214 = vmatprep.subr.bf16.mxu1 %v7552_v43  ;;  %v4221_v52 = vmul.f32 %v9287_v17, %v4205_v49  ;;  %v7570_v46 = vld [vmem:[#allocation6 + $0x4d4] ss:$8 sps:$4 sm:$0xff]  }
0x147a   :  { %v4250_v20 = vmul.f32 %v9276_v36, %v4234_v42  ;;  %v4235_v29 = vadd.f32 1.4214138, %v4219_v51  ;;  %6254 = vmatpush1.bf16.msra.mxu0 %v7547_v31  ;;  %v4090_v51 = vsel %vm4074_vm10, -1.0, %v7863_v60 }
0x147b   :  { %v4252_v47 = vmul.f32 %v9278_v3, %v4236_v38  ;;  %6255 = vmatprep.subr.bf16.mxu0 %v7555_v59  ;;  %v4237_v54 = vadd.f32 1.4214138, %v4221_v52  ;;  %v7568_v59 = vld [vmem:[#allocation6 + $0x4d0] ss:$8 sps:$4 sm:$0xff]  }
0x147c   :  { %v4266_v25 = vadd.f32 -0.28449672, %v4250_v20  ;;  %v4251_v39 = vmul.f32 %v9283_v63, %v4235_v29  ;;  %6215 = vmatpush1.bf16.msra.mxu1 %v7550_v55  ;;  %v7761_v20 = vpop.eup %7760  ;;  %v7576_v55 = vld [vmem:[#allocation6 + $0x4e4] ss:$8 sps:$4 sm:$0xff]  }
0x147d   :  { %v4268_v33 = vadd.f32 -0.28449672, %v4252_v47  ;;  %6216 = vmatprep.subr.bf16.mxu1 %v7558_v32  ;;  %v4253_v62 = vmul.f32 %v9287_v17, %v4237_v54  ;;  %v7763_v29 = vpop.eup %7762 }
0x147e   :  { %v4282_v34 = vmul.f32 %v9276_v36, %v4266_v25  ;;  %v4267_v2 = vadd.f32 -0.28449672, %v4251_v39  ;;  %6256 = vmatpush1.bf16.msra.mxu0 %v7553_v0  ;;  %v7571_v25 = vld [vmem:[#allocation6 + $0x5d0] ss:$8 sps:$4 sm:$0xff]   ;;  %v7582_v39 = vld [vmem:[#allocation6 + $0x4f4] ss:$8 sps:$4 sm:$0xff]  }
0x147f   :  { %v4284_v57 = vmul.f32 %v9278_v3, %v4268_v33  ;;  %6257 = vmatprep.subr.bf16.mxu0 %v7561_v10  ;;  %v4269_v45 = vadd.f32 -0.28449672, %v4253_v62  ;;  %v7574_v10 = vld [vmem:[#allocation6 + $0x4e0] ss:$8 sps:$4 sm:$0xff]  }
0x1480   :  { %v4298_v50 = vadd.f32 0.2548296, %v4282_v34  ;;  %v4283_v7 = vmul.f32 %v9283_v63, %v4267_v2  ;;  %6217 = vmatpush1.bf16.msra.mxu1 %v7556_v40  ;;  %v7577_v40 = vld [vmem:[#allocation6 + $0x5e0] ss:$8 sps:$4 sm:$0xff]   ;;  %v4043_v2 = vmul.f32 0.5, %v9253_v15 }
0x1481   :  { %v4300_v1 = vadd.f32 0.2548296, %v4284_v57  ;;  %6218 = vmatprep.subr.bf16.mxu1 %v7564_v58  ;;  %v4285_v42 = vmul.f32 %v9287_v17, %v4269_v45  ;;  %v4042_v57 = vmul.f32 0.5, %v9249_v4  ;;  %v7583_v4 = vld [vmem:[#allocation6 + $0x5f0] ss:$8 sps:$4 sm:$0xff]  }
0x1482   :  { %v4314_v6 = vmul.f32 %v9276_v36, %v4298_v50  ;;  %v4299_v43 = vadd.f32 0.2548296, %v4283_v7  ;;  %6258 = vmatpush1.bf16.msra.mxu0 %v7559_v41  ;;  %v4093_v50 = vsel %vm4077_vm13, -1.0, %v7863_v60  ;;  %v7580_v41 = vld [vmem:[#allocation6 + $0x4f0] ss:$8 sps:$4 sm:$0xff]   ;;  %v4045_v7 = vmul.f32 0.5, %v9258_v61 }
0x1483   :  { %v4316_v5 = vmul.f32 %v9278_v3, %v4300_v1  ;;  %6259 = vmatprep.subr.bf16.mxu0 %v7567_v56  ;;  %v4301_v3 = vadd.f32 0.2548296, %v4285_v42  ;;  %v4044_v56 = vmul.f32 0.5, %v9251_v9  ;;  %v7589_v42 = vld [vmem:[#allocation6 + $0x700] ss:$8 sps:$4 sm:$0xff]  }
0x1484   :  { %v4394_v31 = vmul.f32 %v7757_v21, %v4314_v6  ;;  %v4315_v28 = vmul.f32 %v9283_v63, %v4299_v43  ;;  %6219 = vmatpush1.bf16.msra.mxu1 %v7562_v8  ;;  %v7588_v6 = vld [vmem:[#allocation6 + $0x604] ss:$8 sps:$4 sm:$0xff]   ;;  %v7594_v43 = vld [vmem:[#allocation6 + $0x614] ss:$8 sps:$4 sm:$0xff]  }
0x1485   :  { %v4396_v36 = vmul.f32 %v7759_v30, %v4316_v5  ;;  %6220 = vmatprep.subr.bf16.mxu1 %v7570_v46  ;;  %v4317_v63 = vmul.f32 %v9287_v17, %v4301_v3  ;;  %v7591_v5 = vld [vmem:[#allocation6 + $0x704] ss:$8 sps:$4 sm:$0xff]   ;;  %v7586_v30 = vld [vmem:[#allocation6 + $0x600] ss:$8 sps:$4 sm:$0xff]   ;;  %v7597_v61 = vld [vmem:[#allocation6 + $0x714] ss:$8 sps:$4 sm:$0xff]   ;;  %v2397_v3 = vrot.slane %v9239_v13, %v8094_v22 }
0x1486   :  { %v4410_v38 = vsub.f32 1.0, %v4394_v31  ;;  %v4395_v32 = vmul.f32 %v7761_v20, %v4315_v28  ;;  %6260 = vmatpush1.bf16.msra.mxu0 %v7565_v24  ;;  %v7603_v28 = vld [vmem:[#allocation6 + $0x724] ss:$8 sps:$4 sm:$0xff]   ;;  %v2405_v20 = vrot.slane %v9239_v13, %v2372_v53 }
0x1487   :  { %v4412_v49 = vsub.f32 1.0, %v4396_v36  ;;  %6261 = vmatprep.subr.bf16.mxu0 %v7573_v35  ;;  %v4397_v33 = vmul.f32 %v7763_v29, %v4317_v63  ;;  %v7592_v36 = vld [vmem:[#allocation6 + $0x610] ss:$8 sps:$4 sm:$0xff]   ;;  %v7600_v35 = vld [vmem:[#allocation6 + $0x624] ss:$8 sps:$4 sm:$0xff]  }
0x1488   :  { %v4426_v47 = vmul.f32 %v4410_v38, %v4090_v51  ;;  %v4411_v0 = vsub.f32 1.0, %v4395_v32  ;;  %6221 = vmatpush1.bf16.msra.mxu1 %v7568_v59  ;;  %v7595_v38 = vld [vmem:[#allocation6 + $0x710] ss:$8 sps:$4 sm:$0xff]   ;;  %v7598_v59 = vld [vmem:[#allocation6 + $0x620] ss:$8 sps:$4 sm:$0xff]   ;;  %v2401_v51 = vrot.slane %v9239_v13, %v8097_v23 }
0x1489   :  { %v4428_v52 = vmul.f32 %v4412_v49, %v4092_v37  ;;  %6222 = vmatprep.subr.bf16.mxu1 %v7576_v55  ;;  %v4413_v54 = vsub.f32 1.0, %v4397_v33  ;;  %v2409_v49 = vrot.slane %v9239_v13, %v2376_v48  ;;  %v7606_v55 = vld [vmem:[#allocation6 + $0x634] ss:$8 sps:$4 sm:$0xff]   ;;  %v7612_v33 = vld [vmem:[#allocation6 + $0x644] ss:$8 sps:$4 sm:$0xff]  }
0x148a   :  { %v4442_v34 = vadd.f32 1.0, %v4426_v47  ;;  %v4427_v17 = vmul.f32 %v4411_v0, %v4091_v27  ;;  %6262 = vmatpush1.bf16.msra.mxu0 %v7571_v25  ;;  %v7601_v47 = vld [vmem:[#allocation6 + $0x720] ss:$8 sps:$4 sm:$0xff]   ;;  %v7609_v25 = vld [vmem:[#allocation6 + $0x734] ss:$8 sps:$4 sm:$0xff]  }
0x148b   :  { %v4444_v58 = vadd.f32 1.0, %v4428_v52  ;;  %6263 = vmatprep.subr.bf16.mxu0 %v7579_v18  ;;  %v4429_v62 = vmul.f32 %v4413_v54, %v4093_v50  ;;  %v7607_v27 = vld [vmem:[#allocation6 + $0x730] ss:$8 sps:$4 sm:$0xff]   ;;  %v7615_v54 = vld [vmem:[#allocation6 + $0x744] ss:$8 sps:$4 sm:$0xff]  }
0x148c   :  { %6223 = vmatpush1.bf16.msra.mxu1 %v7574_v10  ;;  %v4443_v44 = vadd.f32 1.0, %v4427_v17  ;;  %v4458_v1 = vmul.f32 %v4442_v34, %v4042_v57 }
0x148d   :  { %6224 = vmatprep.subr.bf16.mxu1 %v7582_v39  ;;  %v4445_v8 = vadd.f32 1.0, %v4429_v62  ;;  %v4460_v21 = vmul.f32 %v4444_v58, %v4044_v56  ;;  %v7610_v58 = vld [vmem:[#allocation6 + $0x640] ss:$8 sps:$4 sm:$0xff]   ;;  %v7621_v56 = vld [vmem:[#allocation6 + $0x754] ss:$8 sps:$4 sm:$0xff]  }
0x148e   :  { %6264 = vmatpush1.bf16.msra.mxu0 %v7577_v40  ;;  %v4459_v45 = vmul.f32 %v4443_v44, %v4043_v2  ;;  %v4474_v31 = vpack.c.bf16 %v4458_v1, %v4458_v1 }
0x148f   :  { %6265 = vmatprep.subr.bf16.mxu0 %v7585_v12  ;;  %v4461_v46 = vmul.f32 %v4445_v8, %v4045_v7  ;;  %v4476_v24 = vpack.c.bf16 %v4460_v21, %v4460_v21  ;;  %v7618_v12 = vld [vmem:[#allocation6 + $0x654] ss:$8 sps:$4 sm:$0xff]   ;;  %v7624_v8 = vld [vmem:[#allocation6 + $0x664] ss:$8 sps:$4 sm:$0xff]  }
0x1490   :  { %6225 = vmatpush1.bf16.msra.mxu1 %v7580_v41  ;;  %v4475_v15 = vpack.c.bf16 %v4459_v45, %v4459_v45  ;;  %v7613_v41 = vld [vmem:[#allocation6 + $0x740] ss:$8 sps:$4 sm:$0xff]  }
0x1491   :  { %6276 = vmatprep.subr.bf16.mxu1 %v7588_v6  ;;  %v4477_v9 = vpack.c.bf16 %v4461_v46, %v4461_v46  ;;  %v7627_v46 = vld [vmem:[#allocation6 + $0x764] ss:$8 sps:$4 sm:$0xff]  }
0x1492   :  { %6266 = vmatpush1.bf16.msra.mxu0 %v7583_v4  ;;  %6226 = vmatprep.mubr.bf16.mxu1 %v4475_v15  ;;  %v7616_v4 = vld [vmem:[#allocation6 + $0x650] ss:$8 sps:$4 sm:$0xff]  }
0x1493   :  { %6227 = vmatmul.mubr.bf16.vlgmr.msra.gmra.mrb[64].mxu1 %v4474_v31  ;;  %6317 = vmatprep.subr.bf16.mxu0 %v7591_v5  ;;  %v7619_v5 = vld [vmem:[#allocation6 + $0x750] ss:$8 sps:$4 sm:$0xff]   ;;  %v7630_v31 = vld [vmem:[#allocation6 + $0x674] ss:$8 sps:$4 sm:$0xff]  }
0x1494   :  { %6267 = vmatprep.mubr.bf16.mxu0 %v4477_v9  ;;  %6277 = vmatpush1.bf16.msra.mxu1 %v7586_v30  ;;  %v7622_v30 = vld [vmem:[#allocation6 + $0x660] ss:$8 sps:$4 sm:$0xff]  }
0x1495   :  { %6268 = vmatmul.mubr.bf16.vlgmr.msra.gmra.mrb[36].mxu0 %v4476_v24  ;;  %6278 = vmatprep.subr.bf16.mxu1 %v7594_v43  ;;  %v7625_v43 = vld [vmem:[#allocation6 + $0x760] ss:$8 sps:$4 sm:$0xff]  }
0x1496   :  { %6318 = vmatpush1.bf16.msra.mxu0 %v7589_v42  ;;  %v7633_v42 = vld [vmem:[#allocation6 + $0x774] ss:$8 sps:$4 sm:$0xff]  }
0x1497   :  { %6319 = vmatprep.subr.bf16.mxu0 %v7597_v61  ;;  %v7628_v61 = vld [vmem:[#allocation6 + $0x670] ss:$8 sps:$4 sm:$0xff]  }
0x1498   :  { %6279 = vmatpush1.bf16.msra.mxu1 %v7592_v36  ;;  %v7636_v36 = vld [vmem:[#allocation6 + $0x684] ss:$8 sps:$4 sm:$0xff]  }
0x1499   :  { %6280 = vmatprep.subr.bf16.mxu1 %v7600_v35  ;;  %v7631_v35 = vld [vmem:[#allocation6 + $0x770] ss:$8 sps:$4 sm:$0xff]  }
0x149a   :  { %6320 = vmatpush1.bf16.msra.mxu0 %v7595_v38 }
0x149b   :  { %6321 = vmatprep.subr.bf16.mxu0 %v7603_v28 }
0x149c   :  { %v3986_v37 = vpop.f32.mrb[52].mxu1  ;;  %6281 = vmatpush1.bf16.msra.mxu1 %v7598_v59  ;;  %v7639_v59 = vld [vmem:[#allocation6 + $0x784] ss:$8 sps:$4 sm:$0xff]  }
0x149d   :  { %v9334_v22 = vadd.f32 %v3986_v37, %v2397_v3  ;;  %v4027_v32 = vpop.f32.mrb[24].mxu0  ;;  %v3988_v63 = vpop.f32.mrb[53].mxu1  ;;  %6282 = vmatprep.subr.bf16.mxu1 %v7606_v55  ;;  %v7634_v55 = vld [vmem:[#allocation6 + $0x680] ss:$8 sps:$4 sm:$0xff]  }
0x149e   :  { %v9336_v53 = vadd.f32 %v4027_v32, %v2405_v20  ;;  %v9338_v29 = vadd.f32 %v3988_v63, %v2401_v51  ;;  %v4029_v23 = vpop.f32.mrb[25].mxu0  ;;  %v3990_v52 = vpop.f32.mrb[54].mxu1  ;;  %6322 = vmatpush1.bf16.msra.mxu0 %v7601_v47  ;;  %v7642_v32 = vld [vmem:[#allocation6 + $0x694] ss:$8 sps:$4 sm:$0xff]  }
0x149f   :  { %v9341_v48 = vmul.f32 0.70710677, %v9334_v22  ;;  %v9343_v13 = vadd.f32 %v4029_v23, %v2409_v49  ;;  %v4031_v18 = vpop.f32.mrb[26].mxu0  ;;  %v3991_v0 = vpop.f32.mrb[55].mxu1  ;;  %6323 = vmatprep.subr.bf16.mxu0 %v7609_v25  ;;  %v7637_v25 = vld [vmem:[#allocation6 + $0x780] ss:$8 sps:$4 sm:$0xff]  }
0x14a0   :  { %v9346_v10 = vmul.f32 0.70710677, %v9336_v53  ;;  %v9349_v34 = vmul.f32 0.70710677, %v9338_v29  ;;  %v4032_v57 = vpop.f32.mrb[27].mxu0  ;;  %6283 = vmatpush1.bf16.msra.mxu1 %v7604_v14 }
0x14a1   :  { %v4110_v39 = vand.u32 2147483647, %v9341_v48  ;;  %v9353_v17 = vmul.f32 0.70710677, %v9343_v13  ;;  %6284 = vmatprep.subr.bf16.mxu1 %v7612_v33  ;;  %v7645_v0 = vld [vmem:[#allocation6 + $0x794] ss:$8 sps:$4 sm:$0xff]  }
0x14a2   :  { %v4112_v40 = vand.u32 2147483647, %v9346_v10  ;;  %v4111_v62 = vand.u32 2147483647, %v9349_v34  ;;  %6324 = vmatpush1.bf16.msra.mxu0 %v7607_v27  ;;  %vm4078_vm14 = vcmp.lt.f32.partialorder %v9341_v48, 0.0  ;;  %vm4080_vm15 = vcmp.lt.f32.partialorder %v9346_v10, 0.0 }
0x14a3   :  { %v4126_v50 = vmul.f32 0.3275911, %v4110_v39  ;;  %v9358_v1 = vand.u32 2147483647, %v9353_v17  ;;  %6325 = vmatprep.subr.bf16.mxu0 %v7615_v54  ;;  %v4334_v9 = vsub.f32 0.0, %v4110_v39  ;;  %vm4079_vm0 = vcmp.lt.f32.partialorder %v9349_v34, 0.0 }
0x14a4   :  { %v4128_v2 = vmul.f32 0.3275911, %v4112_v40  ;;  %v4127_v7 = vmul.f32 0.3275911, %v4111_v62  ;;  %6285 = vmatpush1.bf16.msra.mxu1 %v7610_v58  ;;  %v4336_v24 = vsub.f32 0.0, %v4112_v40  ;;  %v4335_v3 = vsub.f32 0.0, %v4111_v62 }
0x14a5   :  { %v4142_v44 = vadd.f32 1.0, %v4126_v50  ;;  %v4129_v45 = vmul.f32 0.3275911, %v9358_v1  ;;  %6286 = vmatprep.subr.bf16.mxu1 %v7618_v12  ;;  %v4350_v28 = vmul.f32 %v4334_v9, %v4110_v39  ;;  %v4337_v37 = vsub.f32 0.0, %v9358_v1  ;;  %v7640_v54 = vld [vmem:[#allocation6 + $0x690] ss:$8 sps:$4 sm:$0xff]  }
0x14a6   :  { %v4144_v6 = vadd.f32 1.0, %v4128_v2  ;;  %v4143_v21 = vadd.f32 1.0, %v4127_v7  ;;  %6326 = vmatpush1.bf16.msra.mxu0 %v7613_v41  ;;  %v4352_v49 = vmul.f32 %v4336_v24, %v4112_v40  ;;  %v4351_v18 = vmul.f32 %v4335_v3, %v4111_v62  ;;  %v7643_v50 = vld [vmem:[#allocation6 + $0x790] ss:$8 sps:$4 sm:$0xff]   ;;  %v7648_v12 = vld [vmem:[#allocation6 + $0x6a4] ss:$8 sps:$4 sm:$0xff]  }
0x14a7   :  { %7764 = vrcp.f32 %v4142_v44  ;;  %v4145_v15 = vadd.f32 1.0, %v4129_v45  ;;  %6327 = vmatprep.subr.bf16.mxu0 %v7621_v56  ;;  %v4378_v52 = vmul.f32 1.442695, %v4350_v28  ;;  %v4353_v58 = vmul.f32 %v4337_v37, %v9358_v1  ;;  %v7646_v1 = vld [vmem:[#allocation6 + $0x6a0] ss:$8 sps:$4 sm:$0xff]  }
0x14a8   :  { %7766 = vrcp.f32 %v4144_v6  ;;  %6287 = vmatpush1.bf16.msra.mxu1 %v7616_v4  ;;  %v4382_v27 = vmul.f32 1.442695, %v4352_v49  ;;  %v4380_v56 = vmul.f32 1.442695, %v4351_v18  ;;  %v7651_v6 = vld [vmem:[#allocation6 + $0x7a4] ss:$8 sps:$4 sm:$0xff]  }
0x14a9   :  { %7768 = vrcp.f32 %v4143_v21  ;;  %6288 = vmatprep.subr.bf16.mxu1 %v7624_v8  ;;  %v4384_v21 = vmul.f32 1.442695, %v4353_v58  ;;  %v7657_v9 = vld [vmem:[#allocation6 + $0x7b4] ss:$8 sps:$4 sm:$0xff]   ;;  %v7660_v28 = vld [vmem:[#allocation6 + $0x6c4] ss:$8 sps:$4 sm:$0xff]  }
0x14aa   :  { %6328 = vmatpush1.bf16.msra.mxu0 %v7619_v5  ;;  %7770 = vrcp.f32 %v4145_v15  ;;  %v7654_v5 = vld [vmem:[#allocation6 + $0x6b4] ss:$8 sps:$4 sm:$0xff]   ;;  %v7655_v49 = vld [vmem:[#allocation6 + $0x7b0] ss:$8 sps:$4 sm:$0xff]   ;;  %v7675_v48 = vld [vmem:[#allocation6 + $0x7e4] ss:$8 sps:$4 sm:$0xff]  }
0x14ab   :  { %6329 = vmatprep.subr.bf16.mxu0 %v7627_v46  ;;  %7772 = vpow2.f32 %v4378_v52  ;;  %v7666_v18 = vld [vmem:[#allocation6 + $0x6d4] ss:$8 sps:$4 sm:$0xff]   ;;  %vm4081_vm1 = vcmp.lt.f32.partialorder %v9353_v17, 0.0  ;;  %v4095_v10 = vsel %vm4079_vm0, -1.0, %v7863_v60 }
0x14ac   :  { %6289 = vmatpush1.bf16.msra.mxu1 %v7622_v30  ;;  %7774 = vpow2.f32 %v4382_v27  ;;  %v7681_v17 = vld [vmem:[#allocation6 + $0x7f4] ss:$8 sps:$4 sm:$0xff]  }
0x14ad   :  { %6290 = vmatprep.subr.bf16.mxu1 %v7630_v31  ;;  %v7649_v31 = vld [vmem:[#allocation6 + $0x7a0] ss:$8 sps:$4 sm:$0xff]   ;;  %7776 = vpow2.f32 %v4380_v56 }
0x14ae   :  { %6330 = vmatpush1.bf16.msra.mxu0 %v7625_v43  ;;  %7778 = vpow2.f32 %v4384_v21 }
0x14af   :  { %6331 = vmatprep.subr.bf16.mxu0 %v7633_v42 }
0x14b0   :  { %6291 = vmatpush1.bf16.msra.mxu1 %v7628_v61 }
0x14b1   :  { %v9361_v38 = vpop.eup %7764  ;;  %6292 = vmatprep.subr.bf16.mxu1 %v7636_v36  ;;  %v7652_v36 = vld [vmem:[#allocation6 + $0x6b0] ss:$8 sps:$4 sm:$0xff]  }
0x14b2   :  { %v9363_v20 = vpop.eup %7766  ;;  %v4190_v51 = vmul.f32 1.0614054, %v9361_v38  ;;  %6332 = vmatpush1.bf16.msra.mxu0 %v7631_v35 }
0x14b3   :  { %v4192_v47 = vmul.f32 1.0614054, %v9363_v20  ;;  %v9368_v23 = vpop.eup %7768  ;;  %6333 = vmatprep.subr.bf16.mxu0 %v7639_v59 }
0x14b4   :  { %v4206_v63 = vadd.f32 -1.4531521, %v4190_v51  ;;  %v4191_v39 = vmul.f32 1.0614054, %v9368_v23  ;;  %6293 = vmatpush1.bf16.msra.mxu1 %v7634_v55  ;;  %v9372_v40 = vpop.eup %7770 }
0x14b5   :  { %v4208_v14 = vadd.f32 -1.4531521, %v4192_v47  ;;  %6294 = vmatprep.subr.bf16.mxu1 %v7642_v32  ;;  %v4193_v41 = vmul.f32 1.0614054, %v9372_v40  ;;  %v7663_v47 = vld [vmem:[#allocation6 + $0x7c4] ss:$8 sps:$4 sm:$0xff]   ;;  %v7773_v52 = vpop.eup %7772 }
0x14b6   :  { %v4222_v33 = vmul.f32 %v9361_v38, %v4206_v63  ;;  %v4207_v62 = vadd.f32 -1.4531521, %v4191_v39  ;;  %6334 = vmatpush1.bf16.msra.mxu0 %v7637_v25  ;;  %v7658_v25 = vld [vmem:[#allocation6 + $0x6c0] ss:$8 sps:$4 sm:$0xff]  }
0x14b7   :  { %v4224_v57 = vmul.f32 %v9363_v20, %v4208_v14  ;;  %6335 = vmatprep.subr.bf16.mxu0 %v7645_v0  ;;  %v4209_v45 = vadd.f32 -1.4531521, %v4193_v41  ;;  %v7775_v0 = vpop.eup %7774 }
0x14b8   :  { %v4238_v2 = vadd.f32 1.4214138, %v4222_v33  ;;  %v4223_v4 = vmul.f32 %v9368_v23, %v4207_v62  ;;  %6295 = vmatpush1.bf16.msra.mxu1 %v7640_v54  ;;  %v7661_v54 = vld [vmem:[#allocation6 + $0x7c0] ss:$8 sps:$4 sm:$0xff]   ;;  %v4094_v62 = vsel %vm4078_vm14, -1.0, %v7863_v60 }
0x14b9   :  { %v4240_v44 = vadd.f32 1.4214138, %v4224_v57  ;;  %6296 = vmatprep.subr.bf16.mxu1 %v7648_v12  ;;  %v4225_v30 = vmul.f32 %v9372_v40, %v4209_v45  ;;  %v7669_v57 = vld [vmem:[#allocation6 + $0x7d4] ss:$8 sps:$4 sm:$0xff]   ;;  %v7664_v12 = vld [vmem:[#allocation6 + $0x6d0] ss:$8 sps:$4 sm:$0xff]  }
0x14ba   :  { %v4254_v7 = vmul.f32 %v9361_v38, %v4238_v2  ;;  %v4239_v46 = vadd.f32 1.4214138, %v4223_v4  ;;  %6336 = vmatpush1.bf16.msra.mxu0 %v7643_v50  ;;  %v7777_v2 = vpop.eup %7776  ;;  %v7667_v4 = vld [vmem:[#allocation6 + $0x7d0] ss:$8 sps:$4 sm:$0xff]  }
0x14bb   :  { %v4256_v8 = vmul.f32 %v9363_v20, %v4240_v44  ;;  %6337 = vmatprep.subr.bf16.mxu0 %v7651_v6  ;;  %v4241_v61 = vadd.f32 1.4214138, %v4225_v30  ;;  %v7672_v44 = vld [vmem:[#allocation6 + $0x6e4] ss:$8 sps:$4 sm:$0xff]   ;;  %v4096_v6 = vsel %vm4080_vm15, -1.0, %v7863_v60  ;;  %v7779_v45 = vpop.eup %7778 }
0x14bc   :  { %v4270_v15 = vadd.f32 -0.28449672, %v4254_v7  ;;  %v4255_v24 = vmul.f32 %v9368_v23, %v4239_v46  ;;  %6297 = vmatpush1.bf16.msra.mxu1 %v7646_v1  ;;  %v7678_v46 = vld [vmem:[#allocation6 + $0x6f4] ss:$8 sps:$4 sm:$0xff]  }
0x14bd   :  { %v4272_v43 = vadd.f32 -0.28449672, %v4256_v8  ;;  %6298 = vmatprep.subr.bf16.mxu1 %v7654_v5  ;;  %v4257_v51 = vmul.f32 %v9372_v40, %v4241_v61  ;;  %v7670_v5 = vld [vmem:[#allocation6 + $0x6e0] ss:$8 sps:$4 sm:$0xff]  }
0x14be   :  { %v4286_v42 = vmul.f32 %v9361_v38, %v4270_v15  ;;  %v4271_v59 = vadd.f32 -0.28449672, %v4255_v24  ;;  %6338 = vmatpush1.bf16.msra.mxu0 %v7649_v31  ;;  %v7673_v31 = vld [vmem:[#allocation6 + $0x7e0] ss:$8 sps:$4 sm:$0xff]   ;;  %v4047_v24 = vmul.f32 0.5, %v9338_v29 }
0x14bf   :  { %v4288_v35 = vmul.f32 %v9363_v20, %v4272_v43  ;;  %6339 = vmatprep.subr.bf16.mxu0 %v7657_v9  ;;  %v4273_v63 = vadd.f32 -0.28449672, %v4257_v51  ;;  %v4046_v43 = vmul.f32 0.5, %v9334_v22 }
0x14c0   :  { %v4302_v3 = vadd.f32 0.2548296, %v4286_v42  ;;  %v4287_v32 = vmul.f32 %v9368_v23, %v4271_v59  ;;  %6299 = vmatpush1.bf16.msra.mxu1 %v7652_v36  ;;  %v4097_v42 = vsel %vm4081_vm1, -1.0, %v7863_v60  ;;  %v7676_v36 = vld [vmem:[#allocation6 + $0x6f0] ss:$8 sps:$4 sm:$0xff]  }
0x14c1   :  { %v4304_v55 = vadd.f32 0.2548296, %v4288_v35  ;;  %6300 = vmatprep.subr.bf16.mxu1 %v7660_v28  ;;  %v4289_v39 = vmul.f32 %v9372_v40, %v4273_v63  ;;  %v4048_v28 = vmul.f32 0.5, %v9336_v53  ;;  %v7679_v59 = vld [vmem:[#allocation6 + $0x7f0] ss:$8 sps:$4 sm:$0xff]  }
0x14c2   :  { %v4318_v37 = vmul.f32 %v9361_v38, %v4302_v3  ;;  %v4303_v27 = vadd.f32 0.2548296, %v4287_v32  ;;  %6340 = vmatpush1.bf16.msra.mxu0 %v7655_v49  ;;  %v4049_v3 = vmul.f32 0.5, %v9343_v13  ;;  %v4738_v53 = vld [vmem:[%s9443_s11] sm:$0x3] }
0x14c3   :  { %v4320_v14 = vmul.f32 %v9363_v20, %v4304_v55  ;;  %6341 = vmatprep.subr.bf16.mxu0 %v7663_v47  ;;  %v4305_v20 = vadd.f32 0.2548296, %v4289_v39  ;;  %v4743_v13 = vrot.slane %v4738_v53, %v8015_v16  ;;  %v4747_v32 = vrot.slane %v4738_v53, %v8026_v19 }
0x14c4   :  { %v4398_v33 = vmul.f32 %v7773_v52, %v4318_v37  ;;  %v4319_v50 = vmul.f32 %v9368_v23, %v4303_v27  ;;  %6301 = vmatpush1.bf16.msra.mxu1 %v7658_v25 }
0x14c5   :  { %v4400_v38 = vmul.f32 %v7775_v0, %v4320_v14  ;;  %6302 = vmatprep.subr.bf16.mxu1 %v7666_v18  ;;  %v4321_v23 = vmul.f32 %v9372_v40, %v4305_v20 }
0x14c6   :  { %v4414_v58 = vsub.f32 1.0, %v4398_v33  ;;  %v4399_v7 = vmul.f32 %v7777_v2, %v4319_v50  ;;  %6342 = vmatpush1.bf16.msra.mxu0 %v7661_v54 }
0x14c7   :  { %v4416_v41 = vsub.f32 1.0, %v4400_v38  ;;  %6343 = vmatprep.subr.bf16.mxu0 %v7669_v57  ;;  %v4401_v21 = vmul.f32 %v7779_v45, %v4321_v23 }
0x14c8   :  { %v4430_v56 = vmul.f32 %v4414_v58, %v4094_v62  ;;  %v4415_v8 = vsub.f32 1.0, %v4399_v7  ;;  %6303 = vmatpush1.bf16.msra.mxu1 %v7664_v12 }
0x14c9   :  { %v4432_v1 = vmul.f32 %v4416_v41, %v4096_v6  ;;  %6304 = vmatprep.subr.bf16.mxu1 %v7672_v44  ;;  %v4417_v30 = vsub.f32 1.0, %v4401_v21 }
0x14ca   :  { %v4446_v15 = vadd.f32 1.0, %v4430_v56  ;;  %v4431_v40 = vmul.f32 %v4415_v8, %v4095_v10  ;;  %6344 = vmatpush1.bf16.msra.mxu0 %v7667_v4 }
0x14cb   :  { %v4448_v9 = vadd.f32 1.0, %v4432_v1  ;;  %6345 = vmatprep.subr.bf16.mxu0 %v7675_v48  ;;  %v4433_v61 = vmul.f32 %v4417_v30, %v4097_v42 }
0x14cc   :  { %6305 = vmatpush1.bf16.msra.mxu1 %v7670_v5  ;;  %v4447_v34 = vadd.f32 1.0, %v4431_v40  ;;  %v4462_v35 = vmul.f32 %v4446_v15, %v4046_v43 }
0x14cd   :  { %6306 = vmatprep.subr.bf16.mxu1 %v7678_v46  ;;  %v4449_v51 = vadd.f32 1.0, %v4433_v61  ;;  %v4464_v49 = vmul.f32 %v4448_v9, %v4048_v28 }
0x14ce   :  { %6346 = vmatpush1.bf16.msra.mxu0 %v7673_v31  ;;  %v4463_v22 = vmul.f32 %v4447_v34, %v4047_v24  ;;  %v4478_v29 = vpack.c.bf16 %v4462_v35, %v4462_v35 }
0x14cf   :  { %6347 = vmatprep.subr.bf16.mxu0 %v7681_v17  ;;  %v4465_v55 = vmul.f32 %v4449_v51, %v4049_v3  ;;  %v4480_v37 = vpack.c.bf16 %v4464_v49, %v4464_v49 }
0x14d0   :  { %6307 = vmatpush1.bf16.msra.mxu1 %v7676_v36  ;;  %v4479_v60 = vpack.c.bf16 %v4463_v22, %v4463_v22 }
0x14d1   :  { %v4481_v47 = vpack.c.bf16 %v4465_v55, %v4465_v55 }
0x14d2   :  { %6348 = vmatpush1.bf16.msra.mxu0 %v7679_v59  ;;  %6308 = vmatprep.mubr.bf16.mxu1 %v4479_v60 }
0x14d3   :  { %6309 = vmatmul.mubr.bf16.vlgmr.msra.gmra.mrb[68].mxu1 %v4478_v29  ;;  %6349 = vmatprep.mubr.bf16.mxu0 %v4481_v47 }
0x14d5   :  { %6350 = vmatmul.mubr.bf16.vlgmr.msra.gmra.mrb[40].mxu0 %v4480_v37 }
0x14e6   :  { %v6064_v63 = vpop.f32.mrb[56].mxu1 }
0x14e7   :  { %v6065_v25 = vadd.f32 %v6064_v63, %v4743_v13  ;;  %v6066_v52 = vpop.f32.mrb[57].mxu1 }
0x14e8   :  { %v6105_v14 = vpop.f32.mrb[28].mxu0  ;;  %v6067_v18 = vadd.f32 %v6066_v52, %v4747_v32  ;;  %v6068_v0 = vpop.f32.mrb[58].mxu1 }
0x14e9   :  { %v6106_v33 = vadd.f32 %v6105_v14, %v6065_v25  ;;  %v6107_v27 = vpop.f32.mrb[29].mxu0  ;;  %v6069_v39 = vpop.f32.mrb[59].mxu1 }
0x14ea   :  { %v6108_v54 = vadd.f32 %v6107_v27, %v6067_v18  ;;  %v6109_v38 = vpop.f32.mrb[30].mxu0 }
0x14eb   :  { %v6110_v57 = vpop.f32.mrb[31].mxu0 }
0x1526   :  { %v6146_v58 = vpop.f32.mrb[60].mxu1 }
0x1527   :  { %v6147_v50 = vadd.f32 %v6146_v58, %v6106_v33  ;;  %v6148_v20 = vpop.f32.mrb[61].mxu1 }
0x1528   :  { %v6187_v12 = vpop.f32.mrb[32].mxu0  ;;  %v6149_v2 = vadd.f32 %v6148_v20, %v6108_v54  ;;  %v6150_v62 = vpop.f32.mrb[62].mxu1 }
0x1529   :  { %v6188_v41 = vadd.f32 %v6187_v12, %v6147_v50  ;;  %v6189_v44 = vpop.f32.mrb[33].mxu0  ;;  %v6151_v56 = vpop.f32.mrb[63].mxu1 }
0x152a   :  { %v6190_v6 = vadd.f32 %v6189_v44, %v6149_v2  ;;  %v6191_v7 = vpop.f32.mrb[34].mxu0 }
0x152b   :  { %v6192_v23 = vpop.f32.mrb[35].mxu0 }
0x1566   :  { %v6228_v4 = vpop.f32.mrb[64].mxu1 }
0x1567   :  { %v6229_v45 = vadd.f32 %v6228_v4, %v6188_v41  ;;  %v6230_v1 = vpop.f32.mrb[65].mxu1 }
0x1568   :  { %v6269_v48 = vpop.f32.mrb[36].mxu0  ;;  %v6231_v8 = vadd.f32 %v6230_v1, %v6190_v6  ;;  %v6232_v21 = vpop.f32.mrb[66].mxu1 }
0x1569   :  { %v6270_v5 = vadd.f32 %v6269_v48, %v6229_v45  ;;  %v6271_v15 = vpop.f32.mrb[37].mxu0  ;;  %v6233_v10 = vpop.f32.mrb[67].mxu1 }
0x156a   :  { %v6272_v46 = vadd.f32 %v6271_v15, %v6231_v8  ;;  %v6273_v40 = vpop.f32.mrb[38].mxu0 }
0x156b   :  { %v6274_v30 = vpop.f32.mrb[39].mxu0 }
0x15a6   :  { %v6310_v31 = vpop.f32.mrb[68].mxu1 }
0x15a7   :  { %v6311_v43 = vadd.f32 %v6310_v31, %v6270_v5  ;;  %v6312_v9 = vpop.f32.mrb[69].mxu1 }
0x15a8   :  { %v6351_v42 = vpop.f32.mrb[40].mxu0  ;;  %v6313_v17 = vadd.f32 %v6312_v9, %v6272_v46  ;;  %v6314_v24 = vpop.f32.mrb[70].mxu1 }
0x15a9   :  { %v6352_v61 = vadd.f32 %v6351_v42, %v6311_v43  ;;  %v6353_v36 = vpop.f32.mrb[41].mxu0  ;;  %v6315_v34 = vpop.f32.mrb[71].mxu1 }
0x15aa   :  { %v6354_v35 = vadd.f32 %v6353_v36, %v6313_v17  ;;  %v6355_v28 = vpop.f32.mrb[42].mxu0 }
0x15ab   :  { %v6358_v3 = vadd.f32 %v6352_v61, %v8477_v11  ;;  %v6356_v59 = vpop.f32.mrb[43].mxu0  ;;  %v6360_v11 = vld [vmem:[%s9444_s12] sm:$0x3] }
0x15ac   :  { %v6359_v22 = vadd.f32 %v6354_v35, %v8479_v26  ;;  %v6361_v26 = vld [vmem:[%s9445_s13] sm:$0x3]  ;;  %v6382_v25 = vrot.slane %v6360_v11, %v8015_v16  ;;  %v6386_v52 = vrot.slane %v6360_v11, %v8026_v19 }
0x15ad   :  { %v6395_v18 = vrot.slane %v6361_v26, %v8015_v16  ;;  %v6399_v0 = vrot.slane %v6361_v26, %v8026_v19 }
0x15ae   :  { %v6362_v51 = vadd.f32 %v6359_v22, %v6358_v3 }
0x15b0   :  { %6363 = vadd.xlane.f32.xlu0 %v6362_v51 }
0x163d   :  { %v6364_v49 = vpop.xlane.xlu0 %6363 }
0x163e   :  { %v6365_v60 = vmul.f32 0.00390625, %v6364_v49 }
0x1640   :  { %v6366_v55 = vsub.f32 %v6358_v3, %v6365_v60  ;;  %v6367_v29 = vsub.f32 %v6359_v22, %v6365_v60 }
0x1642   :  { %v6368_v47 = vmul.f32 %v6366_v55, %v6366_v55  ;;  %v6369_v37 = vmul.f32 %v6367_v29, %v6367_v29 }
0x1644   :  { %v6370_v53 = vadd.f32 %v6369_v37, %v6368_v47 }
0x1646   :  { %6371 = vadd.xlane.f32.xlu1 %v6370_v53 }
0x16d3   :  { %v6372_v13 = vpop.xlane.xlu1 %6371 }
0x16d4   :  { %v6373_v32 = vmul.f32 0.00390625, %v6372_v13 }
0x16d6   :  { %v6374_v63 = vadd.f32 1e-05, %v6373_v32 }
0x16d8   :  { %7780 = vrsqrt.f32 %v6374_v63 }
0x16e2   :  { %v7781_v14 = vpop.eup %7780 }
0x16e3   :  { %v6376_v33 = vmul.f32 %v7781_v14, %v6366_v55  ;;  %v6377_v27 = vmul.f32 %v7781_v14, %v6367_v29 }
0x16e5   :  { %v6389_v39 = vmul.f32 %v6382_v25, %v6376_v33  ;;  %v6390_v54 = vmul.f32 %v6386_v52, %v6377_v27 }
0x16e7   :  { %v6402_v38 = vadd.f32 %v6395_v18, %v6389_v39  ;;  %v6403_v57 = vadd.f32 %v6399_v0, %v6390_v54 }
0x16e9   :  { %6404 = vst [vmem:[%s9446_s14] sm:$0xff] %v6402_v38  ;;  %6405 = vst [vmem:[%s9446_s14 + $0x8] sm:$0xff] %v6403_v57 }
0x16ea   :  { %6410 = vsyncpa [#allocation3], 1 }
0x16eb   :  { %6411 = vsyncpa [#allocation5], 1 }

// kernel: vision_transformer_forward.5
= control target key start
LH: loop header
LB: loop body
LE: loop exit
PB: predicated region body
PF: predicated region fallthrough
CT: control target
= control target key end

     0   :  { %s10415_s2 = inlined_call_operand.vmem [shape: bf16[256,768], index: 2, kind: input, shape index: {}]   ;;  %s10416_s0 = inlined_call_operand.vmem [shape: f32[8,256], index: 0, kind: input, shape index: {}]   ;;  %s10417_s3 = inlined_call_operand.vmem [shape: f32[1,768], index: 3, kind: input, shape index: {}]   ;;  %s10418_s1 = inlined_call_operand.vmem [shape: f32[8,8], index: 1, kind: input, shape index: {}]   ;;  %s10419_s4 = inlined_call_operand.vmem [shape: bf16[256,256], index: 4, kind: input, shape index: {}]   ;;  %s10420_s5 = inlined_call_operand.vmem [shape: f32[1,256], index: 5, kind: input, shape index: {}]   ;;  %s10421_s8 = inlined_call_operand.vmem [shape: bf16[256,2048], index: 8, kind: input, shape index: {}]   ;;  %s10422_s6 = inlined_call_operand.vmem [shape: f32[1,256], index: 6, kind: input, shape index: {}]   ;;  %s10423_s7 = inlined_call_operand.vmem [shape: f32[1,256], index: 7, kind: input, shape index: {}]   ;;  %s10424_s10 = inlined_call_operand.vmem [shape: bf16[2048,256], index: 10, kind: input, shape index: {}]   ;;  %s10425_s9 = inlined_call_operand.vmem [shape: f32[1,2048], index: 9, kind: input, shape index: {}]   ;;  %s10426_s11 = inlined_call_operand.vmem [shape: f32[1,256], index: 11, kind: input, shape index: {}]   ;;  %s10427_s12 = inlined_call_operand.vmem [shape: f32[1,256], index: 12, kind: input, shape index: {}]   ;;  %s10428_s13 = inlined_call_operand.vmem [shape: f32[1,256], index: 13, kind: input, shape index: {}]   ;;  %s10429_s14 = inlined_call_operand.vmem [shape: f32[8,256], index: 14, kind: output, shape index: {}]  }
   0x1   :  { %v7056_v0 = vld [vmem:[%s10415_s2 + $0xc] ss:$24 sps:$4 sm:$0xff]   ;;  %v7060_v2 = vld [vmem:[%s10415_s2 + $0x8] ss:$24 sps:$4 sm:$0xff]   ;;  %v7062_v4 = vld [vmem:[%s10415_s2 + $0x3c] ss:$24 sps:$4 sm:$0xff]  }
   0x2   :  { %v7058_v1 = vld [vmem:[%s10415_s2 + $0x4] ss:$24 sps:$4 sm:$0xff]   ;;  %701 = vmatprep.subr.bf16.mxu1 %v7056_v0  ;;  %v7061_v3 = vld [vmem:[%s10415_s2] ss:$24 sps:$4 sm:$0xff]   ;;  %v7064_v5 = vld [vmem:[%s10415_s2 + $0x34] ss:$24 sps:$4 sm:$0xff]  }
   0x3   :  { %660 = vmatprep.subr.bf16.mxu0 %v7058_v1  ;;  %702 = vmatpush1.bf16.msra.mxu1 %v7060_v2  ;;  %v7066_v6 = vld [vmem:[%s10415_s2 + $0x38] ss:$24 sps:$4 sm:$0xff]   ;;  %v7068_v8 = vld [vmem:[%s10415_s2 + $0x6c] ss:$24 sps:$4 sm:$0xff]   ;;  %v7072_v10 = vld [vmem:[%s10415_s2 + $0x68] ss:$24 sps:$4 sm:$0xff]  }
   0x4   :  { %661 = vmatpush1.bf16.msra.mxu0 %v7061_v3  ;;  %703 = vmatprep.subr.bf16.mxu1 %v7062_v4  ;;  %v7067_v7 = vld [vmem:[%s10415_s2 + $0x30] ss:$24 sps:$4 sm:$0xff]   ;;  %v7070_v9 = vld [vmem:[%s10415_s2 + $0x64] ss:$24 sps:$4 sm:$0xff]   ;;  %v7073_v11 = vld [vmem:[%s10415_s2 + $0x60] ss:$24 sps:$4 sm:$0xff]   ;;  %v150_v4 = vlaneseq }
   0x5   :  { %662 = vmatprep.subr.bf16.mxu0 %v7064_v5  ;;  %v7074_v12 = vld [vmem:[%s10415_s2 + $0x9c] ss:$24 sps:$4 sm:$0xff]   ;;  %v7078_v14 = vld [vmem:[%s10415_s2 + $0x98] ss:$24 sps:$4 sm:$0xff]   ;;  %v7080_v16 = vld [vmem:[%s10415_s2 + $0xcc] ss:$24 sps:$4 sm:$0xff]  }
   0x6   :  { %v7076_v13 = vld [vmem:[%s10415_s2 + $0x94] ss:$24 sps:$4 sm:$0xff]   ;;  %v7079_v15 = vld [vmem:[%s10415_s2 + $0x90] ss:$24 sps:$4 sm:$0xff]   ;;  %v7082_v17 = vld [vmem:[%s10415_s2 + $0xc4] ss:$24 sps:$4 sm:$0xff]  }
   0x7   :  { %704 = vmatpush1.bf16.msra.mxu1 %v7066_v6  ;;  %v7084_v18 = vld [vmem:[%s10415_s2 + $0xc8] ss:$24 sps:$4 sm:$0xff]   ;;  %v7086_v20 = vld [vmem:[%s10415_s2 + $0xfc] ss:$24 sps:$4 sm:$0xff]   ;;  %v7090_v22 = vld [vmem:[%s10415_s2 + $0xf8] ss:$24 sps:$4 sm:$0xff]  }
   0x8   :  { %663 = vmatpush1.bf16.msra.mxu0 %v7067_v7  ;;  %705 = vmatprep.subr.bf16.mxu1 %v7068_v8  ;;  %v7085_v19 = vld [vmem:[%s10415_s2 + $0xc0] ss:$24 sps:$4 sm:$0xff]   ;;  %v7088_v21 = vld [vmem:[%s10415_s2 + $0xf4] ss:$24 sps:$4 sm:$0xff]   ;;  %v7091_v23 = vld [vmem:[%s10415_s2 + $0xf0] ss:$24 sps:$4 sm:$0xff]  }
   0x9   :  { %664 = vmatprep.subr.bf16.mxu0 %v7070_v9  ;;  %v7092_v24 = vld [vmem:[%s10415_s2 + $0x12c] ss:$24 sps:$4 sm:$0xff]   ;;  %v7096_v26 = vld [vmem:[%s10415_s2 + $0x128] ss:$24 sps:$4 sm:$0xff]   ;;  %v7098_v28 = vld [vmem:[%s10415_s2 + $0x15c] ss:$24 sps:$4 sm:$0xff]  }
   0xa   :  { %v7094_v25 = vld [vmem:[%s10415_s2 + $0x124] ss:$24 sps:$4 sm:$0xff]   ;;  %v7097_v27 = vld [vmem:[%s10415_s2 + $0x120] ss:$24 sps:$4 sm:$0xff]   ;;  %v7100_v29 = vld [vmem:[%s10415_s2 + $0x154] ss:$24 sps:$4 sm:$0xff]  }
   0xb   :  { %706 = vmatpush1.bf16.msra.mxu1 %v7072_v10  ;;  %v7102_v30 = vld [vmem:[%s10415_s2 + $0x158] ss:$24 sps:$4 sm:$0xff]   ;;  %v7104_v32 = vld [vmem:[%s10415_s2 + $0x18c] ss:$24 sps:$4 sm:$0xff]   ;;  %v7108_v34 = vld [vmem:[%s10415_s2 + $0x188] ss:$24 sps:$4 sm:$0xff]  }
   0xc   :  { %665 = vmatpush1.bf16.msra.mxu0 %v7073_v11  ;;  %707 = vmatprep.subr.bf16.mxu1 %v7074_v12  ;;  %v7103_v31 = vld [vmem:[%s10415_s2 + $0x150] ss:$24 sps:$4 sm:$0xff]   ;;  %v7106_v33 = vld [vmem:[%s10415_s2 + $0x184] ss:$24 sps:$4 sm:$0xff]   ;;  %v7109_v35 = vld [vmem:[%s10415_s2 + $0x180] ss:$24 sps:$4 sm:$0xff]  }
   0xd   :  { %666 = vmatprep.subr.bf16.mxu0 %v7076_v13  ;;  %v7110_v36 = vld [vmem:[%s10415_s2 + $0x1bc] ss:$24 sps:$4 sm:$0xff]   ;;  %v7114_v38 = vld [vmem:[%s10415_s2 + $0x1b8] ss:$24 sps:$4 sm:$0xff]   ;;  %v7116_v40 = vld [vmem:[%s10415_s2 + $0x1ec] ss:$24 sps:$4 sm:$0xff]  }
   0xe   :  { %v7112_v37 = vld [vmem:[%s10415_s2 + $0x1b4] ss:$24 sps:$4 sm:$0xff]   ;;  %v7115_v39 = vld [vmem:[%s10415_s2 + $0x1b0] ss:$24 sps:$4 sm:$0xff]   ;;  %v7118_v41 = vld [vmem:[%s10415_s2 + $0x1e4] ss:$24 sps:$4 sm:$0xff]  }
   0xf   :  { %708 = vmatpush1.bf16.msra.mxu1 %v7078_v14  ;;  %v7120_v42 = vld [vmem:[%s10415_s2 + $0x1e8] ss:$24 sps:$4 sm:$0xff]   ;;  %v7122_v44 = vld [vmem:[%s10415_s2 + $0x21c] ss:$24 sps:$4 sm:$0xff]   ;;  %v7126_v46 = vld [vmem:[%s10415_s2 + $0x218] ss:$24 sps:$4 sm:$0xff]  }
  0x10   :  { %667 = vmatpush1.bf16.msra.mxu0 %v7079_v15  ;;  %709 = vmatprep.subr.bf16.mxu1 %v7080_v16  ;;  %v7121_v43 = vld [vmem:[%s10415_s2 + $0x1e0] ss:$24 sps:$4 sm:$0xff]   ;;  %v7124_v45 = vld [vmem:[%s10415_s2 + $0x214] ss:$24 sps:$4 sm:$0xff]   ;;  %v7127_v47 = vld [vmem:[%s10415_s2 + $0x210] ss:$24 sps:$4 sm:$0xff]  }
  0x11   :  { %668 = vmatprep.subr.bf16.mxu0 %v7082_v17  ;;  %v49_v48 = vld [vmem:[%s10416_s0 + $0x8] sm:$0xff]  ;;  %v7130_v50 = vld [vmem:[%s10415_s2 + $0x244] ss:$24 sps:$4 sm:$0xff]   ;;  %v7133_v53 = vld [vmem:[%s10415_s2 + $0x240] ss:$24 sps:$4 sm:$0xff]   ;;  %v8014_v5 = vand.u32 127, %v150_v4 }
  0x12   :  { %v7128_v49 = vld [vmem:[%s10415_s2 + $0x24c] ss:$24 sps:$4 sm:$0xff]   ;;  %v51_v51 = vpack.c.bf16 %v49_v48, %v49_v48  ;;  %v7132_v52 = vld [vmem:[%s10415_s2 + $0x248] ss:$24 sps:$4 sm:$0xff]   ;;  %v7134_v54 = vld [vmem:[%s10415_s2 + $0x27c] ss:$24 sps:$4 sm:$0xff]  }
  0x13   :  { %710 = vmatpush1.bf16.msra.mxu1 %v7084_v18  ;;  %v7136_v55 = vld [vmem:[%s10415_s2 + $0x274] ss:$24 sps:$4 sm:$0xff]   ;;  %v7138_v56 = vld [vmem:[%s10415_s2 + $0x278] ss:$24 sps:$4 sm:$0xff]   ;;  %v7142_v59 = vld [vmem:[%s10415_s2 + $0x2a4] ss:$24 sps:$4 sm:$0xff]  }
  0x14   :  { %669 = vmatpush1.bf16.msra.mxu0 %v7085_v19  ;;  %711 = vmatprep.subr.bf16.mxu1 %v7086_v20  ;;  %v7139_v57 = vld [vmem:[%s10415_s2 + $0x270] ss:$24 sps:$4 sm:$0xff]   ;;  %v7140_v58 = vld [vmem:[%s10415_s2 + $0x2ac] ss:$24 sps:$4 sm:$0xff]   ;;  %v7145_v61 = vld [vmem:[%s10415_s2 + $0x2a0] ss:$24 sps:$4 sm:$0xff]  }
  0x15   :  { %670 = vmatprep.subr.bf16.mxu0 %v7088_v21  ;;  %733 = vmatprep.mubr.bf16.mxu1 %v51_v51  ;;  %v7144_v60 = vld [vmem:[%s10415_s2 + $0x2a8] ss:$24 sps:$4 sm:$0xff]   ;;  %v7146_v62 = vld [vmem:[%s10415_s2 + $0x2dc] ss:$24 sps:$4 sm:$0xff]   ;;  %v7150_v0 = vld [vmem:[%s10415_s2 + $0x2d8] ss:$24 sps:$4 sm:$0xff]  }
  0x16   :  { %692 = vmatprep.mubr.bf16.mxu0 %v51_v51  ;;  %v7148_v63 = vld [vmem:[%s10415_s2 + $0x2d4] ss:$24 sps:$4 sm:$0xff]   ;;  %v7151_v1 = vld [vmem:[%s10415_s2 + $0x2d0] ss:$24 sps:$4 sm:$0xff]   ;;  %v48_v2 = vld [vmem:[%s10416_s0] sm:$0xff]  ;;  %v789_v6 = vadd.s32 128, %v8014_v5 }
  0x17   :  { %712 = vmatpush1.bf16.msra.mxu1 %v7090_v22  ;;  %v8010_v3 = vpack.c.bf16 %v48_v2, %v48_v2  ;;  %vm1029_vm0 = vcmp.ge.s32.totalorder %v8014_v5, 64  ;;  %vm1031_vm1 = vcmp.lt.s32.totalorder %v8014_v5, 96  ;;  %vm1149_vm3 = vcmp.ge.s32.totalorder %v8014_v5, 96  ;;  %v8043_v17 = vld [vmem:[%s10417_s3] sm:$0x3f] }
  0x18   :  { %671 = vmatpush1.bf16.msra.mxu0 %v7091_v23  ;;  %713 = vmatprep.subr.bf16.mxu1 %v7092_v24  ;;  %vm1033_vm2 = vmand %vm1029_vm0, %vm1031_vm1  ;;  %vm1272_vm4 = vcmp.lt.s32.totalorder %v789_v6, 160  ;;  %v7734_v7 = vmov 0.0   ;;  %vm1390_vm5 = vcmp.ge.s32.totalorder %v789_v6, 160  ;;  %vm1392_vm6 = vcmp.lt.s32.totalorder %v789_v6, 192  ;;  %v7172_v2 = vld [vmem:[%s10415_s2 + $0x134] ss:$24 sps:$4 sm:$0xff]  }
  0x19   :  { %672 = vmatprep.subr.bf16.mxu0 %v7094_v25  ;;  %v8020_v8 = vsel %vm1033_vm2, 1.0, %v7734_v7  ;;  %v8022_v9 = vsel %vm1149_vm3, 1.0, %v7734_v7  ;;  %v8024_v10 = vsel %vm1272_vm4, 1.0, %v7734_v7  ;;  %vm1510_vm7 = vcmp.ge.s32.totalorder %v789_v6, 192  ;;  %vm1394_vm10 = vmand %vm1390_vm5, %vm1392_vm6 }
  0x1a   :  { %vm1512_vm8 = vcmp.lt.s32.totalorder %v789_v6, 224  ;;  %vm1630_vm9 = vcmp.ge.s32.totalorder %v789_v6, 224  ;;  %v8028_v12 = vsel %vm1394_vm10, 1.0, %v7734_v7  ;;  %v8032_v14 = vshrl.u32 %v150_v4, 7  ;;  %v7170_v4 = vld [vmem:[%s10415_s2 + $0x130] ss:$24 sps:$4 sm:$0xff]  }
  0x1b   :  { %714 = vmatpush1.bf16.msra.mxu1 %v7096_v26  ;;  %v8026_v11 = vsel %vm1630_vm9, 1.0, %v7734_v7  ;;  %vm1514_vm11 = vmand %vm1510_vm7, %vm1512_vm8  ;;  %vm793_vm12 = vcmp.lt.s32.totalorder %v8014_v5, 32  ;;  %vm860_vm13 = vcmp.ge.s32.totalorder %v8014_v5, 32  ;;  %vm862_vm14 = vcmp.lt.s32.totalorder %v8014_v5, 64  ;;  %v7175_v5 = vld [vmem:[%s10415_s2 + $0x164] ss:$24 sps:$4 sm:$0xff]  }
  0x1c   :  { %673 = vmatpush1.bf16.msra.mxu0 %v7097_v27  ;;  %715 = vmatprep.subr.bf16.mxu1 %v7098_v28  ;;  %v8030_v13 = vsel %vm1514_vm11, 1.0, %v7734_v7  ;;  %v8035_v15 = vsub.s32 2, %v8032_v14  ;;  %v8038_v16 = vsub.s32 0, %v8032_v14  ;;  %v8046_v18 = vsub.s32 3, %v8032_v14  ;;  %vm864_vm15 = vmand %vm860_vm13, %vm862_vm14  ;;  %v7173_v6 = vld [vmem:[%s10415_s2 + $0x160] ss:$24 sps:$4 sm:$0xff]  }
  0x1d   :  { %674 = vmatprep.subr.bf16.mxu0 %v7100_v29  ;;  %v8049_v19 = vsub.s32 1, %v8032_v14  ;;  %vm843_vm0 = vcmask 64512   ;;  %vm931_vm1 = vcmask 1043456  }
  0x1e   :  { %v161_v20 = vrot.slane %v8043_v17, %v8035_v15  ;;  %v153_v21 = vrot.slane %v8043_v17, %v8038_v16  ;;  %v165_v22 = vrot.slane %v8043_v17, %v8046_v18 }
  0x1f   :  { %716 = vmatpush1.bf16.msra.mxu1 %v7102_v30  ;;  %v157_v23 = vrot.slane %v8043_v17, %v8049_v19 }
  0x20   :  { %675 = vmatpush1.bf16.msra.mxu0 %v7103_v31  ;;  %717 = vmatprep.subr.bf16.mxu1 %v7104_v32 }
  0x21   :  { %676 = vmatprep.subr.bf16.mxu0 %v7106_v33 }
  0x23   :  { %718 = vmatpush1.bf16.msra.mxu1 %v7108_v34 }
  0x24   :  { %677 = vmatpush1.bf16.msra.mxu0 %v7109_v35  ;;  %719 = vmatprep.subr.bf16.mxu1 %v7110_v36 }
  0x25   :  { %678 = vmatprep.subr.bf16.mxu0 %v7112_v37 }
  0x27   :  { %720 = vmatpush1.bf16.msra.mxu1 %v7114_v38 }
  0x28   :  { %679 = vmatpush1.bf16.msra.mxu0 %v7115_v39  ;;  %721 = vmatprep.subr.bf16.mxu1 %v7116_v40  ;;  %v8066_v40 = vsel %vm793_vm12, 1.0, %v7734_v7 }
  0x29   :  { %680 = vmatprep.subr.bf16.mxu0 %v7118_v41 }
  0x2b   :  { %722 = vmatpush1.bf16.msra.mxu1 %v7120_v42 }
  0x2c   :  { %681 = vmatpush1.bf16.msra.mxu0 %v7121_v43  ;;  %723 = vmatprep.subr.bf16.mxu1 %v7122_v44 }
  0x2d   :  { %682 = vmatprep.subr.bf16.mxu0 %v7124_v45 }
  0x2f   :  { %724 = vmatpush1.bf16.msra.mxu1 %v7126_v46 }
  0x30   :  { %683 = vmatpush1.bf16.msra.mxu0 %v7127_v47  ;;  %725 = vmatprep.subr.bf16.mxu1 %v7128_v49 }
  0x31   :  { %684 = vmatprep.subr.bf16.mxu0 %v7130_v50 }
  0x33   :  { %726 = vmatpush1.bf16.msra.mxu1 %v7132_v52 }
  0x34   :  { %685 = vmatpush1.bf16.msra.mxu0 %v7133_v53  ;;  %727 = vmatprep.subr.bf16.mxu1 %v7134_v54  ;;  %v7152_v54 = vld [vmem:[%s10415_s2 + $0x10] ss:$24 sps:$4 sm:$0xff]  }
  0x35   :  { %686 = vmatprep.subr.bf16.mxu0 %v7136_v55  ;;  %v7154_v55 = vld [vmem:[%s10415_s2 + $0x14] ss:$24 sps:$4 sm:$0xff]  }
  0x37   :  { %728 = vmatpush1.bf16.msra.mxu1 %v7138_v56  ;;  %v7157_v56 = vld [vmem:[%s10415_s2 + $0x44] ss:$24 sps:$4 sm:$0xff]  }
  0x38   :  { %687 = vmatpush1.bf16.msra.mxu0 %v7139_v57  ;;  %729 = vmatprep.subr.bf16.mxu1 %v7140_v58  ;;  %v7155_v57 = vld [vmem:[%s10415_s2 + $0x40] ss:$24 sps:$4 sm:$0xff]   ;;  %v7160_v58 = vld [vmem:[%s10415_s2 + $0x74] ss:$24 sps:$4 sm:$0xff]  }
  0x39   :  { %688 = vmatprep.subr.bf16.mxu0 %v7142_v59  ;;  %v7158_v59 = vld [vmem:[%s10415_s2 + $0x70] ss:$24 sps:$4 sm:$0xff]  }
  0x3b   :  { %730 = vmatpush1.bf16.msra.mxu1 %v7144_v60  ;;  %v7163_v60 = vld [vmem:[%s10415_s2 + $0xa4] ss:$24 sps:$4 sm:$0xff]  }
  0x3c   :  { %689 = vmatpush1.bf16.msra.mxu0 %v7145_v61  ;;  %731 = vmatprep.subr.bf16.mxu1 %v7146_v62  ;;  %v7161_v61 = vld [vmem:[%s10415_s2 + $0xa0] ss:$24 sps:$4 sm:$0xff]   ;;  %v7166_v62 = vld [vmem:[%s10415_s2 + $0xd4] ss:$24 sps:$4 sm:$0xff]  }
  0x3d   :  { %690 = vmatprep.subr.bf16.mxu0 %v7148_v63  ;;  %v7164_v63 = vld [vmem:[%s10415_s2 + $0xd0] ss:$24 sps:$4 sm:$0xff]  }
  0x3f   :  { %732 = vmatpush1.bf16.msra.mxu1 %v7150_v0  ;;  %v7169_v0 = vld [vmem:[%s10415_s2 + $0x104] ss:$24 sps:$4 sm:$0xff]  }
  0x40   :  { %691 = vmatpush1.bf16.msra.mxu0 %v7151_v1  ;;  %v7167_v1 = vld [vmem:[%s10415_s2 + $0x100] ss:$24 sps:$4 sm:$0xff]  }
  0x41   :  { %742 = vmatprep.subr.bf16.mxu0 %v7154_v55 }
  0x42   :  { %734 = vmatmul.mubr.bf16.vlgmr.msra.gmra.mrb[0].mxu1 %v8010_v3 }
  0x43   :  { %693 = vmatmul.mubr.bf16.vlgmr.msra.gmra.mrb[0].mxu0 %v8010_v3 }
  0x44   :  { %774 = vmatprep.mubr.bf16.mxu0 %v51_v51  ;;  %v8098_v51 = vsel %vm864_vm15, 1.0, %v7734_v7  ;;  %743 = vmatpush1.bf16.msra.mxu0 %v7152_v54  ;;  %v7178_v7 = vld [vmem:[%s10415_s2 + $0x194] ss:$24 sps:$4 sm:$0xff]  }
  0x45   :  { %744 = vmatprep.subr.bf16.mxu0 %v7157_v56 }
  0x48   :  { %745 = vmatpush1.bf16.msra.mxu0 %v7155_v57 }
  0x49   :  { %746 = vmatprep.subr.bf16.mxu0 %v7160_v58 }
  0x4c   :  { %747 = vmatpush1.bf16.msra.mxu0 %v7158_v59 }
  0x4d   :  { %748 = vmatprep.subr.bf16.mxu0 %v7163_v60 }
  0x50   :  { %749 = vmatpush1.bf16.msra.mxu0 %v7161_v61 }
  0x51   :  { %750 = vmatprep.subr.bf16.mxu0 %v7166_v62 }
  0x54   :  { %751 = vmatpush1.bf16.msra.mxu0 %v7164_v63 }
  0x55   :  { %752 = vmatprep.subr.bf16.mxu0 %v7169_v0 }
  0x58   :  { %753 = vmatpush1.bf16.msra.mxu0 %v7167_v1 }
  0x59   :  { %754 = vmatprep.subr.bf16.mxu0 %v7172_v2 }
  0x5c   :  { %755 = vmatpush1.bf16.msra.mxu0 %v7170_v4 }
  0x5d   :  { %756 = vmatprep.subr.bf16.mxu0 %v7175_v5 }
  0x60   :  { %757 = vmatpush1.bf16.msra.mxu0 %v7173_v6 }
  0x61   :  { %758 = vmatprep.subr.bf16.mxu0 %v7178_v7 }
 0x115   :  { %v735_v24 = vpop.f32.mrb[0].mxu1 }
 0x116   :  { %v694_v25 = vpop.f32.mrb[0].mxu0  ;;  %v736_v26 = vadd.f32 %v735_v24, %v161_v20  ;;  %v737_v28 = vpop.f32.mrb[1].mxu1  ;;  %v7176_v20 = vld [vmem:[%s10415_s2 + $0x190] ss:$24 sps:$4 sm:$0xff]  }
 0x117   :  { %v695_v27 = vadd.f32 %v694_v25, %v153_v21  ;;  %v696_v29 = vpop.f32.mrb[1].mxu0  ;;  %v738_v30 = vadd.f32 %v737_v28, %v165_v22  ;;  %v739_v32 = vpop.f32.mrb[2].mxu1  ;;  %v7181_v21 = vld [vmem:[%s10415_s2 + $0x1c4] ss:$24 sps:$4 sm:$0xff]   ;;  %759 = vmatpush1.bf16.msra.mxu0 %v7176_v20  ;;  %v7179_v22 = vld [vmem:[%s10415_s2 + $0x1c0] ss:$24 sps:$4 sm:$0xff]  }
 0x118   :  { %v697_v31 = vadd.f32 %v696_v29, %v157_v23  ;;  %v698_v33 = vpop.f32.mrb[2].mxu0  ;;  %v740_v35 = vpop.f32.mrb[3].mxu1  ;;  %v8064_v39 = vpack.c.bf16 %v736_v26, %v736_v26  ;;  %760 = vmatprep.subr.bf16.mxu0 %v7181_v21  ;;  %v7184_v23 = vld [vmem:[%s10415_s2 + $0x1f4] ss:$24 sps:$4 sm:$0xff]   ;;  %v7182_v24 = vld [vmem:[%s10415_s2 + $0x1f0] ss:$24 sps:$4 sm:$0xff]  }
 0x119   :  { %v8060_v34 = vmul.f32 0.17677669, %v695_v27  ;;  %v699_v36 = vpop.f32.mrb[3].mxu0  ;;  %v8062_v37 = vpack.c.bf16 %v738_v30, %v738_v30  ;;  %v7187_v25 = vld [vmem:[%s10415_s2 + $0x224] ss:$24 sps:$4 sm:$0xff]  }
 0x11a   :  { %v784_v38 = vmul.f32 0.17677669, %v697_v31  ;;  %v7185_v26 = vld [vmem:[%s10415_s2 + $0x220] ss:$24 sps:$4 sm:$0xff]   ;;  %v7190_v27 = vld [vmem:[%s10415_s2 + $0x254] ss:$24 sps:$4 sm:$0xff]  }
 0x11b   :  { %v8070_v41 = vmul.f32 %v8020_v8, %v8060_v34  ;;  %v8074_v42 = vmul.f32 %v8022_v9, %v8060_v34  ;;  %803 = vmatprep.subr.bf16.mxu1 %v8062_v37  ;;  %v799_v47 = vmul.f32 %v8066_v40, %v8060_v34  ;;  %v868_v52 = vmul.f32 %v8098_v51, %v8060_v34  ;;  %v7188_v28 = vld [vmem:[%s10415_s2 + $0x250] ss:$24 sps:$4 sm:$0xff]   ;;  %v7193_v29 = vld [vmem:[%s10415_s2 + $0x284] ss:$24 sps:$4 sm:$0xff]   ;;  %v7191_v30 = vld [vmem:[%s10415_s2 + $0x280] ss:$24 sps:$4 sm:$0xff]  }
 0x11c   :  { %v800_v43 = vmul.f32 0.0, %v784_v38  ;;  %v8078_v44 = vmul.f32 %v8024_v10, %v784_v38  ;;  %v8081_v45 = vmul.f32 %v8028_v12, %v784_v38  ;;  %804 = vmatpush1.bf16.xpose.msra.mxu1 %v8064_v39  ;;  %v8092_v48 = vmul.f32 %v8030_v13, %v784_v38  ;;  %761 = vmatpush1.bf16.msra.mxu0 %v7179_v22  ;;  %v7196_v31 = vld [vmem:[%s10415_s2 + $0x2b4] ss:$24 sps:$4 sm:$0xff]   ;;  %v7194_v32 = vld [vmem:[%s10415_s2 + $0x2b0] ss:$24 sps:$4 sm:$0xff]  }
 0x11d   :  { %872 = vmatprep.subr.bf16.mxu1 %v8062_v37  ;;  %v8095_v49 = vmul.f32 %v8026_v11, %v784_v38  ;;  %v801_v50 = vpack.c.bf16 %v799_v47, %v799_v47  ;;  %v870_v53 = vpack.c.bf16 %v868_v52, %v868_v52  ;;  %762 = vmatprep.subr.bf16.mxu0 %v7184_v23  ;;  %v7199_v33 = vld [vmem:[%s10415_s2 + $0x2e4] ss:$24 sps:$4 sm:$0xff]   ;;  %v7197_v35 = vld [vmem:[%s10415_s2 + $0x2e0] ss:$24 sps:$4 sm:$0xff]   ;;  %v8213_v22 = vsub.s32 4, %v8032_v14 }
 0x11e   :  { %v8087_v46 = vpack.c.bf16 %v800_v43, %v800_v43  ;;  %v8216_v23 = vsub.s32 5, %v8032_v14 }
 0x120   :  { %835 = vmatprep.mubr.bf16.mxu1 %v8087_v46  ;;  %763 = vmatpush1.bf16.msra.mxu0 %v7182_v24  ;;  %v169_v24 = vrot.slane %v8043_v17, %v8213_v22 }
 0x121   :  { %764 = vmatprep.subr.bf16.mxu0 %v7187_v25  ;;  %v173_v25 = vrot.slane %v8043_v17, %v8216_v23 }
 0x123   :  { %836 = vmatmul.mubr.bf16.vlgmr.msra.gmra.mrb[4].mxu1 %v801_v50  ;;  %v8204_v50 = vld [vmem:[%s10418_s1] sm:$0xff] }
 0x124   :  { %873 = vmatpush1.bf16.xpose.msra.mxu1 %v8064_v39  ;;  %904 = vmatprep.mubr.bf16.mxu1 %v8087_v46 }
 0x125   :  { %765 = vmatpush1.bf16.msra.mxu0 %v7185_v26 }
 0x126   :  { %766 = vmatprep.subr.bf16.mxu0 %v7190_v27 }
 0x129   :  { %767 = vmatpush1.bf16.msra.mxu0 %v7188_v28 }
 0x12a   :  { %768 = vmatprep.subr.bf16.mxu0 %v7193_v29 }
 0x12b   :  { %905 = vmatmul.mubr.bf16.vlgmr.msra.gmra.mrb[8].mxu1 %v870_v53 }
 0x12d   :  { %769 = vmatpush1.bf16.msra.mxu0 %v7191_v30 }
 0x12e   :  { %770 = vmatprep.subr.bf16.mxu0 %v7196_v31 }
 0x131   :  { %771 = vmatpush1.bf16.msra.mxu0 %v7194_v32 }
 0x132   :  { %772 = vmatprep.subr.bf16.mxu0 %v7199_v33 }
 0x135   :  { %773 = vmatpush1.bf16.msra.mxu0 %v7197_v35 }
 0x138   :  { %775 = vmatmul.mubr.bf16.vlgmr.msra.gmra.mrb[4].mxu0 %v8010_v3 }
 0x1f6   :  { %v837_v36 = vpop.f32.mrb[4].mxu1 }
 0x1f7   :  { %v839_v38 = vpop.f32.mrb[5].mxu1  ;;  %v838_v56 = vadd.f32 %v837_v36, %v8204_v50 }
 0x1f8   :  { %v840_v43 = vpop.f32.mrb[6].mxu1 }
 0x1f9   :  { %v841_v47 = vpop.f32.mrb[7].mxu1  ;;  %v844_v58 = vsel %vm843_vm0, %v838_v56, -inf }
 0x1fe   :  { %v906_v52 = vpop.f32.mrb[8].mxu1 }
 0x1ff   :  { %v907_v53 = vadd.f32 %v906_v52, %v8204_v50  ;;  %v908_v54 = vpop.f32.mrb[9].mxu1 }
 0x200   :  { %v909_v55 = vpop.f32.mrb[10].mxu1 }
 0x201   :  { %v910_v57 = vpop.f32.mrb[11].mxu1  ;;  %v912_v3 = vsel %vm843_vm0, %v907_v53, -inf }
 0x202   :  { %913 = vmax.xlane.f32.xlu0 %v912_v3 }
 0x206   :  { %845 = vmax.xlane.f32.xlu0 %v844_v58 }
 0x20b   :  { %v776_v1 = vpop.f32.mrb[4].mxu0 }
 0x20c   :  { %v778_v2 = vpop.f32.mrb[5].mxu0  ;;  %v8222_v26 = vadd.f32 %v776_v1, %v169_v24 }
 0x20d   :  { %v780_v4 = vpop.f32.mrb[6].mxu0  ;;  %v779_v27 = vadd.f32 %v778_v2, %v173_v25 }
 0x20e   :  { %v781_v6 = vpop.f32.mrb[7].mxu0  ;;  %v924_v29 = vmul.f32 %v8098_v51, %v8222_v26  ;;  %v1093_v32 = vmul.f32 %v8020_v8, %v8222_v26  ;;  %v8232_v33 = vmul.f32 %v8022_v9, %v8222_v26  ;;  %v7735_v9 = vmov 0  }
 0x20f   :  { %v857_v28 = vmul.f32 0.0, %v779_v27  ;;  %v8235_v17 = vmul.f32 %v8024_v10, %v779_v27  ;;  %v8241_v51 = vmul.f32 %v8028_v12, %v779_v27  ;;  %v8244_v36 = vmul.f32 %v8030_v13, %v779_v27  ;;  %970 = vmatprep.mubr.bf16.mxu1 %v7735_v9 }
 0x210   :  { %v926_v31 = vpack.c.bf16 %v924_v29, %v924_v29  ;;  %v8249_v8 = vmul.f32 %v8026_v11, %v779_v27  ;;  %v856_v12 = vmul.f32 %v8066_v40, %v8222_v26  ;;  %v1095_v40 = vpack.c.bf16 %v1093_v32, %v1093_v32 }
 0x211   :  { %v8226_v30 = vpack.c.bf16 %v857_v28, %v857_v28 }
 0x212   :  { %v933_v35 = vsel %vm931_vm1, %v926_v31, 0  ;;  %v858_v13 = vpack.c.bf16 %v856_v12, %v856_v12  ;;  %v1101_v57 = vsel %vm931_vm1, %v1095_v40, 0 }
 0x213   :  { %6465 = vmatprep.subr.msk.bf16.mxu1 %vm931_vm1, %v8226_v30 }
 0x214   :  { %939 = vmatpush1.bf16.msra.mxu1 %v933_v35 }
 0x215   :  { %6467 = vmatprep.subr.msk.bf16.mxu1 %vm931_vm1, %v8226_v30 }
 0x28f   :  { %v914_v59 = vpop.xlane.xlu0 %913 }
 0x290   :  { %v915_v60 = vsub.f32 %v907_v53, %v914_v59  ;;  %v983_v53 = vsel %vm931_vm1, %v858_v13, 0  ;;  %v1336_v13 = vpack.c.bf16 %v8235_v17, %v8235_v17 }
 0x292   :  { %v916_v61 = vmul.f32 1.442695, %v915_v60 }
 0x293   :  { %v846_v62 = vpop.xlane.xlu0 %845 }
 0x294   :  { %7632 = vpow2.f32 %v916_v61  ;;  %v847_v63 = vsub.f32 %v838_v56, %v846_v62  ;;  %v1039_v56 = vpack.c.bf16 %v8070_v41, %v8070_v41 }
 0x296   :  { %v848_v0 = vmul.f32 1.442695, %v847_v63 }
 0x298   :  { %7634 = vpow2.f32 %v848_v0 }
 0x29e   :  { %v7633_v5 = vpop.eup %7632 }
 0x29f   :  { %v918_v7 = vsel %vm843_vm0, %v7633_v5, 0.0 }
 0x2a0   :  { %919 = vadd.xlane.f32.xlu1 %v918_v7 }
 0x2a2   :  { %v7635_v20 = vpop.eup %7634 }
 0x2a3   :  { %v850_v21 = vsel %vm843_vm0, %v7635_v20, 0.0 }
 0x2a4   :  { %851 = vadd.xlane.f32.xlu1 %v850_v21  ;;  %v1159_v21 = vpack.c.bf16 %v8074_v42, %v8074_v42 }
 0x32d   :  { %v920_v10 = vpop.xlane.xlu1 %919 }
 0x32e   :  { %7636 = vrcp.f32 %v920_v10 }
 0x331   :  { %v852_v38 = vpop.xlane.xlu1 %851 }
 0x332   :  { %7638 = vrcp.f32 %v852_v38 }
 0x338   :  { %v7637_v43 = vpop.eup %7636 }
 0x339   :  { %v922_v47 = vmul.f32 %v7637_v43, %v7633_v5 }
 0x33b   :  { %v923_v52 = vpack.c.bf16 %v922_v47, %v922_v47  ;;  %v1280_v47 = vpack.c.bf16 %v8078_v44, %v8078_v44 }
 0x33c   :  { %v7639_v11 = vpop.eup %7638 }
 0x33d   :  { %6466 = vmatmul.mubr.msk.bf16.vlgmr.msra.gmra.mrb[12].mxu1 %vm843_vm0, %v923_v52  ;;  %v854_v54 = vmul.f32 %v7639_v11, %v7635_v20  ;;  %v1215_v20 = vpack.c.bf16 %v8232_v33, %v8232_v33  ;;  %v1333_v52 = vmul.f32 0.0, %v8222_v26 }
 0x33e   :  { %989 = vmatpush1.bf16.msra.mxu1 %v983_v53  ;;  %1020 = vmatprep.mubr.bf16.mxu1 %v7735_v9  ;;  %v1277_v53 = vmul.f32 0.0, %v8060_v34 }
 0x33f   :  { %1041 = vmatprep.subr.bf16.mxu1 %v8062_v37  ;;  %v855_v55 = vpack.c.bf16 %v854_v54, %v854_v54  ;;  %v1221_v24 = vsel %vm931_vm1, %v1215_v20, 0  ;;  %v1335_v11 = vpack.c.bf16 %v1333_v52, %v1333_v52 }
 0x340   :  { %v8295_v54 = vpack.c.bf16 %v1277_v53, %v1277_v53 }
 0x341   :  { %v8299_v44 = vsel %vm931_vm1, %v1335_v11, 0  ;;  %v1640_v11 = vpack.c.bf16 %v8095_v49, %v8095_v49 }
 0x349   :  { %6468 = vmatmul.mubr.msk.bf16.vlgmr.msra.gmra.mrb[12].mxu1 %vm843_vm0, %v855_v55 }
 0x34a   :  { %1042 = vmatpush1.bf16.xpose.msra.mxu1 %v8064_v39  ;;  %1073 = vmatprep.mubr.bf16.mxu1 %v8087_v46 }
 0x34b   :  { %6469 = vmatprep.subr.msk.bf16.mxu1 %vm931_vm1, %v8226_v30 }
 0x351   :  { %1074 = vmatmul.mubr.bf16.vlgmr.msra.gmra.mrb[16].mxu1 %v1039_v56 }
 0x352   :  { %1107 = vmatpush1.bf16.msra.mxu1 %v1101_v57  ;;  %1138 = vmatprep.mubr.bf16.mxu1 %v7735_v9 }
 0x353   :  { %1161 = vmatprep.subr.bf16.mxu1 %v8062_v37 }
 0x424   :  { %v1075_v3 = vpop.f32.mrb[16].mxu1 }
 0x425   :  { %v1076_v58 = vadd.f32 %v1075_v3, %v8204_v50  ;;  %v1077_v59 = vpop.f32.mrb[17].mxu1 }
 0x426   :  { %v1078_v60 = vpop.f32.mrb[18].mxu1 }
 0x427   :  { %v1079_v61 = vpop.f32.mrb[19].mxu1  ;;  %v1081_v62 = vsel %vm843_vm0, %v1076_v58, -inf }
 0x428   :  { %1082 = vmax.xlane.f32.xlu0 %v1081_v62 }
 0x4b5   :  { %v1083_v63 = vpop.xlane.xlu0 %1082 }
 0x4b6   :  { %v1084_v0 = vsub.f32 %v1076_v58, %v1083_v63 }
 0x4b8   :  { %v1085_v41 = vmul.f32 1.442695, %v1084_v0 }
 0x4ba   :  { %7640 = vpow2.f32 %v1085_v41  ;;  %v1400_v41 = vpack.c.bf16 %v8081_v45, %v8081_v45 }
 0x4c4   :  { %v7641_v1 = vpop.eup %7640 }
 0x4c5   :  { %v1087_v2 = vsel %vm843_vm0, %v7641_v1, 0.0 }
 0x4c6   :  { %1088 = vadd.xlane.f32.xlu1 %v1087_v2 }
 0x553   :  { %v1089_v4 = vpop.xlane.xlu1 %1088 }
 0x554   :  { %7642 = vrcp.f32 %v1089_v4 }
 0x55e   :  { %v7643_v5 = vpop.eup %7642 }
 0x55f   :  { %v1091_v6 = vmul.f32 %v7643_v5, %v7641_v1  ;;  %v1456_v1 = vpack.c.bf16 %v8241_v51, %v8241_v51 }
 0x561   :  { %v1092_v7 = vpack.c.bf16 %v1091_v6, %v1091_v6 }
 0x563   :  { %6470 = vmatmul.mubr.msk.bf16.vlgmr.msra.gmra.mrb[12].mxu1 %vm843_vm0, %v1092_v7 }
 0x564   :  { %1162 = vmatpush1.bf16.xpose.msra.mxu1 %v8064_v39  ;;  %1193 = vmatprep.mubr.bf16.mxu1 %v8087_v46 }
 0x565   :  { %6471 = vmatprep.subr.msk.bf16.mxu1 %vm931_vm1, %v8226_v30 }
 0x56b   :  { %1194 = vmatmul.mubr.bf16.vlgmr.msra.gmra.mrb[20].mxu1 %v1159_v21 }
 0x56c   :  { %1227 = vmatpush1.bf16.msra.mxu1 %v1221_v24  ;;  %1258 = vmatprep.mubr.bf16.mxu1 %v7735_v9 }
 0x56d   :  { %1281 = vmatprep.subr.bf16.mxu1 %v8062_v37 }
 0x63e   :  { %v1195_v25 = vpop.f32.mrb[20].mxu1 }
 0x63f   :  { %v1196_v46 = vadd.f32 %v1195_v25, %v8204_v50  ;;  %v1197_v27 = vpop.f32.mrb[21].mxu1 }
 0x640   :  { %v1198_v28 = vpop.f32.mrb[22].mxu1 }
 0x641   :  { %v1199_v29 = vpop.f32.mrb[23].mxu1  ;;  %v1201_v30 = vsel %vm843_vm0, %v1196_v46, -inf }
 0x642   :  { %1202 = vmax.xlane.f32.xlu0 %v1201_v30  ;;  %v1520_v30 = vpack.c.bf16 %v8092_v48, %v8092_v48 }
 0x6cf   :  { %v1203_v31 = vpop.xlane.xlu0 %1202 }
 0x6d0   :  { %v1204_v32 = vsub.f32 %v1196_v46, %v1203_v31  ;;  %v1576_v31 = vpack.c.bf16 %v8244_v36, %v8244_v36 }
 0x6d2   :  { %v1205_v42 = vmul.f32 1.442695, %v1204_v32 }
 0x6d4   :  { %7644 = vpow2.f32 %v1205_v42 }
 0x6de   :  { %v7645_v33 = vpop.eup %7644 }
 0x6df   :  { %v1207_v35 = vsel %vm843_vm0, %v7645_v33, 0.0 }
 0x6e0   :  { %1208 = vadd.xlane.f32.xlu1 %v1207_v35 }
 0x76d   :  { %v1209_v10 = vpop.xlane.xlu1 %1208 }
 0x76e   :  { %7646 = vrcp.f32 %v1209_v10 }
 0x778   :  { %v7647_v38 = vpop.eup %7646 }
 0x779   :  { %v1211_v12 = vmul.f32 %v7647_v38, %v7645_v33 }
 0x77b   :  { %v1212_v43 = vpack.c.bf16 %v1211_v12, %v1211_v12 }
 0x77d   :  { %6472 = vmatmul.mubr.msk.bf16.vlgmr.msra.gmra.mrb[12].mxu1 %vm843_vm0, %v1212_v43 }
 0x77e   :  { %1282 = vmatpush1.bf16.xpose.msra.mxu1 %v8064_v39  ;;  %1313 = vmatprep.mubr.bf16.mxu1 %v1280_v47 }
 0x77f   :  { %6473 = vmatprep.subr.msk.bf16.mxu1 %vm931_vm1, %v1336_v13 }
 0x785   :  { %1314 = vmatmul.mubr.bf16.vlgmr.msra.gmra.mrb[24].mxu1 %v8295_v54 }
 0x786   :  { %1347 = vmatpush1.bf16.msra.mxu1 %v8299_v44  ;;  %1378 = vmatprep.mubr.bf16.mxu1 %v7735_v9 }
 0x787   :  { %1401 = vmatprep.subr.bf16.mxu1 %v8062_v37 }
 0x858   :  { %v1315_v26 = vpop.f32.mrb[24].mxu1 }
 0x859   :  { %v1316_v17 = vadd.f32 %v1315_v26, %v8204_v50  ;;  %v1317_v55 = vpop.f32.mrb[25].mxu1  ;;  %v1696_v26 = vpack.c.bf16 %v8249_v8, %v8249_v8 }
 0x85a   :  { %v1318_v40 = vpop.f32.mrb[26].mxu1 }
 0x85b   :  { %v1319_v34 = vpop.f32.mrb[27].mxu1  ;;  %v1321_v56 = vsel %vm843_vm0, %v1316_v17, -inf }
 0x85c   :  { %1322 = vmax.xlane.f32.xlu0 %v1321_v56 }
 0x8e9   :  { %v1323_v57 = vpop.xlane.xlu0 %1322 }
 0x8ea   :  { %v1324_v3 = vsub.f32 %v1316_v17, %v1323_v57 }
 0x8ec   :  { %v1325_v58 = vmul.f32 1.442695, %v1324_v3 }
 0x8ee   :  { %7648 = vpow2.f32 %v1325_v58  ;;  %v7203_v58 = vld [vmem:[%s10419_s4 + $0x10] ss:$8 sps:$4 sm:$0xff]  }
 0x8f8   :  { %v7649_v59 = vpop.eup %7648 }
 0x8f9   :  { %v1327_v60 = vsel %vm843_vm0, %v7649_v59, 0.0 }
 0x8fa   :  { %1328 = vadd.xlane.f32.xlu1 %v1327_v60  ;;  %v7206_v60 = vld [vmem:[%s10419_s4 + $0x20] ss:$8 sps:$4 sm:$0xff]  }
 0x987   :  { %v1329_v61 = vpop.xlane.xlu1 %1328 }
 0x988   :  { %7650 = vrcp.f32 %v1329_v61  ;;  %v7211_v61 = vld [vmem:[%s10419_s4 + $0x34] ss:$8 sps:$4 sm:$0xff]  }
 0x992   :  { %v7651_v62 = vpop.eup %7650 }
 0x993   :  { %v1331_v63 = vmul.f32 %v7651_v62, %v7649_v59  ;;  %v7208_v59 = vld [vmem:[%s10419_s4 + $0x24] ss:$8 sps:$4 sm:$0xff]   ;;  %v7209_v62 = vld [vmem:[%s10419_s4 + $0x30] ss:$8 sps:$4 sm:$0xff]  }
 0x995   :  { %v1332_v0 = vpack.c.bf16 %v1331_v63, %v1331_v63  ;;  %v7214_v63 = vld [vmem:[%s10419_s4 + $0x44] ss:$8 sps:$4 sm:$0xff]  }
 0x997   :  { %6474 = vmatmul.mubr.msk.bf16.vlgmr.msra.gmra.mrb[12].mxu1 %vm843_vm0, %v1332_v0  ;;  %v7212_v0 = vld [vmem:[%s10419_s4 + $0x40] ss:$8 sps:$4 sm:$0xff]  }
 0x998   :  { %1402 = vmatpush1.bf16.xpose.msra.mxu1 %v8064_v39  ;;  %1433 = vmatprep.mubr.bf16.mxu1 %v1400_v41  ;;  %v7217_v41 = vld [vmem:[%s10419_s4 + $0x54] ss:$8 sps:$4 sm:$0xff]  }
 0x999   :  { %6475 = vmatprep.subr.msk.bf16.mxu1 %vm931_vm1, %v1456_v1  ;;  %v7215_v1 = vld [vmem:[%s10419_s4 + $0x50] ss:$8 sps:$4 sm:$0xff]  }
 0x99f   :  { %1434 = vmatmul.mubr.bf16.vlgmr.msra.gmra.mrb[28].mxu1 %v8295_v54 }
 0x9a0   :  { %1467 = vmatpush1.bf16.msra.mxu1 %v8299_v44  ;;  %1498 = vmatprep.mubr.bf16.mxu1 %v7735_v9 }
 0x9a1   :  { %1521 = vmatprep.subr.bf16.mxu1 %v8062_v37 }
 0xa72   :  { %v1435_v2 = vpop.f32.mrb[28].mxu1 }
 0xa73   :  { %v1436_v45 = vadd.f32 %v1435_v2, %v8204_v50  ;;  %v1437_v4 = vpop.f32.mrb[29].mxu1  ;;  %v7220_v2 = vld [vmem:[%s10419_s4 + $0x64] ss:$8 sps:$4 sm:$0xff]  }
 0xa74   :  { %v1438_v5 = vpop.f32.mrb[30].mxu1  ;;  %v7223_v4 = vld [vmem:[%s10419_s4 + $0x74] ss:$8 sps:$4 sm:$0xff]  }
 0xa75   :  { %v1439_v6 = vpop.f32.mrb[31].mxu1  ;;  %v1441_v51 = vsel %vm843_vm0, %v1436_v45, -inf  ;;  %v7221_v5 = vld [vmem:[%s10419_s4 + $0x70] ss:$8 sps:$4 sm:$0xff]  }
 0xa76   :  { %1442 = vmax.xlane.f32.xlu0 %v1441_v51  ;;  %v7226_v6 = vld [vmem:[%s10419_s4 + $0x84] ss:$8 sps:$4 sm:$0xff]   ;;  %v7224_v51 = vld [vmem:[%s10419_s4 + $0x80] ss:$8 sps:$4 sm:$0xff]  }
 0xb03   :  { %v1443_v7 = vpop.xlane.xlu0 %1442 }
 0xb04   :  { %v1444_v20 = vsub.f32 %v1436_v45, %v1443_v7  ;;  %v7218_v45 = vld [vmem:[%s10419_s4 + $0x60] ss:$8 sps:$4 sm:$0xff]   ;;  %v7229_v7 = vld [vmem:[%s10419_s4 + $0x94] ss:$8 sps:$4 sm:$0xff]  }
 0xb06   :  { %v1445_v21 = vmul.f32 1.442695, %v1444_v20  ;;  %v7227_v20 = vld [vmem:[%s10419_s4 + $0x90] ss:$8 sps:$4 sm:$0xff]  }
 0xb08   :  { %7652 = vpow2.f32 %v1445_v21  ;;  %v7232_v21 = vld [vmem:[%s10419_s4 + $0xa4] ss:$8 sps:$4 sm:$0xff]  }
 0xb12   :  { %v7653_v24 = vpop.eup %7652 }
 0xb13   :  { %v1447_v25 = vsel %vm843_vm0, %v7653_v24, 0.0 }
 0xb14   :  { %1448 = vadd.xlane.f32.xlu1 %v1447_v25  ;;  %v7235_v25 = vld [vmem:[%s10419_s4 + $0xb4] ss:$8 sps:$4 sm:$0xff]  }
 0xba1   :  { %v1449_v46 = vpop.xlane.xlu1 %1448 }
 0xba2   :  { %7654 = vrcp.f32 %v1449_v46  ;;  %v7233_v46 = vld [vmem:[%s10419_s4 + $0xb0] ss:$8 sps:$4 sm:$0xff]  }
 0xbac   :  { %v7655_v27 = vpop.eup %7654 }
 0xbad   :  { %v1451_v28 = vmul.f32 %v7655_v27, %v7653_v24  ;;  %v7230_v24 = vld [vmem:[%s10419_s4 + $0xa0] ss:$8 sps:$4 sm:$0xff]   ;;  %v7238_v27 = vld [vmem:[%s10419_s4 + $0xc4] ss:$8 sps:$4 sm:$0xff]  }
 0xbaf   :  { %v1452_v29 = vpack.c.bf16 %v1451_v28, %v1451_v28  ;;  %v7236_v28 = vld [vmem:[%s10419_s4 + $0xc0] ss:$8 sps:$4 sm:$0xff]  }
 0xbb1   :  { %6476 = vmatmul.mubr.msk.bf16.vlgmr.msra.gmra.mrb[12].mxu1 %vm843_vm0, %v1452_v29  ;;  %v7241_v29 = vld [vmem:[%s10419_s4 + $0xd4] ss:$8 sps:$4 sm:$0xff]  }
 0xbb2   :  { %1522 = vmatpush1.bf16.xpose.msra.mxu1 %v8064_v39  ;;  %1553 = vmatprep.mubr.bf16.mxu1 %v1520_v30  ;;  %v7239_v30 = vld [vmem:[%s10419_s4 + $0xd0] ss:$8 sps:$4 sm:$0xff]  }
 0xbb3   :  { %6477 = vmatprep.subr.msk.bf16.mxu1 %vm931_vm1, %v1576_v31  ;;  %v7244_v31 = vld [vmem:[%s10419_s4 + $0xe4] ss:$8 sps:$4 sm:$0xff]  }
 0xbb9   :  { %1554 = vmatmul.mubr.bf16.vlgmr.msra.gmra.mrb[32].mxu1 %v8295_v54 }
 0xbba   :  { %1587 = vmatpush1.bf16.msra.mxu1 %v8299_v44  ;;  %1618 = vmatprep.mubr.bf16.mxu1 %v7735_v9 }
 0xbbb   :  { %1641 = vmatprep.subr.bf16.mxu1 %v8062_v37 }
 0xc8c   :  { %v1555_v32 = vpop.f32.mrb[32].mxu1 }
 0xc8d   :  { %v1556_v48 = vadd.f32 %v1555_v32, %v8204_v50  ;;  %v1557_v42 = vpop.f32.mrb[33].mxu1  ;;  %v7242_v32 = vld [vmem:[%s10419_s4 + $0xe0] ss:$8 sps:$4 sm:$0xff]  }
 0xc8e   :  { %v1558_v33 = vpop.f32.mrb[34].mxu1 }
 0xc8f   :  { %v1559_v35 = vpop.f32.mrb[35].mxu1  ;;  %v1561_v36 = vsel %vm843_vm0, %v1556_v48, -inf }
 0xc90   :  { %1562 = vmax.xlane.f32.xlu0 %v1561_v36  ;;  %v7247_v36 = vld [vmem:[%s10419_s4 + $0xf4] ss:$8 sps:$4 sm:$0xff]  }
 0xd1d   :  { %v1563_v10 = vpop.xlane.xlu0 %1562 }
 0xd1e   :  { %v1564_v38 = vsub.f32 %v1556_v48, %v1563_v10  ;;  %v7245_v10 = vld [vmem:[%s10419_s4 + $0xf0] ss:$8 sps:$4 sm:$0xff]  }
 0xd20   :  { %v1565_v12 = vmul.f32 1.442695, %v1564_v38 }
 0xd22   :  { %7656 = vpow2.f32 %v1565_v12 }
 0xd2c   :  { %v7657_v43 = vpop.eup %7656 }
 0xd2d   :  { %v1567_v47 = vsel %vm843_vm0, %v7657_v43, 0.0 }
 0xd2e   :  { %1568 = vadd.xlane.f32.xlu1 %v1567_v47 }
 0xdbb   :  { %v1569_v13 = vpop.xlane.xlu1 %1568 }
 0xdbc   :  { %7658 = vrcp.f32 %v1569_v13 }
 0xdc6   :  { %v7659_v37 = vpop.eup %7658 }
 0xdc7   :  { %v1571_v52 = vmul.f32 %v7659_v37, %v7657_v43 }
 0xdc9   :  { %v1572_v53 = vpack.c.bf16 %v1571_v52, %v1571_v52  ;;  %v1783_v52 = vld [vmem:[%s10420_s5] sm:$0x3] }
 0xdcb   :  { %6478 = vmatmul.mubr.msk.bf16.vlgmr.msra.gmra.mrb[12].mxu1 %vm843_vm0, %v1572_v53  ;;  %v1788_v53 = vrot.slane %v1783_v52, %v8038_v16 }
 0xdcc   :  { %1642 = vmatpush1.bf16.xpose.msra.mxu1 %v8064_v39  ;;  %1673 = vmatprep.mubr.bf16.mxu1 %v1640_v11  ;;  %v1792_v11 = vrot.slane %v1783_v52, %v8049_v19 }
 0xdcd   :  { %6479 = vmatprep.subr.msk.bf16.mxu1 %vm931_vm1, %v1696_v26 }
 0xdd3   :  { %1674 = vmatmul.mubr.bf16.vlgmr.msra.gmra.mrb[36].mxu1 %v8295_v54 }
 0xdd4   :  { %1707 = vmatpush1.bf16.msra.mxu1 %v8299_v44  ;;  %1738 = vmatprep.mubr.bf16.mxu1 %v7735_v9  ;;  %v7202_v9 = vld [vmem:[%s10419_s4 + $0x4] ss:$8 sps:$4 sm:$0xff]   ;;  %v7205_v44 = vld [vmem:[%s10419_s4 + $0x14] ss:$8 sps:$4 sm:$0xff]  }
 0xdd5   :  { %1955 = vmatprep.subr.bf16.mxu0 %v7202_v9  ;;  %v2046_v9 = vld [vmem:[%s10421_s8 + $0x8] sm:$0xff] }
 0xea6   :  { %v1675_v17 = vpop.f32.mrb[36].mxu1 }
 0xea7   :  { %v1676_v55 = vadd.f32 %v1675_v17, %v8204_v50  ;;  %v1677_v49 = vpop.f32.mrb[37].mxu1  ;;  %v7200_v50 = vld [vmem:[%s10419_s4] ss:$8 sps:$4 sm:$0xff]  }
 0xea8   :  { %v1678_v40 = vpop.f32.mrb[38].mxu1  ;;  %1956 = vmatpush1.bf16.msra.mxu0 %v7200_v50  ;;  %v2053_v50 = vld [vmem:[%s10421_s8 + $0x40] sm:$0xff] }
 0xea9   :  { %v1679_v34 = vpop.f32.mrb[39].mxu1  ;;  %v1681_v56 = vsel %vm843_vm0, %v1676_v55, -inf  ;;  %1957 = vmatprep.subr.bf16.mxu0 %v7205_v44 }
 0xeaa   :  { %1682 = vmax.xlane.f32.xlu0 %v1681_v56  ;;  %v7732_v34 = vld [vmem:[%s10416_s0] sm:$0xff] }
 0xeac   :  { %1958 = vmatpush1.bf16.msra.mxu0 %v7203_v58 }
 0xead   :  { %1959 = vmatprep.subr.bf16.mxu0 %v7208_v59  ;;  %v2054_v59 = vld [vmem:[%s10421_s8 + $0x48] sm:$0xff] }
 0xeb0   :  { %1960 = vmatpush1.bf16.msra.mxu0 %v7206_v60  ;;  %v2061_v60 = vld [vmem:[%s10421_s8 + $0x80] sm:$0xff] }
 0xeb1   :  { %1961 = vmatprep.subr.bf16.mxu0 %v7211_v61  ;;  %v2069_v61 = vld [vmem:[%s10421_s8 + $0xc0] sm:$0xff] }
 0xeb4   :  { %1962 = vmatpush1.bf16.msra.mxu0 %v7209_v62  ;;  %v6515_v62 = vcombine.low %v2046_v9, %v2054_v59 }
 0xeb5   :  { %1963 = vmatprep.subr.bf16.mxu0 %v7214_v63  ;;  %v6516_v63 = vcombine.high %v2046_v9, %v2054_v59  ;;  %v2166_v9 = vld [vmem:[%s10421_s8 + $0x3c8] sm:$0xff] }
 0xeb8   :  { %1964 = vmatpush1.bf16.msra.mxu0 %v7212_v0  ;;  %v6530_v0 = vcombine.high %v2061_v60, %v2069_v61 }
 0xeb9   :  { %1965 = vmatprep.subr.bf16.mxu0 %v7217_v41  ;;  %v2062_v41 = vld [vmem:[%s10421_s8 + $0x88] sm:$0xff] }
 0xebc   :  { %1966 = vmatpush1.bf16.msra.mxu0 %v7215_v1  ;;  %v2070_v1 = vld [vmem:[%s10421_s8 + $0xc8] sm:$0xff] }
 0xebd   :  { %1967 = vmatprep.subr.bf16.mxu0 %v7220_v2  ;;  %v2077_v2 = vld [vmem:[%s10421_s8 + $0x100] sm:$0xff] }
 0xec0   :  { %1968 = vmatpush1.bf16.msra.mxu0 %v7218_v45  ;;  %v6532_v45 = vcombine.high %v2062_v41, %v2070_v1 }
 0xec1   :  { %1969 = vmatprep.subr.bf16.mxu0 %v7223_v4  ;;  %v2085_v4 = vld [vmem:[%s10421_s8 + $0x140] sm:$0xff] }
 0xec4   :  { %1970 = vmatpush1.bf16.msra.mxu0 %v7221_v5  ;;  %v2078_v5 = vld [vmem:[%s10421_s8 + $0x108] sm:$0xff] }
 0xec5   :  { %1971 = vmatprep.subr.bf16.mxu0 %v7226_v6  ;;  %v2086_v6 = vld [vmem:[%s10421_s8 + $0x148] sm:$0xff] }
 0xec8   :  { %1972 = vmatpush1.bf16.msra.mxu0 %v7224_v51  ;;  %v6529_v51 = vcombine.low %v2061_v60, %v2069_v61  ;;  %v2173_v61 = vld [vmem:[%s10421_s8 + $0x400] sm:$0xff] }
 0xec9   :  { %1973 = vmatprep.subr.bf16.mxu0 %v7229_v7  ;;  %v6531_v7 = vcombine.low %v2062_v41, %v2070_v1 }
 0xecc   :  { %1974 = vmatpush1.bf16.msra.mxu0 %v7227_v20  ;;  %v6546_v20 = vcombine.high %v2077_v2, %v2085_v4 }
 0xecd   :  { %1975 = vmatprep.subr.bf16.mxu0 %v7232_v21  ;;  %v6548_v21 = vcombine.high %v2078_v5, %v2086_v6 }
 0xed0   :  { %1976 = vmatpush1.bf16.msra.mxu0 %v7230_v24  ;;  %v2093_v24 = vld [vmem:[%s10421_s8 + $0x180] sm:$0xff] }
 0xed1   :  { %1977 = vmatprep.subr.bf16.mxu0 %v7235_v25  ;;  %v2101_v25 = vld [vmem:[%s10421_s8 + $0x1c0] sm:$0xff] }
 0xed4   :  { %1978 = vmatpush1.bf16.msra.mxu0 %v7233_v46  ;;  %v2094_v46 = vld [vmem:[%s10421_s8 + $0x188] sm:$0xff] }
 0xed5   :  { %1979 = vmatprep.subr.bf16.mxu0 %v7238_v27  ;;  %v2102_v27 = vld [vmem:[%s10421_s8 + $0x1c8] sm:$0xff] }
 0xed8   :  { %1980 = vmatpush1.bf16.msra.mxu0 %v7236_v28  ;;  %v6545_v28 = vcombine.low %v2077_v2, %v2085_v4  ;;  %v2189_v4 = vld [vmem:[%s10421_s8 + $0x480] sm:$0xff] }
 0xed9   :  { %1981 = vmatprep.subr.bf16.mxu0 %v7241_v29  ;;  %v6547_v29 = vcombine.low %v2078_v5, %v2086_v6  ;;  %v2197_v5 = vld [vmem:[%s10421_s8 + $0x4c0] sm:$0xff]  ;;  %v2190_v6 = vld [vmem:[%s10421_s8 + $0x488] sm:$0xff] }
 0xedc   :  { %1982 = vmatpush1.bf16.msra.mxu0 %v7239_v30  ;;  %v6562_v30 = vcombine.high %v2093_v24, %v2101_v25 }
 0xedd   :  { %1983 = vmatprep.subr.bf16.mxu0 %v7244_v31  ;;  %v6564_v31 = vcombine.high %v2094_v46, %v2102_v27 }
 0xee0   :  { %1984 = vmatpush1.bf16.msra.mxu0 %v7242_v32  ;;  %v2109_v32 = vld [vmem:[%s10421_s8 + $0x200] sm:$0xff] }
 0xee1   :  { %1985 = vmatprep.subr.bf16.mxu0 %v7247_v36  ;;  %v6563_v36 = vcombine.low %v2094_v46, %v2102_v27  ;;  %v2213_v46 = vld [vmem:[%s10421_s8 + $0x540] sm:$0xff]  ;;  %v2206_v27 = vld [vmem:[%s10421_s8 + $0x508] sm:$0xff] }
 0xee4   :  { %1986 = vmatpush1.bf16.msra.mxu0 %v7245_v10 }
 0xee5   :  { %3706 = vmatprep.subr.bf16.mxu0 %v6516_v63  ;;  %v2174_v63 = vld [vmem:[%s10421_s8 + $0x408] sm:$0xff] }
 0xf37   :  { %v1683_v8 = vpop.xlane.xlu0 %1682 }
 0xf38   :  { %v1684_v39 = vsub.f32 %v1676_v55, %v1683_v8 }
 0xf3a   :  { %v1685_v57 = vmul.f32 1.442695, %v1684_v39  ;;  %v7733_v39 = vld [vmem:[%s10416_s0 + $0x8] sm:$0xff] }
 0xf3c   :  { %7660 = vpow2.f32 %v1685_v57 }
 0xf46   :  { %v8347_v3 = vpop.eup %7660 }
 0xf47   :  { %v1687_v54 = vsel %vm843_vm0, %v8347_v3, 0.0 }
 0xf48   :  { %1688 = vadd.xlane.f32.xlu1 %v1687_v54  ;;  %v2045_v54 = vld [vmem:[%s10421_s8] sm:$0xff] }
 0xf49   :  { %v6513_v44 = vcombine.low %v2045_v54, %v2053_v50  ;;  %v6514_v58 = vcombine.high %v2045_v54, %v2053_v50  ;;  %v2165_v54 = vld [vmem:[%s10421_s8 + $0x3c0] sm:$0xff]  ;;  %v2158_v50 = vld [vmem:[%s10421_s8 + $0x388] sm:$0xff] }
 0xf4a   :  { %v6628_v60 = vcombine.high %v2158_v50, %v2166_v9  ;;  %v6627_v1 = vcombine.low %v2158_v50, %v2166_v9  ;;  %v2254_v50 = vld [vmem:[%s10421_s8 + $0x688] sm:$0xff] }
 0xf4b   :  { %3665 = vmatprep.subr.bf16.mxu1 %v6514_v58 }
 0xfd5   :  { %v1689_v48 = vpop.xlane.xlu1 %1688 }
 0xfd6   :  { %7662 = vrcp.f32 %v1689_v48  ;;  %v2117_v48 = vld [vmem:[%s10421_s8 + $0x240] sm:$0xff] }
 0xfd7   :  { %v6578_v10 = vcombine.high %v2109_v32, %v2117_v48 }
 0xfe0   :  { %v7663_v42 = vpop.eup %7662 }
 0xfe1   :  { %v1691_v33 = vmul.f32 %v7663_v42, %v8347_v3  ;;  %v2110_v42 = vld [vmem:[%s10421_s8 + $0x208] sm:$0xff] }
 0xfe3   :  { %v1692_v35 = vpack.c.bf16 %v1691_v33, %v1691_v33  ;;  %v2118_v33 = vld [vmem:[%s10421_s8 + $0x248] sm:$0xff] }
 0xfe4   :  { %v6579_v52 = vcombine.low %v2110_v42, %v2118_v33 }
 0xfe5   :  { %6480 = vmatmul.mubr.msk.bf16.vlgmr.msra.gmra.mrb[12].mxu1 %vm843_vm0, %v1692_v35  ;;  %v6561_v35 = vcombine.low %v2093_v24, %v2101_v25  ;;  %v2205_v25 = vld [vmem:[%s10421_s8 + $0x500] sm:$0xff] }
 0xfe6   :  { %3666 = vmatpush1.bf16.msra.mxu1 %v6513_v44 }
 0xfe7   :  { %3667 = vmatprep.subr.bf16.mxu1 %v6530_v0  ;;  %v2182_v0 = vld [vmem:[%s10421_s8 + $0x448] sm:$0xff] }
 0xfea   :  { %3668 = vmatpush1.bf16.msra.mxu1 %v6529_v51  ;;  %v2198_v51 = vld [vmem:[%s10421_s8 + $0x4c8] sm:$0xff] }
 0xfeb   :  { %3669 = vmatprep.subr.bf16.mxu1 %v6546_v20  ;;  %v6643_v20 = vcombine.low %v2174_v63, %v2182_v0  ;;  %v6660_v24 = vcombine.high %v2190_v6, %v2198_v51 }
 0xfee   :  { %3670 = vmatpush1.bf16.msra.mxu1 %v6545_v28  ;;  %v2214_v28 = vld [vmem:[%s10421_s8 + $0x548] sm:$0xff] }
 0xfef   :  { %3671 = vmatprep.subr.bf16.mxu1 %v6562_v30  ;;  %v6659_v30 = vcombine.low %v2190_v6, %v2198_v51  ;;  %v2286_v6 = vld [vmem:[%s10421_s8 + $0x788] sm:$0xff] }
 0xff2   :  { %3672 = vmatpush1.bf16.msra.mxu1 %v6561_v35 }
 0xff3   :  { %3673 = vmatprep.subr.bf16.mxu1 %v6578_v10 }
0x10b8   :  { %v1740_v38 = vpop.f32.mrb[12].mxu1 }
0x10b9   :  { %v1742_v12 = vpop.f32.mrb[13].mxu1  ;;  %v1749_v13 = vpack.c.bf16 %v1740_v38, %v1740_v38  ;;  %v6580_v38 = vcombine.high %v2110_v42, %v2118_v33  ;;  %v6675_v42 = vcombine.low %v2206_v27, %v2214_v28 }
0x10ba   :  { %v1750_v43 = vpack.c.bf16 %v1742_v12, %v1742_v12  ;;  %v1744_v47 = vpop.f32.mrb[14].mxu1  ;;  %v2125_v12 = vld [vmem:[%s10421_s8 + $0x280] sm:$0xff] }
0x10bb   :  { %v1745_v37 = vpop.f32.mrb[15].mxu1  ;;  %v2126_v47 = vld [vmem:[%s10421_s8 + $0x288] sm:$0xff] }
0x10bc   :  { %1987 = vmatprep.mubr.bf16.mxu0 %v1750_v43  ;;  %v2133_v43 = vld [vmem:[%s10421_s8 + $0x2c0] sm:$0xff]  ;;  %v6577_v37 = vcombine.low %v2109_v32, %v2117_v48  ;;  %v6676_v32 = vcombine.high %v2206_v27, %v2214_v28  ;;  %v6673_v48 = vcombine.low %v2205_v25, %v2213_v46  ;;  %v2048_v27 = vld [vmem:[%s10421_s8 + $0x18] sm:$0xff] }
0x10bd   :  { %1988 = vmatmul.mubr.bf16.vlgmr.msra.gmra.mrb[8].mxu0 %v1749_v13  ;;  %v2134_v13 = vld [vmem:[%s10421_s8 + $0x2c8] sm:$0xff] }
0x10be   :  { %3707 = vmatpush1.bf16.msra.mxu0 %v6515_v62  ;;  %3674 = vmatpush1.bf16.msra.mxu1 %v6577_v37  ;;  %v2181_v62 = vld [vmem:[%s10421_s8 + $0x440] sm:$0xff]  ;;  %v2230_v37 = vld [vmem:[%s10421_s8 + $0x5c8] sm:$0xff] }
0x10bf   :  { %3708 = vmatprep.subr.bf16.mxu0 %v6532_v45  ;;  %v6642_v2 = vcombine.high %v2173_v61, %v2181_v62  ;;  %v6644_v45 = vcombine.high %v2174_v63, %v2182_v0  ;;  %v2270_v63 = vld [vmem:[%s10421_s8 + $0x708] sm:$0xff] }
0x10c2   :  { %3709 = vmatpush1.bf16.msra.mxu0 %v6531_v7  ;;  %v6641_v7 = vcombine.low %v2173_v61, %v2181_v62  ;;  %v2269_v61 = vld [vmem:[%s10421_s8 + $0x700] sm:$0xff] }
0x10c3   :  { %3710 = vmatprep.subr.bf16.mxu0 %v6548_v21  ;;  %v6658_v21 = vcombine.high %v2189_v4, %v2197_v5  ;;  %v2277_v62 = vld [vmem:[%s10421_s8 + $0x740] sm:$0xff] }
0x10c4   :  { %v6738_v0 = vcombine.high %v2269_v61, %v2277_v62 }
0x10c6   :  { %3711 = vmatpush1.bf16.msra.mxu0 %v6547_v29  ;;  %v6657_v29 = vcombine.low %v2189_v4, %v2197_v5  ;;  %v2285_v4 = vld [vmem:[%s10421_s8 + $0x780] sm:$0xff] }
0x10c7   :  { %3712 = vmatprep.subr.bf16.mxu0 %v6564_v31  ;;  %v6674_v31 = vcombine.high %v2205_v25, %v2213_v46  ;;  %v2293_v5 = vld [vmem:[%s10421_s8 + $0x7c0] sm:$0xff]  ;;  %v2047_v25 = vld [vmem:[%s10421_s8 + $0x10] sm:$0xff] }
0x10c8   :  { %v6754_v51 = vcombine.high %v2285_v4, %v2293_v5  ;;  %v2055_v46 = vld [vmem:[%s10421_s8 + $0x50] sm:$0xff] }
0x10c9   :  { %v6518_v28 = vcombine.high %v2047_v25, %v2055_v46 }
0x10ca   :  { %3713 = vmatpush1.bf16.msra.mxu0 %v6563_v36 }
0x10cb   :  { %3714 = vmatprep.subr.bf16.mxu0 %v6580_v38 }
0x10ce   :  { %3715 = vmatpush1.bf16.msra.mxu0 %v6579_v52 }
0x1190   :  { %v1989_v26 = vpop.f32.mrb[8].mxu0 }
0x1191   :  { %v1990_v17 = vadd.f32 %v1989_v26, %v1788_v53  ;;  %v1991_v55 = vpop.f32.mrb[9].mxu0  ;;  %v6594_v53 = vcombine.high %v2125_v12, %v2133_v43  ;;  %v2141_v26 = vld [vmem:[%s10421_s8 + $0x300] sm:$0xff] }
0x1192   :  { %v1992_v49 = vadd.f32 %v1991_v55, %v1792_v11  ;;  %v1993_v40 = vpop.f32.mrb[10].mxu0  ;;  %v6596_v11 = vcombine.high %v2126_v47, %v2134_v13  ;;  %v2142_v55 = vld [vmem:[%s10421_s8 + $0x308] sm:$0xff] }
0x1193   :  { %v8457_v56 = vadd.f32 %v7732_v34, %v1990_v17  ;;  %v1994_v8 = vpop.f32.mrb[11].mxu0  ;;  %v2149_v17 = vld [vmem:[%s10421_s8 + $0x340] sm:$0xff]  ;;  %v6593_v40 = vcombine.low %v2125_v12, %v2133_v43  ;;  %3675 = vmatprep.subr.bf16.mxu1 %v6594_v53  ;;  %v6595_v34 = vcombine.low %v2126_v47, %v2134_v13 }
0x1194   :  { %v8462_v57 = vadd.f32 %v7733_v39, %v1992_v49  ;;  %v2150_v49 = vld [vmem:[%s10421_s8 + $0x348] sm:$0xff]  ;;  %v6610_v8 = vcombine.high %v2141_v26, %v2149_v17  ;;  %3716 = vmatprep.subr.bf16.mxu0 %v6596_v11  ;;  %v6609_v44 = vcombine.low %v2141_v26, %v2149_v17  ;;  %v2221_v47 = vld [vmem:[%s10421_s8 + $0x580] sm:$0xff] }
0x1195   :  { %v6612_v39 = vcombine.high %v2142_v55, %v2150_v49  ;;  %3676 = vmatpush1.bf16.msra.mxu1 %v6593_v40  ;;  %3717 = vmatpush1.bf16.msra.mxu0 %v6595_v34  ;;  %v6611_v58 = vcombine.low %v2142_v55, %v2150_v49  ;;  %v2237_v26 = vld [vmem:[%s10421_s8 + $0x600] sm:$0xff]  ;;  %v2238_v55 = vld [vmem:[%s10421_s8 + $0x608] sm:$0xff] }
0x1196   :  { %v2000_v3 = vadd.f32 %v8462_v57, %v8457_v56  ;;  %3677 = vmatprep.subr.bf16.mxu1 %v6610_v8  ;;  %v2245_v17 = vld [vmem:[%s10421_s8 + $0x640] sm:$0xff]  ;;  %v2246_v40 = vld [vmem:[%s10421_s8 + $0x648] sm:$0xff] }
0x1197   :  { %3718 = vmatprep.subr.bf16.mxu0 %v6612_v39  ;;  %v6706_v49 = vcombine.high %v2237_v26, %v2245_v17  ;;  %v6705_v34 = vcombine.low %v2237_v26, %v2245_v17  ;;  %v6707_v8 = vcombine.low %v2238_v55, %v2246_v40  ;;  %v6708_v39 = vcombine.high %v2238_v55, %v2246_v40  ;;  %v2063_v17 = vld [vmem:[%s10421_s8 + $0x90] sm:$0xff] }
0x1198   :  { %2001 = vadd.xlane.f32.xlu0 %v2000_v3  ;;  %v2157_v3 = vld [vmem:[%s10421_s8 + $0x380] sm:$0xff]  ;;  %v2071_v55 = vld [vmem:[%s10421_s8 + $0xd0] sm:$0xff] }
0x1199   :  { %v6626_v59 = vcombine.high %v2157_v3, %v2165_v54  ;;  %3678 = vmatpush1.bf16.msra.mxu1 %v6609_v44  ;;  %v6625_v41 = vcombine.low %v2157_v3, %v2165_v54  ;;  %3719 = vmatpush1.bf16.msra.mxu0 %v6611_v58  ;;  %v2253_v3 = vld [vmem:[%s10421_s8 + $0x680] sm:$0xff]  ;;  %v2262_v44 = vld [vmem:[%s10421_s8 + $0x6c8] sm:$0xff] }
0x119a   :  { %3720 = vmatprep.subr.bf16.mxu0 %v6628_v60  ;;  %v2261_v54 = vld [vmem:[%s10421_s8 + $0x6c0] sm:$0xff]  ;;  %v6724_v60 = vcombine.high %v2254_v50, %v2262_v44 }
0x119b   :  { %3679 = vmatprep.subr.bf16.mxu1 %v6626_v59  ;;  %v6722_v9 = vcombine.high %v2253_v3, %v2261_v54  ;;  %v6721_v58 = vcombine.low %v2253_v3, %v2261_v54  ;;  %v6723_v59 = vcombine.low %v2254_v50, %v2262_v44  ;;  %v2087_v3 = vld [vmem:[%s10421_s8 + $0x150] sm:$0xff]  ;;  %v2080_v54 = vld [vmem:[%s10421_s8 + $0x118] sm:$0xff] }
0x119c   :  { %v2088_v50 = vld [vmem:[%s10421_s8 + $0x158] sm:$0xff] }
0x119d   :  { %3680 = vmatpush1.bf16.msra.mxu1 %v6625_v41  ;;  %3721 = vmatpush1.bf16.msra.mxu0 %v6627_v1  ;;  %v2278_v41 = vld [vmem:[%s10421_s8 + $0x748] sm:$0xff]  ;;  %v6737_v1 = vcombine.low %v2269_v61, %v2277_v62  ;;  %v2103_v61 = vld [vmem:[%s10421_s8 + $0x1d0] sm:$0xff]  ;;  %v2096_v62 = vld [vmem:[%s10421_s8 + $0x198] sm:$0xff] }
0x119e   :  { %3681 = vmatprep.subr.bf16.mxu1 %v6642_v2  ;;  %3722 = vmatprep.subr.bf16.mxu0 %v6644_v45  ;;  %v6739_v2 = vcombine.low %v2270_v63, %v2278_v41  ;;  %v6740_v45 = vcombine.high %v2270_v63, %v2278_v41  ;;  %v2104_v63 = vld [vmem:[%s10421_s8 + $0x1d8] sm:$0xff]  ;;  %v6551_v41 = vcombine.low %v2080_v54, %v2088_v50 }
0x11a1   :  { %3682 = vmatpush1.bf16.msra.mxu1 %v6641_v7  ;;  %3723 = vmatpush1.bf16.msra.mxu0 %v6643_v20  ;;  %v2294_v7 = vld [vmem:[%s10421_s8 + $0x7c8] sm:$0xff]  ;;  %v6753_v20 = vcombine.low %v2285_v4, %v2293_v5  ;;  %v2119_v4 = vld [vmem:[%s10421_s8 + $0x250] sm:$0xff]  ;;  %v2112_v5 = vld [vmem:[%s10421_s8 + $0x218] sm:$0xff] }
0x11a2   :  { %3683 = vmatprep.subr.bf16.mxu1 %v6658_v21  ;;  %3724 = vmatprep.subr.bf16.mxu0 %v6660_v24  ;;  %v6755_v21 = vcombine.low %v2286_v6, %v2294_v7  ;;  %v6756_v24 = vcombine.high %v2286_v6, %v2294_v7  ;;  %v2120_v6 = vld [vmem:[%s10421_s8 + $0x258] sm:$0xff]  ;;  %v6567_v7 = vcombine.low %v2096_v62, %v2104_v63 }
0x11a5   :  { %3684 = vmatpush1.bf16.msra.mxu1 %v6657_v29  ;;  %3725 = vmatpush1.bf16.msra.mxu0 %v6659_v30  ;;  %v2056_v29 = vld [vmem:[%s10421_s8 + $0x58] sm:$0xff]  ;;  %v6517_v30 = vcombine.low %v2047_v25, %v2055_v46  ;;  %v2135_v25 = vld [vmem:[%s10421_s8 + $0x2d0] sm:$0xff] }
0x11a6   :  { %3685 = vmatprep.subr.bf16.mxu1 %v6674_v31  ;;  %3726 = vmatprep.subr.bf16.mxu0 %v6676_v32  ;;  %v6519_v31 = vcombine.low %v2048_v27, %v2056_v29  ;;  %v6520_v32 = vcombine.high %v2048_v27, %v2056_v29  ;;  %v2128_v46 = vld [vmem:[%s10421_s8 + $0x298] sm:$0xff]  ;;  %v6583_v29 = vcombine.low %v2112_v5, %v2120_v6 }
0x11a7   :  { %v2136_v27 = vld [vmem:[%s10421_s8 + $0x2d8] sm:$0xff] }
0x11a9   :  { %3686 = vmatpush1.bf16.msra.mxu1 %v6673_v48  ;;  %3727 = vmatpush1.bf16.msra.mxu0 %v6675_v42 }
0x1225   :  { %v2002_v33 = vpop.xlane.xlu0 %2001 }
0x1226   :  { %v2004_v35 = vmul.f32 0.00390625, %v2002_v33 }
0x1228   :  { %v8599_v36 = vsub.f32 %v8457_v56, %v2004_v35  ;;  %v8602_v10 = vsub.f32 %v8462_v57, %v2004_v35  ;;  %v2229_v56 = vld [vmem:[%s10421_s8 + $0x5c0] sm:$0xff]  ;;  %v2222_v57 = vld [vmem:[%s10421_s8 + $0x588] sm:$0xff] }
0x1229   :  { %v6690_v13 = vcombine.high %v2221_v47, %v2229_v56  ;;  %v6689_v52 = vcombine.low %v2221_v47, %v2229_v56  ;;  %v6691_v53 = vcombine.low %v2222_v57, %v2230_v37  ;;  %v6692_v11 = vcombine.high %v2222_v57, %v2230_v37  ;;  %v1998_v35 = vld [vmem:[%s10422_s6] sm:$0x3] }
0x122a   :  { %v2007_v38 = vmul.f32 %v8599_v36, %v8599_v36  ;;  %v2008_v12 = vmul.f32 %v8602_v10, %v8602_v10 }
0x122b   :  { %3687 = vmatprep.subr.bf16.mxu1 %v6690_v13  ;;  %3728 = vmatprep.subr.bf16.mxu0 %v6692_v11 }
0x122c   :  { %v2009_v43 = vadd.f32 %v2008_v12, %v2007_v38  ;;  %3688 = vmatpush1.bf16.msra.mxu1 %v6689_v52  ;;  %3729 = vmatpush1.bf16.msra.mxu0 %v6691_v53  ;;  %v1999_v38 = vld [vmem:[%s10423_s7] sm:$0x3]  ;;  %v2021_v12 = vrot.slane %v1998_v35, %v8038_v16 }
0x122d   :  { %3689 = vmatprep.subr.bf16.mxu1 %v6706_v49  ;;  %3730 = vmatprep.subr.bf16.mxu0 %v6708_v39  ;;  %v2034_v56 = vrot.slane %v1999_v38, %v8038_v16  ;;  %v2038_v57 = vrot.slane %v1999_v38, %v8049_v19  ;;  %v6599_v38 = vcombine.low %v2128_v46, %v2136_v27 }
0x122e   :  { %2010 = vadd.xlane.f32.xlu1 %v2009_v43  ;;  %v2025_v43 = vrot.slane %v1998_v35, %v8049_v19 }
0x1230   :  { %3690 = vmatpush1.bf16.msra.mxu1 %v6705_v34  ;;  %3731 = vmatpush1.bf16.msra.mxu0 %v6707_v8  ;;  %v2079_v34 = vld [vmem:[%s10421_s8 + $0x110] sm:$0xff]  ;;  %v6534_v8 = vcombine.high %v2063_v17, %v2071_v55 }
0x1231   :  { %3691 = vmatprep.subr.bf16.mxu1 %v6722_v9  ;;  %3732 = vmatprep.subr.bf16.mxu0 %v6724_v60  ;;  %v6533_v9 = vcombine.low %v2063_v17, %v2071_v55  ;;  %v2095_v60 = vld [vmem:[%s10421_s8 + $0x190] sm:$0xff] }
0x1232   :  { %v2175_v55 = vld [vmem:[%s10421_s8 + $0x410] sm:$0xff] }
0x1234   :  { %3692 = vmatpush1.bf16.msra.mxu1 %v6721_v58  ;;  %3733 = vmatpush1.bf16.msra.mxu0 %v6723_v59  ;;  %v6550_v58 = vcombine.high %v2079_v34, %v2087_v3  ;;  %v6552_v59 = vcombine.high %v2080_v54, %v2088_v50  ;;  %v2191_v50 = vld [vmem:[%s10421_s8 + $0x490] sm:$0xff] }
0x1235   :  { %3693 = vmatprep.subr.bf16.mxu1 %v6738_v0  ;;  %3734 = vmatprep.subr.bf16.mxu0 %v6740_v45  ;;  %v6549_v0 = vcombine.low %v2079_v34, %v2087_v3  ;;  %v2111_v45 = vld [vmem:[%s10421_s8 + $0x210] sm:$0xff]  ;;  %v2184_v34 = vld [vmem:[%s10421_s8 + $0x458] sm:$0xff] }
0x1238   :  { %3694 = vmatpush1.bf16.msra.mxu1 %v6737_v1  ;;  %3735 = vmatpush1.bf16.msra.mxu0 %v6739_v2  ;;  %v6566_v1 = vcombine.high %v2095_v60, %v2103_v61  ;;  %v6568_v2 = vcombine.high %v2096_v62, %v2104_v63  ;;  %v2207_v63 = vld [vmem:[%s10421_s8 + $0x510] sm:$0xff] }
0x1239   :  { %3695 = vmatprep.subr.bf16.mxu1 %v6754_v51  ;;  %3736 = vmatprep.subr.bf16.mxu0 %v6756_v24  ;;  %v6565_v51 = vcombine.low %v2095_v60, %v2103_v61  ;;  %v2127_v24 = vld [vmem:[%s10421_s8 + $0x290] sm:$0xff] }
0x123a   :  { %v6597_v35 = vcombine.low %v2127_v24, %v2135_v25 }
0x123c   :  { %3696 = vmatpush1.bf16.msra.mxu1 %v6753_v20  ;;  %3737 = vmatpush1.bf16.msra.mxu0 %v6755_v21  ;;  %v6582_v20 = vcombine.high %v2111_v45, %v2119_v4  ;;  %v6584_v21 = vcombine.high %v2112_v5, %v2120_v6  ;;  %v2223_v6 = vld [vmem:[%s10421_s8 + $0x590] sm:$0xff] }
0x123d   :  { %3747 = vmatprep.subr.bf16.mxu1 %v6518_v28  ;;  %3788 = vmatprep.subr.bf16.mxu0 %v6520_v32  ;;  %v6581_v28 = vcombine.low %v2111_v45, %v2119_v4  ;;  %v2143_v32 = vld [vmem:[%s10421_s8 + $0x310] sm:$0xff] }
0x12bb   :  { %v2011_v48 = vpop.xlane.xlu1 %2010 }
0x12bc   :  { %v2012_v42 = vmul.f32 0.00390625, %v2011_v48  ;;  %v2151_v48 = vld [vmem:[%s10421_s8 + $0x350] sm:$0xff] }
0x12be   :  { %v2013_v33 = vadd.f32 1e-05, %v2012_v42  ;;  %v2144_v42 = vld [vmem:[%s10421_s8 + $0x318] sm:$0xff] }
0x12c0   :  { %7664 = vrsqrt.f32 %v2013_v33  ;;  %v2152_v33 = vld [vmem:[%s10421_s8 + $0x358] sm:$0xff] }
0x12ca   :  { %v7665_v47 = vpop.eup %7664 }
0x12cb   :  { %v2015_v13 = vmul.f32 %v7665_v47, %v8599_v36  ;;  %v2016_v37 = vmul.f32 %v7665_v47, %v8602_v10  ;;  %v2064_v36 = vld [vmem:[%s10421_s8 + $0x98] sm:$0xff]  ;;  %v2159_v47 = vld [vmem:[%s10421_s8 + $0x390] sm:$0xff] }
0x12cc   :  { %v2072_v10 = vld [vmem:[%s10421_s8 + $0xd8] sm:$0xff] }
0x12cd   :  { %v2028_v52 = vmul.f32 %v2021_v12, %v2015_v13  ;;  %v2029_v53 = vmul.f32 %v2025_v43, %v2016_v37  ;;  %v6536_v39 = vcombine.high %v2064_v36, %v2072_v10  ;;  %v6535_v44 = vcombine.low %v2064_v36, %v2072_v10  ;;  %v2168_v13 = vld [vmem:[%s10421_s8 + $0x3d8] sm:$0xff]  ;;  %v2183_v36 = vld [vmem:[%s10421_s8 + $0x450] sm:$0xff] }
0x12ce   :  { %v6614_v12 = vcombine.high %v2143_v32, %v2151_v48  ;;  %v6616_v43 = vcombine.high %v2144_v42, %v2152_v33  ;;  %v6613_v37 = vcombine.low %v2143_v32, %v2151_v48  ;;  %v2176_v10 = vld [vmem:[%s10421_s8 + $0x418] sm:$0xff]  ;;  %v6646_v3 = vcombine.high %v2175_v55, %v2183_v36 }
0x12cf   :  { %v8692_v11 = vadd.f32 %v2034_v56, %v2028_v52  ;;  %v8694_v26 = vadd.f32 %v2038_v57, %v2029_v53  ;;  %v2167_v56 = vld [vmem:[%s10421_s8 + $0x3d0] sm:$0xff]  ;;  %v2160_v57 = vld [vmem:[%s10421_s8 + $0x398] sm:$0xff]  ;;  %v6615_v52 = vcombine.low %v2144_v42, %v2152_v33  ;;  %v6648_v54 = vcombine.high %v2176_v10, %v2184_v34 }
0x12d0   :  { %v6630_v53 = vcombine.high %v2159_v47, %v2167_v56  ;;  %v6632_v17 = vcombine.high %v2160_v57, %v2168_v13  ;;  %v6647_v60 = vcombine.low %v2176_v10, %v2184_v34  ;;  %v2255_v33 = vld [vmem:[%s10421_s8 + $0x690] sm:$0xff] }
0x12d1   :  { %v8710_v49 = vpack.c.bf16 %v8692_v11, %v8692_v11  ;;  %v8714_v40 = vpack.c.bf16 %v8694_v26, %v8694_v26  ;;  %v2287_v34 = vld [vmem:[%s10421_s8 + $0x790] sm:$0xff] }
0x12d3   :  { %3697 = vmatprep.mubr.bf16.mxu1 %v8714_v40  ;;  %3738 = vmatprep.mubr.bf16.mxu0 %v8714_v40 }
0x12d4   :  { %3698 = vmatmul.mubr.bf16.vlgmr.msra.gmra.mrb[40].mxu1 %v8710_v49  ;;  %3739 = vmatmul.mubr.bf16.vlgmr.msra.gmra.mrb[12].mxu0 %v8710_v49 }
0x12d5   :  { %3748 = vmatpush1.bf16.msra.mxu1 %v6517_v30  ;;  %3789 = vmatpush1.bf16.msra.mxu0 %v6519_v31  ;;  %v6598_v30 = vcombine.high %v2127_v24, %v2135_v25  ;;  %v6600_v31 = vcombine.high %v2128_v46, %v2136_v27  ;;  %v2239_v27 = vld [vmem:[%s10421_s8 + $0x610] sm:$0xff] }
0x12d6   :  { %3779 = vmatprep.mubr.bf16.mxu1 %v8714_v40  ;;  %3820 = vmatprep.mubr.bf16.mxu0 %v8714_v40 }
0x12d7   :  { %3749 = vmatprep.subr.bf16.mxu1 %v6534_v8  ;;  %3790 = vmatprep.subr.bf16.mxu0 %v6536_v39  ;;  %v6629_v8 = vcombine.low %v2159_v47, %v2167_v56  ;;  %v6631_v39 = vcombine.low %v2160_v57, %v2168_v13  ;;  %v2271_v13 = vld [vmem:[%s10421_s8 + $0x710] sm:$0xff] }
0x12d9   :  { %3750 = vmatpush1.bf16.msra.mxu1 %v6533_v9  ;;  %3791 = vmatpush1.bf16.msra.mxu0 %v6535_v44  ;;  %v2199_v9 = vld [vmem:[%s10421_s8 + $0x4d0] sm:$0xff]  ;;  %v2192_v44 = vld [vmem:[%s10421_s8 + $0x498] sm:$0xff] }
0x12da   :  { %3751 = vmatprep.subr.bf16.mxu1 %v6550_v58  ;;  %3792 = vmatprep.subr.bf16.mxu0 %v6552_v59  ;;  %v2200_v58 = vld [vmem:[%s10421_s8 + $0x4d8] sm:$0xff]  ;;  %v6645_v59 = vcombine.low %v2175_v55, %v2183_v36  ;;  %v6662_v61 = vcombine.high %v2191_v50, %v2199_v9 }
0x12db   :  { %v6664_v62 = vcombine.high %v2192_v44, %v2200_v58  ;;  %v6663_v45 = vcombine.low %v2192_v44, %v2200_v58  ;;  %v2049_v58 = vld [vmem:[%s10421_s8 + $0x20] sm:$0xff] }
0x12dd   :  { %3752 = vmatpush1.bf16.msra.mxu1 %v6549_v0  ;;  %3793 = vmatpush1.bf16.msra.mxu0 %v6551_v41  ;;  %v2215_v0 = vld [vmem:[%s10421_s8 + $0x550] sm:$0xff]  ;;  %v2208_v41 = vld [vmem:[%s10421_s8 + $0x518] sm:$0xff] }
0x12de   :  { %3753 = vmatprep.subr.bf16.mxu1 %v6566_v1  ;;  %3794 = vmatprep.subr.bf16.mxu0 %v6568_v2  ;;  %v2216_v1 = vld [vmem:[%s10421_s8 + $0x558] sm:$0xff]  ;;  %v6661_v2 = vcombine.low %v2191_v50, %v2199_v9  ;;  %v6678_v4 = vcombine.high %v2207_v63, %v2215_v0 }
0x12df   :  { %v6680_v5 = vcombine.high %v2208_v41, %v2216_v1  ;;  %v6679_v24 = vcombine.low %v2208_v41, %v2216_v1  ;;  %v2065_v1 = vld [vmem:[%s10421_s8 + $0xa0] sm:$0xff] }
0x12e1   :  { %3754 = vmatpush1.bf16.msra.mxu1 %v6565_v51  ;;  %3795 = vmatpush1.bf16.msra.mxu0 %v6567_v7  ;;  %v2231_v51 = vld [vmem:[%s10421_s8 + $0x5d0] sm:$0xff]  ;;  %v2224_v7 = vld [vmem:[%s10421_s8 + $0x598] sm:$0xff] }
0x12e2   :  { %3755 = vmatprep.subr.bf16.mxu1 %v6582_v20  ;;  %3796 = vmatprep.subr.bf16.mxu0 %v6584_v21  ;;  %v2232_v20 = vld [vmem:[%s10421_s8 + $0x5d8] sm:$0xff]  ;;  %v6677_v21 = vcombine.low %v2207_v63, %v2215_v0  ;;  %v6694_v25 = vcombine.high %v2223_v6, %v2231_v51 }
0x12e3   :  { %v6696_v46 = vcombine.high %v2224_v7, %v2232_v20  ;;  %v6695_v32 = vcombine.low %v2224_v7, %v2232_v20  ;;  %v2081_v20 = vld [vmem:[%s10421_s8 + $0x120] sm:$0xff] }
0x12e5   :  { %3756 = vmatpush1.bf16.msra.mxu1 %v6581_v28  ;;  %3797 = vmatpush1.bf16.msra.mxu0 %v6583_v29  ;;  %v2247_v28 = vld [vmem:[%s10421_s8 + $0x650] sm:$0xff]  ;;  %v2240_v29 = vld [vmem:[%s10421_s8 + $0x618] sm:$0xff] }
0x12e6   :  { %3757 = vmatprep.subr.bf16.mxu1 %v6598_v30  ;;  %3798 = vmatprep.subr.bf16.mxu0 %v6600_v31  ;;  %v2248_v30 = vld [vmem:[%s10421_s8 + $0x658] sm:$0xff]  ;;  %v6693_v31 = vcombine.low %v2223_v6, %v2231_v51  ;;  %v6710_v48 = vcombine.high %v2239_v27, %v2247_v28 }
0x12e7   :  { %v6712_v42 = vcombine.high %v2240_v29, %v2248_v30  ;;  %v6711_v47 = vcombine.low %v2240_v29, %v2248_v30  ;;  %v2097_v29 = vld [vmem:[%s10421_s8 + $0x1a0] sm:$0xff] }
0x12e9   :  { %3758 = vmatpush1.bf16.msra.mxu1 %v6597_v35  ;;  %3799 = vmatpush1.bf16.msra.mxu0 %v6599_v38  ;;  %v2263_v35 = vld [vmem:[%s10421_s8 + $0x6d0] sm:$0xff]  ;;  %v2256_v38 = vld [vmem:[%s10421_s8 + $0x698] sm:$0xff] }
0x12ea   :  { %3759 = vmatprep.subr.bf16.mxu1 %v6614_v12  ;;  %3800 = vmatprep.subr.bf16.mxu0 %v6616_v43  ;;  %v2264_v12 = vld [vmem:[%s10421_s8 + $0x6d8] sm:$0xff]  ;;  %v6709_v43 = vcombine.low %v2239_v27, %v2247_v28  ;;  %v6726_v56 = vcombine.high %v2255_v33, %v2263_v35 }
0x12eb   :  { %v6728_v57 = vcombine.high %v2256_v38, %v2264_v12  ;;  %v6727_v55 = vcombine.low %v2256_v38, %v2264_v12  ;;  %v2113_v38 = vld [vmem:[%s10421_s8 + $0x220] sm:$0xff] }
0x12ed   :  { %3760 = vmatpush1.bf16.msra.mxu1 %v6613_v37  ;;  %3801 = vmatpush1.bf16.msra.mxu0 %v6615_v52  ;;  %v2279_v37 = vld [vmem:[%s10421_s8 + $0x750] sm:$0xff]  ;;  %v2272_v52 = vld [vmem:[%s10421_s8 + $0x718] sm:$0xff] }
0x12ee   :  { %3761 = vmatprep.subr.bf16.mxu1 %v6630_v53  ;;  %3802 = vmatprep.subr.bf16.mxu0 %v6632_v17  ;;  %v2280_v53 = vld [vmem:[%s10421_s8 + $0x758] sm:$0xff]  ;;  %v6725_v17 = vcombine.low %v2255_v33, %v2263_v35  ;;  %v6742_v36 = vcombine.high %v2271_v13, %v2279_v37 }
0x12ef   :  { %v6744_v10 = vcombine.high %v2272_v52, %v2280_v53  ;;  %v6743_v50 = vcombine.low %v2272_v52, %v2280_v53 }
0x12f1   :  { %3762 = vmatpush1.bf16.msra.mxu1 %v6629_v8  ;;  %3803 = vmatpush1.bf16.msra.mxu0 %v6631_v39  ;;  %v2295_v8 = vld [vmem:[%s10421_s8 + $0x7d0] sm:$0xff]  ;;  %v2288_v39 = vld [vmem:[%s10421_s8 + $0x798] sm:$0xff] }
0x12f2   :  { %3763 = vmatprep.subr.bf16.mxu1 %v6646_v3  ;;  %3804 = vmatprep.subr.bf16.mxu0 %v6648_v54  ;;  %v2296_v3 = vld [vmem:[%s10421_s8 + $0x7d8] sm:$0xff]  ;;  %v6741_v54 = vcombine.low %v2271_v13, %v2279_v37  ;;  %v6758_v9 = vcombine.high %v2287_v34, %v2295_v8  ;;  %v2129_v13 = vld [vmem:[%s10421_s8 + $0x2a0] sm:$0xff] }
0x12f3   :  { %v6760_v44 = vcombine.high %v2288_v39, %v2296_v3  ;;  %v6759_v63 = vcombine.low %v2288_v39, %v2296_v3  ;;  %v2137_v37 = vld [vmem:[%s10421_s8 + $0x2e0] sm:$0xff] }
0x12f4   :  { %v6602_v3 = vcombine.high %v2129_v13, %v2137_v37 }
0x12f5   :  { %3764 = vmatpush1.bf16.msra.mxu1 %v6645_v59  ;;  %3805 = vmatpush1.bf16.msra.mxu0 %v6647_v60  ;;  %v2057_v59 = vld [vmem:[%s10421_s8 + $0x60] sm:$0xff]  ;;  %v2050_v60 = vld [vmem:[%s10421_s8 + $0x28] sm:$0xff] }
0x12f6   :  { %3765 = vmatprep.subr.bf16.mxu1 %v6662_v61  ;;  %3806 = vmatprep.subr.bf16.mxu0 %v6664_v62  ;;  %v2058_v61 = vld [vmem:[%s10421_s8 + $0x68] sm:$0xff]  ;;  %v6757_v62 = vcombine.low %v2287_v34, %v2295_v8  ;;  %v6522_v0 = vcombine.high %v2049_v58, %v2057_v59  ;;  %v2145_v34 = vld [vmem:[%s10421_s8 + $0x320] sm:$0xff] }
0x12f7   :  { %v6524_v41 = vcombine.high %v2050_v60, %v2058_v61  ;;  %v6523_v6 = vcombine.low %v2050_v60, %v2058_v61  ;;  %v2153_v8 = vld [vmem:[%s10421_s8 + $0x360] sm:$0xff] }
0x12f8   :  { %v6618_v61 = vcombine.high %v2145_v34, %v2153_v8 }
0x12f9   :  { %3766 = vmatpush1.bf16.msra.mxu1 %v6661_v2  ;;  %3807 = vmatpush1.bf16.msra.mxu0 %v6663_v45  ;;  %v2073_v2 = vld [vmem:[%s10421_s8 + $0xe0] sm:$0xff]  ;;  %v2066_v45 = vld [vmem:[%s10421_s8 + $0xa8] sm:$0xff] }
0x12fa   :  { %3767 = vmatprep.subr.bf16.mxu1 %v6678_v4  ;;  %3808 = vmatprep.subr.bf16.mxu0 %v6680_v5  ;;  %v2074_v4 = vld [vmem:[%s10421_s8 + $0xe8] sm:$0xff]  ;;  %v6521_v5 = vcombine.low %v2049_v58, %v2057_v59  ;;  %v6538_v51 = vcombine.high %v2065_v1, %v2073_v2  ;;  %v2161_v58 = vld [vmem:[%s10421_s8 + $0x3a0] sm:$0xff] }
0x12fb   :  { %v6540_v7 = vcombine.high %v2066_v45, %v2074_v4  ;;  %v6539_v27 = vcombine.low %v2066_v45, %v2074_v4  ;;  %v2169_v59 = vld [vmem:[%s10421_s8 + $0x3e0] sm:$0xff] }
0x12fc   :  { %v2177_v4 = vld [vmem:[%s10421_s8 + $0x420] sm:$0xff] }
0x12fd   :  { %3768 = vmatpush1.bf16.msra.mxu1 %v6677_v21  ;;  %3809 = vmatpush1.bf16.msra.mxu0 %v6679_v24  ;;  %v2089_v21 = vld [vmem:[%s10421_s8 + $0x160] sm:$0xff]  ;;  %v2082_v24 = vld [vmem:[%s10421_s8 + $0x128] sm:$0xff] }
0x12fe   :  { %3769 = vmatprep.subr.bf16.mxu1 %v6694_v25  ;;  %3810 = vmatprep.subr.bf16.mxu0 %v6696_v46  ;;  %v2090_v25 = vld [vmem:[%s10421_s8 + $0x168] sm:$0xff]  ;;  %v6537_v46 = vcombine.low %v2065_v1, %v2073_v2  ;;  %v6554_v28 = vcombine.high %v2081_v20, %v2089_v21  ;;  %v6634_v2 = vcombine.high %v2161_v58, %v2169_v59 }
0x12ff   :  { %v6556_v30 = vcombine.high %v2082_v24, %v2090_v25  ;;  %v6555_v33 = vcombine.low %v2082_v24, %v2090_v25  ;;  %v2193_v25 = vld [vmem:[%s10421_s8 + $0x4a0] sm:$0xff] }
0x1301   :  { %3770 = vmatpush1.bf16.msra.mxu1 %v6693_v31  ;;  %3811 = vmatpush1.bf16.msra.mxu0 %v6695_v32  ;;  %v2105_v31 = vld [vmem:[%s10421_s8 + $0x1e0] sm:$0xff]  ;;  %v2098_v32 = vld [vmem:[%s10421_s8 + $0x1a8] sm:$0xff] }
0x1302   :  { %3771 = vmatprep.subr.bf16.mxu1 %v6710_v48  ;;  %3812 = vmatprep.subr.bf16.mxu0 %v6712_v42  ;;  %v2106_v48 = vld [vmem:[%s10421_s8 + $0x1e8] sm:$0xff]  ;;  %v6553_v42 = vcombine.low %v2081_v20, %v2089_v21  ;;  %v6570_v35 = vcombine.high %v2097_v29, %v2105_v31 }
0x1303   :  { %v6572_v12 = vcombine.high %v2098_v32, %v2106_v48  ;;  %v6571_v52 = vcombine.low %v2098_v32, %v2106_v48  ;;  %v2209_v48 = vld [vmem:[%s10421_s8 + $0x520] sm:$0xff] }
0x1305   :  { %3772 = vmatpush1.bf16.msra.mxu1 %v6709_v43  ;;  %3813 = vmatpush1.bf16.msra.mxu0 %v6711_v47  ;;  %v2121_v43 = vld [vmem:[%s10421_s8 + $0x260] sm:$0xff]  ;;  %v2114_v47 = vld [vmem:[%s10421_s8 + $0x228] sm:$0xff] }
0x1306   :  { %3773 = vmatprep.subr.bf16.mxu1 %v6726_v56  ;;  %3814 = vmatprep.subr.bf16.mxu0 %v6728_v57  ;;  %v2122_v56 = vld [vmem:[%s10421_s8 + $0x268] sm:$0xff]  ;;  %v6569_v57 = vcombine.low %v2097_v29, %v2105_v31  ;;  %v6586_v53 = vcombine.high %v2113_v38, %v2121_v43 }
0x1307   :  { %v6587_v39 = vcombine.low %v2114_v47, %v2122_v56 }
0x1309   :  { %3774 = vmatpush1.bf16.msra.mxu1 %v6725_v17  ;;  %3815 = vmatpush1.bf16.msra.mxu0 %v6727_v55  ;;  %v2130_v17 = vld [vmem:[%s10421_s8 + $0x2a8] sm:$0xff]  ;;  %v6588_v55 = vcombine.high %v2114_v47, %v2122_v56  ;;  %v2225_v56 = vld [vmem:[%s10421_s8 + $0x5a0] sm:$0xff] }
0x130a   :  { %3775 = vmatprep.subr.bf16.mxu1 %v6742_v36  ;;  %3816 = vmatprep.subr.bf16.mxu0 %v6744_v10  ;;  %v2138_v36 = vld [vmem:[%s10421_s8 + $0x2e8] sm:$0xff]  ;;  %v6585_v10 = vcombine.low %v2113_v38, %v2121_v43 }
0x130b   :  { %v6603_v60 = vcombine.low %v2130_v17, %v2138_v36 }
0x130d   :  { %3776 = vmatpush1.bf16.msra.mxu1 %v6741_v54  ;;  %3817 = vmatpush1.bf16.msra.mxu0 %v6743_v50  ;;  %v2146_v54 = vld [vmem:[%s10421_s8 + $0x328] sm:$0xff] }
0x130e   :  { %3777 = vmatprep.subr.bf16.mxu1 %v6758_v9  ;;  %3818 = vmatprep.subr.bf16.mxu0 %v6760_v44  ;;  %v2154_v50 = vld [vmem:[%s10421_s8 + $0x368] sm:$0xff]  ;;  %v6604_v9 = vcombine.high %v2130_v17, %v2138_v36  ;;  %v6601_v44 = vcombine.low %v2129_v13, %v2137_v37  ;;  %v2241_v36 = vld [vmem:[%s10421_s8 + $0x620] sm:$0xff] }
0x130f   :  { %v6619_v1 = vcombine.low %v2146_v54, %v2154_v50  ;;  %v2226_v13 = vld [vmem:[%s10421_s8 + $0x5a8] sm:$0xff] }
0x1310   :  { %v2234_v37 = vld [vmem:[%s10421_s8 + $0x5e8] sm:$0xff] }
0x1311   :  { %3778 = vmatpush1.bf16.msra.mxu1 %v6757_v62  ;;  %3819 = vmatpush1.bf16.msra.mxu0 %v6759_v63  ;;  %v2162_v62 = vld [vmem:[%s10421_s8 + $0x3a8] sm:$0xff] }
0x1312   :  { %3829 = vmatprep.subr.bf16.mxu1 %v6522_v0  ;;  %3870 = vmatprep.subr.bf16.mxu0 %v6524_v41  ;;  %v2170_v63 = vld [vmem:[%s10421_s8 + $0x3e8] sm:$0xff]  ;;  %v6620_v0 = vcombine.high %v2146_v54, %v2154_v50  ;;  %v6617_v41 = vcombine.low %v2145_v34, %v2153_v8 }
0x1313   :  { %v6636_v45 = vcombine.high %v2162_v62, %v2170_v63  ;;  %v6635_v20 = vcombine.low %v2162_v62, %v2170_v63  ;;  %v2242_v34 = vld [vmem:[%s10421_s8 + $0x628] sm:$0xff] }
0x1314   :  { %3780 = vmatmul.mubr.bf16.vlgmr.msra.gmra.mrb[44].mxu1 %v8710_v49  ;;  %3821 = vmatmul.mubr.bf16.vlgmr.msra.gmra.mrb[16].mxu0 %v8710_v49  ;;  %v2250_v8 = vld [vmem:[%s10421_s8 + $0x668] sm:$0xff] }
0x1315   :  { %3830 = vmatpush1.bf16.msra.mxu1 %v6521_v5  ;;  %3861 = vmatprep.mubr.bf16.mxu1 %v8714_v40  ;;  %v2185_v5 = vld [vmem:[%s10421_s8 + $0x460] sm:$0xff]  ;;  %v6716_v50 = vcombine.high %v2242_v34, %v2250_v8 }
0x1316   :  { %3871 = vmatpush1.bf16.msra.mxu0 %v6523_v6  ;;  %3902 = vmatprep.mubr.bf16.mxu0 %v8714_v40  ;;  %v2178_v6 = vld [vmem:[%s10421_s8 + $0x428] sm:$0xff]  ;;  %v6650_v21 = vcombine.high %v2177_v4, %v2185_v5  ;;  %v6649_v29 = vcombine.low %v2177_v4, %v2185_v5 }
0x1317   :  { %3831 = vmatprep.subr.bf16.mxu1 %v6538_v51  ;;  %3872 = vmatprep.subr.bf16.mxu0 %v6540_v7  ;;  %v2186_v51 = vld [vmem:[%s10421_s8 + $0x468] sm:$0xff]  ;;  %v6633_v7 = vcombine.low %v2161_v58, %v2169_v59 }
0x1318   :  { %v6652_v24 = vcombine.high %v2178_v6, %v2186_v51  ;;  %v2258_v58 = vld [vmem:[%s10421_s8 + $0x6a8] sm:$0xff] }
0x1319   :  { %3832 = vmatpush1.bf16.msra.mxu1 %v6537_v46  ;;  %v2201_v46 = vld [vmem:[%s10421_s8 + $0x4e0] sm:$0xff]  ;;  %v2266_v59 = vld [vmem:[%s10421_s8 + $0x6e8] sm:$0xff] }
0x131a   :  { %3873 = vmatpush1.bf16.msra.mxu0 %v6539_v27  ;;  %3833 = vmatprep.subr.bf16.mxu1 %v6554_v28  ;;  %v2194_v27 = vld [vmem:[%s10421_s8 + $0x4a8] sm:$0xff]  ;;  %v6666_v31 = vcombine.high %v2193_v25, %v2201_v46  ;;  %v6665_v38 = vcombine.low %v2193_v25, %v2201_v46  ;;  %v6732_v63 = vcombine.high %v2258_v58, %v2266_v59 }
0x131b   :  { %3874 = vmatprep.subr.bf16.mxu0 %v6556_v30  ;;  %v2202_v28 = vld [vmem:[%s10421_s8 + $0x4e8] sm:$0xff]  ;;  %v6651_v30 = vcombine.low %v2178_v6, %v2186_v51  ;;  %v6731_v4 = vcombine.low %v2258_v58, %v2266_v59  ;;  %v2289_v51 = vld [vmem:[%s10421_s8 + $0x7a0] sm:$0xff]  ;;  %v2123_v58 = vld [vmem:[%s10421_s8 + $0x270] sm:$0xff] }
0x131c   :  { %v6668_v32 = vcombine.high %v2194_v27, %v2202_v28  ;;  %v2116_v59 = vld [vmem:[%s10421_s8 + $0x238] sm:$0xff] }
0x131d   :  { %3834 = vmatpush1.bf16.msra.mxu1 %v6553_v42  ;;  %v2217_v42 = vld [vmem:[%s10421_s8 + $0x560] sm:$0xff] }
0x131e   :  { %3875 = vmatpush1.bf16.msra.mxu0 %v6555_v33  ;;  %3835 = vmatprep.subr.bf16.mxu1 %v6570_v35  ;;  %v2210_v33 = vld [vmem:[%s10421_s8 + $0x528] sm:$0xff]  ;;  %v6682_v43 = vcombine.high %v2209_v48, %v2217_v42 }
0x131f   :  { %3876 = vmatprep.subr.bf16.mxu0 %v6572_v12  ;;  %v2218_v35 = vld [vmem:[%s10421_s8 + $0x568] sm:$0xff]  ;;  %v6667_v12 = vcombine.low %v2194_v27, %v2202_v28  ;;  %v2051_v28 = vld [vmem:[%s10421_s8 + $0x30] sm:$0xff] }
0x1320   :  { %v6684_v47 = vcombine.high %v2210_v33, %v2218_v35 }
0x1321   :  { %3836 = vmatpush1.bf16.msra.mxu1 %v6569_v57  ;;  %v2233_v57 = vld [vmem:[%s10421_s8 + $0x5e0] sm:$0xff] }
0x1322   :  { %3877 = vmatpush1.bf16.msra.mxu0 %v6571_v52  ;;  %3837 = vmatprep.subr.bf16.mxu1 %v6586_v53  ;;  %v6681_v52 = vcombine.low %v2209_v48, %v2217_v42  ;;  %v6683_v53 = vcombine.low %v2210_v33, %v2218_v35  ;;  %v6698_v17 = vcombine.high %v2225_v56, %v2233_v57  ;;  %v2067_v35 = vld [vmem:[%s10421_s8 + $0xb0] sm:$0xff] }
0x1323   :  { %3878 = vmatprep.subr.bf16.mxu0 %v6588_v55  ;;  %v6700_v55 = vcombine.high %v2226_v13, %v2234_v37 }
0x1325   :  { %3838 = vmatpush1.bf16.msra.mxu1 %v6585_v10  ;;  %v2249_v10 = vld [vmem:[%s10421_s8 + $0x660] sm:$0xff] }
0x1326   :  { %3879 = vmatpush1.bf16.msra.mxu0 %v6587_v39  ;;  %3839 = vmatprep.subr.bf16.mxu1 %v6602_v3  ;;  %v6697_v39 = vcombine.low %v2225_v56, %v2233_v57  ;;  %v6699_v3 = vcombine.low %v2226_v13, %v2234_v37  ;;  %v6714_v54 = vcombine.high %v2241_v36, %v2249_v10  ;;  %v2083_v13 = vld [vmem:[%s10421_s8 + $0x130] sm:$0xff] }
0x1327   :  { %3880 = vmatprep.subr.bf16.mxu0 %v6604_v9  ;;  %v2257_v9 = vld [vmem:[%s10421_s8 + $0x6a0] sm:$0xff]  ;;  %v2091_v37 = vld [vmem:[%s10421_s8 + $0x170] sm:$0xff] }
0x1329   :  { %3840 = vmatpush1.bf16.msra.mxu1 %v6601_v44  ;;  %v2265_v44 = vld [vmem:[%s10421_s8 + $0x6e0] sm:$0xff] }
0x132a   :  { %3881 = vmatpush1.bf16.msra.mxu0 %v6603_v60  ;;  %3841 = vmatprep.subr.bf16.mxu1 %v6618_v61  ;;  %v6713_v60 = vcombine.low %v2241_v36, %v2249_v10  ;;  %v6715_v61 = vcombine.low %v2242_v34, %v2250_v8  ;;  %v6730_v62 = vcombine.high %v2257_v9, %v2265_v44  ;;  %v2099_v8 = vld [vmem:[%s10421_s8 + $0x1b0] sm:$0xff] }
0x132b   :  { %3882 = vmatprep.subr.bf16.mxu0 %v6620_v0  ;;  %v2273_v0 = vld [vmem:[%s10421_s8 + $0x720] sm:$0xff]  ;;  %v6558_v10 = vcombine.high %v2083_v13, %v2091_v37 }
0x132d   :  { %3842 = vmatpush1.bf16.msra.mxu1 %v6617_v41  ;;  %v2281_v41 = vld [vmem:[%s10421_s8 + $0x760] sm:$0xff] }
0x132e   :  { %3883 = vmatpush1.bf16.msra.mxu0 %v6619_v1  ;;  %3843 = vmatprep.subr.bf16.mxu1 %v6634_v2  ;;  %v2274_v1 = vld [vmem:[%s10421_s8 + $0x728] sm:$0xff]  ;;  %v6746_v5 = vcombine.high %v2273_v0, %v2281_v41 }
0x132f   :  { %3884 = vmatprep.subr.bf16.mxu0 %v6636_v45  ;;  %v2282_v2 = vld [vmem:[%s10421_s8 + $0x768] sm:$0xff]  ;;  %v6729_v45 = vcombine.low %v2257_v9, %v2265_v44  ;;  %v2115_v44 = vld [vmem:[%s10421_s8 + $0x230] sm:$0xff] }
0x1330   :  { %v6748_v6 = vcombine.high %v2274_v1, %v2282_v2  ;;  %v6747_v25 = vcombine.low %v2274_v1, %v2282_v2  ;;  %v2131_v1 = vld [vmem:[%s10421_s8 + $0x2b0] sm:$0xff] }
0x1331   :  { %3844 = vmatpush1.bf16.msra.mxu1 %v6633_v7  ;;  %v2297_v7 = vld [vmem:[%s10421_s8 + $0x7e0] sm:$0xff]  ;;  %v2139_v2 = vld [vmem:[%s10421_s8 + $0x2f0] sm:$0xff] }
0x1332   :  { %3885 = vmatpush1.bf16.msra.mxu0 %v6635_v20  ;;  %3845 = vmatprep.subr.bf16.mxu1 %v6650_v21  ;;  %v2290_v20 = vld [vmem:[%s10421_s8 + $0x7a8] sm:$0xff]  ;;  %v6762_v46 = vcombine.high %v2289_v51, %v2297_v7 }
0x1333   :  { %3886 = vmatprep.subr.bf16.mxu0 %v6652_v24  ;;  %v2298_v21 = vld [vmem:[%s10421_s8 + $0x7e8] sm:$0xff]  ;;  %v6745_v24 = vcombine.low %v2273_v0, %v2281_v41  ;;  %v6590_v0 = vcombine.high %v2115_v44, %v2123_v58 }
0x1334   :  { %v6764_v27 = vcombine.high %v2290_v20, %v2298_v21  ;;  %v6763_v48 = vcombine.low %v2290_v20, %v2298_v21  ;;  %v2147_v20 = vld [vmem:[%s10421_s8 + $0x330] sm:$0xff] }
0x1335   :  { %3846 = vmatpush1.bf16.msra.mxu1 %v6649_v29  ;;  %v2059_v29 = vld [vmem:[%s10421_s8 + $0x70] sm:$0xff] }
0x1336   :  { %3887 = vmatpush1.bf16.msra.mxu0 %v6651_v30  ;;  %3847 = vmatprep.subr.bf16.mxu1 %v6666_v31  ;;  %v2052_v30 = vld [vmem:[%s10421_s8 + $0x38] sm:$0xff]  ;;  %v6526_v42 = vcombine.high %v2051_v28, %v2059_v29  ;;  %v2155_v21 = vld [vmem:[%s10421_s8 + $0x370] sm:$0xff] }
0x1337   :  { %3888 = vmatprep.subr.bf16.mxu0 %v6668_v32  ;;  %v2060_v31 = vld [vmem:[%s10421_s8 + $0x78] sm:$0xff]  ;;  %v6761_v32 = vcombine.low %v2289_v51, %v2297_v7  ;;  %v6606_v51 = vcombine.high %v2131_v1, %v2139_v2 }
0x1338   :  { %v6528_v33 = vcombine.high %v2052_v30, %v2060_v31  ;;  %v6527_v56 = vcombine.low %v2052_v30, %v2060_v31  ;;  %v2163_v30 = vld [vmem:[%s10421_s8 + $0x3b0] sm:$0xff] }
0x1339   :  { %3848 = vmatpush1.bf16.msra.mxu1 %v6665_v38  ;;  %v2075_v38 = vld [vmem:[%s10421_s8 + $0xf0] sm:$0xff] }
0x133a   :  { %3889 = vmatpush1.bf16.msra.mxu0 %v6667_v12  ;;  %3849 = vmatprep.subr.bf16.mxu1 %v6682_v43  ;;  %v2068_v12 = vld [vmem:[%s10421_s8 + $0xb8] sm:$0xff]  ;;  %v6542_v57 = vcombine.high %v2067_v35, %v2075_v38  ;;  %v2171_v31 = vld [vmem:[%s10421_s8 + $0x3f0] sm:$0xff] }
0x133b   :  { %3890 = vmatprep.subr.bf16.mxu0 %v6684_v47  ;;  %v2076_v43 = vld [vmem:[%s10421_s8 + $0xf8] sm:$0xff]  ;;  %v6525_v47 = vcombine.low %v2051_v28, %v2059_v29  ;;  %v6622_v28 = vcombine.high %v2147_v20, %v2155_v21 }
0x133c   :  { %v6543_v36 = vcombine.low %v2068_v12, %v2076_v43 }
0x133d   :  { %3850 = vmatpush1.bf16.msra.mxu1 %v6681_v52  ;;  %v6544_v52 = vcombine.high %v2068_v12, %v2076_v43  ;;  %v6638_v12 = vcombine.high %v2163_v30, %v2171_v31 }
0x133e   :  { %3891 = vmatpush1.bf16.msra.mxu0 %v6683_v53  ;;  %3851 = vmatprep.subr.bf16.mxu1 %v6698_v17  ;;  %v2084_v53 = vld [vmem:[%s10421_s8 + $0x138] sm:$0xff] }
0x133f   :  { %3892 = vmatprep.subr.bf16.mxu0 %v6700_v55  ;;  %v2092_v17 = vld [vmem:[%s10421_s8 + $0x178] sm:$0xff]  ;;  %v6541_v55 = vcombine.low %v2067_v35, %v2075_v38  ;;  %v2187_v35 = vld [vmem:[%s10421_s8 + $0x470] sm:$0xff] }
0x1340   :  { %v6560_v34 = vcombine.high %v2084_v53, %v2092_v17 }
0x1341   :  { %3852 = vmatpush1.bf16.msra.mxu1 %v6697_v39  ;;  %v2107_v39 = vld [vmem:[%s10421_s8 + $0x1f0] sm:$0xff] }
0x1342   :  { %3893 = vmatpush1.bf16.msra.mxu0 %v6699_v3  ;;  %3853 = vmatprep.subr.bf16.mxu1 %v6714_v54  ;;  %v2100_v3 = vld [vmem:[%s10421_s8 + $0x1b8] sm:$0xff]  ;;  %v6574_v9 = vcombine.high %v2099_v8, %v2107_v39 }
0x1343   :  { %3894 = vmatprep.subr.bf16.mxu0 %v6716_v50  ;;  %v2108_v54 = vld [vmem:[%s10421_s8 + $0x1f8] sm:$0xff]  ;;  %v6559_v50 = vcombine.low %v2084_v53, %v2092_v17 }
0x1345   :  { %3854 = vmatpush1.bf16.msra.mxu1 %v6713_v60  ;;  %v6576_v60 = vcombine.high %v2100_v3, %v2108_v54 }
0x1346   :  { %3895 = vmatpush1.bf16.msra.mxu0 %v6715_v61  ;;  %3855 = vmatprep.subr.bf16.mxu1 %v6730_v62  ;;  %v2124_v61 = vld [vmem:[%s10421_s8 + $0x278] sm:$0xff]  ;;  %v6573_v62 = vcombine.low %v2099_v8, %v2107_v39  ;;  %v2219_v8 = vld [vmem:[%s10421_s8 + $0x570] sm:$0xff] }
0x1347   :  { %3896 = vmatprep.subr.bf16.mxu0 %v6732_v63  ;;  %v6575_v63 = vcombine.low %v2100_v3, %v2108_v54  ;;  %v6592_v41 = vcombine.high %v2116_v59, %v2124_v61 }
0x1349   :  { %3856 = vmatpush1.bf16.msra.mxu1 %v6729_v45  ;;  %v2132_v45 = vld [vmem:[%s10421_s8 + $0x2b8] sm:$0xff] }
0x134a   :  { %3897 = vmatpush1.bf16.msra.mxu0 %v6731_v4  ;;  %3857 = vmatprep.subr.bf16.mxu1 %v6746_v5  ;;  %v2140_v4 = vld [vmem:[%s10421_s8 + $0x2f8] sm:$0xff]  ;;  %v6589_v5 = vcombine.low %v2115_v44, %v2123_v58  ;;  %v2227_v44 = vld [vmem:[%s10421_s8 + $0x5b0] sm:$0xff] }
0x134b   :  { %3898 = vmatprep.subr.bf16.mxu0 %v6748_v6  ;;  %v6591_v6 = vcombine.low %v2116_v59, %v2124_v61  ;;  %v6608_v7 = vcombine.high %v2132_v45, %v2140_v4  ;;  %v2235_v58 = vld [vmem:[%s10421_s8 + $0x5f0] sm:$0xff] }
0x134d   :  { %3858 = vmatpush1.bf16.msra.mxu1 %v6745_v24  ;;  %v2148_v24 = vld [vmem:[%s10421_s8 + $0x338] sm:$0xff] }
0x134e   :  { %3899 = vmatpush1.bf16.msra.mxu0 %v6747_v25  ;;  %3859 = vmatprep.subr.bf16.mxu1 %v6762_v46  ;;  %v2156_v25 = vld [vmem:[%s10421_s8 + $0x378] sm:$0xff]  ;;  %v6605_v46 = vcombine.low %v2131_v1, %v2139_v2  ;;  %v2251_v1 = vld [vmem:[%s10421_s8 + $0x670] sm:$0xff] }
0x134f   :  { %3900 = vmatprep.subr.bf16.mxu0 %v6764_v27  ;;  %v6607_v27 = vcombine.low %v2132_v45, %v2140_v4  ;;  %v6624_v29 = vcombine.high %v2148_v24, %v2156_v25  ;;  %v6623_v38 = vcombine.low %v2148_v24, %v2156_v25  ;;  %v6702_v45 = vcombine.high %v2227_v44, %v2235_v58 }
0x1351   :  { %3860 = vmatpush1.bf16.msra.mxu1 %v6761_v32  ;;  %v2164_v32 = vld [vmem:[%s10421_s8 + $0x3b8] sm:$0xff] }
0x1352   :  { %3901 = vmatpush1.bf16.msra.mxu0 %v6763_v48  ;;  %3911 = vmatprep.subr.bf16.mxu1 %v6526_v42  ;;  %v2172_v48 = vld [vmem:[%s10421_s8 + $0x3f8] sm:$0xff]  ;;  %v6621_v42 = vcombine.low %v2147_v20, %v2155_v21  ;;  %v2267_v20 = vld [vmem:[%s10421_s8 + $0x6f0] sm:$0xff] }
0x1353   :  { %3952 = vmatprep.subr.bf16.mxu0 %v6528_v33  ;;  %v2179_v33 = vld [vmem:[%s10421_s8 + $0x430] sm:$0xff]  ;;  %v6640_v43 = vcombine.high %v2164_v32, %v2172_v48 }
0x1354   :  { %3862 = vmatmul.mubr.bf16.vlgmr.msra.gmra.mrb[48].mxu1 %v8710_v49  ;;  %v6654_v53 = vcombine.high %v2179_v33, %v2187_v35 }
0x1355   :  { %3903 = vmatmul.mubr.bf16.vlgmr.msra.gmra.mrb[20].mxu0 %v8710_v49  ;;  %3912 = vmatpush1.bf16.msra.mxu1 %v6525_v47  ;;  %v2180_v47 = vld [vmem:[%s10421_s8 + $0x438] sm:$0xff] }
0x1356   :  { %3943 = vmatprep.mubr.bf16.mxu1 %v8714_v40  ;;  %3953 = vmatpush1.bf16.msra.mxu0 %v6527_v56  ;;  %v2188_v56 = vld [vmem:[%s10421_s8 + $0x478] sm:$0xff] }
0x1357   :  { %3984 = vmatprep.mubr.bf16.mxu0 %v8714_v40  ;;  %3913 = vmatprep.subr.bf16.mxu1 %v6542_v57  ;;  %v6557_v40 = vcombine.low %v2083_v13, %v2091_v37  ;;  %v6637_v57 = vcombine.low %v2163_v30, %v2171_v31  ;;  %v2195_v13 = vld [vmem:[%s10421_s8 + $0x4b0] sm:$0xff]  ;;  %v6656_v17 = vcombine.high %v2180_v47, %v2188_v56 }
0x1358   :  { %3954 = vmatprep.subr.bf16.mxu0 %v6544_v52  ;;  %v2203_v37 = vld [vmem:[%s10421_s8 + $0x4f0] sm:$0xff]  ;;  %v6639_v52 = vcombine.low %v2164_v32, %v2172_v48  ;;  %v6655_v39 = vcombine.low %v2180_v47, %v2188_v56 }
0x1359   :  { %3914 = vmatpush1.bf16.msra.mxu1 %v6541_v55  ;;  %v2196_v55 = vld [vmem:[%s10421_s8 + $0x4b8] sm:$0xff]  ;;  %v6670_v3 = vcombine.high %v2195_v13, %v2203_v37  ;;  %v2283_v30 = vld [vmem:[%s10421_s8 + $0x770] sm:$0xff] }
0x135a   :  { %3955 = vmatpush1.bf16.msra.mxu0 %v6543_v36  ;;  %3915 = vmatprep.subr.bf16.mxu1 %v6558_v10  ;;  %v2204_v36 = vld [vmem:[%s10421_s8 + $0x4f8] sm:$0xff]  ;;  %v6653_v10 = vcombine.low %v2179_v33, %v2187_v35 }
0x135b   :  { %3956 = vmatprep.subr.bf16.mxu0 %v6560_v34  ;;  %v2211_v34 = vld [vmem:[%s10421_s8 + $0x530] sm:$0xff]  ;;  %v6672_v54 = vcombine.high %v2196_v55, %v2204_v36  ;;  %v6671_v59 = vcombine.low %v2196_v55, %v2204_v36  ;;  %v2284_v33 = vld [vmem:[%s10421_s8 + $0x778] sm:$0xff]  ;;  %v7250_v36 = vld [vmem:[%s10424_s10 + $0x4] ss:$8 sps:$4 sm:$0xff]  }
0x135d   :  { %3916 = vmatpush1.bf16.msra.mxu1 %v6557_v40  ;;  %v2212_v40 = vld [vmem:[%s10421_s8 + $0x538] sm:$0xff] }
0x135e   :  { %3957 = vmatpush1.bf16.msra.mxu0 %v6559_v50  ;;  %3917 = vmatprep.subr.bf16.mxu1 %v6574_v9  ;;  %v2220_v50 = vld [vmem:[%s10421_s8 + $0x578] sm:$0xff]  ;;  %v6669_v9 = vcombine.low %v2195_v13, %v2203_v37 }
0x135f   :  { %3958 = vmatprep.subr.bf16.mxu0 %v6576_v60  ;;  %v6686_v60 = vcombine.high %v2211_v34, %v2219_v8  ;;  %v6688_v61 = vcombine.high %v2212_v40, %v2220_v50  ;;  %v6687_v2 = vcombine.low %v2212_v40, %v2220_v50  ;;  %v2300_v13 = vld [vmem:[%s10421_s8 + $0x7f8] sm:$0xff] }
0x1360   :  { %v7254_v40 = vld [vmem:[%s10424_s10 + $0x10] ss:$8 sps:$4 sm:$0xff]  }
0x1361   :  { %3918 = vmatpush1.bf16.msra.mxu1 %v6573_v62  ;;  %v2228_v62 = vld [vmem:[%s10421_s8 + $0x5b8] sm:$0xff] }
0x1362   :  { %3959 = vmatpush1.bf16.msra.mxu0 %v6575_v63  ;;  %3919 = vmatprep.subr.bf16.mxu1 %v6590_v0  ;;  %v2236_v63 = vld [vmem:[%s10421_s8 + $0x5f8] sm:$0xff]  ;;  %v6685_v0 = vcombine.low %v2211_v34, %v2219_v8  ;;  %v7248_v8 = vld [vmem:[%s10424_s10] ss:$8 sps:$4 sm:$0xff]  }
0x1363   :  { %3960 = vmatprep.subr.bf16.mxu0 %v6592_v41  ;;  %v2243_v41 = vld [vmem:[%s10421_s8 + $0x630] sm:$0xff]  ;;  %v6704_v4 = vcombine.high %v2228_v62, %v2236_v63  ;;  %v6703_v21 = vcombine.low %v2228_v62, %v2236_v63  ;;  %v7274_v63 = vld [vmem:[%s10424_s10 + $0x44] ss:$8 sps:$4 sm:$0xff]  }
0x1364   :  { %v6718_v24 = vcombine.high %v2243_v41, %v2251_v1  ;;  %v7257_v50 = vld [vmem:[%s10424_s10 + $0x110] ss:$8 sps:$4 sm:$0xff]  }
0x1365   :  { %3920 = vmatpush1.bf16.msra.mxu1 %v6589_v5  ;;  %v2244_v5 = vld [vmem:[%s10421_s8 + $0x638] sm:$0xff] }
0x1366   :  { %3961 = vmatpush1.bf16.msra.mxu0 %v6591_v6  ;;  %3921 = vmatprep.subr.bf16.mxu1 %v6606_v51  ;;  %v2252_v6 = vld [vmem:[%s10421_s8 + $0x678] sm:$0xff]  ;;  %v6701_v51 = vcombine.low %v2227_v44, %v2235_v58  ;;  %v7260_v44 = vld [vmem:[%s10424_s10 + $0x20] ss:$8 sps:$4 sm:$0xff]  }
0x1367   :  { %3962 = vmatprep.subr.bf16.mxu0 %v6608_v7  ;;  %v2259_v7 = vld [vmem:[%s10421_s8 + $0x6b0] sm:$0xff]  ;;  %v6720_v25 = vcombine.high %v2244_v5, %v2252_v6  ;;  %v6719_v31 = vcombine.low %v2244_v5, %v2252_v6  ;;  %v7263_v58 = vld [vmem:[%s10424_s10 + $0x120] ss:$8 sps:$4 sm:$0xff]  }
0x1368   :  { %v6734_v32 = vcombine.high %v2259_v7, %v2267_v20  ;;  %v6733_v35 = vcombine.low %v2259_v7, %v2267_v20  ;;  %v7269_v62 = vld [vmem:[%s10424_s10 + $0x130] ss:$8 sps:$4 sm:$0xff]  }
0x1369   :  { %3922 = vmatpush1.bf16.msra.mxu1 %v6605_v46  ;;  %v2260_v46 = vld [vmem:[%s10421_s8 + $0x6b8] sm:$0xff] }
0x136a   :  { %3963 = vmatpush1.bf16.msra.mxu0 %v6607_v27  ;;  %3923 = vmatprep.subr.bf16.mxu1 %v6622_v28  ;;  %v2268_v27 = vld [vmem:[%s10421_s8 + $0x6f8] sm:$0xff]  ;;  %v6717_v28 = vcombine.low %v2243_v41, %v2251_v1  ;;  %v9341_v41 = vld [vmem:[%s10425_s9] sm:$0xff] }
0x136b   :  { %3964 = vmatprep.subr.bf16.mxu0 %v6624_v29  ;;  %v2275_v29 = vld [vmem:[%s10421_s8 + $0x730] sm:$0xff]  ;;  %v6736_v48 = vcombine.high %v2260_v46, %v2268_v27  ;;  %v7272_v1 = vld [vmem:[%s10424_s10 + $0x40] ss:$8 sps:$4 sm:$0xff]   ;;  %v2308_v5 = vrot.slane %v9341_v41, %v8038_v16  ;;  %v2316_v6 = vrot.slane %v9341_v41, %v8035_v15  ;;  %v2320_v7 = vrot.slane %v9341_v41, %v8046_v18 }
0x136c   :  { %v6750_v47 = vcombine.high %v2275_v29, %v2283_v30  ;;  %v6749_v37 = vcombine.low %v2275_v29, %v2283_v30  ;;  %v7278_v20 = vld [vmem:[%s10424_s10 + $0x50] ss:$8 sps:$4 sm:$0xff]  }
0x136d   :  { %3924 = vmatpush1.bf16.msra.mxu1 %v6621_v42  ;;  %v2276_v42 = vld [vmem:[%s10421_s8 + $0x738] sm:$0xff] }
0x136e   :  { %3965 = vmatpush1.bf16.msra.mxu0 %v6623_v38  ;;  %3925 = vmatprep.subr.bf16.mxu1 %v6638_v12  ;;  %v2291_v38 = vld [vmem:[%s10421_s8 + $0x7b0] sm:$0xff]  ;;  %v6752_v56 = vcombine.high %v2276_v42, %v2284_v33 }
0x136f   :  { %3966 = vmatprep.subr.bf16.mxu0 %v6640_v43  ;;  %v2299_v12 = vld [vmem:[%s10421_s8 + $0x7f0] sm:$0xff]  ;;  %v6735_v43 = vcombine.low %v2260_v46, %v2268_v27  ;;  %v7289_v27 = vld [vmem:[%s10424_s10 + $0x164] ss:$8 sps:$4 sm:$0xff]  }
0x1370   :  { %v6765_v55 = vcombine.low %v2291_v38, %v2299_v12 }
0x1371   :  { %3926 = vmatpush1.bf16.msra.mxu1 %v6637_v57  ;;  %v2292_v57 = vld [vmem:[%s10421_s8 + $0x7b8] sm:$0xff] }
0x1372   :  { %3967 = vmatpush1.bf16.msra.mxu0 %v6639_v52  ;;  %3927 = vmatprep.subr.bf16.mxu1 %v6654_v53  ;;  %v6751_v52 = vcombine.low %v2276_v42, %v2284_v33  ;;  %v6766_v53 = vcombine.high %v2291_v38, %v2299_v12  ;;  %v6767_v34 = vcombine.low %v2292_v57, %v2300_v13  ;;  %v7287_v38 = vld [vmem:[%s10424_s10 + $0x160] ss:$8 sps:$4 sm:$0xff]  }
0x1373   :  { %3968 = vmatprep.subr.bf16.mxu0 %v6656_v17  ;;  %v6768_v17 = vcombine.high %v2292_v57, %v2300_v13  ;;  %v7290_v57 = vld [vmem:[%s10424_s10 + $0x70] ss:$8 sps:$4 sm:$0xff]   ;;  %v7295_v13 = vld [vmem:[%s10424_s10 + $0x174] ss:$8 sps:$4 sm:$0xff]  }
0x1375   :  { %3928 = vmatpush1.bf16.msra.mxu1 %v6653_v10  ;;  %v7253_v10 = vld [vmem:[%s10424_s10 + $0x104] ss:$8 sps:$4 sm:$0xff]  }
0x1376   :  { %3969 = vmatpush1.bf16.msra.mxu0 %v6655_v39  ;;  %3929 = vmatprep.subr.bf16.mxu1 %v6670_v3  ;;  %v7251_v39 = vld [vmem:[%s10424_s10 + $0x100] ss:$8 sps:$4 sm:$0xff]   ;;  %v7256_v3 = vld [vmem:[%s10424_s10 + $0x14] ss:$8 sps:$4 sm:$0xff]  }
0x1377   :  { %3970 = vmatprep.subr.bf16.mxu0 %v6672_v54  ;;  %v7259_v54 = vld [vmem:[%s10424_s10 + $0x114] ss:$8 sps:$4 sm:$0xff]  }
0x1379   :  { %3930 = vmatpush1.bf16.msra.mxu1 %v6669_v9  ;;  %v7262_v9 = vld [vmem:[%s10424_s10 + $0x24] ss:$8 sps:$4 sm:$0xff]  }
0x137a   :  { %3971 = vmatpush1.bf16.msra.mxu0 %v6671_v59  ;;  %3931 = vmatprep.subr.bf16.mxu1 %v6686_v60  ;;  %v7268_v59 = vld [vmem:[%s10424_s10 + $0x34] ss:$8 sps:$4 sm:$0xff]  }
0x137b   :  { %3972 = vmatprep.subr.bf16.mxu0 %v6688_v61  ;;  %v7271_v60 = vld [vmem:[%s10424_s10 + $0x134] ss:$8 sps:$4 sm:$0xff]   ;;  %v7266_v61 = vld [vmem:[%s10424_s10 + $0x30] ss:$8 sps:$4 sm:$0xff]  }
0x137d   :  { %3932 = vmatpush1.bf16.msra.mxu1 %v6685_v0  ;;  %v7277_v0 = vld [vmem:[%s10424_s10 + $0x144] ss:$8 sps:$4 sm:$0xff]  }
0x137e   :  { %3973 = vmatpush1.bf16.msra.mxu0 %v6687_v2  ;;  %3933 = vmatprep.subr.bf16.mxu1 %v6702_v45  ;;  %v7275_v2 = vld [vmem:[%s10424_s10 + $0x140] ss:$8 sps:$4 sm:$0xff]   ;;  %v7280_v45 = vld [vmem:[%s10424_s10 + $0x54] ss:$8 sps:$4 sm:$0xff]  }
0x137f   :  { %3974 = vmatprep.subr.bf16.mxu0 %v6704_v4  ;;  %v7283_v4 = vld [vmem:[%s10424_s10 + $0x154] ss:$8 sps:$4 sm:$0xff]  }
0x1381   :  { %3934 = vmatpush1.bf16.msra.mxu1 %v6701_v51  ;;  %v2312_v51 = vrot.slane %v9341_v41, %v8049_v19 }
0x1382   :  { %3975 = vmatpush1.bf16.msra.mxu0 %v6703_v21  ;;  %3935 = vmatprep.subr.bf16.mxu1 %v6718_v24  ;;  %v7281_v21 = vld [vmem:[%s10424_s10 + $0x150] ss:$8 sps:$4 sm:$0xff]   ;;  %v7286_v24 = vld [vmem:[%s10424_s10 + $0x64] ss:$8 sps:$4 sm:$0xff]  }
0x1383   :  { %3976 = vmatprep.subr.bf16.mxu0 %v6720_v25 }
0x1385   :  { %3936 = vmatpush1.bf16.msra.mxu1 %v6717_v28 }
0x1386   :  { %3977 = vmatpush1.bf16.msra.mxu0 %v6719_v31  ;;  %3937 = vmatprep.subr.bf16.mxu1 %v6734_v32 }
0x1387   :  { %3978 = vmatprep.subr.bf16.mxu0 %v6736_v48 }
0x1389   :  { %3938 = vmatpush1.bf16.msra.mxu1 %v6733_v35  ;;  %v7284_v35 = vld [vmem:[%s10424_s10 + $0x60] ss:$8 sps:$4 sm:$0xff]  }
0x138a   :  { %3979 = vmatpush1.bf16.msra.mxu0 %v6735_v43  ;;  %3939 = vmatprep.subr.bf16.mxu1 %v6750_v47  ;;  %v7292_v47 = vld [vmem:[%s10424_s10 + $0x74] ss:$8 sps:$4 sm:$0xff]  }
0x138b   :  { %3980 = vmatprep.subr.bf16.mxu0 %v6752_v56 }
0x138d   :  { %3940 = vmatpush1.bf16.msra.mxu1 %v6749_v37 }
0x138e   :  { %3981 = vmatpush1.bf16.msra.mxu0 %v6751_v52  ;;  %3941 = vmatprep.subr.bf16.mxu1 %v6766_v53  ;;  %v7293_v53 = vld [vmem:[%s10424_s10 + $0x170] ss:$8 sps:$4 sm:$0xff]  }
0x138f   :  { %3982 = vmatprep.subr.bf16.mxu0 %v6768_v17 }
0x1391   :  { %3942 = vmatpush1.bf16.msra.mxu1 %v6765_v55 }
0x1392   :  { %3983 = vmatpush1.bf16.msra.mxu0 %v6767_v34  ;;  %5989 = vmatprep.subr.bf16.mxu1 %v7250_v36 }
0x1393   :  { %6030 = vmatprep.subr.bf16.mxu0 %v7253_v10 }
0x1394   :  { %3944 = vmatmul.mubr.bf16.vlgmr.msra.gmra.mrb[52].mxu1 %v8710_v49 }
0x1395   :  { %3985 = vmatmul.mubr.bf16.vlgmr.msra.gmra.mrb[24].mxu0 %v8710_v49  ;;  %5990 = vmatpush1.bf16.msra.mxu1 %v7248_v8  ;;  %v7265_v49 = vld [vmem:[%s10424_s10 + $0x124] ss:$8 sps:$4 sm:$0xff]  }
0x1396   :  { %6031 = vmatpush1.bf16.msra.mxu0 %v7251_v39  ;;  %5991 = vmatprep.subr.bf16.mxu1 %v7256_v3  ;;  %v7298_v8 = vld [vmem:[%s10424_s10 + $0x84] ss:$8 sps:$4 sm:$0xff]  }
0x1397   :  { %6032 = vmatprep.subr.bf16.mxu0 %v7259_v54  ;;  %v7301_v54 = vld [vmem:[%s10424_s10 + $0x184] ss:$8 sps:$4 sm:$0xff]  }
0x1399   :  { %5992 = vmatpush1.bf16.msra.mxu1 %v7254_v40 }
0x139a   :  { %6033 = vmatpush1.bf16.msra.mxu0 %v7257_v50  ;;  %5993 = vmatprep.subr.bf16.mxu1 %v7262_v9 }
0x139b   :  { %6034 = vmatprep.subr.bf16.mxu0 %v7265_v49  ;;  %v7296_v49 = vld [vmem:[%s10424_s10 + $0x80] ss:$8 sps:$4 sm:$0xff]  }
0x139d   :  { %5994 = vmatpush1.bf16.msra.mxu1 %v7260_v44 }
0x139e   :  { %6035 = vmatpush1.bf16.msra.mxu0 %v7263_v58  ;;  %5995 = vmatprep.subr.bf16.mxu1 %v7268_v59  ;;  %v7299_v58 = vld [vmem:[%s10424_s10 + $0x180] ss:$8 sps:$4 sm:$0xff]   ;;  %v7304_v59 = vld [vmem:[%s10424_s10 + $0x94] ss:$8 sps:$4 sm:$0xff]  }
0x139f   :  { %6036 = vmatprep.subr.bf16.mxu0 %v7271_v60 }
0x13a1   :  { %5996 = vmatpush1.bf16.msra.mxu1 %v7266_v61  ;;  %v7307_v61 = vld [vmem:[%s10424_s10 + $0x194] ss:$8 sps:$4 sm:$0xff]  }
0x13a2   :  { %6037 = vmatpush1.bf16.msra.mxu0 %v7269_v62  ;;  %5997 = vmatprep.subr.bf16.mxu1 %v7274_v63  ;;  %v7302_v63 = vld [vmem:[%s10424_s10 + $0x90] ss:$8 sps:$4 sm:$0xff]  }
0x13a3   :  { %6038 = vmatprep.subr.bf16.mxu0 %v7277_v0  ;;  %v7305_v0 = vld [vmem:[%s10424_s10 + $0x190] ss:$8 sps:$4 sm:$0xff]  }
0x13a5   :  { %5998 = vmatpush1.bf16.msra.mxu1 %v7272_v1  ;;  %v7310_v1 = vld [vmem:[%s10424_s10 + $0xa4] ss:$8 sps:$4 sm:$0xff]  }
0x13a6   :  { %6039 = vmatpush1.bf16.msra.mxu0 %v7275_v2  ;;  %5999 = vmatprep.subr.bf16.mxu1 %v7280_v45  ;;  %v7313_v2 = vld [vmem:[%s10424_s10 + $0x1a4] ss:$8 sps:$4 sm:$0xff]  }
0x13a7   :  { %v3699_v25 = vpop.f32.mrb[40].mxu1  ;;  %v3740_v46 = vpop.f32.mrb[12].mxu0  ;;  %6040 = vmatprep.subr.bf16.mxu0 %v7283_v4 }
0x13a8   :  { %v9375_v28 = vadd.f32 %v3699_v25, %v2308_v5  ;;  %v9377_v29 = vadd.f32 %v3740_v46, %v2316_v6  ;;  %v3701_v30 = vpop.f32.mrb[41].mxu1  ;;  %v3742_v31 = vpop.f32.mrb[13].mxu0  ;;  %v7308_v5 = vld [vmem:[%s10424_s10 + $0xa0] ss:$8 sps:$4 sm:$0xff]  }
0x13a9   :  { %v9379_v32 = vadd.f32 %v3701_v30, %v2312_v51  ;;  %v9381_v48 = vadd.f32 %v3742_v31, %v2320_v7  ;;  %v3703_v42 = vpop.f32.mrb[42].mxu1  ;;  %v3744_v33 = vpop.f32.mrb[14].mxu0  ;;  %6000 = vmatpush1.bf16.msra.mxu1 %v7278_v20  ;;  %v7311_v6 = vld [vmem:[%s10424_s10 + $0x1a0] ss:$8 sps:$4 sm:$0xff]   ;;  %v7316_v51 = vld [vmem:[%s10424_s10 + $0xb4] ss:$8 sps:$4 sm:$0xff]  }
0x13aa   :  { %v9390_v12 = vmul.f32 0.70710677, %v9375_v28  ;;  %v9393_v43 = vmul.f32 0.70710677, %v9377_v29  ;;  %6041 = vmatpush1.bf16.msra.mxu0 %v7281_v21  ;;  %6001 = vmatprep.subr.bf16.mxu1 %v7286_v24  ;;  %v3704_v36 = vpop.f32.mrb[43].mxu1  ;;  %v3745_v3 = vpop.f32.mrb[15].mxu0 }
0x13ab   :  { %v9399_v56 = vmul.f32 0.70710677, %v9379_v32  ;;  %6042 = vmatprep.subr.bf16.mxu0 %v7289_v27  ;;  %v9416_v55 = vmul.f32 0.70710677, %v9381_v48  ;;  %v7319_v7 = vld [vmem:[%s10424_s10 + $0x1b4] ss:$8 sps:$4 sm:$0xff]  }
0x13ac   :  { %v4057_v37 = vand.u32 2147483647, %v9390_v12  ;;  %v4059_v52 = vand.u32 2147483647, %v9393_v43  ;;  %v7314_v30 = vld [vmem:[%s10424_s10 + $0xb0] ss:$8 sps:$4 sm:$0xff]  }
0x13ad   :  { %v9413_v17 = vand.u32 2147483647, %v9399_v56  ;;  %6002 = vmatpush1.bf16.msra.mxu1 %v7284_v35  ;;  %v4060_v9 = vand.u32 2147483647, %v9416_v55  ;;  %v7317_v31 = vld [vmem:[%s10424_s10 + $0x1b0] ss:$8 sps:$4 sm:$0xff]  }
0x13ae   :  { %v4073_v10 = vmul.f32 0.3275911, %v4057_v37  ;;  %v4075_v34 = vmul.f32 0.3275911, %v4059_v52  ;;  %6043 = vmatpush1.bf16.msra.mxu0 %v7287_v38  ;;  %6003 = vmatprep.subr.bf16.mxu1 %v7292_v47  ;;  %v4281_v45 = vsub.f32 0.0, %v4057_v37  ;;  %v4283_v4 = vsub.f32 0.0, %v4059_v52 }
0x13af   :  { %v4074_v39 = vmul.f32 0.3275911, %v9413_v17  ;;  %6044 = vmatprep.subr.bf16.mxu0 %v7295_v13  ;;  %v4076_v60 = vmul.f32 0.3275911, %v4060_v9  ;;  %v4282_v24 = vsub.f32 0.0, %v9413_v17  ;;  %v4284_v33 = vsub.f32 0.0, %v4060_v9 }
0x13b0   :  { %v4089_v40 = vadd.f32 1.0, %v4073_v10  ;;  %v4091_v50 = vadd.f32 1.0, %v4075_v34  ;;  %v4297_v21 = vmul.f32 %v4281_v45, %v4057_v37  ;;  %v4299_v27 = vmul.f32 %v4283_v4, %v4059_v52  ;;  %v7322_v35 = vld [vmem:[%s10424_s10 + $0xc4] ss:$8 sps:$4 sm:$0xff]   ;;  %v7320_v34 = vld [vmem:[%s10424_s10 + $0xc0] ss:$8 sps:$4 sm:$0xff]  }
0x13b1   :  { %6004 = vmatpush1.bf16.msra.mxu1 %v7290_v57  ;;  %v4090_v44 = vadd.f32 1.0, %v4074_v39  ;;  %v4092_v62 = vadd.f32 1.0, %v4076_v60  ;;  %v7325_v47 = vld [vmem:[%s10424_s10 + $0x1c4] ss:$8 sps:$4 sm:$0xff]   ;;  %v4298_v52 = vmul.f32 %v4282_v24, %v9413_v17  ;;  %v4300_v3 = vmul.f32 %v4284_v33, %v4060_v9  ;;  %v7323_v17 = vld [vmem:[%s10424_s10 + $0x1c0] ss:$8 sps:$4 sm:$0xff]  }
0x13b2   :  { %7666 = vrcp.f32 %v4089_v40  ;;  %6045 = vmatpush1.bf16.msra.mxu0 %v7293_v53  ;;  %6005 = vmatprep.subr.bf16.mxu1 %v7298_v8  ;;  %v4313_v13 = vmul.f32 1.442695, %v4297_v21  ;;  %v4317_v36 = vmul.f32 1.442695, %v4299_v27  ;;  %v7331_v40 = vld [vmem:[%s10424_s10 + $0x1d4] ss:$8 sps:$4 sm:$0xff]  }
0x13b3   :  { %7668 = vrcp.f32 %v4091_v50  ;;  %6046 = vmatprep.subr.bf16.mxu0 %v7301_v54  ;;  %v7328_v54 = vld [vmem:[%s10424_s10 + $0xd4] ss:$8 sps:$4 sm:$0xff]   ;;  %vm4025_vm2 = vcmp.lt.f32.partialorder %v9390_v12, 0.0  ;;  %vm4027_vm3 = vcmp.lt.f32.partialorder %v9393_v43, 0.0  ;;  %vm4026_vm4 = vcmp.lt.f32.partialorder %v9399_v56, 0.0 }
0x13b4   :  { %7670 = vrcp.f32 %v4090_v44  ;;  %vm4028_vm5 = vcmp.lt.f32.partialorder %v9416_v55, 0.0  ;;  %v3996_v55 = vmul.f32 0.5, %v9381_v48 }
0x13b5   :  { %6006 = vmatpush1.bf16.msra.mxu1 %v7296_v49  ;;  %7672 = vrcp.f32 %v4092_v62  ;;  %v7326_v62 = vld [vmem:[%s10424_s10 + $0xd0] ss:$8 sps:$4 sm:$0xff]  }
0x13b6   :  { %6047 = vmatpush1.bf16.msra.mxu0 %v7299_v58  ;;  %6007 = vmatprep.subr.bf16.mxu1 %v7304_v59  ;;  %7674 = vpow2.f32 %v4313_v13  ;;  %v4315_v58 = vmul.f32 1.442695, %v4298_v52 }
0x13b7   :  { %6048 = vmatprep.subr.bf16.mxu0 %v7307_v61  ;;  %7676 = vpow2.f32 %v4317_v36 }
0x13b8   :  { %7678 = vpow2.f32 %v4315_v58  ;;  %v7736_v58 = vmov 1.0  }
0x13b9   :  { %6008 = vmatpush1.bf16.msra.mxu1 %v7302_v63  ;;  %v4041_v43 = vsel %vm4025_vm2, -1.0, %v7736_v58  ;;  %v4044_v56 = vsel %vm4028_vm5, -1.0, %v7736_v58 }
0x13ba   :  { %6049 = vmatpush1.bf16.msra.mxu0 %v7305_v0  ;;  %6009 = vmatprep.subr.bf16.mxu1 %v7310_v1  ;;  %v4319_v0 = vmul.f32 1.442695, %v4300_v3  ;;  %v7329_v1 = vld [vmem:[%s10424_s10 + $0x1d0] ss:$8 sps:$4 sm:$0xff]  }
0x13bb   :  { %6050 = vmatprep.subr.bf16.mxu0 %v7313_v2  ;;  %v7334_v2 = vld [vmem:[%s10424_s10 + $0xe4] ss:$8 sps:$4 sm:$0xff]  }
0x13bc   :  { %v9462_v20 = vpop.eup %7666  ;;  %7680 = vpow2.f32 %v4319_v0 }
0x13bd   :  { %v9465_v25 = vpop.eup %7668  ;;  %v4137_v46 = vmul.f32 1.0614054, %v9462_v20  ;;  %6010 = vmatpush1.bf16.msra.mxu1 %v7308_v5 }
0x13be   :  { %v4139_v42 = vmul.f32 1.0614054, %v9465_v25  ;;  %6051 = vmatpush1.bf16.msra.mxu0 %v7311_v6  ;;  %6011 = vmatprep.subr.bf16.mxu1 %v7316_v51  ;;  %v9481_v57 = vpop.eup %7670  ;;  %v7337_v6 = vld [vmem:[%s10424_s10 + $0x1e4] ss:$8 sps:$4 sm:$0xff]  }
0x13bf   :  { %v4153_v38 = vadd.f32 -1.4531521, %v4137_v46  ;;  %6052 = vmatprep.subr.bf16.mxu0 %v7319_v7  ;;  %v4138_v10 = vmul.f32 1.0614054, %v9481_v57  ;;  %v9489_v8 = vpop.eup %7672  ;;  %v7332_v46 = vld [vmem:[%s10424_s10 + $0xe0] ss:$8 sps:$4 sm:$0xff]  }
0x13c0   :  { %v4155_v37 = vadd.f32 -1.4531521, %v4139_v42  ;;  %v4140_v44 = vmul.f32 1.0614054, %v9489_v8  ;;  %v7675_v36 = vpop.eup %7674 }
0x13c1   :  { %v4169_v53 = vmul.f32 %v9462_v20, %v4153_v38  ;;  %6012 = vmatpush1.bf16.msra.mxu1 %v7314_v30  ;;  %v4154_v49 = vadd.f32 -1.4531521, %v4138_v10  ;;  %v7335_v30 = vld [vmem:[%s10424_s10 + $0x1e0] ss:$8 sps:$4 sm:$0xff]   ;;  %v7343_v38 = vld [vmem:[%s10424_s10 + $0x1f4] ss:$8 sps:$4 sm:$0xff]  }
0x13c2   :  { %v4171_v39 = vmul.f32 %v9465_v25, %v4155_v37  ;;  %6053 = vmatpush1.bf16.msra.mxu0 %v7317_v31  ;;  %6013 = vmatprep.subr.bf16.mxu1 %v7322_v35  ;;  %v4156_v61 = vadd.f32 -1.4531521, %v4140_v44  ;;  %v7340_v31 = vld [vmem:[%s10424_s10 + $0xf4] ss:$8 sps:$4 sm:$0xff]  }
0x13c3   :  { %v4185_v50 = vadd.f32 1.4214138, %v4169_v53  ;;  %6054 = vmatprep.subr.bf16.mxu0 %v7325_v47  ;;  %v4170_v60 = vmul.f32 %v9481_v57, %v4154_v49  ;;  %v7338_v53 = vld [vmem:[%s10424_s10 + $0xf0] ss:$8 sps:$4 sm:$0xff]  }
0x13c4   :  { %v4187_v9 = vadd.f32 1.4214138, %v4171_v39  ;;  %v4172_v5 = vmul.f32 %v9489_v8, %v4156_v61  ;;  %v7677_v39 = vpop.eup %7676 }
0x13c5   :  { %v4201_v59 = vmul.f32 %v9462_v20, %v4185_v50  ;;  %6014 = vmatpush1.bf16.msra.mxu1 %v7320_v34  ;;  %v4186_v4 = vadd.f32 1.4214138, %v4170_v60  ;;  %v7341_v34 = vld [vmem:[%s10424_s10 + $0x1f0] ss:$8 sps:$4 sm:$0xff]  }
0x13c6   :  { %v4203_v63 = vmul.f32 %v9465_v25, %v4187_v9  ;;  %6055 = vmatpush1.bf16.msra.mxu0 %v7323_v17  ;;  %6015 = vmatprep.subr.bf16.mxu1 %v7328_v54  ;;  %v4188_v24 = vadd.f32 1.4214138, %v4172_v5  ;;  %v7679_v9 = vpop.eup %7678 }
0x13c7   :  { %v4217_v45 = vadd.f32 -0.28449672, %v4201_v59  ;;  %6056 = vmatprep.subr.bf16.mxu0 %v7331_v40  ;;  %v4202_v21 = vmul.f32 %v9481_v57, %v4186_v4  ;;  %v4043_v59 = vsel %vm4027_vm3, -1.0, %v7736_v58 }
0x13c8   :  { %v4219_v51 = vadd.f32 -0.28449672, %v4203_v63  ;;  %v4204_v35 = vmul.f32 %v9489_v8, %v4188_v24 }
0x13c9   :  { %v4233_v7 = vmul.f32 %v9462_v20, %v4217_v45  ;;  %6016 = vmatpush1.bf16.msra.mxu1 %v7326_v62  ;;  %v4218_v33 = vadd.f32 -0.28449672, %v4202_v21  ;;  %v4042_v45 = vsel %vm4026_vm4, -1.0, %v7736_v58 }
0x13ca   :  { %v4235_v27 = vmul.f32 %v9465_v25, %v4219_v51  ;;  %6057 = vmatpush1.bf16.msra.mxu0 %v7329_v1  ;;  %6017 = vmatprep.subr.bf16.mxu1 %v7334_v2  ;;  %v4220_v52 = vadd.f32 -0.28449672, %v4204_v35 }
0x13cb   :  { %v4249_v42 = vadd.f32 0.2548296, %v4233_v7  ;;  %6058 = vmatprep.subr.bf16.mxu0 %v7337_v6  ;;  %v4234_v37 = vmul.f32 %v9481_v57, %v4218_v33  ;;  %v3993_v6 = vmul.f32 0.5, %v9375_v28  ;;  %v3994_v7 = vmul.f32 0.5, %v9379_v32  ;;  %v7344_v28 = vld [vmem:[%s10424_s10 + $0x200] ss:$8 sps:$4 sm:$0xff]  }
0x13cc   :  { %v4251_v47 = vadd.f32 0.2548296, %v4235_v27  ;;  %v4236_v54 = vmul.f32 %v9489_v8, %v4220_v52  ;;  %v7352_v32 = vld [vmem:[%s10424_s10 + $0x214] ss:$8 sps:$4 sm:$0xff]   ;;  %v2335_v52 = vsub.s32 7, %v8032_v14 }
0x13cd   :  { %v4265_v13 = vmul.f32 %v9462_v20, %v4249_v42  ;;  %6018 = vmatpush1.bf16.msra.mxu1 %v7332_v46  ;;  %v7346_v20 = vld [vmem:[%s10424_s10 + $0x204] ss:$8 sps:$4 sm:$0xff]   ;;  %v4250_v17 = vadd.f32 0.2548296, %v4234_v37  ;;  %v3995_v46 = vmul.f32 0.5, %v9377_v29 }
0x13ce   :  { %v4267_v10 = vmul.f32 %v9465_v25, %v4251_v47  ;;  %6059 = vmatpush1.bf16.msra.mxu0 %v7335_v30  ;;  %6019 = vmatprep.subr.bf16.mxu1 %v7340_v31  ;;  %v7349_v25 = vld [vmem:[%s10424_s10 + $0x304] ss:$8 sps:$4 sm:$0xff]   ;;  %v4252_v44 = vadd.f32 0.2548296, %v4236_v54  ;;  %v7347_v29 = vld [vmem:[%s10424_s10 + $0x300] ss:$8 sps:$4 sm:$0xff]  }
0x13cf   :  { %v4345_v3 = vmul.f32 %v7675_v36, %v4265_v13  ;;  %6060 = vmatprep.subr.bf16.mxu0 %v7343_v38  ;;  %v4266_v49 = vmul.f32 %v9481_v57, %v4250_v17  ;;  %v7681_v57 = vpop.eup %7680  ;;  %v7355_v47 = vld [vmem:[%s10424_s10 + $0x314] ss:$8 sps:$4 sm:$0xff]   ;;  %v2331_v13 = vsub.s32 6, %v8032_v14  ;;  %v7350_v37 = vld [vmem:[%s10424_s10 + $0x210] ss:$8 sps:$4 sm:$0xff]   ;;  %v2336_v17 = vrot.slane %v9341_v41, %v2335_v52 }
0x13d0   :  { %v4347_v40 = vmul.f32 %v7677_v39, %v4267_v10  ;;  %v4268_v63 = vmul.f32 %v9489_v8, %v4252_v44  ;;  %v7353_v36 = vld [vmem:[%s10424_s10 + $0x310] ss:$8 sps:$4 sm:$0xff]   ;;  %v7361_v10 = vld [vmem:[%s10424_s10 + $0x324] ss:$8 sps:$4 sm:$0xff]   ;;  %v7356_v39 = vld [vmem:[%s10424_s10 + $0x220] ss:$8 sps:$4 sm:$0xff]  }
0x13d1   :  { %v4361_v50 = vsub.f32 1.0, %v4345_v3  ;;  %6020 = vmatpush1.bf16.msra.mxu1 %v7338_v53  ;;  %v4346_v62 = vmul.f32 %v7679_v9, %v4266_v49  ;;  %v7358_v53 = vld [vmem:[%s10424_s10 + $0x224] ss:$8 sps:$4 sm:$0xff]   ;;  %v2328_v3 = vrot.slane %v9341_v41, %v8216_v23  ;;  %v7364_v54 = vld [vmem:[%s10424_s10 + $0x234] ss:$8 sps:$4 sm:$0xff]  }
0x13d2   :  { %v4363_v60 = vsub.f32 1.0, %v4347_v40  ;;  %6061 = vmatpush1.bf16.msra.mxu0 %v7341_v34  ;;  %6071 = vmatprep.subr.bf16.mxu1 %v7346_v20  ;;  %v4348_v2 = vmul.f32 %v7681_v57, %v4268_v63  ;;  %v2324_v34 = vrot.slane %v9341_v41, %v8213_v22  ;;  %v2332_v20 = vrot.slane %v9341_v41, %v2331_v13  ;;  %v7367_v41 = vld [vmem:[%s10424_s10 + $0x334] ss:$8 sps:$4 sm:$0xff]   ;;  %v7362_v63 = vld [vmem:[%s10424_s10 + $0x230] ss:$8 sps:$4 sm:$0xff]  }
0x13d3   :  { %v4377_v61 = vmul.f32 %v4361_v50, %v4041_v43  ;;  %6112 = vmatprep.subr.bf16.mxu0 %v7349_v25  ;;  %v4362_v1 = vsub.f32 1.0, %v4346_v62  ;;  %v7359_v25 = vld [vmem:[%s10424_s10 + $0x320] ss:$8 sps:$4 sm:$0xff]   ;;  %v7559_v14 = vld [vmem:[%s10424_s10 + $0x734] ss:$8 sps:$4 sm:$0xff]  }
0x13d4   :  { %v4379_v0 = vmul.f32 %v4363_v60, %v4043_v59  ;;  %v4364_v5 = vsub.f32 1.0, %v4348_v2 }
0x13d5   :  { %v4393_v12 = vadd.f32 1.0, %v4377_v61  ;;  %v4378_v4 = vmul.f32 %v4362_v1, %v4042_v45  ;;  %v7370_v1 = vld [vmem:[%s10424_s10 + $0x244] ss:$8 sps:$4 sm:$0xff]  }
0x13d6   :  { %v4395_v51 = vadd.f32 1.0, %v4379_v0  ;;  %v4380_v8 = vmul.f32 %v4364_v5, %v4044_v56  ;;  %v7373_v45 = vld [vmem:[%s10424_s10 + $0x344] ss:$8 sps:$4 sm:$0xff]  }
0x13d7   :  { %v4394_v21 = vadd.f32 1.0, %v4378_v4  ;;  %v4409_v24 = vmul.f32 %v4393_v12, %v3993_v6  ;;  %v7365_v12 = vld [vmem:[%s10424_s10 + $0x330] ss:$8 sps:$4 sm:$0xff]   ;;  %v7368_v6 = vld [vmem:[%s10424_s10 + $0x240] ss:$8 sps:$4 sm:$0xff]  }
0x13d8   :  { %v4396_v30 = vadd.f32 1.0, %v4380_v8  ;;  %v4411_v31 = vmul.f32 %v4395_v51, %v3995_v46 }
0x13d9   :  { %v4410_v27 = vmul.f32 %v4394_v21, %v3994_v7  ;;  %v4425_v35 = vpack.c.bf16 %v4409_v24, %v4409_v24  ;;  %v7376_v24 = vld [vmem:[%s10424_s10 + $0x254] ss:$8 sps:$4 sm:$0xff]  }
0x13da   :  { %v4412_v33 = vmul.f32 %v4396_v30, %v3996_v55  ;;  %v4427_v48 = vpack.c.bf16 %v4411_v31, %v4411_v31 }
0x13db   :  { %v4426_v42 = vpack.c.bf16 %v4410_v27, %v4410_v27  ;;  %v7371_v27 = vld [vmem:[%s10424_s10 + $0x340] ss:$8 sps:$4 sm:$0xff]  }
0x13dc   :  { %v4428_v38 = vpack.c.bf16 %v4412_v33, %v4412_v33 }
0x13dd   :  { %6021 = vmatprep.mubr.bf16.mxu1 %v4426_v42  ;;  %v7379_v42 = vld [vmem:[%s10424_s10 + $0x354] ss:$8 sps:$4 sm:$0xff]  }
0x13de   :  { %6022 = vmatmul.mubr.bf16.vlgmr.msra.gmra.mrb[56].mxu1 %v4425_v35  ;;  %6062 = vmatprep.mubr.bf16.mxu0 %v4428_v38 }
0x13df   :  { %6072 = vmatpush1.bf16.msra.mxu1 %v7344_v28  ;;  %6063 = vmatmul.mubr.bf16.vlgmr.msra.gmra.mrb[28].mxu0 %v4427_v48  ;;  %v7374_v28 = vld [vmem:[%s10424_s10 + $0x250] ss:$8 sps:$4 sm:$0xff]   ;;  %v7385_v48 = vld [vmem:[%s10424_s10 + $0x364] ss:$8 sps:$4 sm:$0xff]  }
0x13e0   :  { %6073 = vmatprep.subr.bf16.mxu1 %v7352_v32  ;;  %6113 = vmatpush1.bf16.msra.mxu0 %v7347_v29  ;;  %v7382_v32 = vld [vmem:[%s10424_s10 + $0x264] ss:$8 sps:$4 sm:$0xff]   ;;  %v7377_v29 = vld [vmem:[%s10424_s10 + $0x350] ss:$8 sps:$4 sm:$0xff]  }
0x13e1   :  { %6114 = vmatprep.subr.bf16.mxu0 %v7355_v47 }
0x13e3   :  { %6074 = vmatpush1.bf16.msra.mxu1 %v7350_v37  ;;  %v7380_v37 = vld [vmem:[%s10424_s10 + $0x260] ss:$8 sps:$4 sm:$0xff]  }
0x13e4   :  { %6075 = vmatprep.subr.bf16.mxu1 %v7358_v53  ;;  %6115 = vmatpush1.bf16.msra.mxu0 %v7353_v36  ;;  %v7388_v53 = vld [vmem:[%s10424_s10 + $0x274] ss:$8 sps:$4 sm:$0xff]   ;;  %v7383_v36 = vld [vmem:[%s10424_s10 + $0x360] ss:$8 sps:$4 sm:$0xff]  }
0x13e5   :  { %6116 = vmatprep.subr.bf16.mxu0 %v7361_v10 }
0x13e7   :  { %v3781_v40 = vpop.f32.mrb[44].mxu1  ;;  %v3822_v50 = vpop.f32.mrb[16].mxu0  ;;  %6076 = vmatpush1.bf16.msra.mxu1 %v7356_v39  ;;  %v7386_v39 = vld [vmem:[%s10424_s10 + $0x270] ss:$8 sps:$4 sm:$0xff]  }
0x13e8   :  { %v9611_v49 = vadd.f32 %v3781_v40, %v2324_v34  ;;  %v9613_v44 = vadd.f32 %v3822_v50, %v2332_v20  ;;  %v3783_v9 = vpop.f32.mrb[45].mxu1  ;;  %v3824_v43 = vpop.f32.mrb[17].mxu0  ;;  %6077 = vmatprep.subr.bf16.mxu1 %v7364_v54  ;;  %6117 = vmatpush1.bf16.msra.mxu0 %v7359_v25  ;;  %v7391_v34 = vld [vmem:[%s10424_s10 + $0x374] ss:$8 sps:$4 sm:$0xff]   ;;  %v7397_v50 = vld [vmem:[%s10424_s10 + $0x384] ss:$8 sps:$4 sm:$0xff]  }
0x13e9   :  { %v9618_v59 = vadd.f32 %v3783_v9, %v2328_v3  ;;  %v9620_v60 = vadd.f32 %v3824_v43, %v2336_v17  ;;  %v3785_v61 = vpop.f32.mrb[46].mxu1  ;;  %v3826_v62 = vpop.f32.mrb[18].mxu0  ;;  %6118 = vmatprep.subr.bf16.mxu0 %v7367_v41  ;;  %v7394_v3 = vld [vmem:[%s10424_s10 + $0x284] ss:$8 sps:$4 sm:$0xff]   ;;  %v7389_v17 = vld [vmem:[%s10424_s10 + $0x370] ss:$8 sps:$4 sm:$0xff]  }
0x13ea   :  { %v9626_v57 = vmul.f32 0.70710677, %v9611_v49  ;;  %v9629_v0 = vmul.f32 0.70710677, %v9613_v44  ;;  %v3786_v7 = vpop.f32.mrb[47].mxu1  ;;  %v3827_v55 = vpop.f32.mrb[19].mxu0 }
0x13eb   :  { %v9635_v2 = vmul.f32 0.70710677, %v9618_v59  ;;  %v9652_v56 = vmul.f32 0.70710677, %v9620_v60  ;;  %6078 = vmatpush1.bf16.msra.mxu1 %v7362_v63  ;;  %v7392_v61 = vld [vmem:[%s10424_s10 + $0x280] ss:$8 sps:$4 sm:$0xff]  }
0x13ec   :  { %v4061_v4 = vand.u32 2147483647, %v9626_v57  ;;  %v4063_v5 = vand.u32 2147483647, %v9629_v0  ;;  %6079 = vmatprep.subr.bf16.mxu1 %v7370_v1  ;;  %6119 = vmatpush1.bf16.msra.mxu0 %v7365_v12  ;;  %v7400_v1 = vld [vmem:[%s10424_s10 + $0x294] ss:$8 sps:$4 sm:$0xff]  }
0x13ed   :  { %v9649_v51 = vand.u32 2147483647, %v9635_v2  ;;  %6120 = vmatprep.subr.bf16.mxu0 %v7373_v45  ;;  %v4064_v33 = vand.u32 2147483647, %v9652_v56  ;;  %v7395_v45 = vld [vmem:[%s10424_s10 + $0x380] ss:$8 sps:$4 sm:$0xff]  }
0x13ee   :  { %v4077_v8 = vmul.f32 0.3275911, %v4061_v4  ;;  %v4079_v21 = vmul.f32 0.3275911, %v4063_v5  ;;  %v4285_v10 = vsub.f32 0.0, %v4061_v4  ;;  %v4287_v20 = vsub.f32 0.0, %v4063_v5 }
0x13ef   :  { %v4078_v46 = vmul.f32 0.3275911, %v9649_v51  ;;  %6080 = vmatpush1.bf16.msra.mxu1 %v7368_v6  ;;  %v4080_v38 = vmul.f32 0.3275911, %v4064_v33  ;;  %v4286_v40 = vsub.f32 0.0, %v9649_v51  ;;  %v4288_v63 = vsub.f32 0.0, %v4064_v33 }
0x13f0   :  { %v4093_v30 = vadd.f32 1.0, %v4077_v8  ;;  %v4095_v31 = vadd.f32 1.0, %v4079_v21  ;;  %6081 = vmatprep.subr.bf16.mxu1 %v7376_v24  ;;  %6121 = vmatpush1.bf16.msra.mxu0 %v7371_v27  ;;  %v4301_v25 = vmul.f32 %v4285_v10, %v4061_v4  ;;  %v4303_v41 = vmul.f32 %v4287_v20, %v4063_v5  ;;  %v7403_v8 = vld [vmem:[%s10424_s10 + $0x394] ss:$8 sps:$4 sm:$0xff]   ;;  %v7398_v55 = vld [vmem:[%s10424_s10 + $0x290] ss:$8 sps:$4 sm:$0xff]  }
0x13f1   :  { %v4094_v35 = vadd.f32 1.0, %v4078_v46  ;;  %6122 = vmatprep.subr.bf16.mxu0 %v7379_v42  ;;  %v4096_v47 = vadd.f32 1.0, %v4080_v38  ;;  %v4302_v7 = vmul.f32 %v4286_v40, %v9649_v51  ;;  %v4304_v51 = vmul.f32 %v4288_v63, %v4064_v33  ;;  %v7406_v42 = vld [vmem:[%s10424_s10 + $0x2a4] ss:$8 sps:$4 sm:$0xff]   ;;  %v7415_v40 = vld [vmem:[%s10424_s10 + $0x3b4] ss:$8 sps:$4 sm:$0xff]  }
0x13f2   :  { %7682 = vrcp.f32 %v4093_v30  ;;  %v4321_v5 = vmul.f32 1.442695, %v4301_v25  ;;  %v4325_v24 = vmul.f32 1.442695, %v4303_v41  ;;  %v7409_v33 = vld [vmem:[%s10424_s10 + $0x3a4] ss:$8 sps:$4 sm:$0xff]  }
0x13f3   :  { %7684 = vrcp.f32 %v4095_v31  ;;  %6082 = vmatpush1.bf16.msra.mxu1 %v7374_v28  ;;  %v7401_v31 = vld [vmem:[%s10424_s10 + $0x390] ss:$8 sps:$4 sm:$0xff]   ;;  %v4327_v10 = vmul.f32 1.442695, %v4304_v51  ;;  %v7418_v63 = vld [vmem:[%s10424_s10 + $0x2c4] ss:$8 sps:$4 sm:$0xff]  }
0x13f4   :  { %7686 = vrcp.f32 %v4094_v35  ;;  %6083 = vmatprep.subr.bf16.mxu1 %v7382_v32  ;;  %6123 = vmatpush1.bf16.msra.mxu0 %v7377_v29  ;;  %v4323_v29 = vmul.f32 1.442695, %v4302_v7  ;;  %v7421_v7 = vld [vmem:[%s10424_s10 + $0x3c4] ss:$8 sps:$4 sm:$0xff]   ;;  %vm4029_vm6 = vcmp.lt.f32.partialorder %v9626_v57, 0.0  ;;  %vm4031_vm7 = vcmp.lt.f32.partialorder %v9629_v0, 0.0 }
0x13f5   :  { %7688 = vrcp.f32 %v4096_v47  ;;  %6124 = vmatprep.subr.bf16.mxu0 %v7385_v48  ;;  %v7424_v51 = vld [vmem:[%s10424_s10 + $0x2d4] ss:$8 sps:$4 sm:$0xff]   ;;  %v7422_v0 = vld [vmem:[%s10424_s10 + $0x2d0] ss:$8 sps:$4 sm:$0xff]   ;;  %vm4030_vm8 = vcmp.lt.f32.partialorder %v9635_v2, 0.0  ;;  %vm4032_vm9 = vcmp.lt.f32.partialorder %v9652_v56, 0.0 }
0x13f6   :  { %7690 = vpow2.f32 %v4321_v5  ;;  %v7413_v5 = vld [vmem:[%s10424_s10 + $0x3b0] ss:$8 sps:$4 sm:$0xff]   ;;  %v7428_v2 = vld [vmem:[%s10424_s10 + $0x2e0] ss:$8 sps:$4 sm:$0xff]  }
0x13f7   :  { %6084 = vmatpush1.bf16.msra.mxu1 %v7380_v37  ;;  %7692 = vpow2.f32 %v4325_v24  ;;  %v7425_v57 = vld [vmem:[%s10424_s10 + $0x3d0] ss:$8 sps:$4 sm:$0xff]   ;;  %v7431_v56 = vld [vmem:[%s10424_s10 + $0x3e0] ss:$8 sps:$4 sm:$0xff]  }
0x13f8   :  { %6085 = vmatprep.subr.bf16.mxu1 %v7388_v53  ;;  %6125 = vmatpush1.bf16.msra.mxu0 %v7383_v36  ;;  %v7404_v53 = vld [vmem:[%s10424_s10 + $0x2a0] ss:$8 sps:$4 sm:$0xff]   ;;  %7694 = vpow2.f32 %v4323_v29 }
0x13f9   :  { %6126 = vmatprep.subr.bf16.mxu0 %v7391_v34  ;;  %v7412_v34 = vld [vmem:[%s10424_s10 + $0x2b4] ss:$8 sps:$4 sm:$0xff]   ;;  %7696 = vpow2.f32 %v4327_v10 }
0x13fb   :  { %6086 = vmatpush1.bf16.msra.mxu1 %v7386_v39 }
0x13fc   :  { %v9698_v54 = vpop.eup %7682  ;;  %6087 = vmatprep.subr.bf16.mxu1 %v7394_v3  ;;  %6127 = vmatpush1.bf16.msra.mxu0 %v7389_v17  ;;  %v7407_v17 = vld [vmem:[%s10424_s10 + $0x3a0] ss:$8 sps:$4 sm:$0xff]  }
0x13fd   :  { %v9704_v9 = vpop.eup %7684  ;;  %v4141_v43 = vmul.f32 1.0614054, %v9698_v54  ;;  %6128 = vmatprep.subr.bf16.mxu0 %v7397_v50 }
0x13fe   :  { %v4143_v62 = vmul.f32 1.0614054, %v9704_v9  ;;  %v9717_v4 = vpop.eup %7686 }
0x13ff   :  { %v4157_v12 = vadd.f32 -1.4531521, %v4141_v43  ;;  %v4142_v46 = vmul.f32 1.0614054, %v9717_v4  ;;  %6088 = vmatpush1.bf16.msra.mxu1 %v7392_v61  ;;  %v9728_v27 = vpop.eup %7688  ;;  %v7410_v61 = vld [vmem:[%s10424_s10 + $0x2b0] ss:$8 sps:$4 sm:$0xff]  }
0x1400   :  { %v4159_v6 = vadd.f32 -1.4531521, %v4143_v62  ;;  %6089 = vmatprep.subr.bf16.mxu1 %v7400_v1  ;;  %v4144_v32 = vmul.f32 1.0614054, %v9728_v27  ;;  %6129 = vmatpush1.bf16.msra.mxu0 %v7395_v45 }
0x1401   :  { %v4173_v21 = vmul.f32 %v9698_v54, %v4157_v12  ;;  %v4158_v35 = vadd.f32 -1.4531521, %v4142_v46  ;;  %6130 = vmatprep.subr.bf16.mxu0 %v7403_v8  ;;  %v7416_v46 = vld [vmem:[%s10424_s10 + $0x2c0] ss:$8 sps:$4 sm:$0xff]  }
0x1402   :  { %v4175_v30 = vmul.f32 %v9704_v9, %v4159_v6  ;;  %v4160_v37 = vadd.f32 -1.4531521, %v4144_v32 }
0x1403   :  { %v4189_v28 = vadd.f32 1.4214138, %v4173_v21  ;;  %v4174_v47 = vmul.f32 %v9717_v4, %v4158_v35  ;;  %6090 = vmatpush1.bf16.msra.mxu1 %v7398_v55  ;;  %v7691_v55 = vpop.eup %7690  ;;  %v7419_v35 = vld [vmem:[%s10424_s10 + $0x3c0] ss:$8 sps:$4 sm:$0xff]  }
0x1404   :  { %v4191_v38 = vadd.f32 1.4214138, %v4175_v30  ;;  %6091 = vmatprep.subr.bf16.mxu1 %v7406_v42  ;;  %v4176_v3 = vmul.f32 %v9728_v27, %v4160_v37  ;;  %6131 = vmatpush1.bf16.msra.mxu0 %v7401_v31  ;;  %v7693_v31 = vpop.eup %7692  ;;  %v4047_v37 = vsel %vm4031_vm7, -1.0, %v7736_v58 }
0x1405   :  { %v4205_v48 = vmul.f32 %v9698_v54, %v4189_v28  ;;  %v4190_v39 = vadd.f32 1.4214138, %v4174_v47  ;;  %6132 = vmatprep.subr.bf16.mxu0 %v7409_v33  ;;  %v4045_v47 = vsel %vm4029_vm6, -1.0, %v7736_v58 }
0x1406   :  { %v4207_v36 = vmul.f32 %v9704_v9, %v4191_v38  ;;  %v4192_v41 = vadd.f32 1.4214138, %v4176_v3  ;;  %v7433_v3 = vld [vmem:[%s10424_s10 + $0x3e4] ss:$8 sps:$4 sm:$0xff]  }
0x1407   :  { %v4221_v20 = vadd.f32 -0.28449672, %v4205_v48  ;;  %v4206_v43 = vmul.f32 %v9717_v4, %v4190_v39  ;;  %6092 = vmatpush1.bf16.msra.mxu1 %v7404_v53  ;;  %v7695_v48 = vpop.eup %7694 }
0x1408   :  { %v4223_v25 = vadd.f32 -0.28449672, %v4207_v36  ;;  %6093 = vmatprep.subr.bf16.mxu1 %v7412_v34  ;;  %v4208_v45 = vmul.f32 %v9728_v27, %v4192_v41  ;;  %6133 = vmatpush1.bf16.msra.mxu0 %v7407_v17  ;;  %v7430_v36 = vld [vmem:[%s10424_s10 + $0x2e4] ss:$8 sps:$4 sm:$0xff]  }
0x1409   :  { %v4237_v50 = vmul.f32 %v9698_v54, %v4221_v20  ;;  %v4222_v12 = vadd.f32 -0.28449672, %v4206_v43  ;;  %6134 = vmatprep.subr.bf16.mxu0 %v7415_v40  ;;  %v7697_v20 = vpop.eup %7696  ;;  %v4046_v40 = vsel %vm4030_vm8, -1.0, %v7736_v58 }
0x140a   :  { %v4239_v62 = vmul.f32 %v9704_v9, %v4223_v25  ;;  %v4224_v24 = vadd.f32 -0.28449672, %v4208_v45 }
0x140b   :  { %v4253_v1 = vadd.f32 0.2548296, %v4237_v50  ;;  %v4238_v21 = vmul.f32 %v9717_v4, %v4222_v12  ;;  %6094 = vmatpush1.bf16.msra.mxu1 %v7410_v61  ;;  %v7436_v50 = vld [vmem:[%s10424_s10 + $0x2f4] ss:$8 sps:$4 sm:$0xff]   ;;  %v3997_v61 = vmul.f32 0.5, %v9611_v49  ;;  %v3998_v12 = vmul.f32 0.5, %v9618_v59 }
0x140c   :  { %v4255_v6 = vadd.f32 0.2548296, %v4239_v62  ;;  %6095 = vmatprep.subr.bf16.mxu1 %v7418_v63  ;;  %v4240_v28 = vmul.f32 %v9728_v27, %v4224_v24  ;;  %6135 = vmatpush1.bf16.msra.mxu0 %v7413_v5  ;;  %v4048_v63 = vsel %vm4032_vm9, -1.0, %v7736_v58  ;;  %v7434_v5 = vld [vmem:[%s10424_s10 + $0x2f0] ss:$8 sps:$4 sm:$0xff]   ;;  %v3999_v49 = vmul.f32 0.5, %v9613_v44 }
0x140d   :  { %v4269_v8 = vmul.f32 %v9698_v54, %v4253_v1  ;;  %v4254_v42 = vadd.f32 0.2548296, %v4238_v21  ;;  %6136 = vmatprep.subr.bf16.mxu0 %v7421_v7  ;;  %v7439_v1 = vld [vmem:[%s10424_s10 + $0x3f4] ss:$8 sps:$4 sm:$0xff]   ;;  %v4000_v21 = vmul.f32 0.5, %v9620_v60 }
0x140e   :  { %v4271_v30 = vmul.f32 %v9704_v9, %v4255_v6  ;;  %v7427_v9 = vld [vmem:[%s10424_s10 + $0x3d4] ss:$8 sps:$4 sm:$0xff]   ;;  %v4256_v33 = vadd.f32 0.2548296, %v4240_v28  ;;  %v7437_v59 = vld [vmem:[%s10424_s10 + $0x3f0] ss:$8 sps:$4 sm:$0xff]  }
0x140f   :  { %v4349_v54 = vmul.f32 %v7691_v55, %v4269_v8  ;;  %v4270_v29 = vmul.f32 %v9717_v4, %v4254_v42  ;;  %6096 = vmatpush1.bf16.msra.mxu1 %v7416_v46  ;;  %v7442_v8 = vld [vmem:[%s10424_s10 + $0x404] ss:$8 sps:$4 sm:$0xff]   ;;  %v7440_v60 = vld [vmem:[%s10424_s10 + $0x400] ss:$8 sps:$4 sm:$0xff]  }
0x1410   :  { %v4351_v32 = vmul.f32 %v7693_v31, %v4271_v30  ;;  %6097 = vmatprep.subr.bf16.mxu1 %v7424_v51  ;;  %v4272_v34 = vmul.f32 %v9728_v27, %v4256_v33  ;;  %6137 = vmatpush1.bf16.msra.mxu0 %v7419_v35  ;;  %v7445_v44 = vld [vmem:[%s10424_s10 + $0x504] ss:$8 sps:$4 sm:$0xff]   ;;  %v7443_v28 = vld [vmem:[%s10424_s10 + $0x500] ss:$8 sps:$4 sm:$0xff]   ;;  %v7449_v33 = vld [vmem:[%s10424_s10 + $0x510] ss:$8 sps:$4 sm:$0xff]  }
0x1411   :  { %v4365_v38 = vsub.f32 1.0, %v4349_v54  ;;  %v4350_v10 = vmul.f32 %v7695_v48, %v4270_v29  ;;  %6138 = vmatprep.subr.bf16.mxu0 %v7427_v9  ;;  %v7448_v54 = vld [vmem:[%s10424_s10 + $0x414] ss:$8 sps:$4 sm:$0xff]   ;;  %v7446_v9 = vld [vmem:[%s10424_s10 + $0x410] ss:$8 sps:$4 sm:$0xff]  }
0x1412   :  { %v4367_v53 = vsub.f32 1.0, %v4351_v32  ;;  %v4352_v25 = vmul.f32 %v7697_v20, %v4272_v34  ;;  %v7451_v32 = vld [vmem:[%s10424_s10 + $0x514] ss:$8 sps:$4 sm:$0xff]   ;;  %v7454_v29 = vld [vmem:[%s10424_s10 + $0x424] ss:$8 sps:$4 sm:$0xff]  }
0x1413   :  { %v4381_v4 = vmul.f32 %v4365_v38, %v4045_v47  ;;  %v4366_v17 = vsub.f32 1.0, %v4350_v10  ;;  %6098 = vmatpush1.bf16.msra.mxu1 %v7422_v0  ;;  %v9859_v38 = vld [vmem:[%s10425_s9 + $0x8] sm:$0xff] }
0x1414   :  { %v4383_v39 = vmul.f32 %v4367_v53, %v4047_v37  ;;  %6099 = vmatprep.subr.bf16.mxu1 %v7430_v36  ;;  %v4368_v41 = vsub.f32 1.0, %v4352_v25  ;;  %6139 = vmatpush1.bf16.msra.mxu0 %v7425_v57  ;;  %v7457_v0 = vld [vmem:[%s10424_s10 + $0x524] ss:$8 sps:$4 sm:$0xff]   ;;  %v2340_v48 = vrot.slane %v9859_v38, %v8038_v16  ;;  %v7452_v47 = vld [vmem:[%s10424_s10 + $0x420] ss:$8 sps:$4 sm:$0xff]   ;;  %v2348_v37 = vrot.slane %v9859_v38, %v8035_v15 }
0x1415   :  { %v4397_v27 = vadd.f32 1.0, %v4381_v4  ;;  %v4382_v43 = vmul.f32 %v4366_v17, %v4046_v40  ;;  %6140 = vmatprep.subr.bf16.mxu0 %v7433_v3  ;;  %v2344_v53 = vrot.slane %v9859_v38, %v8049_v19  ;;  %v2352_v36 = vrot.slane %v9859_v38, %v8046_v18  ;;  %v7460_v4 = vld [vmem:[%s10424_s10 + $0x434] ss:$8 sps:$4 sm:$0xff]   ;;  %v7455_v10 = vld [vmem:[%s10424_s10 + $0x520] ss:$8 sps:$4 sm:$0xff]  }
0x1416   :  { %v4399_v62 = vadd.f32 1.0, %v4383_v39  ;;  %v4384_v45 = vmul.f32 %v4368_v41, %v4048_v63  ;;  %v7463_v39 = vld [vmem:[%s10424_s10 + $0x534] ss:$8 sps:$4 sm:$0xff]   ;;  %v7466_v41 = vld [vmem:[%s10424_s10 + $0x444] ss:$8 sps:$4 sm:$0xff]  }
0x1417   :  { %6100 = vmatpush1.bf16.msra.mxu1 %v7428_v2  ;;  %v4398_v6 = vadd.f32 1.0, %v4382_v43  ;;  %v4413_v7 = vmul.f32 %v4397_v27, %v3997_v61  ;;  %v7458_v2 = vld [vmem:[%s10424_s10 + $0x430] ss:$8 sps:$4 sm:$0xff]  }
0x1418   :  { %6101 = vmatprep.subr.bf16.mxu1 %v7436_v50  ;;  %6141 = vmatpush1.bf16.msra.mxu0 %v7431_v56  ;;  %v4400_v46 = vadd.f32 1.0, %v4384_v45  ;;  %v4415_v55 = vmul.f32 %v4399_v62, %v3999_v49  ;;  %v7461_v62 = vld [vmem:[%s10424_s10 + $0x530] ss:$8 sps:$4 sm:$0xff]   ;;  %v7472_v49 = vld [vmem:[%s10424_s10 + $0x454] ss:$8 sps:$4 sm:$0xff]  }
0x1419   :  { %v4414_v24 = vmul.f32 %v4398_v6, %v3998_v12  ;;  %6142 = vmatprep.subr.bf16.mxu0 %v7439_v1  ;;  %v4429_v31 = vpack.c.bf16 %v4413_v7, %v4413_v7  ;;  %v7469_v12 = vld [vmem:[%s10424_s10 + $0x544] ss:$8 sps:$4 sm:$0xff]   ;;  %v7464_v6 = vld [vmem:[%s10424_s10 + $0x440] ss:$8 sps:$4 sm:$0xff]  }
0x141a   :  { %v4416_v51 = vmul.f32 %v4400_v46, %v4000_v21  ;;  %v4431_v35 = vpack.c.bf16 %v4415_v55, %v4415_v55  ;;  %v7475_v55 = vld [vmem:[%s10424_s10 + $0x554] ss:$8 sps:$4 sm:$0xff]  }
0x141b   :  { %6102 = vmatpush1.bf16.msra.mxu1 %v7434_v5  ;;  %v4430_v30 = vpack.c.bf16 %v4414_v24, %v4414_v24 }
0x141c   :  { %6153 = vmatprep.subr.bf16.mxu1 %v7442_v8  ;;  %6143 = vmatpush1.bf16.msra.mxu0 %v7437_v59  ;;  %v4432_v42 = vpack.c.bf16 %v4416_v51, %v4416_v51  ;;  %v7467_v59 = vld [vmem:[%s10424_s10 + $0x540] ss:$8 sps:$4 sm:$0xff]   ;;  %v7470_v51 = vld [vmem:[%s10424_s10 + $0x450] ss:$8 sps:$4 sm:$0xff]  }
0x141d   :  { %6103 = vmatprep.mubr.bf16.mxu1 %v4430_v30  ;;  %6194 = vmatprep.subr.bf16.mxu0 %v7445_v44 }
0x141e   :  { %6104 = vmatmul.mubr.bf16.vlgmr.msra.gmra.mrb[60].mxu1 %v4429_v31  ;;  %6144 = vmatprep.mubr.bf16.mxu0 %v4432_v42  ;;  %v7478_v31 = vld [vmem:[%s10424_s10 + $0x464] ss:$8 sps:$4 sm:$0xff]   ;;  %v7473_v42 = vld [vmem:[%s10424_s10 + $0x550] ss:$8 sps:$4 sm:$0xff]  }
0x141f   :  { %6154 = vmatpush1.bf16.msra.mxu1 %v7440_v60  ;;  %6145 = vmatmul.mubr.bf16.vlgmr.msra.gmra.mrb[32].mxu0 %v4431_v35  ;;  %v7481_v35 = vld [vmem:[%s10424_s10 + $0x564] ss:$8 sps:$4 sm:$0xff]  }
0x1420   :  { %6155 = vmatprep.subr.bf16.mxu1 %v7448_v54  ;;  %6195 = vmatpush1.bf16.msra.mxu0 %v7443_v28 }
0x1421   :  { %6196 = vmatprep.subr.bf16.mxu0 %v7451_v32  ;;  %v7476_v32 = vld [vmem:[%s10424_s10 + $0x460] ss:$8 sps:$4 sm:$0xff]  }
0x1423   :  { %6156 = vmatpush1.bf16.msra.mxu1 %v7446_v9  ;;  %v7484_v9 = vld [vmem:[%s10424_s10 + $0x474] ss:$8 sps:$4 sm:$0xff]  }
0x1424   :  { %6157 = vmatprep.subr.bf16.mxu1 %v7454_v29  ;;  %6197 = vmatpush1.bf16.msra.mxu0 %v7449_v33  ;;  %v7479_v29 = vld [vmem:[%s10424_s10 + $0x560] ss:$8 sps:$4 sm:$0xff]  }
0x1425   :  { %6198 = vmatprep.subr.bf16.mxu0 %v7457_v0  ;;  %v7487_v0 = vld [vmem:[%s10424_s10 + $0x574] ss:$8 sps:$4 sm:$0xff]  }
0x1427   :  { %v3863_v34 = vpop.f32.mrb[48].mxu1  ;;  %6158 = vmatpush1.bf16.msra.mxu1 %v7452_v47  ;;  %v7482_v47 = vld [vmem:[%s10424_s10 + $0x470] ss:$8 sps:$4 sm:$0xff]  }
0x1428   :  { %v9887_v57 = vadd.f32 %v3863_v34, %v2340_v48  ;;  %v3904_v15 = vpop.f32.mrb[20].mxu0  ;;  %v3865_v20 = vpop.f32.mrb[49].mxu1  ;;  %6159 = vmatprep.subr.bf16.mxu1 %v7460_v4  ;;  %6199 = vmatpush1.bf16.msra.mxu0 %v7455_v10  ;;  %v7493_v34 = vld [vmem:[%s10424_s10 + $0x584] ss:$8 sps:$4 sm:$0xff]  }
0x1429   :  { %v9892_v18 = vadd.f32 %v3904_v15, %v2348_v37  ;;  %v9894_v3 = vadd.f32 %v3865_v20, %v2344_v53  ;;  %v3906_v17 = vpop.f32.mrb[21].mxu0  ;;  %v3867_v25 = vpop.f32.mrb[50].mxu1  ;;  %6200 = vmatprep.subr.bf16.mxu0 %v7463_v39  ;;  %v7490_v37 = vld [vmem:[%s10424_s10 + $0x484] ss:$8 sps:$4 sm:$0xff]   ;;  %v7485_v53 = vld [vmem:[%s10424_s10 + $0x570] ss:$8 sps:$4 sm:$0xff]  }
0x142a   :  { %v9900_v27 = vmul.f32 0.70710677, %v9887_v57  ;;  %v9902_v40 = vadd.f32 %v3906_v17, %v2352_v36  ;;  %v3908_v50 = vpop.f32.mrb[22].mxu0  ;;  %v3868_v43 = vpop.f32.mrb[51].mxu1  ;;  %v7488_v17 = vld [vmem:[%s10424_s10 + $0x480] ss:$8 sps:$4 sm:$0xff]  }
0x142b   :  { %v9908_v56 = vmul.f32 0.70710677, %v9892_v18  ;;  %v9911_v61 = vmul.f32 0.70710677, %v9894_v3  ;;  %v3909_v5 = vpop.f32.mrb[23].mxu0  ;;  %6160 = vmatpush1.bf16.msra.mxu1 %v7458_v2 }
0x142c   :  { %v4065_v63 = vand.u32 2147483647, %v9900_v27  ;;  %v9918_v1 = vmul.f32 0.70710677, %v9902_v40  ;;  %6161 = vmatprep.subr.bf16.mxu1 %v7466_v41  ;;  %6201 = vmatpush1.bf16.msra.mxu0 %v7461_v62  ;;  %v7496_v50 = vld [vmem:[%s10424_s10 + $0x494] ss:$8 sps:$4 sm:$0xff]  }
0x142d   :  { %v4067_v45 = vand.u32 2147483647, %v9908_v56  ;;  %v4066_v21 = vand.u32 2147483647, %v9911_v61  ;;  %6202 = vmatprep.subr.bf16.mxu0 %v7469_v12  ;;  %v7491_v41 = vld [vmem:[%s10424_s10 + $0x580] ss:$8 sps:$4 sm:$0xff]  }
0x142e   :  { %v4081_v7 = vmul.f32 0.3275911, %v4065_v63  ;;  %v9935_v46 = vand.u32 2147483647, %v9918_v1  ;;  %v4289_v33 = vsub.f32 0.0, %v4065_v63  ;;  %vm4033_vm10 = vcmp.lt.f32.partialorder %v9900_v27, 0.0 }
0x142f   :  { %v4083_v8 = vmul.f32 0.3275911, %v4067_v45  ;;  %v4082_v30 = vmul.f32 0.3275911, %v4066_v21  ;;  %6162 = vmatpush1.bf16.msra.mxu1 %v7464_v6  ;;  %v4291_v48 = vsub.f32 0.0, %v4067_v45  ;;  %v4290_v10 = vsub.f32 0.0, %v4066_v21 }
0x1430   :  { %v4097_v24 = vadd.f32 1.0, %v4081_v7  ;;  %v4084_v60 = vmul.f32 0.3275911, %v9935_v46  ;;  %6163 = vmatprep.subr.bf16.mxu1 %v7472_v49  ;;  %6203 = vmatpush1.bf16.msra.mxu0 %v7467_v59  ;;  %v4305_v4 = vmul.f32 %v4289_v33, %v4065_v63  ;;  %v4292_v2 = vsub.f32 0.0, %v9935_v46  ;;  %v7499_v5 = vld [vmem:[%s10424_s10 + $0x594] ss:$8 sps:$4 sm:$0xff]  }
0x1431   :  { %v4099_v44 = vadd.f32 1.0, %v4083_v8  ;;  %v4098_v54 = vadd.f32 1.0, %v4082_v30  ;;  %6204 = vmatprep.subr.bf16.mxu0 %v7475_v55  ;;  %v4307_v39 = vmul.f32 %v4291_v48, %v4067_v45  ;;  %v4306_v45 = vmul.f32 %v4290_v10, %v4066_v21  ;;  %v7494_v8 = vld [vmem:[%s10424_s10 + $0x490] ss:$8 sps:$4 sm:$0xff]   ;;  %v7508_v33 = vld [vmem:[%s10424_s10 + $0x4b4] ss:$8 sps:$4 sm:$0xff]  }
0x1432   :  { %7698 = vrcp.f32 %v4097_v24  ;;  %v4100_v28 = vadd.f32 1.0, %v4084_v60  ;;  %v4329_v63 = vmul.f32 1.442695, %v4305_v4  ;;  %v4308_v21 = vmul.f32 %v4292_v2, %v9935_v46  ;;  %v7497_v55 = vld [vmem:[%s10424_s10 + $0x590] ss:$8 sps:$4 sm:$0xff]  }
0x1433   :  { %7700 = vrcp.f32 %v4099_v44  ;;  %6164 = vmatpush1.bf16.msra.mxu1 %v7470_v51  ;;  %v4333_v7 = vmul.f32 1.442695, %v4307_v39  ;;  %v7502_v44 = vld [vmem:[%s10424_s10 + $0x4a4] ss:$8 sps:$4 sm:$0xff]   ;;  %v7511_v4 = vld [vmem:[%s10424_s10 + $0x5b4] ss:$8 sps:$4 sm:$0xff]  }
0x1434   :  { %7702 = vrcp.f32 %v4098_v54  ;;  %6165 = vmatprep.subr.bf16.mxu1 %v7478_v31  ;;  %6205 = vmatpush1.bf16.msra.mxu0 %v7473_v42  ;;  %v4331_v54 = vmul.f32 1.442695, %v4306_v45  ;;  %v7505_v46 = vld [vmem:[%s10424_s10 + $0x5a4] ss:$8 sps:$4 sm:$0xff]   ;;  %v7506_v39 = vld [vmem:[%s10424_s10 + $0x4b0] ss:$8 sps:$4 sm:$0xff]  }
0x1435   :  { %7704 = vrcp.f32 %v4100_v28  ;;  %6206 = vmatprep.subr.bf16.mxu0 %v7481_v35  ;;  %vm4035_vm11 = vcmp.lt.f32.partialorder %v9908_v56, 0.0  ;;  %vm4034_vm12 = vcmp.lt.f32.partialorder %v9911_v61, 0.0  ;;  %v7521_v27 = vld [vmem:[%s10424_s10 + $0x5d0] ss:$8 sps:$4 sm:$0xff]   ;;  %vm4036_vm13 = vcmp.lt.f32.partialorder %v9918_v1, 0.0 }
0x1436   :  { %7706 = vpow2.f32 %v4329_v63  ;;  %v7527_v1 = vld [vmem:[%s10424_s10 + $0x5e0] ss:$8 sps:$4 sm:$0xff]   ;;  %v7535_v61 = vld [vmem:[%s10424_s10 + $0x5f4] ss:$8 sps:$4 sm:$0xff]  }
0x1437   :  { %6166 = vmatpush1.bf16.msra.mxu1 %v7476_v32  ;;  %7708 = vpow2.f32 %v4333_v7  ;;  %v7500_v32 = vld [vmem:[%s10424_s10 + $0x4a0] ss:$8 sps:$4 sm:$0xff]  }
0x1438   :  { %6167 = vmatprep.subr.bf16.mxu1 %v7484_v9  ;;  %6207 = vmatpush1.bf16.msra.mxu0 %v7479_v29  ;;  %v4335_v29 = vmul.f32 1.442695, %v4308_v21  ;;  %7710 = vpow2.f32 %v4331_v54  ;;  %v7512_v7 = vld [vmem:[%s10424_s10 + $0x4c0] ss:$8 sps:$4 sm:$0xff]  }
0x1439   :  { %6208 = vmatprep.subr.bf16.mxu0 %v7487_v0 }
0x143a   :  { %7712 = vpow2.f32 %v4335_v29 }
0x143b   :  { %6168 = vmatpush1.bf16.msra.mxu1 %v7482_v47 }
0x143c   :  { %v9974_v36 = vpop.eup %7698  ;;  %6169 = vmatprep.subr.bf16.mxu1 %v7490_v37  ;;  %6209 = vmatpush1.bf16.msra.mxu0 %v7485_v53  ;;  %v7503_v37 = vld [vmem:[%s10424_s10 + $0x5a0] ss:$8 sps:$4 sm:$0xff]  }
0x143d   :  { %v9979_v15 = vpop.eup %7700  ;;  %v4145_v20 = vmul.f32 1.0614054, %v9974_v36  ;;  %6210 = vmatprep.subr.bf16.mxu0 %v7493_v34 }
0x143e   :  { %v4147_v25 = vmul.f32 1.0614054, %v9979_v15  ;;  %v9993_v62 = vpop.eup %7702 }
0x143f   :  { %v4161_v43 = vadd.f32 -1.4531521, %v4145_v20  ;;  %v4146_v49 = vmul.f32 1.0614054, %v9993_v62  ;;  %6170 = vmatpush1.bf16.msra.mxu1 %v7488_v17  ;;  %v10003_v59 = vpop.eup %7704 }
0x1440   :  { %v4163_v12 = vadd.f32 -1.4531521, %v4147_v25  ;;  %6171 = vmatprep.subr.bf16.mxu1 %v7496_v50  ;;  %v4148_v60 = vmul.f32 1.0614054, %v10003_v59  ;;  %6211 = vmatpush1.bf16.msra.mxu0 %v7491_v41  ;;  %v7514_v25 = vld [vmem:[%s10424_s10 + $0x4c4] ss:$8 sps:$4 sm:$0xff]  }
0x1441   :  { %v4177_v6 = vmul.f32 %v9974_v36, %v4161_v43  ;;  %v4162_v51 = vadd.f32 -1.4531521, %v4146_v49  ;;  %6212 = vmatprep.subr.bf16.mxu0 %v7499_v5  ;;  %v7509_v41 = vld [vmem:[%s10424_s10 + $0x5b0] ss:$8 sps:$4 sm:$0xff]   ;;  %v7707_v49 = vpop.eup %7706 }
0x1442   :  { %v4179_v24 = vmul.f32 %v9979_v15, %v4163_v12  ;;  %v4164_v35 = vadd.f32 -1.4531521, %v4148_v60  ;;  %v7517_v12 = vld [vmem:[%s10424_s10 + $0x5c4] ss:$8 sps:$4 sm:$0xff]   ;;  %v7709_v21 = vpop.eup %7708 }
0x1443   :  { %v4193_v30 = vadd.f32 1.4214138, %v4177_v6  ;;  %v4178_v28 = vmul.f32 %v9993_v62, %v4162_v51  ;;  %6172 = vmatpush1.bf16.msra.mxu1 %v7494_v8  ;;  %v7523_v51 = vld [vmem:[%s10424_s10 + $0x5d4] ss:$8 sps:$4 sm:$0xff]  }
0x1444   :  { %v4195_v31 = vadd.f32 1.4214138, %v4179_v24  ;;  %6173 = vmatprep.subr.bf16.mxu1 %v7502_v44  ;;  %v4180_v47 = vmul.f32 %v10003_v59, %v4164_v35  ;;  %6213 = vmatpush1.bf16.msra.mxu0 %v7497_v55  ;;  %v7520_v24 = vld [vmem:[%s10424_s10 + $0x4d4] ss:$8 sps:$4 sm:$0xff]  }
0x1445   :  { %v4209_v42 = vmul.f32 %v9974_v36, %v4193_v30  ;;  %v4194_v48 = vadd.f32 1.4214138, %v4178_v28  ;;  %6214 = vmatprep.subr.bf16.mxu0 %v7505_v46  ;;  %v7515_v30 = vld [vmem:[%s10424_s10 + $0x5c0] ss:$8 sps:$4 sm:$0xff]   ;;  %v7518_v46 = vld [vmem:[%s10424_s10 + $0x4d0] ss:$8 sps:$4 sm:$0xff]  }
0x1446   :  { %v4211_v9 = vmul.f32 %v9979_v15, %v4195_v31  ;;  %v4196_v20 = vadd.f32 1.4214138, %v4180_v47  ;;  %v4049_v28 = vsel %vm4033_vm10, -1.0, %v7736_v58  ;;  %v7529_v47 = vld [vmem:[%s10424_s10 + $0x5e4] ss:$8 sps:$4 sm:$0xff]  }
0x1447   :  { %v4225_v0 = vadd.f32 -0.28449672, %v4209_v42  ;;  %v4210_v34 = vmul.f32 %v9993_v62, %v4194_v48  ;;  %6174 = vmatpush1.bf16.msra.mxu1 %v7500_v32  ;;  %v7711_v42 = vpop.eup %7710  ;;  %v7526_v32 = vld [vmem:[%s10424_s10 + $0x4e4] ss:$8 sps:$4 sm:$0xff]  }
0x1448   :  { %v4227_v53 = vadd.f32 -0.28449672, %v4211_v9  ;;  %6175 = vmatprep.subr.bf16.mxu1 %v7508_v33  ;;  %v4212_v43 = vmul.f32 %v10003_v59, %v4196_v20  ;;  %6215 = vmatpush1.bf16.msra.mxu0 %v7503_v37  ;;  %v4051_v9 = vsel %vm4035_vm11, -1.0, %v7736_v58 }
0x1449   :  { %v4241_v10 = vmul.f32 %v9974_v36, %v4225_v0  ;;  %v4226_v50 = vadd.f32 -0.28449672, %v4210_v34  ;;  %6216 = vmatprep.subr.bf16.mxu0 %v7511_v4  ;;  %v7713_v0 = vpop.eup %7712  ;;  %v4050_v4 = vsel %vm4034_vm12, -1.0, %v7736_v58 }
0x144a   :  { %v4243_v17 = vmul.f32 %v9979_v15, %v4227_v53  ;;  %v4228_v6 = vadd.f32 -0.28449672, %v4212_v43  ;;  %v7530_v43 = vld [vmem:[%s10424_s10 + $0x4f0] ss:$8 sps:$4 sm:$0xff]  }
0x144b   :  { %v4257_v2 = vadd.f32 0.2548296, %v4241_v10  ;;  %v4242_v5 = vmul.f32 %v9993_v62, %v4226_v50  ;;  %6176 = vmatpush1.bf16.msra.mxu1 %v7506_v39  ;;  %v7532_v10 = vld [vmem:[%s10424_s10 + $0x4f4] ss:$8 sps:$4 sm:$0xff]   ;;  %v4001_v39 = vmul.f32 0.5, %v9887_v57  ;;  %v4003_v57 = vmul.f32 0.5, %v9892_v18 }
0x144c   :  { %v4259_v63 = vadd.f32 0.2548296, %v4243_v17  ;;  %6177 = vmatprep.subr.bf16.mxu1 %v7514_v25  ;;  %v4244_v44 = vmul.f32 %v10003_v59, %v4228_v6  ;;  %6217 = vmatpush1.bf16.msra.mxu0 %v7509_v41  ;;  %v4052_v25 = vsel %vm4036_vm13, -1.0, %v7736_v58  ;;  %v7541_v18 = vld [vmem:[%s10424_s10 + $0x704] ss:$8 sps:$4 sm:$0xff]  }
0x144d   :  { %v4273_v45 = vmul.f32 %v9974_v36, %v4257_v2  ;;  %v4258_v55 = vadd.f32 0.2548296, %v4242_v5  ;;  %6218 = vmatprep.subr.bf16.mxu0 %v7517_v12  ;;  %v4002_v2 = vmul.f32 0.5, %v9894_v3  ;;  %v7538_v12 = vld [vmem:[%s10424_s10 + $0x604] ss:$8 sps:$4 sm:$0xff]  }
0x144e   :  { %v4275_v8 = vmul.f32 %v9979_v15, %v4259_v63  ;;  %v4260_v54 = vadd.f32 0.2548296, %v4244_v44  ;;  %v7533_v3 = vld [vmem:[%s10424_s10 + $0x5f0] ss:$8 sps:$4 sm:$0xff]  }
0x144f   :  { %v4353_v36 = vmul.f32 %v7707_v49, %v4273_v45  ;;  %v4274_v31 = vmul.f32 %v9993_v62, %v4258_v55  ;;  %6178 = vmatpush1.bf16.msra.mxu1 %v7512_v7  ;;  %v4004_v45 = vmul.f32 0.5, %v9902_v40  ;;  %v7536_v40 = vld [vmem:[%s10424_s10 + $0x600] ss:$8 sps:$4 sm:$0xff]  }
0x1450   :  { %v4355_v15 = vmul.f32 %v7709_v21, %v4275_v8  ;;  %6179 = vmatprep.subr.bf16.mxu1 %v7520_v24  ;;  %v4276_v33 = vmul.f32 %v10003_v59, %v4260_v54  ;;  %6219 = vmatpush1.bf16.msra.mxu0 %v7515_v30  ;;  %v7524_v59 = vld [vmem:[%s10424_s10 + $0x4e0] ss:$8 sps:$4 sm:$0xff]   ;;  %v7544_v21 = vld [vmem:[%s10424_s10 + $0x614] ss:$8 sps:$4 sm:$0xff]   ;;  %v2356_v54 = vrot.slane %v9859_v38, %v8213_v22 }
0x1451   :  { %v4369_v60 = vsub.f32 1.0, %v4353_v36  ;;  %v4354_v29 = vmul.f32 %v7711_v42, %v4274_v31  ;;  %6220 = vmatprep.subr.bf16.mxu0 %v7523_v51  ;;  %v7539_v55 = vld [vmem:[%s10424_s10 + $0x700] ss:$8 sps:$4 sm:$0xff]   ;;  %v7547_v30 = vld [vmem:[%s10424_s10 + $0x714] ss:$8 sps:$4 sm:$0xff]   ;;  %v2364_v42 = vrot.slane %v9859_v38, %v2331_v13 }
0x1452   :  { %v4371_v35 = vsub.f32 1.0, %v4355_v15  ;;  %v4356_v56 = vmul.f32 %v7713_v0, %v4276_v33  ;;  %v7542_v15 = vld [vmem:[%s10424_s10 + $0x610] ss:$8 sps:$4 sm:$0xff]   ;;  %v7550_v51 = vld [vmem:[%s10424_s10 + $0x624] ss:$8 sps:$4 sm:$0xff]  }
0x1453   :  { %v4385_v62 = vmul.f32 %v4369_v60, %v4049_v28  ;;  %v4370_v37 = vsub.f32 1.0, %v4354_v29  ;;  %6180 = vmatpush1.bf16.msra.mxu1 %v7518_v46  ;;  %v7545_v60 = vld [vmem:[%s10424_s10 + $0x710] ss:$8 sps:$4 sm:$0xff]   ;;  %v7553_v31 = vld [vmem:[%s10424_s10 + $0x724] ss:$8 sps:$4 sm:$0xff]   ;;  %v2360_v28 = vrot.slane %v9859_v38, %v8216_v23 }
0x1454   :  { %v4387_v48 = vmul.f32 %v4371_v35, %v4051_v9  ;;  %6181 = vmatprep.subr.bf16.mxu1 %v7526_v32  ;;  %v4372_v20 = vsub.f32 1.0, %v4356_v56  ;;  %6221 = vmatpush1.bf16.msra.mxu0 %v7521_v27  ;;  %v7548_v46 = vld [vmem:[%s10424_s10 + $0x620] ss:$8 sps:$4 sm:$0xff]   ;;  %v2368_v35 = vrot.slane %v9859_v38, %v2335_v52  ;;  %v7556_v22 = vld [vmem:[%s10424_s10 + $0x634] ss:$8 sps:$4 sm:$0xff]  }
0x1455   :  { %v4401_v53 = vadd.f32 1.0, %v4385_v62  ;;  %v4386_v34 = vmul.f32 %v4370_v37, %v4050_v4  ;;  %6222 = vmatprep.subr.bf16.mxu0 %v7529_v47  ;;  %v7551_v32 = vld [vmem:[%s10424_s10 + $0x720] ss:$8 sps:$4 sm:$0xff]   ;;  %v7554_v27 = vld [vmem:[%s10424_s10 + $0x630] ss:$8 sps:$4 sm:$0xff]  }
0x1456   :  { %v4403_v17 = vadd.f32 1.0, %v4387_v48  ;;  %v4388_v50 = vmul.f32 %v4372_v20, %v4052_v25  ;;  %v7562_v56 = vld [vmem:[%s10424_s10 + $0x644] ss:$8 sps:$4 sm:$0xff]   ;;  %v7557_v4 = vld [vmem:[%s10424_s10 + $0x730] ss:$8 sps:$4 sm:$0xff]  }
0x1457   :  { %6182 = vmatpush1.bf16.msra.mxu1 %v7524_v59  ;;  %v4402_v41 = vadd.f32 1.0, %v4386_v34  ;;  %v4417_v63 = vmul.f32 %v4401_v53, %v4001_v39  ;;  %v7565_v20 = vld [vmem:[%s10424_s10 + $0x744] ss:$8 sps:$4 sm:$0xff]  }
0x1458   :  { %6183 = vmatprep.subr.bf16.mxu1 %v7532_v10  ;;  %6223 = vmatpush1.bf16.msra.mxu0 %v7527_v1  ;;  %v4404_v6 = vadd.f32 1.0, %v4388_v50  ;;  %v4419_v7 = vmul.f32 %v4403_v17, %v4003_v57  ;;  %v7560_v17 = vld [vmem:[%s10424_s10 + $0x640] ss:$8 sps:$4 sm:$0xff]   ;;  %v7571_v57 = vld [vmem:[%s10424_s10 + $0x754] ss:$8 sps:$4 sm:$0xff]  }
0x1459   :  { %v4418_v5 = vmul.f32 %v4402_v41, %v4002_v2  ;;  %6224 = vmatprep.subr.bf16.mxu0 %v7535_v61  ;;  %v4433_v24 = vpack.c.bf16 %v4417_v63, %v4417_v63  ;;  %v7568_v61 = vld [vmem:[%s10424_s10 + $0x654] ss:$8 sps:$4 sm:$0xff]  }
0x145a   :  { %v4420_v8 = vmul.f32 %v4404_v6, %v4004_v45  ;;  %v4435_v44 = vpack.c.bf16 %v4419_v7, %v4419_v7  ;;  %v7574_v6 = vld [vmem:[%s10424_s10 + $0x664] ss:$8 sps:$4 sm:$0xff]  }
0x145b   :  { %6184 = vmatpush1.bf16.msra.mxu1 %v7530_v43  ;;  %v4434_v49 = vpack.c.bf16 %v4418_v5, %v4418_v5  ;;  %v7563_v43 = vld [vmem:[%s10424_s10 + $0x740] ss:$8 sps:$4 sm:$0xff]  }
0x145c   :  { %6235 = vmatprep.subr.bf16.mxu1 %v7538_v12  ;;  %6225 = vmatpush1.bf16.msra.mxu0 %v7533_v3  ;;  %v4436_v36 = vpack.c.bf16 %v4420_v8, %v4420_v8  ;;  %v7566_v3 = vld [vmem:[%s10424_s10 + $0x650] ss:$8 sps:$4 sm:$0xff]   ;;  %v7577_v8 = vld [vmem:[%s10424_s10 + $0x764] ss:$8 sps:$4 sm:$0xff]  }
0x145d   :  { %6185 = vmatprep.mubr.bf16.mxu1 %v4434_v49  ;;  %6276 = vmatprep.subr.bf16.mxu0 %v7541_v18  ;;  %v7569_v18 = vld [vmem:[%s10424_s10 + $0x750] ss:$8 sps:$4 sm:$0xff]  }
0x145e   :  { %6186 = vmatmul.mubr.bf16.vlgmr.msra.gmra.mrb[64].mxu1 %v4433_v24  ;;  %6226 = vmatprep.mubr.bf16.mxu0 %v4436_v36  ;;  %v7580_v24 = vld [vmem:[%s10424_s10 + $0x674] ss:$8 sps:$4 sm:$0xff]  }
0x145f   :  { %6236 = vmatpush1.bf16.msra.mxu1 %v7536_v40  ;;  %6227 = vmatmul.mubr.bf16.vlgmr.msra.gmra.mrb[36].mxu0 %v4435_v44  ;;  %v7572_v40 = vld [vmem:[%s10424_s10 + $0x660] ss:$8 sps:$4 sm:$0xff]  }
0x1460   :  { %6237 = vmatprep.subr.bf16.mxu1 %v7544_v21  ;;  %6277 = vmatpush1.bf16.msra.mxu0 %v7539_v55  ;;  %v7575_v21 = vld [vmem:[%s10424_s10 + $0x760] ss:$8 sps:$4 sm:$0xff]   ;;  %v7583_v55 = vld [vmem:[%s10424_s10 + $0x774] ss:$8 sps:$4 sm:$0xff]  }
0x1461   :  { %6278 = vmatprep.subr.bf16.mxu0 %v7547_v30  ;;  %v7578_v30 = vld [vmem:[%s10424_s10 + $0x670] ss:$8 sps:$4 sm:$0xff]  }
0x1463   :  { %6238 = vmatpush1.bf16.msra.mxu1 %v7542_v15  ;;  %v7586_v15 = vld [vmem:[%s10424_s10 + $0x684] ss:$8 sps:$4 sm:$0xff]  }
0x1464   :  { %6239 = vmatprep.subr.bf16.mxu1 %v7550_v51  ;;  %6279 = vmatpush1.bf16.msra.mxu0 %v7545_v60  ;;  %v7581_v51 = vld [vmem:[%s10424_s10 + $0x770] ss:$8 sps:$4 sm:$0xff]  }
0x1465   :  { %6280 = vmatprep.subr.bf16.mxu0 %v7553_v31 }
0x1467   :  { %v3945_v62 = vpop.f32.mrb[52].mxu1  ;;  %6240 = vmatpush1.bf16.msra.mxu1 %v7548_v46  ;;  %v7589_v46 = vld [vmem:[%s10424_s10 + $0x784] ss:$8 sps:$4 sm:$0xff]  }
0x1468   :  { %v10164_v13 = vadd.f32 %v3945_v62, %v2356_v54  ;;  %v3986_v9 = vpop.f32.mrb[24].mxu0  ;;  %v3947_v23 = vpop.f32.mrb[53].mxu1  ;;  %6241 = vmatprep.subr.bf16.mxu1 %v7556_v22  ;;  %6281 = vmatpush1.bf16.msra.mxu0 %v7551_v32  ;;  %v7584_v22 = vld [vmem:[%s10424_s10 + $0x680] ss:$8 sps:$4 sm:$0xff]  }
0x1469   :  { %v10169_v52 = vadd.f32 %v3986_v9, %v2364_v42  ;;  %v10171_v38 = vadd.f32 %v3947_v23, %v2360_v28  ;;  %v3988_v29 = vpop.f32.mrb[25].mxu0  ;;  %v3949_v33 = vpop.f32.mrb[54].mxu1  ;;  %6282 = vmatprep.subr.bf16.mxu0 %v7559_v14  ;;  %v7592_v9 = vld [vmem:[%s10424_s10 + $0x694] ss:$8 sps:$4 sm:$0xff]   ;;  %v7587_v14 = vld [vmem:[%s10424_s10 + $0x780] ss:$8 sps:$4 sm:$0xff]  }
0x146a   :  { %v10177_v0 = vmul.f32 0.70710677, %v10164_v13  ;;  %v10179_v48 = vadd.f32 %v3988_v29, %v2368_v35  ;;  %v3990_v47 = vpop.f32.mrb[26].mxu0  ;;  %v3950_v37 = vpop.f32.mrb[55].mxu1 }
0x146b   :  { %v10185_v59 = vmul.f32 0.70710677, %v10169_v52  ;;  %v10188_v53 = vmul.f32 0.70710677, %v10171_v38  ;;  %v3991_v39 = vpop.f32.mrb[27].mxu0  ;;  %6242 = vmatpush1.bf16.msra.mxu1 %v7554_v27 }
0x146c   :  { %v4069_v10 = vand.u32 2147483647, %v10177_v0  ;;  %v10195_v34 = vmul.f32 0.70710677, %v10179_v48  ;;  %6243 = vmatprep.subr.bf16.mxu1 %v7562_v56  ;;  %6283 = vmatpush1.bf16.msra.mxu0 %v7557_v4  ;;  %v7595_v37 = vld [vmem:[%s10424_s10 + $0x794] ss:$8 sps:$4 sm:$0xff]  }
0x146d   :  { %v4071_v1 = vand.u32 2147483647, %v10185_v59  ;;  %v4070_v50 = vand.u32 2147483647, %v10188_v53  ;;  %6284 = vmatprep.subr.bf16.mxu0 %v7565_v20  ;;  %v7590_v20 = vld [vmem:[%s10424_s10 + $0x690] ss:$8 sps:$4 sm:$0xff]  }
0x146e   :  { %v4085_v25 = vmul.f32 0.3275911, %v4069_v10  ;;  %v10212_v63 = vand.u32 2147483647, %v10195_v34  ;;  %v4293_v36 = vsub.f32 0.0, %v4069_v10  ;;  %vm4037_vm14 = vcmp.lt.f32.partialorder %v10177_v0, 0.0 }
0x146f   :  { %v4087_v2 = vmul.f32 0.3275911, %v4071_v1  ;;  %v4086_v45 = vmul.f32 0.3275911, %v4070_v50  ;;  %6244 = vmatpush1.bf16.msra.mxu1 %v7560_v17  ;;  %v4295_v44 = vsub.f32 0.0, %v4071_v1  ;;  %v4294_v54 = vsub.f32 0.0, %v4070_v50 }
0x1470   :  { %v4101_v41 = vadd.f32 1.0, %v4085_v25  ;;  %v4088_v5 = vmul.f32 0.3275911, %v10212_v63  ;;  %6245 = vmatprep.subr.bf16.mxu1 %v7568_v61  ;;  %6285 = vmatpush1.bf16.msra.mxu0 %v7563_v43  ;;  %v4309_v31 = vmul.f32 %v4293_v36, %v4069_v10  ;;  %v4296_v62 = vsub.f32 0.0, %v10212_v63  ;;  %v7593_v25 = vld [vmem:[%s10424_s10 + $0x790] ss:$8 sps:$4 sm:$0xff]  }
0x1471   :  { %v4103_v12 = vadd.f32 1.0, %v4087_v2  ;;  %v4102_v7 = vadd.f32 1.0, %v4086_v45  ;;  %6286 = vmatprep.subr.bf16.mxu0 %v7571_v57  ;;  %v4311_v35 = vmul.f32 %v4295_v44, %v4071_v1  ;;  %v4310_v47 = vmul.f32 %v4294_v54, %v4070_v50  ;;  %v7598_v61 = vld [vmem:[%s10424_s10 + $0x6a4] ss:$8 sps:$4 sm:$0xff]   ;;  %v7607_v36 = vld [vmem:[%s10424_s10 + $0x7b4] ss:$8 sps:$4 sm:$0xff]  }
0x1472   :  { %7714 = vrcp.f32 %v4101_v41  ;;  %v4104_v49 = vadd.f32 1.0, %v4088_v5  ;;  %v4337_v33 = vmul.f32 1.442695, %v4309_v31  ;;  %v4312_v17 = vmul.f32 %v4296_v62, %v10212_v63  ;;  %v7601_v63 = vld [vmem:[%s10424_s10 + $0x7a4] ss:$8 sps:$4 sm:$0xff]  }
0x1473   :  { %7716 = vrcp.f32 %v4103_v12  ;;  %6246 = vmatpush1.bf16.msra.mxu1 %v7566_v3  ;;  %v4341_v4 = vmul.f32 1.442695, %v4311_v35  ;;  %v4339_v57 = vmul.f32 1.442695, %v4310_v47  ;;  %v7596_v5 = vld [vmem:[%s10424_s10 + $0x6a0] ss:$8 sps:$4 sm:$0xff]  }
0x1474   :  { %7718 = vrcp.f32 %v4102_v7  ;;  %6247 = vmatprep.subr.bf16.mxu1 %v7574_v6  ;;  %6287 = vmatpush1.bf16.msra.mxu0 %v7569_v18  ;;  %v4343_v7 = vmul.f32 1.442695, %v4312_v17  ;;  %v7604_v18 = vld [vmem:[%s10424_s10 + $0x6b4] ss:$8 sps:$4 sm:$0xff]   ;;  %v7610_v31 = vld [vmem:[%s10424_s10 + $0x6c4] ss:$8 sps:$4 sm:$0xff]  }
0x1475   :  { %7720 = vrcp.f32 %v4104_v49  ;;  %6288 = vmatprep.subr.bf16.mxu0 %v7577_v8  ;;  %v7605_v35 = vld [vmem:[%s10424_s10 + $0x7b0] ss:$8 sps:$4 sm:$0xff]   ;;  %v7616_v47 = vld [vmem:[%s10424_s10 + $0x6d4] ss:$8 sps:$4 sm:$0xff]   ;;  %vm4039_vm15 = vcmp.lt.f32.partialorder %v10185_v59, 0.0  ;;  %vm4038_vm0 = vcmp.lt.f32.partialorder %v10188_v53, 0.0 }
0x1476   :  { %7722 = vpow2.f32 %v4337_v33  ;;  %v7617_v0 = vld [vmem:[%s10424_s10 + $0x7d0] ss:$8 sps:$4 sm:$0xff]   ;;  %vm4040_vm1 = vcmp.lt.f32.partialorder %v10195_v34, 0.0  ;;  %v7623_v34 = vld [vmem:[%s10424_s10 + $0x7e0] ss:$8 sps:$4 sm:$0xff]  }
0x1477   :  { %6248 = vmatpush1.bf16.msra.mxu1 %v7572_v40  ;;  %7724 = vpow2.f32 %v4341_v4  ;;  %v7631_v53 = vld [vmem:[%s10424_s10 + $0x7f4] ss:$8 sps:$4 sm:$0xff]  }
0x1478   :  { %6249 = vmatprep.subr.bf16.mxu1 %v7580_v24  ;;  %6289 = vmatpush1.bf16.msra.mxu0 %v7575_v21  ;;  %v7599_v24 = vld [vmem:[%s10424_s10 + $0x7a0] ss:$8 sps:$4 sm:$0xff]   ;;  %7726 = vpow2.f32 %v4339_v57  ;;  %v4055_v57 = vsel %vm4039_vm15, -1.0, %v7736_v58 }
0x1479   :  { %6290 = vmatprep.subr.bf16.mxu0 %v7583_v55  ;;  %7728 = vpow2.f32 %v4343_v7 }
0x147b   :  { %6250 = vmatpush1.bf16.msra.mxu1 %v7578_v30 }
0x147c   :  { %v10251_v60 = vpop.eup %7714  ;;  %6251 = vmatprep.subr.bf16.mxu1 %v7586_v15  ;;  %6291 = vmatpush1.bf16.msra.mxu0 %v7581_v51  ;;  %v7602_v15 = vld [vmem:[%s10424_s10 + $0x6b0] ss:$8 sps:$4 sm:$0xff]  }
0x147d   :  { %v10256_v42 = vpop.eup %7716  ;;  %v4149_v28 = vmul.f32 1.0614054, %v10251_v60  ;;  %6292 = vmatprep.subr.bf16.mxu0 %v7589_v46 }
0x147e   :  { %v4151_v32 = vmul.f32 1.0614054, %v10256_v42  ;;  %v10270_v29 = vpop.eup %7718 }
0x147f   :  { %v4165_v23 = vadd.f32 -1.4531521, %v4149_v28  ;;  %v4150_v10 = vmul.f32 1.0614054, %v10270_v29  ;;  %6252 = vmatpush1.bf16.msra.mxu1 %v7584_v22  ;;  %v10280_v1 = vpop.eup %7720 }
0x1480   :  { %v4167_v27 = vadd.f32 -1.4531521, %v4151_v32  ;;  %6253 = vmatprep.subr.bf16.mxu1 %v7592_v9  ;;  %v4152_v43 = vmul.f32 1.0614054, %v10280_v1  ;;  %6293 = vmatpush1.bf16.msra.mxu0 %v7587_v14  ;;  %v7613_v32 = vld [vmem:[%s10424_s10 + $0x7c4] ss:$8 sps:$4 sm:$0xff]   ;;  %v7723_v33 = vpop.eup %7722 }
0x1481   :  { %v4181_v56 = vmul.f32 %v10251_v60, %v4165_v23  ;;  %v4166_v50 = vadd.f32 -1.4531521, %v4150_v10  ;;  %6294 = vmatprep.subr.bf16.mxu0 %v7595_v37  ;;  %v7608_v14 = vld [vmem:[%s10424_s10 + $0x6c0] ss:$8 sps:$4 sm:$0xff]   ;;  %v7725_v37 = vpop.eup %7724 }
0x1482   :  { %v4183_v39 = vmul.f32 %v10256_v42, %v4167_v27  ;;  %v4168_v3 = vadd.f32 -1.4531521, %v4152_v43  ;;  %v7611_v10 = vld [vmem:[%s10424_s10 + $0x7c0] ss:$8 sps:$4 sm:$0xff]  }
0x1483   :  { %v4197_v2 = vadd.f32 1.4214138, %v4181_v56  ;;  %v4182_v45 = vmul.f32 %v10270_v29, %v4166_v50  ;;  %6254 = vmatpush1.bf16.msra.mxu1 %v7590_v20  ;;  %v7619_v20 = vld [vmem:[%s10424_s10 + $0x7d4] ss:$8 sps:$4 sm:$0xff]   ;;  %v4053_v50 = vsel %vm4037_vm14, -1.0, %v7736_v58 }
0x1484   :  { %v4199_v41 = vadd.f32 1.4214138, %v4183_v39  ;;  %6255 = vmatprep.subr.bf16.mxu1 %v7598_v61  ;;  %v4184_v40 = vmul.f32 %v10280_v1, %v4168_v3  ;;  %6295 = vmatpush1.bf16.msra.mxu0 %v7593_v25  ;;  %v7614_v61 = vld [vmem:[%s10424_s10 + $0x6d0] ss:$8 sps:$4 sm:$0xff]  }
0x1485   :  { %v4213_v12 = vmul.f32 %v10251_v60, %v4197_v2  ;;  %v4198_v8 = vadd.f32 1.4214138, %v4182_v45  ;;  %6296 = vmatprep.subr.bf16.mxu0 %v7601_v63  ;;  %v7727_v2 = vpop.eup %7726 }
0x1486   :  { %v4215_v6 = vmul.f32 %v10256_v42, %v4199_v41  ;;  %v4200_v30 = vadd.f32 1.4214138, %v4184_v40  ;;  %v7622_v41 = vld [vmem:[%s10424_s10 + $0x6e4] ss:$8 sps:$4 sm:$0xff]   ;;  %v7729_v45 = vpop.eup %7728 }
0x1487   :  { %v4229_v49 = vadd.f32 -0.28449672, %v4213_v12  ;;  %v4214_v44 = vmul.f32 %v10270_v29, %v4198_v8  ;;  %6256 = vmatpush1.bf16.msra.mxu1 %v7596_v5  ;;  %v7625_v5 = vld [vmem:[%s10424_s10 + $0x7e4] ss:$8 sps:$4 sm:$0xff]  }
0x1488   :  { %v4231_v21 = vadd.f32 -0.28449672, %v4215_v6  ;;  %6257 = vmatprep.subr.bf16.mxu1 %v7604_v18  ;;  %v4216_v28 = vmul.f32 %v10280_v1, %v4200_v30  ;;  %6297 = vmatpush1.bf16.msra.mxu0 %v7599_v24  ;;  %v4054_v18 = vsel %vm4038_vm0, -1.0, %v7736_v58  ;;  %v4005_v24 = vmul.f32 0.5, %v10164_v13  ;;  %v7626_v30 = vld [vmem:[%s10424_s10 + $0x6f0] ss:$8 sps:$4 sm:$0xff]  }
0x1489   :  { %v4245_v55 = vmul.f32 %v10251_v60, %v4229_v49  ;;  %v4230_v46 = vadd.f32 -0.28449672, %v4214_v44  ;;  %6298 = vmatprep.subr.bf16.mxu0 %v7607_v36  ;;  %v7628_v49 = vld [vmem:[%s10424_s10 + $0x6f4] ss:$8 sps:$4 sm:$0xff]   ;;  %v4056_v36 = vsel %vm4040_vm1, -1.0, %v7736_v58  ;;  %v4007_v13 = vmul.f32 0.5, %v10169_v52 }
0x148a   :  { %v4247_v51 = vmul.f32 %v10256_v42, %v4231_v21  ;;  %v4232_v23 = vadd.f32 -0.28449672, %v4216_v28  ;;  %v4008_v58 = vmul.f32 0.5, %v10179_v48  ;;  %v4697_v48 = vld [vmem:[%s10426_s11] sm:$0x3] }
0x148b   :  { %v4261_v54 = vadd.f32 0.2548296, %v4245_v55  ;;  %v4246_v9 = vmul.f32 %v10270_v29, %v4230_v46  ;;  %6258 = vmatpush1.bf16.msra.mxu1 %v7602_v15  ;;  %v4006_v55 = vmul.f32 0.5, %v10171_v38 }
0x148c   :  { %v4263_v22 = vadd.f32 0.2548296, %v4247_v51  ;;  %6259 = vmatprep.subr.bf16.mxu1 %v7610_v31  ;;  %v4248_v4 = vmul.f32 %v10280_v1, %v4232_v23  ;;  %6299 = vmatpush1.bf16.msra.mxu0 %v7605_v35  ;;  %v7629_v31 = vld [vmem:[%s10424_s10 + $0x7f0] ss:$8 sps:$4 sm:$0xff]  }
0x148d   :  { %v4277_v62 = vmul.f32 %v10251_v60, %v4261_v54  ;;  %v4262_v56 = vadd.f32 0.2548296, %v4246_v9  ;;  %6300 = vmatprep.subr.bf16.mxu0 %v7613_v32  ;;  %v4706_v9 = vrot.slane %v4697_v48, %v8049_v19 }
0x148e   :  { %v4279_v27 = vmul.f32 %v10256_v42, %v4263_v22  ;;  %v4264_v25 = vadd.f32 0.2548296, %v4248_v4 }
0x148f   :  { %v4357_v60 = vmul.f32 %v7723_v33, %v4277_v62  ;;  %v4278_v17 = vmul.f32 %v10270_v29, %v4262_v56  ;;  %6260 = vmatpush1.bf16.msra.mxu1 %v7608_v14  ;;  %v4702_v62 = vrot.slane %v4697_v48, %v8038_v16 }
0x1490   :  { %v4359_v42 = vmul.f32 %v7725_v37, %v4279_v27  ;;  %6261 = vmatprep.subr.bf16.mxu1 %v7616_v47  ;;  %v4280_v12 = vmul.f32 %v10280_v1, %v4264_v25  ;;  %6301 = vmatpush1.bf16.msra.mxu0 %v7611_v10  ;;  %v7620_v1 = vld [vmem:[%s10424_s10 + $0x6e0] ss:$8 sps:$4 sm:$0xff]  }
0x1491   :  { %v4373_v39 = vsub.f32 1.0, %v4357_v60  ;;  %v4358_v63 = vmul.f32 %v7727_v2, %v4278_v17  ;;  %6302 = vmatprep.subr.bf16.mxu0 %v7619_v20 }
0x1492   :  { %v4375_v43 = vsub.f32 1.0, %v4359_v42  ;;  %v4360_v59 = vmul.f32 %v7729_v45, %v4280_v12 }
0x1493   :  { %v4389_v29 = vmul.f32 %v4373_v39, %v4053_v50  ;;  %v4374_v6 = vsub.f32 1.0, %v4358_v63  ;;  %6262 = vmatpush1.bf16.msra.mxu1 %v7614_v61 }
0x1494   :  { %v4391_v3 = vmul.f32 %v4375_v43, %v4055_v57  ;;  %6263 = vmatprep.subr.bf16.mxu1 %v7622_v41  ;;  %v4376_v40 = vsub.f32 1.0, %v4360_v59  ;;  %6303 = vmatpush1.bf16.msra.mxu0 %v7617_v0 }
0x1495   :  { %v4405_v7 = vadd.f32 1.0, %v4389_v29  ;;  %v4390_v8 = vmul.f32 %v4374_v6, %v4054_v18  ;;  %6304 = vmatprep.subr.bf16.mxu0 %v7625_v5 }
0x1496   :  { %v4407_v21 = vadd.f32 1.0, %v4391_v3  ;;  %v4392_v44 = vmul.f32 %v4376_v40, %v4056_v36 }
0x1497   :  { %6264 = vmatpush1.bf16.msra.mxu1 %v7620_v1  ;;  %v4406_v15 = vadd.f32 1.0, %v4390_v8  ;;  %v4421_v51 = vmul.f32 %v4405_v7, %v4005_v24 }
0x1498   :  { %6265 = vmatprep.subr.bf16.mxu1 %v7628_v49  ;;  %6305 = vmatpush1.bf16.msra.mxu0 %v7623_v34  ;;  %v4408_v38 = vadd.f32 1.0, %v4392_v44  ;;  %v4423_v46 = vmul.f32 %v4407_v21, %v4007_v13 }
0x1499   :  { %v4422_v54 = vmul.f32 %v4406_v15, %v4006_v55  ;;  %6306 = vmatprep.subr.bf16.mxu0 %v7631_v53  ;;  %v4437_v22 = vpack.c.bf16 %v4421_v51, %v4421_v51 }
0x149a   :  { %v4424_v35 = vmul.f32 %v4408_v38, %v4008_v58  ;;  %v4439_v52 = vpack.c.bf16 %v4423_v46, %v4423_v46 }
0x149b   :  { %6266 = vmatpush1.bf16.msra.mxu1 %v7626_v30  ;;  %v4438_v28 = vpack.c.bf16 %v4422_v54, %v4422_v54 }
0x149c   :  { %6307 = vmatpush1.bf16.msra.mxu0 %v7629_v31  ;;  %v4440_v32 = vpack.c.bf16 %v4424_v35, %v4424_v35 }
0x149d   :  { %6267 = vmatprep.mubr.bf16.mxu1 %v4438_v28 }
0x149e   :  { %6268 = vmatmul.mubr.bf16.vlgmr.msra.gmra.mrb[68].mxu1 %v4437_v22  ;;  %6308 = vmatprep.mubr.bf16.mxu0 %v4440_v32 }
0x149f   :  { %6309 = vmatmul.mubr.bf16.vlgmr.msra.gmra.mrb[40].mxu0 %v4439_v52 }
0x14b1   :  { %v6023_v23 = vpop.f32.mrb[56].mxu1 }
0x14b2   :  { %v6024_v14 = vadd.f32 %v6023_v23, %v4702_v62  ;;  %v6025_v33 = vpop.f32.mrb[57].mxu1  ;;  %v6064_v27 = vpop.f32.mrb[28].mxu0 }
0x14b3   :  { %v6026_v47 = vadd.f32 %v6025_v33, %v4706_v9  ;;  %v6027_v37 = vpop.f32.mrb[58].mxu1  ;;  %v6066_v56 = vpop.f32.mrb[29].mxu0 }
0x14b4   :  { %v6065_v60 = vadd.f32 %v6064_v27, %v6024_v14  ;;  %v6028_v4 = vpop.f32.mrb[59].mxu1  ;;  %v6068_v42 = vpop.f32.mrb[30].mxu0 }
0x14b5   :  { %v6067_v10 = vadd.f32 %v6066_v56, %v6026_v47  ;;  %v6069_v20 = vpop.f32.mrb[31].mxu0 }
0x14f1   :  { %v6105_v39 = vpop.f32.mrb[60].mxu1 }
0x14f2   :  { %v6106_v17 = vadd.f32 %v6105_v39, %v6065_v60  ;;  %v6107_v25 = vpop.f32.mrb[61].mxu1  ;;  %v6146_v61 = vpop.f32.mrb[32].mxu0 }
0x14f3   :  { %v6108_v2 = vadd.f32 %v6107_v25, %v6067_v10  ;;  %v6109_v50 = vpop.f32.mrb[62].mxu1  ;;  %v6148_v41 = vpop.f32.mrb[33].mxu0 }
0x14f4   :  { %v6147_v43 = vadd.f32 %v6146_v61, %v6106_v17  ;;  %v6110_v29 = vpop.f32.mrb[63].mxu1  ;;  %v6150_v63 = vpop.f32.mrb[34].mxu0 }
0x14f5   :  { %v6149_v57 = vadd.f32 %v6148_v41, %v6108_v2  ;;  %v6151_v12 = vpop.f32.mrb[35].mxu0 }
0x1531   :  { %v6187_v0 = vpop.f32.mrb[64].mxu1 }
0x1532   :  { %v6188_v45 = vadd.f32 %v6187_v0, %v6147_v43  ;;  %v6189_v3 = vpop.f32.mrb[65].mxu1  ;;  %v6228_v5 = vpop.f32.mrb[36].mxu0 }
0x1533   :  { %v6190_v6 = vadd.f32 %v6189_v3, %v6149_v57  ;;  %v6191_v59 = vpop.f32.mrb[66].mxu1  ;;  %v6230_v7 = vpop.f32.mrb[37].mxu0 }
0x1534   :  { %v6229_v1 = vadd.f32 %v6228_v5, %v6188_v45  ;;  %v6192_v18 = vpop.f32.mrb[67].mxu1  ;;  %v6232_v8 = vpop.f32.mrb[38].mxu0 }
0x1535   :  { %v6231_v49 = vadd.f32 %v6230_v7, %v6190_v6  ;;  %v6233_v40 = vpop.f32.mrb[39].mxu0 }
0x1571   :  { %v6269_v34 = vpop.f32.mrb[68].mxu1 }
0x1572   :  { %v6270_v24 = vadd.f32 %v6269_v34, %v6229_v1  ;;  %v6271_v21 = vpop.f32.mrb[69].mxu1  ;;  %v6310_v36 = vpop.f32.mrb[40].mxu0 }
0x1573   :  { %v6272_v53 = vadd.f32 %v6271_v21, %v6231_v49  ;;  %v6273_v55 = vpop.f32.mrb[70].mxu1  ;;  %v6312_v30 = vpop.f32.mrb[41].mxu0 }
0x1574   :  { %v6311_v44 = vadd.f32 %v6310_v36, %v6270_v24  ;;  %v6274_v15 = vpop.f32.mrb[71].mxu1  ;;  %v6314_v13 = vpop.f32.mrb[42].mxu0 }
0x1575   :  { %v6313_v51 = vadd.f32 %v6312_v30, %v6272_v53  ;;  %v6315_v31 = vpop.f32.mrb[43].mxu0 }
0x1576   :  { %v6317_v58 = vadd.f32 %v6311_v44, %v8692_v11  ;;  %v6319_v11 = vld [vmem:[%s10427_s12] sm:$0x3] }
0x1577   :  { %v6318_v54 = vadd.f32 %v6313_v51, %v8694_v26  ;;  %v6320_v26 = vld [vmem:[%s10428_s13] sm:$0x3]  ;;  %v6341_v14 = vrot.slane %v6319_v11, %v8038_v16  ;;  %v6345_v33 = vrot.slane %v6319_v11, %v8049_v19 }
0x1578   :  { %v6354_v47 = vrot.slane %v6320_v26, %v8038_v16  ;;  %v6358_v37 = vrot.slane %v6320_v26, %v8049_v19 }
0x1579   :  { %v6321_v38 = vadd.f32 %v6318_v54, %v6317_v58 }
0x157b   :  { %6322 = vadd.xlane.f32.xlu0 %v6321_v38 }
0x1608   :  { %v6323_v46 = vpop.xlane.xlu0 %6322 }
0x1609   :  { %v6324_v28 = vmul.f32 0.00390625, %v6323_v46 }
0x160b   :  { %v6325_v35 = vsub.f32 %v6317_v58, %v6324_v28  ;;  %v6326_v22 = vsub.f32 %v6318_v54, %v6324_v28 }
0x160d   :  { %v6327_v32 = vmul.f32 %v6325_v35, %v6325_v35  ;;  %v6328_v52 = vmul.f32 %v6326_v22, %v6326_v22 }
0x160f   :  { %v6329_v48 = vadd.f32 %v6328_v52, %v6327_v32 }
0x1611   :  { %6330 = vadd.xlane.f32.xlu1 %v6329_v48 }
0x169e   :  { %v6331_v62 = vpop.xlane.xlu1 %6330 }
0x169f   :  { %v6332_v9 = vmul.f32 0.00390625, %v6331_v62 }
0x16a1   :  { %v6333_v23 = vadd.f32 1e-05, %v6332_v9 }
0x16a3   :  { %7730 = vrsqrt.f32 %v6333_v23 }
0x16ad   :  { %v7731_v27 = vpop.eup %7730 }
0x16ae   :  { %v6335_v60 = vmul.f32 %v7731_v27, %v6325_v35  ;;  %v6336_v56 = vmul.f32 %v7731_v27, %v6326_v22 }
0x16b0   :  { %v6348_v4 = vmul.f32 %v6341_v14, %v6335_v60  ;;  %v6349_v10 = vmul.f32 %v6345_v33, %v6336_v56 }
0x16b2   :  { %v6361_v42 = vadd.f32 %v6354_v47, %v6348_v4  ;;  %v6362_v20 = vadd.f32 %v6358_v37, %v6349_v10 }
0x16b4   :  { %6363 = vst [vmem:[%s10429_s14] sm:$0xff] %v6361_v42  ;;  %6364 = vst [vmem:[%s10429_s14 + $0x8] sm:$0xff] %v6362_v20 }

</bundles_post_ra>
